<compile_context>
chip_gen: v6e
topology: v6e:2x2x1
jax: 0.10.0
libtpu: 0.0.40
codegen_flags: <defaults>
</compile_context>

<pallas_src>
import functools

import jax
import jax.numpy as jnp
from jax import lax
from jax.experimental import pallas as pl
from jax.experimental.pallas import tpu as pltpu


_VMEM_LIMIT = 32 * 1024 * 1024
_EPS = 1e-5
_SLOPE = 0.2


# ----------------------------------------------------------------------------
# Pallas kernel 1: matmul + bias (+ optional InstanceNorm) (+ optional Leaky)
#   a_ref : (HW, K)    bf16  -- im2col patches of one sample
#   w_ref : (K, OCp)   bf16  -- packed conv weight (OC padded to lane width)
#   b_ref : (1, OCp)   f32
#   o_ref : (HW, OCp)  bf16
# ----------------------------------------------------------------------------
def _conv_mm_kernel(a_ref, w_ref, b_ref, o_ref, *, norm, leaky):
    acc = jnp.dot(a_ref[...], w_ref[...],
                  preferred_element_type=jnp.float32)          # (HW, OCp) f32
    acc = acc + b_ref[...]
    if norm:  # InstanceNorm2d(affine=False), f32 stats over spatial axis.
        mean = jnp.mean(acc, axis=0, keepdims=True)
        cen = acc - mean
        var = jnp.mean(cen * cen, axis=0, keepdims=True)
        acc = cen * lax.rsqrt(var + _EPS)
    if leaky:
        acc = jnp.where(acc >= 0.0, acc, _SLOPE * acc)
    o_ref[...] = acc.astype(o_ref.dtype)


def conv_layer(a, w, b, *, norm, leaky, out_dtype=jnp.bfloat16):
    """a: (B, HW, K) bf16, w: (K, OCp) bf16, b: (1, OCp) f32 -> (B, HW, OCp)."""
    B, HW, K = a.shape
    OCp = w.shape[1]
    return pl.pallas_call(
        functools.partial(_conv_mm_kernel, norm=norm, leaky=leaky),
        out_shape=jax.ShapeDtypeStruct((B, HW, OCp), out_dtype),
        grid=(B,),
        in_specs=[
            pl.BlockSpec((None, HW, K), lambda i: (i, 0, 0)),
            pl.BlockSpec((K, OCp), lambda i: (0, 0)),
            pl.BlockSpec((1, OCp), lambda i: (0, 0)),
        ],
        out_specs=pl.BlockSpec((None, HW, OCp), lambda i: (i, 0, 0)),
        compiler_params=pltpu.CompilerParams(
            dimension_semantics=("parallel",),
            vmem_limit_bytes=_VMEM_LIMIT),
    )(a, w, b)


# ----------------------------------------------------------------------------
# Pallas kernel 2: 512 -> 1 head as a VPU multiply-reduce (OC = 1)
#   a_ref : (HW, K) bf16, w_ref : (1, K) bf16, b_ref : (1, 1) f32
# ----------------------------------------------------------------------------
def _head_kernel(a_ref, w_ref, b_ref, o_ref):
    a = a_ref[...].astype(jnp.float32)                         # (HW, K)
    w = w_ref[...].astype(jnp.float32)                         # (1, K)
    acc = jnp.sum(a * w, axis=1, keepdims=True) + b_ref[...]   # (HW, 1)
    o_ref[...] = acc.astype(o_ref.dtype)


def head_layer(a, w, b):
    B, HW, K = a.shape
    return pl.pallas_call(
        _head_kernel,
        out_shape=jax.ShapeDtypeStruct((B, HW, 1), jnp.float32),
        grid=(B,),
        in_specs=[
            pl.BlockSpec((None, HW, K), lambda i: (i, 0, 0)),
            pl.BlockSpec((1, K), lambda i: (0, 0)),
            pl.BlockSpec((1, 1), lambda i: (0, 0)),
        ],
        out_specs=pl.BlockSpec((None, HW, 1), lambda i: (i, 0, 0)),
        compiler_params=pltpu.CompilerParams(
            dimension_semantics=("parallel",),
            vmem_limit_bytes=_VMEM_LIMIT),
    )(a, w, b)


# ----------------------------------------------------------------------------
# im2col (plain-JAX glue, pure data movement; bf16 throughout)
# ----------------------------------------------------------------------------
def _im2col(x, stride, pads):
    """x: (B, H, W, C) -> (B, OH*OW, 16*C) patches for a 4x4 kernel."""
    pt, pb, pleft, pright = pads
    B, H, W, C = x.shape
    xp = jnp.pad(x, ((0, 0), (pt, pb), (pleft, pright), (0, 0)))
    Hp, Wp = H + pt + pb, W + pleft + pright
    OH = (Hp - 4) // stride + 1
    OW = (Wp - 4) // stride + 1
    cols = []
    for i in range(4):
        for j in range(4):
            cols.append(xp[:, i:i + stride * (OH - 1) + 1:stride,
                            j:j + stride * (OW - 1) + 1:stride, :])
    patches = jnp.stack(cols, axis=3)                  # (B, OH, OW, 16, C)
    return patches.reshape(B, OH * OW, 16 * C), OH, OW


# ----------------------------------------------------------------------------
# Parameters: raw OIHW (for the reference) + one-time packed bf16 matrices
# ----------------------------------------------------------------------------
def init_params(key, in_channels):
    chans = [(in_channels, 64), (64, 128), (128, 256), (256, 512)]
    params = {}
    keys = jax.random.split(key, 10)
    k = 0
    for idx, (cin, cout) in enumerate(chans, start=1):
        params[f"w{idx}"] = 0.02 * jax.random.normal(
            keys[k], (cout, cin, 4, 4), jnp.float32); k += 1
        params[f"b{idx}"] = 0.01 * jax.random.normal(
            keys[k], (cout,), jnp.float32); k += 1
    params["w5"] = 0.02 * jax.random.normal(keys[k], (1, 512, 4, 4), jnp.float32)
    k += 1
    params["b5"] = 0.01 * jax.random.normal(keys[k], (1,), jnp.float32)
    return params


def _round_up(n, m):
    return ((n + m - 1) // m) * m


def pack_params(params, in_channels):
    """One-time repack: OIHW f32 -> (KH*KW*ICp, OCp) bf16 + (1, OCp) f32."""
    def pack(w, b, ic_pad=None, oc_pad=None):
        OC, IC, KH, KW = w.shape
        wt = jnp.transpose(w, (2, 3, 1, 0))            # (KH, KW, IC, OC)
        if ic_pad is not None and ic_pad > IC:
            wt = jnp.pad(wt, ((0, 0), (0, 0), (0, ic_pad - IC), (0, 0)))
            IC = ic_pad
        if oc_pad is not None and oc_pad > OC:
            wt = jnp.pad(wt, ((0, 0), (0, 0), (0, 0), (0, oc_pad - OC)))
            b = jnp.pad(b, (0, oc_pad - OC))
            OC = oc_pad
        return (wt.reshape(KH * KW * IC, OC).astype(jnp.bfloat16),
                b.reshape(1, OC).astype(jnp.float32))

    pp = {}
    # conv1: IC padded to a sublane multiple (K = 16*ICp lane-dense) and
    # OC 64 -> 128 (lane-dense activation).  Padded channels are exactly zero
    # (zero weights + zero bias + LeakyReLU(0) == 0), so semantics are kept.
    icp1 = _round_up(in_channels, 8)
    pp["w1"], pp["b1"] = pack(params["w1"], params["b1"], ic_pad=icp1,
                              oc_pad=128)
    # conv2 consumes the 128-channel (zero-padded) conv1 output.
    pp["w2"], pp["b2"] = pack(params["w2"], params["b2"], ic_pad=128)
    pp["w3"], pp["b3"] = pack(params["w3"], params["b3"])
    pp["w4"], pp["b4"] = pack(params["w4"], params["b4"])
    # Head: keep OC = 1 as a lane-dense (1, K) row for the VPU reduce.
    w5, b5 = pack(params["w5"], params["b5"])          # (8192, 1), (1, 1)
    pp["w5"] = w5.reshape(1, -1)                       # (1, 8192) bf16
    pp["b5"] = b5                                      # (1, 1) f32
    pp["icp1"] = icp1
    return pp


# ----------------------------------------------------------------------------
# Discriminator forward
# ----------------------------------------------------------------------------
def discriminator_forward(img_nchw, pp, icp1):
    x = jnp.transpose(img_nchw, (0, 2, 3, 1)).astype(jnp.bfloat16)   # NHWC bf16
    B, _, _, C = x.shape
    if icp1 > C:  # zero-pad input channels so conv1's im2col K is lane-dense
        x = jnp.pad(x, ((0, 0), (0, 0), (0, 0), (0, icp1 - C)))

    # Block 1: conv(4x4, s=2, p=1) + LeakyReLU (no norm), OC padded to 128.
    a, oh, ow = _im2col(x, 2, (1, 1, 1, 1))
    x = conv_layer(a, pp["w1"], pp["b1"], norm=False, leaky=True)
    x = x.reshape(B, oh, ow, -1)

    # Blocks 2-4: conv(4x4, s=2, p=1) + InstanceNorm2d + LeakyReLU (all fused).
    for idx in (2, 3, 4):
        a, oh, ow = _im2col(x, 2, (1, 1, 1, 1))
        x = conv_layer(a, pp[f"w{idx}"], pp[f"b{idx}"], norm=True, leaky=True)
        x = x.reshape(B, oh, ow, -1)

    # ZeroPad2d((1,0,1,0)) + Conv2d(512, 1, 4, padding=1)
    #   -> combined asymmetric pad: top=2, bottom=1, left=2, right=1, stride=1.
    a, oh, ow = _im2col(x, 1, (2, 1, 2, 1))
    y = head_layer(a, pp["w5"], pp["b5"])              # (B, OH*OW, 1) f32
    y = y.reshape(B, oh, ow, 1)
    return jnp.transpose(y, (0, 3, 1, 2))              # back to NCHW


# ----------------------------------------------------------------------------
# Pure-JAX f32 reference (for correctness check)
# ----------------------------------------------------------------------------
def _ref_conv(x, w, b, stride, pads):
    y = lax.conv_general_dilated(
        x, w, window_strides=(stride, stride), padding=pads,
        dimension_numbers=("NCHW", "OIHW", "NCHW"))
    return y + b.reshape(1, -1, 1, 1)


def ref_forward(img, p):
    x = _ref_conv(img, p["w1"], p["b1"], 2, [(1, 1), (1, 1)])
    x = jnp.where(x >= 0, x, 0.2 * x)
    for idx in (2, 3, 4):
        x = _ref_conv(x, p[f"w{idx}"], p[f"b{idx}"], 2, [(1, 1), (1, 1)])
        mean = jnp.mean(x, axis=(2, 3), keepdims=True)
        var = jnp.mean((x - mean) ** 2, axis=(2, 3), keepdims=True)
        x = (x - mean) * lax.rsqrt(var + 1e-5)
        x = jnp.where(x >= 0, x, 0.2 * x)
    x = _ref_conv(x, p["w5"], p["b5"], 1, [(2, 1), (2, 1)])
    return x


# ----------------------------------------------------------------------------
if __name__ == "__main__":
    key = jax.random.PRNGKey(0)
    k_img, k_par = jax.random.split(key)

    B, C, H, W = 2, 3, 32, 32                      # input_shape = (3, 32, 32)
    img = jax.random.normal(k_img, (B, C, H, W), jnp.float32)
    params = init_params(k_par, C)
    packed = pack_params(params, C)                # weight repack hoisted out
    icp1 = int(packed.pop("icp1"))

    fwd = jax.jit(functools.partial(discriminator_forward, icp1=icp1))
    out = jax.block_until_ready(fwd(img, packed))

    expected_shape = (B, 1, H // 2 ** 4, W // 2 ** 4)
    assert out.shape == expected_shape, (out.shape, expected_shape)

    ref = jax.block_until_ready(jax.jit(ref_forward)(img, params))
    # bf16 MXU operands / bf16 activation storage (f32 accumulation and
    # InstanceNorm statistics) -> relaxed tolerance vs. the f32 reference.
    max_err = float(jnp.max(jnp.abs(out - ref)))
    assert jnp.allclose(out, ref, rtol=5e-2, atol=5e-2), max_err

    print("KERNEL_OK")
</pallas_src>

<mosaic_0001>
module attributes {stable_mosaic.version = 11 : i64} {
  func.func @_conv_mm_kernel(%arg0: i32, %arg1: memref<1x256x128xbf16, #tpu.memory_space<vmem>>, %arg2: memref<128x128xbf16, #tpu.memory_space<vmem>>, %arg3: memref<1x128xf32, #tpu.memory_space<vmem>>, %arg4: memref<1x256x128xbf16, #tpu.memory_space<vmem>>) attributes {dimension_semantics = [#tpu.dimension_semantics<parallel>], iteration_bounds = array<i64: 2>, scalar_prefetch = 0 : i64, scratch_operands = 0 : i64, tpu.core_type = #tpu.core_type<tc>, window_params = [{transform_indices = @transform_0, window_bounds = array<i64: 1, 256, 128>}, {pipeline_mode = #tpu.pipeline_mode<synchronous>, transform_indices = @transform_1, window_bounds = array<i64: 128, 128>}, {pipeline_mode = #tpu.pipeline_mode<synchronous>, transform_indices = @transform_2, window_bounds = array<i64: 1, 128>}, {transform_indices = @transform_3, window_bounds = array<i64: 1, 256, 128>}]} {
    %c0 = arith.constant 0 : index
    %c0_0 = arith.constant 0 : index
    %c0_1 = arith.constant 0 : index
    %0 = vector.load %arg1[%c0, %c0_0, %c0_1] : memref<1x256x128xbf16, #tpu.memory_space<vmem>>, vector<1x256x128xbf16>
    %1 = vector.shape_cast %0 : vector<1x256x128xbf16> to vector<256x128xbf16>
    %c0_2 = arith.constant 0 : index
    %c0_3 = arith.constant 0 : index
    %2 = vector.load %arg2[%c0_2, %c0_3] : memref<128x128xbf16, #tpu.memory_space<vmem>>, vector<128x128xbf16>
    %cst = arith.constant dense<0.000000e+00> : vector<256x128xf32>
    %3 = tpu.matmul %1, %2, %cst {dimension_numbers = #tpu.dot_dimension_numbers<[1], [0], [0], [1], [0, 0, 1, 1], [], []>} : vector<256x128xbf16>, vector<128x128xbf16>, vector<256x128xf32> -> vector<256x128xf32>
    %c0_4 = arith.constant 0 : index
    %c0_5 = arith.constant 0 : index
    %4 = vector.load %arg3[%c0_4, %c0_5] : memref<1x128xf32, #tpu.memory_space<vmem>>, vector<1x128xf32>
    %5 = vector.broadcast %4 : vector<1x128xf32> to vector<256x128xf32>
    %6 = arith.addf %3, %5 : vector<256x128xf32>
    %cst_6 = arith.constant 0.000000e+00 : f32
    %7 = vector.broadcast %cst_6 : f32 to vector<256x128xf32>
    %8 = arith.cmpf oge, %6, %7 : vector<256x128xf32>
    %cst_7 = arith.constant 2.000000e-01 : f32
    %9 = vector.broadcast %cst_7 : f32 to vector<256x128xf32>
    %10 = arith.mulf %9, %6 : vector<256x128xf32>
    %11 = arith.select %8, %6, %10 : vector<256x128xi1>, vector<256x128xf32>
    %12 = arith.truncf %11 : vector<256x128xf32> to vector<256x128xbf16>
    %c0_8 = arith.constant 0 : index
    %c0_9 = arith.constant 0 : index
    %c0_10 = arith.constant 0 : index
    %13 = vector.load %arg4[%c0_8, %c0_9, %c0_10] : memref<1x256x128xbf16, #tpu.memory_space<vmem>>, vector<1x256x128xbf16>
    %14 = vector.shape_cast %13 : vector<1x256x128xbf16> to vector<256x128xbf16>
    %15 = vector.shape_cast %12 : vector<256x128xbf16> to vector<1x256x128xbf16>
    tpu.vector_store %arg4[%c0_8, %c0_9, %c0_10], %15 {strides = array<i32>} : memref<1x256x128xbf16, #tpu.memory_space<vmem>>, vector<1x256x128xbf16>,
    return
  }
  func.func @transform_0(%arg0: i32) -> (i32, i32, i32) {
    %c0_i32 = arith.constant 0 : i32
    %c0_i32_0 = arith.constant 0 : i32
    %c0_i32_1 = arith.constant 0 : i32
    return %arg0, %c0_i32, %c0_i32_0 : i32, i32, i32
  }
  func.func @transform_1(%arg0: i32) -> (i32, i32) {
    %c0_i32 = arith.constant 0 : i32
    %c0_i32_0 = arith.constant 0 : i32
    %c0_i32_1 = arith.constant 0 : i32
    return %c0_i32, %c0_i32_0 : i32, i32
  }
  func.func @transform_2(%arg0: i32) -> (i32, i32) {
    %c0_i32 = arith.constant 0 : i32
    %c0_i32_0 = arith.constant 0 : i32
    %c0_i32_1 = arith.constant 0 : i32
    return %c0_i32, %c0_i32_0 : i32, i32
  }
  func.func @transform_3(%arg0: i32) -> (i32, i32, i32) {
    %c0_i32 = arith.constant 0 : i32
    %c0_i32_0 = arith.constant 0 : i32
    %c0_i32_1 = arith.constant 0 : i32
    return %arg0, %c0_i32, %c0_i32_0 : i32, i32, i32
  }
}

module attributes {stable_mosaic.version = 11 : i64} {
  func.func @_conv_mm_kernel(%arg0: i32, %arg1: memref<1x64x2048xbf16, #tpu.memory_space<vmem>>, %arg2: memref<2048x128xbf16, #tpu.memory_space<vmem>>, %arg3: memref<1x128xf32, #tpu.memory_space<vmem>>, %arg4: memref<1x64x128xbf16, #tpu.memory_space<vmem>>) attributes {dimension_semantics = [#tpu.dimension_semantics<parallel>], iteration_bounds = array<i64: 2>, scalar_prefetch = 0 : i64, scratch_operands = 0 : i64, tpu.core_type = #tpu.core_type<tc>, window_params = [{transform_indices = @transform_0, window_bounds = array<i64: 1, 64, 2048>}, {pipeline_mode = #tpu.pipeline_mode<synchronous>, transform_indices = @transform_1, window_bounds = array<i64: 2048, 128>}, {pipeline_mode = #tpu.pipeline_mode<synchronous>, transform_indices = @transform_2, window_bounds = array<i64: 1, 128>}, {transform_indices = @transform_3, window_bounds = array<i64: 1, 64, 128>}]} {
    %c0 = arith.constant 0 : index
    %c0_0 = arith.constant 0 : index
    %c0_1 = arith.constant 0 : index
    %0 = vector.load %arg1[%c0, %c0_0, %c0_1] : memref<1x64x2048xbf16, #tpu.memory_space<vmem>>, vector<1x64x2048xbf16>
    %1 = vector.shape_cast %0 : vector<1x64x2048xbf16> to vector<64x2048xbf16>
    %c0_2 = arith.constant 0 : index
    %c0_3 = arith.constant 0 : index
    %2 = vector.load %arg2[%c0_2, %c0_3] : memref<2048x128xbf16, #tpu.memory_space<vmem>>, vector<2048x128xbf16>
    %cst = arith.constant dense<0.000000e+00> : vector<64x128xf32>
    %3 = tpu.matmul %1, %2, %cst {dimension_numbers = #tpu.dot_dimension_numbers<[1], [0], [0], [1], [0, 0, 1, 1], [], []>} : vector<64x2048xbf16>, vector<2048x128xbf16>, vector<64x128xf32> -> vector<64x128xf32>
    %c0_4 = arith.constant 0 : index
    %c0_5 = arith.constant 0 : index
    %4 = vector.load %arg3[%c0_4, %c0_5] : memref<1x128xf32, #tpu.memory_space<vmem>>, vector<1x128xf32>
    %5 = vector.broadcast %4 : vector<1x128xf32> to vector<64x128xf32>
    %6 = arith.addf %3, %5 : vector<64x128xf32>
    %cst_6 = arith.constant dense<0.000000e+00> : vector<128xf32>
    %7 = vector.multi_reduction <add>, %6, %cst_6 [0] : vector<64x128xf32> to vector<128xf32>
    %8 = vector.shape_cast %7 : vector<128xf32> to vector<1x128xf32>
    %cst_7 = arith.constant 6.400000e+01 : f32
    %9 = vector.broadcast %cst_7 : f32 to vector<1x128xf32>
    %10 = arith.divf %8, %9 : vector<1x128xf32>
    %11 = vector.broadcast %10 : vector<1x128xf32> to vector<64x128xf32>
    %12 = arith.subf %6, %11 : vector<64x128xf32>
    %13 = arith.mulf %12, %12 : vector<64x128xf32>
    %cst_8 = arith.constant dense<0.000000e+00> : vector<128xf32>
    %14 = vector.multi_reduction <add>, %13, %cst_8 [0] : vector<64x128xf32> to vector<128xf32>
    %15 = vector.shape_cast %14 : vector<128xf32> to vector<1x128xf32>
    %cst_9 = arith.constant 6.400000e+01 : f32
    %16 = vector.broadcast %cst_9 : f32 to vector<1x128xf32>
    %17 = arith.divf %15, %16 : vector<1x128xf32>
    %cst_10 = arith.constant 9.99999974E-6 : f32
    %18 = vector.broadcast %cst_10 : f32 to vector<1x128xf32>
    %19 = arith.addf %17, %18 : vector<1x128xf32>
    %20 = math.rsqrt %19 : vector<1x128xf32>
    %21 = vector.broadcast %20 : vector<1x128xf32> to vector<64x128xf32>
    %22 = arith.mulf %12, %21 : vector<64x128xf32>
    %cst_11 = arith.constant 0.000000e+00 : f32
    %23 = vector.broadcast %cst_11 : f32 to vector<64x128xf32>
    %24 = arith.cmpf oge, %22, %23 : vector<64x128xf32>
    %cst_12 = arith.constant 2.000000e-01 : f32
    %25 = vector.broadcast %cst_12 : f32 to vector<64x128xf32>
    %26 = arith.mulf %25, %22 : vector<64x128xf32>
    %27 = arith.select %24, %22, %26 : vector<64x128xi1>, vector<64x128xf32>
    %28 = arith.truncf %27 : vector<64x128xf32> to vector<64x128xbf16>
    %c0_13 = arith.constant 0 : index
    %c0_14 = arith.constant 0 : index
    %c0_15 = arith.constant 0 : index
    %29 = vector.load %arg4[%c0_13, %c0_14, %c0_15] : memref<1x64x128xbf16, #tpu.memory_space<vmem>>, vector<1x64x128xbf16>
    %30 = vector.shape_cast %29 : vector<1x64x128xbf16> to vector<64x128xbf16>
    %31 = vector.shape_cast %28 : vector<64x128xbf16> to vector<1x64x128xbf16>
    tpu.vector_store %arg4[%c0_13, %c0_14, %c0_15], %31 {strides = array<i32>} : memref<1x64x128xbf16, #tpu.memory_space<vmem>>, vector<1x64x128xbf16>,
    return
  }
  func.func @transform_0(%arg0: i32) -> (i32, i32, i32) {
    %c0_i32 = arith.constant 0 : i32
    %c0_i32_0 = arith.constant 0 : i32
    %c0_i32_1 = arith.constant 0 : i32
    return %arg0, %c0_i32, %c0_i32_0 : i32, i32, i32
  }
  func.func @transform_1(%arg0: i32) -> (i32, i32) {
    %c0_i32 = arith.constant 0 : i32
    %c0_i32_0 = arith.constant 0 : i32
    %c0_i32_1 = arith.constant 0 : i32
    return %c0_i32, %c0_i32_0 : i32, i32
  }
  func.func @transform_2(%arg0: i32) -> (i32, i32) {
    %c0_i32 = arith.constant 0 : i32
    %c0_i32_0 = arith.constant 0 : i32
    %c0_i32_1 = arith.constant 0 : i32
    return %c0_i32, %c0_i32_0 : i32, i32
  }
  func.func @transform_3(%arg0: i32) -> (i32, i32, i32) {
    %c0_i32 = arith.constant 0 : i32
    %c0_i32_0 = arith.constant 0 : i32
    %c0_i32_1 = arith.constant 0 : i32
    return %arg0, %c0_i32, %c0_i32_0 : i32, i32, i32
  }
}

module attributes {stable_mosaic.version = 11 : i64} {
  func.func @_conv_mm_kernel(%arg0: i32, %arg1: memref<1x16x2048xbf16, #tpu.memory_space<vmem>>, %arg2: memref<2048x256xbf16, #tpu.memory_space<vmem>>, %arg3: memref<1x256xf32, #tpu.memory_space<vmem>>, %arg4: memref<1x16x256xbf16, #tpu.memory_space<vmem>>) attributes {dimension_semantics = [#tpu.dimension_semantics<parallel>], iteration_bounds = array<i64: 2>, scalar_prefetch = 0 : i64, scratch_operands = 0 : i64, tpu.core_type = #tpu.core_type<tc>, window_params = [{transform_indices = @transform_0, window_bounds = array<i64: 1, 16, 2048>}, {pipeline_mode = #tpu.pipeline_mode<synchronous>, transform_indices = @transform_1, window_bounds = array<i64: 2048, 256>}, {pipeline_mode = #tpu.pipeline_mode<synchronous>, transform_indices = @transform_2, window_bounds = array<i64: 1, 256>}, {transform_indices = @transform_3, window_bounds = array<i64: 1, 16, 256>}]} {
    %c0 = arith.constant 0 : index
    %c0_0 = arith.constant 0 : index
    %c0_1 = arith.constant 0 : index
    %0 = vector.load %arg1[%c0, %c0_0, %c0_1] : memref<1x16x2048xbf16, #tpu.memory_space<vmem>>, vector<1x16x2048xbf16>
    %1 = vector.shape_cast %0 : vector<1x16x2048xbf16> to vector<16x2048xbf16>
    %c0_2 = arith.constant 0 : index
    %c0_3 = arith.constant 0 : index
    %2 = vector.load %arg2[%c0_2, %c0_3] : memref<2048x256xbf16, #tpu.memory_space<vmem>>, vector<2048x256xbf16>
    %cst = arith.constant dense<0.000000e+00> : vector<16x256xf32>
    %3 = tpu.matmul %1, %2, %cst {dimension_numbers = #tpu.dot_dimension_numbers<[1], [0], [0], [1], [0, 0, 1, 1], [], []>} : vector<16x2048xbf16>, vector<2048x256xbf16>, vector<16x256xf32> -> vector<16x256xf32>
    %c0_4 = arith.constant 0 : index
    %c0_5 = arith.constant 0 : index
    %4 = vector.load %arg3[%c0_4, %c0_5] : memref<1x256xf32, #tpu.memory_space<vmem>>, vector<1x256xf32>
    %5 = vector.broadcast %4 : vector<1x256xf32> to vector<16x256xf32>
    %6 = arith.addf %3, %5 : vector<16x256xf32>
    %cst_6 = arith.constant dense<0.000000e+00> : vector<256xf32>
    %7 = vector.multi_reduction <add>, %6, %cst_6 [0] : vector<16x256xf32> to vector<256xf32>
    %8 = vector.shape_cast %7 : vector<256xf32> to vector<1x256xf32>
    %cst_7 = arith.constant 1.600000e+01 : f32
    %9 = vector.broadcast %cst_7 : f32 to vector<1x256xf32>
    %10 = arith.divf %8, %9 : vector<1x256xf32>
    %11 = vector.broadcast %10 : vector<1x256xf32> to vector<16x256xf32>
    %12 = arith.subf %6, %11 : vector<16x256xf32>
    %13 = arith.mulf %12, %12 : vector<16x256xf32>
    %cst_8 = arith.constant dense<0.000000e+00> : vector<256xf32>
    %14 = vector.multi_reduction <add>, %13, %cst_8 [0] : vector<16x256xf32> to vector<256xf32>
    %15 = vector.shape_cast %14 : vector<256xf32> to vector<1x256xf32>
    %cst_9 = arith.constant 1.600000e+01 : f32
    %16 = vector.broadcast %cst_9 : f32 to vector<1x256xf32>
    %17 = arith.divf %15, %16 : vector<1x256xf32>
    %cst_10 = arith.constant 9.99999974E-6 : f32
    %18 = vector.broadcast %cst_10 : f32 to vector<1x256xf32>
    %19 = arith.addf %17, %18 : vector<1x256xf32>
    %20 = math.rsqrt %19 : vector<1x256xf32>
    %21 = vector.broadcast %20 : vector<1x256xf32> to vector<16x256xf32>
    %22 = arith.mulf %12, %21 : vector<16x256xf32>
    %cst_11 = arith.constant 0.000000e+00 : f32
    %23 = vector.broadcast %cst_11 : f32 to vector<16x256xf32>
    %24 = arith.cmpf oge, %22, %23 : vector<16x256xf32>
    %cst_12 = arith.constant 2.000000e-01 : f32
    %25 = vector.broadcast %cst_12 : f32 to vector<16x256xf32>
    %26 = arith.mulf %25, %22 : vector<16x256xf32>
    %27 = arith.select %24, %22, %26 : vector<16x256xi1>, vector<16x256xf32>
    %28 = arith.truncf %27 : vector<16x256xf32> to vector<16x256xbf16>
    %c0_13 = arith.constant 0 : index
    %c0_14 = arith.constant 0 : index
    %c0_15 = arith.constant 0 : index
    %29 = vector.load %arg4[%c0_13, %c0_14, %c0_15] : memref<1x16x256xbf16, #tpu.memory_space<vmem>>, vector<1x16x256xbf16>
    %30 = vector.shape_cast %29 : vector<1x16x256xbf16> to vector<16x256xbf16>
    %31 = vector.shape_cast %28 : vector<16x256xbf16> to vector<1x16x256xbf16>
    tpu.vector_store %arg4[%c0_13, %c0_14, %c0_15], %31 {strides = array<i32>} : memref<1x16x256xbf16, #tpu.memory_space<vmem>>, vector<1x16x256xbf16>,
    return
  }
  func.func @transform_0(%arg0: i32) -> (i32, i32, i32) {
    %c0_i32 = arith.constant 0 : i32
    %c0_i32_0 = arith.constant 0 : i32
    %c0_i32_1 = arith.constant 0 : i32
    return %arg0, %c0_i32, %c0_i32_0 : i32, i32, i32
  }
  func.func @transform_1(%arg0: i32) -> (i32, i32) {
    %c0_i32 = arith.constant 0 : i32
    %c0_i32_0 = arith.constant 0 : i32
    %c0_i32_1 = arith.constant 0 : i32
    return %c0_i32, %c0_i32_0 : i32, i32
  }
  func.func @transform_2(%arg0: i32) -> (i32, i32) {
    %c0_i32 = arith.constant 0 : i32
    %c0_i32_0 = arith.constant 0 : i32
    %c0_i32_1 = arith.constant 0 : i32
    return %c0_i32, %c0_i32_0 : i32, i32
  }
  func.func @transform_3(%arg0: i32) -> (i32, i32, i32) {
    %c0_i32 = arith.constant 0 : i32
    %c0_i32_0 = arith.constant 0 : i32
    %c0_i32_1 = arith.constant 0 : i32
    return %arg0, %c0_i32, %c0_i32_0 : i32, i32, i32
  }
}

module attributes {stable_mosaic.version = 11 : i64} {
  func.func @_conv_mm_kernel(%arg0: i32, %arg1: memref<1x4x4096xbf16, #tpu.memory_space<vmem>>, %arg2: memref<4096x512xbf16, #tpu.memory_space<vmem>>, %arg3: memref<1x512xf32, #tpu.memory_space<vmem>>, %arg4: memref<1x4x512xbf16, #tpu.memory_space<vmem>>) attributes {dimension_semantics = [#tpu.dimension_semantics<parallel>], iteration_bounds = array<i64: 2>, scalar_prefetch = 0 : i64, scratch_operands = 0 : i64, tpu.core_type = #tpu.core_type<tc>, window_params = [{transform_indices = @transform_0, window_bounds = array<i64: 1, 4, 4096>}, {pipeline_mode = #tpu.pipeline_mode<synchronous>, transform_indices = @transform_1, window_bounds = array<i64: 4096, 512>}, {pipeline_mode = #tpu.pipeline_mode<synchronous>, transform_indices = @transform_2, window_bounds = array<i64: 1, 512>}, {transform_indices = @transform_3, window_bounds = array<i64: 1, 4, 512>}]} {
    %c0 = arith.constant 0 : index
    %c0_0 = arith.constant 0 : index
    %c0_1 = arith.constant 0 : index
    %0 = vector.load %arg1[%c0, %c0_0, %c0_1] : memref<1x4x4096xbf16, #tpu.memory_space<vmem>>, vector<1x4x4096xbf16>
    %1 = vector.shape_cast %0 : vector<1x4x4096xbf16> to vector<4x4096xbf16>
    %c0_2 = arith.constant 0 : index
    %c0_3 = arith.constant 0 : index
    %2 = vector.load %arg2[%c0_2, %c0_3] : memref<4096x512xbf16, #tpu.memory_space<vmem>>, vector<4096x512xbf16>
    %cst = arith.constant dense<0.000000e+00> : vector<4x512xf32>
    %3 = tpu.matmul %1, %2, %cst {dimension_numbers = #tpu.dot_dimension_numbers<[1], [0], [0], [1], [0, 0, 1, 1], [], []>} : vector<4x4096xbf16>, vector<4096x512xbf16>, vector<4x512xf32> -> vector<4x512xf32>
    %c0_4 = arith.constant 0 : index
    %c0_5 = arith.constant 0 : index
    %4 = vector.load %arg3[%c0_4, %c0_5] : memref<1x512xf32, #tpu.memory_space<vmem>>, vector<1x512xf32>
    %5 = vector.broadcast %4 : vector<1x512xf32> to vector<4x512xf32>
    %6 = arith.addf %3, %5 : vector<4x512xf32>
    %cst_6 = arith.constant dense<0.000000e+00> : vector<512xf32>
    %7 = vector.multi_reduction <add>, %6, %cst_6 [0] : vector<4x512xf32> to vector<512xf32>
    %8 = vector.shape_cast %7 : vector<512xf32> to vector<1x512xf32>
    %cst_7 = arith.constant 4.000000e+00 : f32
    %9 = vector.broadcast %cst_7 : f32 to vector<1x512xf32>
    %10 = arith.divf %8, %9 : vector<1x512xf32>
    %11 = vector.broadcast %10 : vector<1x512xf32> to vector<4x512xf32>
    %12 = arith.subf %6, %11 : vector<4x512xf32>
    %13 = arith.mulf %12, %12 : vector<4x512xf32>
    %cst_8 = arith.constant dense<0.000000e+00> : vector<512xf32>
    %14 = vector.multi_reduction <add>, %13, %cst_8 [0] : vector<4x512xf32> to vector<512xf32>
    %15 = vector.shape_cast %14 : vector<512xf32> to vector<1x512xf32>
    %cst_9 = arith.constant 4.000000e+00 : f32
    %16 = vector.broadcast %cst_9 : f32 to vector<1x512xf32>
    %17 = arith.divf %15, %16 : vector<1x512xf32>
    %cst_10 = arith.constant 9.99999974E-6 : f32
    %18 = vector.broadcast %cst_10 : f32 to vector<1x512xf32>
    %19 = arith.addf %17, %18 : vector<1x512xf32>
    %20 = math.rsqrt %19 : vector<1x512xf32>
    %21 = vector.broadcast %20 : vector<1x512xf32> to vector<4x512xf32>
    %22 = arith.mulf %12, %21 : vector<4x512xf32>
    %cst_11 = arith.constant 0.000000e+00 : f32
    %23 = vector.broadcast %cst_11 : f32 to vector<4x512xf32>
    %24 = arith.cmpf oge, %22, %23 : vector<4x512xf32>
    %cst_12 = arith.constant 2.000000e-01 : f32
    %25 = vector.broadcast %cst_12 : f32 to vector<4x512xf32>
    %26 = arith.mulf %25, %22 : vector<4x512xf32>
    %27 = arith.select %24, %22, %26 : vector<4x512xi1>, vector<4x512xf32>
    %28 = arith.truncf %27 : vector<4x512xf32> to vector<4x512xbf16>
    %c0_13 = arith.constant 0 : index
    %c0_14 = arith.constant 0 : index
    %c0_15 = arith.constant 0 : index
    %29 = vector.load %arg4[%c0_13, %c0_14, %c0_15] : memref<1x4x512xbf16, #tpu.memory_space<vmem>>, vector<1x4x512xbf16>
    %30 = vector.shape_cast %29 : vector<1x4x512xbf16> to vector<4x512xbf16>
    %31 = vector.shape_cast %28 : vector<4x512xbf16> to vector<1x4x512xbf16>
    tpu.vector_store %arg4[%c0_13, %c0_14, %c0_15], %31 {strides = array<i32>} : memref<1x4x512xbf16, #tpu.memory_space<vmem>>, vector<1x4x512xbf16>,
    return
  }
  func.func @transform_0(%arg0: i32) -> (i32, i32, i32) {
    %c0_i32 = arith.constant 0 : i32
    %c0_i32_0 = arith.constant 0 : i32
    %c0_i32_1 = arith.constant 0 : i32
    return %arg0, %c0_i32, %c0_i32_0 : i32, i32, i32
  }
  func.func @transform_1(%arg0: i32) -> (i32, i32) {
    %c0_i32 = arith.constant 0 : i32
    %c0_i32_0 = arith.constant 0 : i32
    %c0_i32_1 = arith.constant 0 : i32
    return %c0_i32, %c0_i32_0 : i32, i32
  }
  func.func @transform_2(%arg0: i32) -> (i32, i32) {
    %c0_i32 = arith.constant 0 : i32
    %c0_i32_0 = arith.constant 0 : i32
    %c0_i32_1 = arith.constant 0 : i32
    return %c0_i32, %c0_i32_0 : i32, i32
  }
  func.func @transform_3(%arg0: i32) -> (i32, i32, i32) {
    %c0_i32 = arith.constant 0 : i32
    %c0_i32_0 = arith.constant 0 : i32
    %c0_i32_1 = arith.constant 0 : i32
    return %arg0, %c0_i32, %c0_i32_0 : i32, i32, i32
  }
}

module attributes {stable_mosaic.version = 11 : i64} {
  func.func @_head_kernel(%arg0: i32, %arg1: memref<1x4x8192xbf16, #tpu.memory_space<vmem>>, %arg2: memref<1x8192xbf16, #tpu.memory_space<vmem>>, %arg3: memref<1x1xf32, #tpu.memory_space<vmem>>, %arg4: memref<1x4x1xf32, #tpu.memory_space<vmem>>) attributes {dimension_semantics = [#tpu.dimension_semantics<parallel>], iteration_bounds = array<i64: 2>, scalar_prefetch = 0 : i64, scratch_operands = 0 : i64, tpu.core_type = #tpu.core_type<tc>, window_params = [{transform_indices = @transform_0, window_bounds = array<i64: 1, 4, 8192>}, {pipeline_mode = #tpu.pipeline_mode<synchronous>, transform_indices = @transform_1, window_bounds = array<i64: 1, 8192>}, {pipeline_mode = #tpu.pipeline_mode<synchronous>, transform_indices = @transform_2, window_bounds = array<i64: 1, 1>}, {transform_indices = @transform_3, window_bounds = array<i64: 1, 4, 1>}]} {
    %c0 = arith.constant 0 : index
    %c0_0 = arith.constant 0 : index
    %c0_1 = arith.constant 0 : index
    %0 = vector.load %arg1[%c0, %c0_0, %c0_1] : memref<1x4x8192xbf16, #tpu.memory_space<vmem>>, vector<1x4x8192xbf16>
    %1 = vector.shape_cast %0 : vector<1x4x8192xbf16> to vector<4x8192xbf16>
    %2 = arith.extf %1 : vector<4x8192xbf16> to vector<4x8192xf32>
    %c0_2 = arith.constant 0 : index
    %c0_3 = arith.constant 0 : index
    %3 = vector.load %arg2[%c0_2, %c0_3] : memref<1x8192xbf16, #tpu.memory_space<vmem>>, vector<1x8192xbf16>
    %4 = arith.extf %3 : vector<1x8192xbf16> to vector<1x8192xf32>
    %5 = vector.broadcast %4 : vector<1x8192xf32> to vector<4x8192xf32>
    %6 = arith.mulf %2, %5 : vector<4x8192xf32>
    %cst = arith.constant dense<0.000000e+00> : vector<4xf32>
    %7 = vector.multi_reduction <add>, %6, %cst [1] : vector<4x8192xf32> to vector<4xf32>
    %8 = vector.shape_cast %7 : vector<4xf32> to vector<4x1xf32>
    %c0_4 = arith.constant 0 : index
    %c0_5 = arith.constant 0 : index
    %9 = vector.load %arg3[%c0_4, %c0_5] : memref<1x1xf32, #tpu.memory_space<vmem>>, vector<1x1xf32>
    %10 = vector.broadcast %9 : vector<1x1xf32> to vector<4x1xf32>
    %11 = arith.addf %8, %10 : vector<4x1xf32>
    %c0_6 = arith.constant 0 : index
    %c0_7 = arith.constant 0 : index
    %c0_8 = arith.constant 0 : index
    %12 = vector.load %arg4[%c0_6, %c0_7, %c0_8] : memref<1x4x1xf32, #tpu.memory_space<vmem>>, vector<1x4x1xf32>
    %13 = vector.shape_cast %12 : vector<1x4x1xf32> to vector<4x1xf32>
    %14 = vector.shape_cast %11 : vector<4x1xf32> to vector<1x4x1xf32>
    tpu.vector_store %arg4[%c0_6, %c0_7, %c0_8], %14 {strides = array<i32>} : memref<1x4x1xf32, #tpu.memory_space<vmem>>, vector<1x4x1xf32>,
    return
  }
  func.func @transform_0(%arg0: i32) -> (i32, i32, i32) {
    %c0_i32 = arith.constant 0 : i32
    %c0_i32_0 = arith.constant 0 : i32
    %c0_i32_1 = arith.constant 0 : i32
    return %arg0, %c0_i32, %c0_i32_0 : i32, i32, i32
  }
  func.func @transform_1(%arg0: i32) -> (i32, i32) {
    %c0_i32 = arith.constant 0 : i32
    %c0_i32_0 = arith.constant 0 : i32
    %c0_i32_1 = arith.constant 0 : i32
    return %c0_i32, %c0_i32_0 : i32, i32
  }
  func.func @transform_2(%arg0: i32) -> (i32, i32) {
    %c0_i32 = arith.constant 0 : i32
    %c0_i32_0 = arith.constant 0 : i32
    %c0_i32_1 = arith.constant 0 : i32
    return %c0_i32, %c0_i32_0 : i32, i32
  }
  func.func @transform_3(%arg0: i32) -> (i32, i32, i32) {
    %c0_i32 = arith.constant 0 : i32
    %c0_i32_0 = arith.constant 0 : i32
    %c0_i32_1 = arith.constant 0 : i32
    return %arg0, %c0_i32, %c0_i32_0 : i32, i32, i32
  }
}

</mosaic_0001>

<bundles_post_ra>
// kernel: discriminator_forward.5
= control target key start
LH: loop header
LB: loop body
LE: loop exit
PB: predicated region body
PF: predicated region fallthrough
CT: control target
= control target key end

     0   :  { %s1188_s12 = smov 0   ;;  %s1313_s0 = inlined_call_operand.vmem [shape: bf16[2,256,128], index: 0, kind: input, shape index: {}]   ;;  %s1314_s1 = inlined_call_operand.vmem [shape: bf16[128,128], index: 1, kind: input, shape index: {}]   ;;  %s1315_s2 = inlined_call_operand.vmem [shape: f32[1,128], index: 2, kind: input, shape index: {}]   ;;  %s1316_s3 = inlined_call_operand.vmem [shape: bf16[2,256,128], index: 3, kind: output, shape index: {}]  }
   0x1 LB: > { %s843_s13 = sadd.s32 4294967295, %s1166_s12   ;;  %p847_p0 = scmp.ge.s32.totalorder %s1166_s12, 1  ;;  %s1166_s12 = sphi %s1188_s12, %s13_s12  }
   0x2   : > { %p137_p1 = scmp.lt.s32.totalorder %s1166_s12, 3 }
   0x4   : > { %p138_p2 = pnand %p847_p0, %p137_p1 }
   0x5   : > { %p161_p3 = scmp.lt.s32.totalorder (!%p138_p2), %s843_s13, 1 }
   0x6   : > { %141 = sbr.rel (%p138_p2) target bundleno = 279 (0x117), region = 32 }
   0xb   : > { %v1136_v0 = vld [vmem:[%s1314_s1 + $0x38] sm:$0xff]   ;;  %v1137_v1 = vld [vmem:[%s1314_s1 + $0x30] sm:$0xff]   ;;  %s1318_s13 = smov (!%p161_p3, %s843_s13), 1  ;;  %v1138_v2 = vld [vmem:[%s1314_s1 + $0x28] sm:$0xff]  }
   0xc   : > { %1064 = vmatprep.subr.bf16.mxu0 %v1136_v0  ;;  %1112 = vmatprep.subr.bf16.mxu1 %v1136_v0  ;;  %s911_s20 = sshll.u32 %s1318_s13, 7  ;;  %v1139_v3 = vld [vmem:[%s1314_s1 + $0x20] sm:$0xff]   ;;  %v1140_v6 = vld [vmem:[%s1314_s1 + $0x18] sm:$0xff]   ;;  %v1141_v7 = vld [vmem:[%s1314_s1 + $0x10] sm:$0xff]  }
   0xd   : > { %1065 = vmatpush3.bf16.msra.mxu0 %v1136_v0  ;;  %1120 = vmatpush3.bf16.msra.mxu1 %v1136_v0  ;;  %s1213_s23 = scalar_lea.vmem %s1313_s0, %s911_s20  ;;  %v1142_v8 = vld [vmem:[%s1314_s1 + $0x8] sm:$0xff]   ;;  %v1143_v9 = vld [vmem:[%s1314_s1] sm:$0xff]   ;;  %s1264_s11 = scalar_lea.vmem %s1316_s3, %s911_s20 }
   0xe   : > { %1066 = vmatprep.subr.bf16.mxu0 %v1137_v1  ;;  %1113 = vmatprep.subr.bf16.mxu1 %v1137_v1  ;;  %v1144_v4 = vld [vmem:[%s1213_s23] sm:$0xff]   ;;  %v1146_v10 = vld [vmem:[%s1213_s23 + $0x8] sm:$0xff]   ;;  %v1148_v12 = vld [vmem:[%s1213_s23 + $0x10] sm:$0xff]  }
   0xf   : > { %v1145_v5 = vld [vmem:[%s1213_s23 + $0x40] sm:$0xff]   ;;  %1080 = vmatprep.mubr.bf16.mxu0 %v1144_v4  ;;  %v1147_v11 = vld [vmem:[%s1213_s23 + $0x48] sm:$0xff]   ;;  %v1149_v13 = vld [vmem:[%s1213_s23 + $0x50] sm:$0xff]  }
  0x10   : > { %1096 = vmatprep.mubr.bf16.mxu1 %v1145_v5  ;;  %v1150_v14 = vld [vmem:[%s1213_s23 + $0x18] sm:$0xff]   ;;  %v1152_v16 = vld [vmem:[%s1213_s23 + $0x20] sm:$0xff]   ;;  %v1154_v18 = vld [vmem:[%s1213_s23 + $0x28] sm:$0xff]  }
  0x11   : > { %1067 = vmatpush3.bf16.msra.mxu0 %v1137_v1  ;;  %1121 = vmatpush3.bf16.msra.mxu1 %v1137_v1  ;;  %v1151_v15 = vld [vmem:[%s1213_s23 + $0x58] sm:$0xff]   ;;  %v1153_v17 = vld [vmem:[%s1213_s23 + $0x60] sm:$0xff]   ;;  %v1155_v19 = vld [vmem:[%s1213_s23 + $0x68] sm:$0xff]  }
  0x12   : > { %1068 = vmatprep.subr.bf16.mxu0 %v1138_v2  ;;  %1114 = vmatprep.subr.bf16.mxu1 %v1138_v2  ;;  %v1156_v20 = vld [vmem:[%s1213_s23 + $0x30] sm:$0xff]   ;;  %v1158_v22 = vld [vmem:[%s1213_s23 + $0x38] sm:$0xff]   ;;  %v1249_v24 = vld [vmem:[%s1315_s2] ss:$0 sm:$0xff] }
  0x13   : > { %v1157_v21 = vld [vmem:[%s1213_s23 + $0x70] sm:$0xff]   ;;  %v1159_v23 = vld [vmem:[%s1213_s23 + $0x78] sm:$0xff]  }
  0x15   : > { %1069 = vmatpush3.bf16.msra.mxu0 %v1138_v2  ;;  %1122 = vmatpush3.bf16.msra.mxu1 %v1138_v2 }
  0x16   : > { %1070 = vmatprep.subr.bf16.mxu0 %v1139_v3  ;;  %1115 = vmatprep.subr.bf16.mxu1 %v1139_v3 }
  0x19   : > { %1071 = vmatpush3.bf16.msra.mxu0 %v1139_v3  ;;  %1123 = vmatpush3.bf16.msra.mxu1 %v1139_v3 }
  0x1a   : > { %1072 = vmatprep.subr.bf16.mxu0 %v1140_v6  ;;  %1116 = vmatprep.subr.bf16.mxu1 %v1140_v6 }
  0x1d   : > { %1073 = vmatpush3.bf16.msra.mxu0 %v1140_v6  ;;  %1124 = vmatpush3.bf16.msra.mxu1 %v1140_v6 }
  0x1e   : > { %1074 = vmatprep.subr.bf16.mxu0 %v1141_v7  ;;  %1117 = vmatprep.subr.bf16.mxu1 %v1141_v7 }
  0x21   : > { %1075 = vmatpush3.bf16.msra.mxu0 %v1141_v7  ;;  %1125 = vmatpush3.bf16.msra.mxu1 %v1141_v7 }
  0x22   : > { %1076 = vmatprep.subr.bf16.mxu0 %v1142_v8  ;;  %1118 = vmatprep.subr.bf16.mxu1 %v1142_v8 }
  0x25   : > { %1077 = vmatpush3.bf16.msra.mxu0 %v1142_v8  ;;  %1126 = vmatpush3.bf16.msra.mxu1 %v1142_v8 }
  0x26   : > { %1078 = vmatprep.subr.bf16.mxu0 %v1143_v9  ;;  %1119 = vmatprep.subr.bf16.mxu1 %v1143_v9 }
  0x29   : > { %1079 = vmatpush3.bf16.msra.mxu0 %v1143_v9  ;;  %1127 = vmatpush3.bf16.msra.mxu1 %v1143_v9 }
  0x2c   : > { %1081 = vmatmul.mubr.bf16.vlgmr.msra.gmra.mxu0 %v1146_v10  ;;  %1097 = vmatmul.mubr.bf16.vlgmr.msra.gmra.mxu1 %v1147_v11 }
  0x2d   : > { %1084 = vmatprep.mubr.bf16.mxu0 %v1148_v12  ;;  %1100 = vmatprep.mubr.bf16.mxu1 %v1149_v13 }
  0x34   : > { %1085 = vmatmul.mubr.bf16.gmra.mxu0 %v1150_v14  ;;  %1101 = vmatmul.mubr.bf16.gmra.mxu1 %v1151_v15 }
  0x35   : > { %1088 = vmatprep.mubr.bf16.mxu0 %v1152_v16  ;;  %1104 = vmatprep.mubr.bf16.mxu1 %v1153_v17 }
  0x3c   : > { %1089 = vmatmul.mubr.bf16.gmra.mxu0 %v1154_v18  ;;  %1105 = vmatmul.mubr.bf16.gmra.mxu1 %v1155_v19 }
  0x3d   : > { %1092 = vmatprep.mubr.bf16.mxu0 %v1156_v20  ;;  %1108 = vmatprep.mubr.bf16.mxu1 %v1157_v21 }
  0x44   : > { %1093 = vmatmul.mubr.bf16.gmra.mxu0 %v1158_v22  ;;  %1109 = vmatmul.mubr.bf16.gmra.mxu1 %v1159_v23 }
  0xec   : > { %v1082_v25 = vpop.f32.mrf.mxu0  ;;  %v1098_v26 = vpop.f32.mrf.mxu1 }
  0xed   : > { %v414_v27 = vadd.f32 %v1082_v25, %v1249_v24  ;;  %v478_v28 = vadd.f32 %v1098_v26, %v1249_v24 }
  0xee   : > { %v405_v29 = vpop.f32.mrf.mxu0  ;;  %v469_v30 = vpop.f32.mrf.mxu1 }
  0xef   : > { %vm534_vm0 = vcmp.ge.f32.partialorder %v414_v27, 0.0  ;;  %v566_v31 = vmul.f32 0.2, %v414_v27  ;;  %vm550_vm1 = vcmp.ge.f32.partialorder %v478_v28, 0.0  ;;  %v582_v32 = vmul.f32 0.2, %v478_v28 }
  0xf0   : > { %v406_v33 = vadd.f32 %v1249_v24, %v405_v29  ;;  %v470_v34 = vadd.f32 %v1249_v24, %v469_v30  ;;  %v1083_v35 = vpop.f32.mrf.mxu0  ;;  %v1099_v36 = vpop.f32.mrf.mxu1 }
  0xf1   : > { %v598_v37 = vsel %vm534_vm0, %v414_v27, %v566_v31  ;;  %v417_v38 = vadd.f32 %v1083_v35, %v1249_v24  ;;  %v481_v39 = vadd.f32 %v1099_v36, %v1249_v24  ;;  %v614_v40 = vsel %vm550_vm1, %v478_v28, %v582_v32 }
  0xf2   : > { %vm532_vm2 = vcmp.ge.f32.partialorder %v406_v33, 0.0  ;;  %v564_v41 = vmul.f32 0.2, %v406_v33  ;;  %vm548_vm3 = vcmp.ge.f32.partialorder %v470_v34, 0.0  ;;  %v408_v42 = vpop.f32.mrf.mxu0  ;;  %v472_v43 = vpop.f32.mrf.mxu1  ;;  %v580_v47 = vmul.f32 0.2, %v470_v34 }
  0xf3   : > { %vm535_vm4 = vcmp.ge.f32.partialorder %v417_v38, 0.0  ;;  %v567_v44 = vmul.f32 0.2, %v417_v38  ;;  %vm551_vm5 = vcmp.ge.f32.partialorder %v481_v39, 0.0  ;;  %v583_v45 = vmul.f32 0.2, %v481_v39 }
  0xf4   : > { %v596_v46 = vsel %vm532_vm2, %v406_v33, %v564_v41  ;;  %v409_v48 = vadd.f32 %v1249_v24, %v408_v42  ;;  %v473_v49 = vadd.f32 %v1249_v24, %v472_v43  ;;  %v1086_v50 = vpop.f32.mrf.mxu0  ;;  %v1102_v51 = vpop.f32.mrf.mxu1  ;;  %v612_v63 = vsel %vm548_vm3, %v470_v34, %v580_v47 }
  0xf5   : > { %v599_v52 = vsel %vm535_vm4, %v417_v38, %v567_v44  ;;  %v615_v53 = vsel %vm551_vm5, %v481_v39, %v583_v45  ;;  %v430_v54 = vadd.f32 %v1086_v50, %v1249_v24  ;;  %v494_v55 = vadd.f32 %v1102_v51, %v1249_v24 }
  0xf6   : > { %v953_v56 = vpack.c.bf16 %v599_v52, %v598_v37  ;;  %v993_v57 = vpack.c.bf16 %v615_v53, %v614_v40  ;;  %vm533_vm6 = vcmp.ge.f32.partialorder %v409_v48, 0.0  ;;  %v565_v58 = vmul.f32 0.2, %v409_v48  ;;  %v421_v59 = vpop.f32.mrf.mxu0  ;;  %v485_v60 = vpop.f32.mrf.mxu1 }
  0xf7   : > { %vm549_vm7 = vcmp.ge.f32.partialorder %v473_v49, 0.0  ;;  %v581_v61 = vmul.f32 0.2, %v473_v49  ;;  %vm538_vm8 = vcmp.ge.f32.partialorder %v430_v54, 0.0  ;;  %v570_v62 = vmul.f32 0.2, %v430_v54 }
  0xf8   : > { %1025 = vst [vmem:[%s1264_s11 + $0x8] sm:$0xff] %v953_v56   ;;  %1033 = vst [vmem:[%s1264_s11 + $0x48] sm:$0xff] %v993_v57   ;;  %v597_v0 = vsel %vm533_vm6, %v409_v48, %v565_v58  ;;  %v586_v1 = vmul.f32 0.2, %v494_v55  ;;  %v422_v2 = vadd.f32 %v1249_v24, %v421_v59  ;;  %v1087_v3 = vpop.f32.mrf.mxu0  ;;  %v1103_v4 = vpop.f32.mrf.mxu1  ;;  %vm554_vm9 = vcmp.ge.f32.partialorder %v494_v55, 0.0 }
  0xf9   : > { %v948_v5 = vpack.c.bf16 %v597_v0, %v596_v46  ;;  %v613_v6 = vsel %vm549_vm7, %v473_v49, %v581_v61  ;;  %v486_v7 = vadd.f32 %v1249_v24, %v485_v60  ;;  %v602_v9 = vsel %vm538_vm8, %v430_v54, %v570_v62 }
  0xfa   : > { %v988_v8 = vpack.c.bf16 %v613_v6, %v612_v63  ;;  %vm536_vm10 = vcmp.ge.f32.partialorder %v422_v2, 0.0  ;;  %v568_v10 = vmul.f32 0.2, %v422_v2  ;;  %v424_v11 = vpop.f32.mrf.mxu0  ;;  %v488_v12 = vpop.f32.mrf.mxu1  ;;  %v433_v14 = vadd.f32 %v1087_v3, %v1249_v24 }
  0xfb   : > { %949 = vst [vmem:[%s1264_s11] sm:$0xff] %v948_v5   ;;  %vm552_vm11 = vcmp.ge.f32.partialorder %v486_v7, 0.0  ;;  %v584_v13 = vmul.f32 0.2, %v486_v7  ;;  %v497_v15 = vadd.f32 %v1103_v4, %v1249_v24  ;;  %v618_v16 = vsel %vm554_vm9, %v494_v55, %v586_v1 }
  0xfc   : > { %1032 = vst [vmem:[%s1264_s11 + $0x40] sm:$0xff] %v988_v8   ;;  %v600_v17 = vsel %vm536_vm10, %v422_v2, %v568_v10  ;;  %v425_v18 = vadd.f32 %v1249_v24, %v424_v11  ;;  %v489_v19 = vadd.f32 %v1249_v24, %v488_v12  ;;  %v1090_v20 = vpop.f32.mrf.mxu0  ;;  %v1106_v21 = vpop.f32.mrf.mxu1  ;;  %vm539_vm12 = vcmp.ge.f32.partialorder %v433_v14, 0.0 }
  0xfd   : > { %v616_v22 = vsel %vm552_vm11, %v486_v7, %v584_v13  ;;  %v571_v23 = vmul.f32 0.2, %v433_v14  ;;  %vm555_vm13 = vcmp.ge.f32.partialorder %v497_v15, 0.0  ;;  %v587_v25 = vmul.f32 0.2, %v497_v15 }
  0xfe   : > { %vm537_vm14 = vcmp.ge.f32.partialorder %v425_v18, 0.0  ;;  %v569_v26 = vmul.f32 0.2, %v425_v18  ;;  %vm553_vm15 = vcmp.ge.f32.partialorder %v489_v19, 0.0  ;;  %v437_v27 = vpop.f32.mrf.mxu0  ;;  %v501_v28 = vpop.f32.mrf.mxu1  ;;  %v585_v30 = vmul.f32 0.2, %v489_v19 }
  0xff   : > { %v603_v29 = vsel %vm539_vm12, %v433_v14, %v571_v23  ;;  %v446_v31 = vadd.f32 %v1090_v20, %v1249_v24  ;;  %v510_v32 = vadd.f32 %v1106_v21, %v1249_v24  ;;  %v619_v34 = vsel %vm555_vm13, %v497_v15, %v587_v25 }
 0x100   : > { %v963_v33 = vpack.c.bf16 %v603_v29, %v602_v9  ;;  %v601_v35 = vsel %vm537_vm14, %v425_v18, %v569_v26  ;;  %v438_v36 = vadd.f32 %v1249_v24, %v437_v27  ;;  %v1091_v37 = vpop.f32.mrf.mxu0  ;;  %v1107_v38 = vpop.f32.mrf.mxu1  ;;  %v1003_v39 = vpack.c.bf16 %v619_v34, %v618_v16 }
 0x101   : > { %v958_v40 = vpack.c.bf16 %v601_v35, %v600_v17  ;;  %v617_v41 = vsel %vm553_vm15, %v489_v19, %v585_v30  ;;  %vm542_vm0 = vcmp.ge.f32.partialorder %v446_v31, 0.0  ;;  %v574_v43 = vmul.f32 0.2, %v446_v31 }
 0x102   : > { %1027 = vst [vmem:[%s1264_s11 + $0x18] sm:$0xff] %v963_v33   ;;  %v998_v42 = vpack.c.bf16 %v617_v41, %v616_v22  ;;  %vm558_vm1 = vcmp.ge.f32.partialorder %v510_v32, 0.0  ;;  %v590_v44 = vmul.f32 0.2, %v510_v32  ;;  %v440_v45 = vpop.f32.mrf.mxu0  ;;  %v504_v46 = vpop.f32.mrf.mxu1  ;;  %1035 = vst [vmem:[%s1264_s11 + $0x58] sm:$0xff] %v1003_v39   ;;  %vm540_vm2 = vcmp.ge.f32.partialorder %v438_v36, 0.0 }
 0x103   : > { %1026 = vst [vmem:[%s1264_s11 + $0x10] sm:$0xff] %v958_v40   ;;  %v572_v47 = vmul.f32 0.2, %v438_v36  ;;  %v502_v48 = vadd.f32 %v1249_v24, %v501_v28  ;;  %v449_v49 = vadd.f32 %v1091_v37, %v1249_v24  ;;  %v606_v50 = vsel %vm542_vm0, %v446_v31, %v574_v43 }
 0x104   : > { %1034 = vst [vmem:[%s1264_s11 + $0x50] sm:$0xff] %v998_v42   ;;  %v513_v51 = vadd.f32 %v1107_v38, %v1249_v24  ;;  %v441_v52 = vadd.f32 %v1249_v24, %v440_v45  ;;  %v1094_v53 = vpop.f32.mrf.mxu0  ;;  %v1110_v54 = vpop.f32.mrf.mxu1  ;;  %v622_v55 = vsel %vm558_vm1, %v510_v32, %v590_v44  ;;  %v505_v63 = vadd.f32 %v1249_v24, %v504_v46 }
 0x105   : > { %v604_v56 = vsel %vm540_vm2, %v438_v36, %v572_v47  ;;  %vm556_vm3 = vcmp.ge.f32.partialorder %v502_v48, 0.0  ;;  %vm543_vm4 = vcmp.ge.f32.partialorder %v449_v49, 0.0  ;;  %v575_v57 = vmul.f32 0.2, %v449_v49 }
 0x106   : > { %vm559_vm5 = vcmp.ge.f32.partialorder %v513_v51, 0.0  ;;  %v591_v58 = vmul.f32 0.2, %v513_v51  ;;  %vm541_vm6 = vcmp.ge.f32.partialorder %v441_v52, 0.0  ;;  %v453_v59 = vpop.f32.mrf.mxu0  ;;  %v517_v60 = vpop.f32.mrf.mxu1  ;;  %v588_v61 = vmul.f32 0.2, %v502_v48 }
 0x107   : > { %v573_v62 = vmul.f32 0.2, %v441_v52  ;;  %v462_v0 = vadd.f32 %v1094_v53, %v1249_v24  ;;  %v607_v1 = vsel %vm543_vm4, %v449_v49, %v575_v57  ;;  %v526_v3 = vadd.f32 %v1110_v54, %v1249_v24 }
 0x108   : > { %v623_v2 = vsel %vm559_vm5, %v513_v51, %v591_v58  ;;  %v454_v4 = vadd.f32 %v1249_v24, %v453_v59  ;;  %v1095_v5 = vpop.f32.mrf.mxu0  ;;  %v1111_v6 = vpop.f32.mrf.mxu1  ;;  %v973_v7 = vpack.c.bf16 %v607_v1, %v606_v50  ;;  %vm557_vm7 = vcmp.ge.f32.partialorder %v505_v63, 0.0 }
 0x109   : > { %v1013_v8 = vpack.c.bf16 %v623_v2, %v622_v55  ;;  %v605_v9 = vsel %vm541_vm6, %v441_v52, %v573_v62  ;;  %v589_v11 = vmul.f32 0.2, %v505_v63  ;;  %v578_v12 = vmul.f32 0.2, %v462_v0 }
 0x10a   : > { %v968_v10 = vpack.c.bf16 %v605_v9, %v604_v56  ;;  %v620_v13 = vsel %vm556_vm3, %v502_v48, %v588_v61  ;;  %1029 = vst [vmem:[%s1264_s11 + $0x28] sm:$0xff] %v973_v7   ;;  %vm546_vm8 = vcmp.ge.f32.partialorder %v462_v0, 0.0  ;;  %v594_v15 = vmul.f32 0.2, %v526_v3  ;;  %v456_v18 = vpop.f32.mrf.mxu0  ;;  %v520_v19 = vpop.f32.mrf.mxu1 }
 0x10b   : > { %1037 = vst [vmem:[%s1264_s11 + $0x68] sm:$0xff] %v1013_v8   ;;  %v621_v14 = vsel %vm557_vm7, %v505_v63, %v589_v11  ;;  %v518_v16 = vadd.f32 %v1249_v24, %v517_v60  ;;  %v465_v17 = vadd.f32 %v1095_v5, %v1249_v24  ;;  %vm562_vm9 = vcmp.ge.f32.partialorder %v526_v3, 0.0 }
 0x10c   : > { %1028 = vst [vmem:[%s1264_s11 + $0x20] sm:$0xff] %v968_v10   ;;  %v1008_v20 = vpack.c.bf16 %v621_v14, %v620_v13  ;;  %vm544_vm10 = vcmp.ge.f32.partialorder %v454_v4, 0.0  ;;  %v529_v21 = vadd.f32 %v1111_v6, %v1249_v24  ;;  %v610_v22 = vsel %vm546_vm8, %v462_v0, %v578_v12 }
 0x10d   : > { %v576_v23 = vmul.f32 0.2, %v454_v4  ;;  %vm547_vm11 = vcmp.ge.f32.partialorder %v465_v17, 0.0  ;;  %v579_v25 = vmul.f32 0.2, %v465_v17  ;;  %v457_v27 = vadd.f32 %v1249_v24, %v456_v18 }
 0x10e   : > { %1036 = vst [vmem:[%s1264_s11 + $0x60] sm:$0xff] %v1008_v20   ;;  %vm563_vm12 = vcmp.ge.f32.partialorder %v529_v21, 0.0  ;;  %v595_v26 = vmul.f32 0.2, %v529_v21  ;;  %v521_v28 = vadd.f32 %v1249_v24, %v520_v19  ;;  %v626_v29 = vsel %vm562_vm9, %v526_v3, %v594_v15 }
 0x10f   : > { %vm560_vm13 = vcmp.ge.f32.partialorder %v518_v16, 0.0  ;;  %v592_v30 = vmul.f32 0.2, %v518_v16  ;;  %v611_v31 = vsel %vm547_vm11, %v465_v17, %v579_v25  ;;  %vm545_vm14 = vcmp.ge.f32.partialorder %v457_v27, 0.0 }
 0x110   : > { %v983_v32 = vpack.c.bf16 %v611_v31, %v610_v22  ;;  %v627_v33 = vsel %vm563_vm12, %v529_v21, %v595_v26  ;;  %v577_v34 = vmul.f32 0.2, %v457_v27  ;;  %vm561_vm15 = vcmp.ge.f32.partialorder %v521_v28, 0.0 }
 0x111   : > { %v1023_v35 = vpack.c.bf16 %v627_v33, %v626_v29  ;;  %v593_v36 = vmul.f32 0.2, %v521_v28  ;;  %v608_v37 = vsel %vm544_vm10, %v454_v4, %v576_v23  ;;  %v624_v39 = vsel %vm560_vm13, %v518_v16, %v592_v30 }
 0x112   : > { %1031 = vst [vmem:[%s1264_s11 + $0x38] sm:$0xff] %v983_v32   ;;  %v609_v38 = vsel %vm545_vm14, %v457_v27, %v577_v34 }
 0x113   : > { %1039 = vst [vmem:[%s1264_s11 + $0x78] sm:$0xff] %v1023_v35   ;;  %v978_v24 = vpack.c.bf16 %v609_v38, %v608_v37  ;;  %v625_v40 = vsel %vm561_vm15, %v521_v28, %v593_v36 }
 0x114   : > { %v1018_v41 = vpack.c.bf16 %v625_v40, %v624_v39 }
 0x115   : > { %1030 = vst [vmem:[%s1264_s11 + $0x30] sm:$0xff] %v978_v24  }
 0x116   : > { %1038 = vst [vmem:[%s1264_s11 + $0x70] sm:$0xff] %v1018_v41  }
 0x117 PF: > { %s13_s12 = sadd.s32 1, %s1166_s12  }
 0x118   : > { %p10_p4 = scmp.ge.s32.totalorder %s13_s12, 4  }
 0x11a   :  { %12 = sbr.rel (!%p10_p4) target bundleno = 1 (0x1), region = 62 }

// kernel: discriminator_forward.6
= control target key start
LH: loop header
LB: loop body
LE: loop exit
PB: predicated region body
PF: predicated region fallthrough
CT: control target
= control target key end

     0   :  { %s3012_s12 = smov 0   ;;  %s3606_s0 = inlined_call_operand.vmem [shape: bf16[2,64,2048], index: 0, kind: input, shape index: {}]   ;;  %s3607_s1 = inlined_call_operand.vmem [shape: bf16[2048,128], index: 1, kind: input, shape index: {}]   ;;  %s3608_s2 = inlined_call_operand.vmem [shape: f32[1,128], index: 2, kind: input, shape index: {}]   ;;  %s3609_s3 = inlined_call_operand.vmem [shape: bf16[2,64,128], index: 3, kind: output, shape index: {}]  }
   0x1 LB: > { %s2281_s13 = sadd.s32 4294967295, %s2990_s12   ;;  %p2285_p0 = scmp.ge.s32.totalorder %s2990_s12, 1  ;;  %s2990_s12 = sphi %s3012_s12, %s13_s12  }
   0x2   : > { %p137_p1 = scmp.lt.s32.totalorder %s2990_s12, 3 }
   0x4   : > { %p138_p2 = pnand %p2285_p0, %p137_p1 }
   0x6   : > { %141 = sbr.rel (%p138_p2) target bundleno = 446 (0x1be), region = 32 }
   0xb   : > { %v2854_v0 = vld [vmem:[%s3607_s1 + $0x78] sm:$0xff]   ;;  %v2858_v4 = vld [vmem:[%s3607_s1 + $0x70] sm:$0xff]   ;;  %v2862_v8 = vld [vmem:[%s3607_s1 + $0x68] sm:$0xff]   ;;  %p161_p3 = scmp.lt.s32.totalorder %s2281_s13, 1 }
   0xc   : > { %v2855_v1 = vld [vmem:[%s3607_s1 + $0xf8] sm:$0xff]   ;;  %2526 = vmatprep.subr.bf16.mxu0 %v2854_v0  ;;  %v2859_v5 = vld [vmem:[%s3607_s1 + $0xf0] sm:$0xff]   ;;  %v2863_v9 = vld [vmem:[%s3607_s1 + $0xe8] sm:$0xff]  }
   0xd   : > { %v2856_v2 = vld [vmem:[%s3607_s1 + $0x38] sm:$0xff]   ;;  %2566 = vmatprep.subr.bf16.mxu1 %v2855_v1  ;;  %v2860_v6 = vld [vmem:[%s3607_s1 + $0x30] sm:$0xff]   ;;  %v2864_v10 = vld [vmem:[%s3607_s1 + $0x28] sm:$0xff]   ;;  %s3621_s13 = smov (!%p161_p3, %s2281_s13), 1 }
   0xe   : > { %v2857_v3 = vld [vmem:[%s3607_s1 + $0xb8] sm:$0xff]   ;;  %2527 = vmatpush3.bf16.msra.mxu0 %v2856_v2  ;;  %v2861_v7 = vld [vmem:[%s3607_s1 + $0xb0] sm:$0xff]   ;;  %v2865_v11 = vld [vmem:[%s3607_s1 + $0xa8] sm:$0xff]   ;;  %s2493_s18 = sshll.u32 %s3621_s13, 9 }
   0xf   : > { %2567 = vmatpush3.bf16.msra.mxu1 %v2857_v3  ;;  %2528 = vmatprep.subr.bf16.mxu0 %v2858_v4  ;;  %v2866_v12 = vld [vmem:[%s3607_s1 + $0x60] sm:$0xff]   ;;  %v2870_v16 = vld [vmem:[%s3607_s1 + $0x58] sm:$0xff]   ;;  %v2874_v20 = vld [vmem:[%s3607_s1 + $0x50] sm:$0xff]   ;;  %s3120_s27 = scalar_lea.vmem %s3606_s0, %s2493_s18 }
  0x10   : > { %2568 = vmatprep.subr.bf16.mxu1 %v2859_v5  ;;  %v2867_v13 = vld [vmem:[%s3607_s1 + $0xe0] sm:$0xff]   ;;  %v2871_v17 = vld [vmem:[%s3607_s1 + $0xd8] sm:$0xff]   ;;  %v2875_v21 = vld [vmem:[%s3607_s1 + $0xd0] sm:$0xff]  }
  0x11   : > { %v2868_v14 = vld [vmem:[%s3607_s1 + $0x20] sm:$0xff]   ;;  %v2872_v18 = vld [vmem:[%s3607_s1 + $0x18] sm:$0xff]   ;;  %v2876_v22 = vld [vmem:[%s3607_s1 + $0x10] sm:$0xff]  }
  0x12   : > { %2529 = vmatpush3.bf16.msra.mxu0 %v2860_v6  ;;  %v2869_v15 = vld [vmem:[%s3607_s1 + $0xa0] sm:$0xff]   ;;  %v2873_v19 = vld [vmem:[%s3607_s1 + $0x98] sm:$0xff]   ;;  %v2877_v23 = vld [vmem:[%s3607_s1 + $0x90] sm:$0xff]  }
  0x13   : > { %2569 = vmatpush3.bf16.msra.mxu1 %v2861_v7  ;;  %2530 = vmatprep.subr.bf16.mxu0 %v2862_v8  ;;  %v2878_v24 = vld [vmem:[%s3607_s1 + $0x48] sm:$0xff]   ;;  %v2882_v28 = vld [vmem:[%s3607_s1 + $0x40] sm:$0xff]   ;;  %v2886_v40 = vld [vmem:[%s3607_s1 + $0x178] sm:$0xff]  }
  0x14   : > { %2570 = vmatprep.subr.bf16.mxu1 %v2863_v9  ;;  %v2879_v25 = vld [vmem:[%s3607_s1 + $0xc8] sm:$0xff]   ;;  %v2883_v29 = vld [vmem:[%s3607_s1 + $0xc0] sm:$0xff]   ;;  %v2887_v41 = vld [vmem:[%s3607_s1 + $0x1f8] sm:$0xff]  }
  0x15   : > { %v2880_v26 = vld [vmem:[%s3607_s1 + $0x8] sm:$0xff]   ;;  %v2884_v30 = vld [vmem:[%s3607_s1] sm:$0xff]   ;;  %v2888_v42 = vld [vmem:[%s3607_s1 + $0x138] sm:$0xff]  }
  0x16   : > { %2531 = vmatpush3.bf16.msra.mxu0 %v2864_v10  ;;  %v2881_v27 = vld [vmem:[%s3607_s1 + $0x88] sm:$0xff]   ;;  %v2885_v31 = vld [vmem:[%s3607_s1 + $0x80] sm:$0xff]   ;;  %v2889_v43 = vld [vmem:[%s3607_s1 + $0x1b8] sm:$0xff]  }
  0x17   : > { %2571 = vmatpush3.bf16.msra.mxu1 %v2865_v11  ;;  %2532 = vmatprep.subr.bf16.mxu0 %v2866_v12  ;;  %v172_v32 = vld [vmem:[%s3120_s27] sm:$0xff]  ;;  %v173_v34 = vld [vmem:[%s3120_s27 + $0x8] sm:$0xff]  ;;  %v2890_v44 = vld [vmem:[%s3607_s1 + $0x170] sm:$0xff]  }
  0x18   : > { %2572 = vmatprep.subr.bf16.mxu1 %v2867_v13  ;;  %v180_v33 = vld [vmem:[%s3120_s27 + $0x40] sm:$0xff]  ;;  %v181_v37 = vld [vmem:[%s3120_s27 + $0x48] sm:$0xff]  ;;  %v2891_v45 = vld [vmem:[%s3607_s1 + $0x1f0] sm:$0xff]  }
  0x19   : > { %v2291_v35 = vcombine.low %v172_v32, %v180_v33  ;;  %v2292_v36 = vcombine.high %v172_v32, %v180_v33  ;;  %v2293_v38 = vcombine.low %v173_v34, %v181_v37  ;;  %v2294_v39 = vcombine.high %v173_v34, %v181_v37  ;;  %v2892_v46 = vld [vmem:[%s3607_s1 + $0x130] sm:$0xff]   ;;  %v188_v48 = vld [vmem:[%s3120_s27 + $0x80] sm:$0xff]  ;;  %v189_v51 = vld [vmem:[%s3120_s27 + $0x88] sm:$0xff] }
  0x1a   : > { %2533 = vmatpush3.bf16.msra.mxu0 %v2868_v14  ;;  %v2893_v47 = vld [vmem:[%s3607_s1 + $0x1b0] sm:$0xff]   ;;  %v196_v49 = vld [vmem:[%s3120_s27 + $0xc0] sm:$0xff]  ;;  %v197_v52 = vld [vmem:[%s3120_s27 + $0xc8] sm:$0xff] }
  0x1b   : > { %2573 = vmatpush3.bf16.msra.mxu1 %v2869_v15  ;;  %2534 = vmatprep.subr.bf16.mxu0 %v2870_v16  ;;  %v2308_v50 = vcombine.high %v188_v48, %v196_v49  ;;  %v2307_v53 = vcombine.low %v188_v48, %v196_v49  ;;  %v2310_v54 = vcombine.high %v189_v51, %v197_v52  ;;  %v2894_v56 = vld [vmem:[%s3607_s1 + $0x168] sm:$0xff]   ;;  %v2898_v60 = vld [vmem:[%s3607_s1 + $0x160] sm:$0xff]   ;;  %v2902_v8 = vld [vmem:[%s3607_s1 + $0x158] sm:$0xff]  }
  0x1c   : > { %2574 = vmatprep.subr.bf16.mxu1 %v2871_v17  ;;  %1619 = vmatprep.mubr.bf16.mxu0 %v2292_v36  ;;  %v2309_v55 = vcombine.low %v189_v51, %v197_v52  ;;  %v2895_v57 = vld [vmem:[%s3607_s1 + $0x1e8] sm:$0xff]   ;;  %v2899_v61 = vld [vmem:[%s3607_s1 + $0x1e0] sm:$0xff]   ;;  %v2903_v9 = vld [vmem:[%s3607_s1 + $0x1d8] sm:$0xff]  }
  0x1d   : > { %1684 = vmatprep.mubr.bf16.mxu1 %v2294_v39  ;;  %v2896_v58 = vld [vmem:[%s3607_s1 + $0x128] sm:$0xff]   ;;  %v2900_v62 = vld [vmem:[%s3607_s1 + $0x120] sm:$0xff]   ;;  %v2904_v10 = vld [vmem:[%s3607_s1 + $0x118] sm:$0xff]  }
  0x1e   : > { %2535 = vmatpush3.bf16.msra.mxu0 %v2872_v18  ;;  %v2897_v59 = vld [vmem:[%s3607_s1 + $0x1a8] sm:$0xff]   ;;  %v2901_v63 = vld [vmem:[%s3607_s1 + $0x1a0] sm:$0xff]   ;;  %v2905_v11 = vld [vmem:[%s3607_s1 + $0x198] sm:$0xff]  }
  0x1f   : > { %2575 = vmatpush3.bf16.msra.mxu1 %v2873_v19  ;;  %2536 = vmatprep.subr.bf16.mxu0 %v2874_v20  ;;  %v204_v0 = vld [vmem:[%s3120_s27 + $0x100] sm:$0xff]  ;;  %v205_v2 = vld [vmem:[%s3120_s27 + $0x108] sm:$0xff]  ;;  %v2906_v12 = vld [vmem:[%s3607_s1 + $0x150] sm:$0xff]  }
  0x20   : > { %2576 = vmatprep.subr.bf16.mxu1 %v2875_v21  ;;  %v212_v1 = vld [vmem:[%s3120_s27 + $0x140] sm:$0xff]  ;;  %v213_v3 = vld [vmem:[%s3120_s27 + $0x148] sm:$0xff]  ;;  %v2907_v13 = vld [vmem:[%s3607_s1 + $0x1d0] sm:$0xff]  }
  0x21   : > { %v2324_v4 = vcombine.high %v204_v0, %v212_v1  ;;  %v2326_v5 = vcombine.high %v205_v2, %v213_v3  ;;  %v2323_v6 = vcombine.low %v204_v0, %v212_v1  ;;  %v2325_v7 = vcombine.low %v205_v2, %v213_v3  ;;  %v2908_v14 = vld [vmem:[%s3607_s1 + $0x110] sm:$0xff]   ;;  %v220_v16 = vld [vmem:[%s3120_s27 + $0x180] sm:$0xff]  ;;  %v221_v18 = vld [vmem:[%s3120_s27 + $0x188] sm:$0xff] }
  0x22   : > { %2537 = vmatpush3.bf16.msra.mxu0 %v2876_v22  ;;  %v2909_v15 = vld [vmem:[%s3607_s1 + $0x190] sm:$0xff]   ;;  %v228_v17 = vld [vmem:[%s3120_s27 + $0x1c0] sm:$0xff]  ;;  %v229_v20 = vld [vmem:[%s3120_s27 + $0x1c8] sm:$0xff] }
  0x23   : > { %2577 = vmatpush3.bf16.msra.mxu1 %v2877_v23  ;;  %2538 = vmatprep.subr.bf16.mxu0 %v2878_v24  ;;  %v2340_v19 = vcombine.high %v220_v16, %v228_v17  ;;  %v2339_v21 = vcombine.low %v220_v16, %v228_v17  ;;  %v2342_v22 = vcombine.high %v221_v18, %v229_v20  ;;  %v2910_v24 = vld [vmem:[%s3607_s1 + $0x148] sm:$0xff]   ;;  %v174_v32 = vld [vmem:[%s3120_s27 + $0x10] sm:$0xff]  ;;  %v175_v36 = vld [vmem:[%s3120_s27 + $0x18] sm:$0xff] }
  0x24   : > { %2578 = vmatprep.subr.bf16.mxu1 %v2879_v25  ;;  %v2341_v23 = vcombine.low %v221_v18, %v229_v20  ;;  %v2911_v25 = vld [vmem:[%s3607_s1 + $0x1c8] sm:$0xff]   ;;  %v182_v33 = vld [vmem:[%s3120_s27 + $0x50] sm:$0xff]  ;;  %v183_v37 = vld [vmem:[%s3120_s27 + $0x58] sm:$0xff] }
  0x25   : > { %v2295_v34 = vcombine.low %v174_v32, %v182_v33  ;;  %v2298_v39 = vcombine.high %v175_v36, %v183_v37  ;;  %v190_v48 = vld [vmem:[%s3120_s27 + $0x90] sm:$0xff]  ;;  %v199_v51 = vld [vmem:[%s3120_s27 + $0xd8] sm:$0xff] }
  0x26   : > { %2539 = vmatpush3.bf16.msra.mxu0 %v2880_v26  ;;  %v2912_v26 = vld [vmem:[%s3607_s1 + $0x108] sm:$0xff]   ;;  %v198_v49 = vld [vmem:[%s3120_s27 + $0xd0] sm:$0xff]  ;;  %v207_v2 = vld [vmem:[%s3120_s27 + $0x118] sm:$0xff] }
  0x27   : > { %2579 = vmatpush3.bf16.msra.mxu1 %v2881_v27  ;;  %2540 = vmatprep.subr.bf16.mxu0 %v2882_v28  ;;  %v2913_v27 = vld [vmem:[%s3607_s1 + $0x188] sm:$0xff]   ;;  %v2914_v28 = vld [vmem:[%s3607_s1 + $0x140] sm:$0xff]   ;;  %v2312_v52 = vcombine.high %v190_v48, %v198_v49  ;;  %v206_v0 = vld [vmem:[%s3120_s27 + $0x110] sm:$0xff] }
  0x28   : > { %2580 = vmatprep.subr.bf16.mxu1 %v2883_v29  ;;  %v2915_v29 = vld [vmem:[%s3607_s1 + $0x1c0] sm:$0xff]   ;;  %v214_v1 = vld [vmem:[%s3120_s27 + $0x150] sm:$0xff]  ;;  %v231_v20 = vld [vmem:[%s3120_s27 + $0x1d8] sm:$0xff] }
  0x29   : > { %v2328_v3 = vcombine.high %v206_v0, %v214_v1  ;;  %v222_v16 = vld [vmem:[%s3120_s27 + $0x190] sm:$0xff] }
  0x2a   : > { %2541 = vmatpush3.bf16.msra.mxu0 %v2884_v30  ;;  %v2916_v30 = vld [vmem:[%s3607_s1 + $0x100] sm:$0xff]   ;;  %v230_v17 = vld [vmem:[%s3120_s27 + $0x1d0] sm:$0xff] }
  0x2b   : > { %2581 = vmatpush3.bf16.msra.mxu1 %v2885_v31  ;;  %2606 = vmatprep.subr.bf16.mxu0 %v2886_v40  ;;  %v2917_v31 = vld [vmem:[%s3607_s1 + $0x180] sm:$0xff]   ;;  %v2918_v40 = vld [vmem:[%s3607_s1 + $0x278] sm:$0xff]   ;;  %v2344_v18 = vcombine.high %v222_v16, %v230_v17 }
  0x2c   : > { %2646 = vmatprep.subr.bf16.mxu1 %v2887_v41  ;;  %v2919_v41 = vld [vmem:[%s3607_s1 + $0x2f8] sm:$0xff]  }
  0x2d   : > { %1620 = vmatmul.mubr.bf16.vlgmr.msra.gmra.mxu0 %v2291_v35  ;;  %v2296_v35 = vcombine.high %v174_v32, %v182_v33  ;;  %v176_v32 = vld [vmem:[%s3120_s27 + $0x20] sm:$0xff] }
  0x2e   : > { %1685 = vmatmul.mubr.bf16.vlgmr.msra.gmra.mxu1 %v2293_v38  ;;  %2607 = vmatpush3.bf16.msra.mxu0 %v2888_v42  ;;  %v2297_v38 = vcombine.low %v175_v36, %v183_v37  ;;  %v2920_v42 = vld [vmem:[%s3607_s1 + $0x238] sm:$0xff]   ;;  %v184_v33 = vld [vmem:[%s3120_s27 + $0x60] sm:$0xff] }
  0x2f   : > { %2647 = vmatpush3.bf16.msra.mxu1 %v2889_v43  ;;  %2608 = vmatprep.subr.bf16.mxu0 %v2890_v44  ;;  %v2921_v43 = vld [vmem:[%s3607_s1 + $0x2b8] sm:$0xff]   ;;  %v2922_v44 = vld [vmem:[%s3607_s1 + $0x270] sm:$0xff]   ;;  %v2299_v36 = vcombine.low %v176_v32, %v184_v33  ;;  %v2300_v37 = vcombine.high %v176_v32, %v184_v33 }
  0x30   : > { %2648 = vmatprep.subr.bf16.mxu1 %v2891_v45  ;;  %1627 = vmatprep.mubr.bf16.mxu0 %v2308_v50  ;;  %v2923_v45 = vld [vmem:[%s3607_s1 + $0x2f0] sm:$0xff]   ;;  %v191_v50 = vld [vmem:[%s3120_s27 + $0x98] sm:$0xff] }
  0x31   : > { %1692 = vmatprep.mubr.bf16.mxu1 %v2310_v54  ;;  %v2311_v54 = vcombine.low %v190_v48, %v198_v49  ;;  %v192_v48 = vld [vmem:[%s3120_s27 + $0xa0] sm:$0xff]  ;;  %v178_v32 = vld [vmem:[%s3120_s27 + $0x30] sm:$0xff] }
  0x32   : > { %2609 = vmatpush3.bf16.msra.mxu0 %v2892_v46  ;;  %v2924_v46 = vld [vmem:[%s3607_s1 + $0x230] sm:$0xff]   ;;  %v200_v49 = vld [vmem:[%s3120_s27 + $0xe0] sm:$0xff] }
  0x33   : > { %2649 = vmatpush3.bf16.msra.mxu1 %v2893_v47  ;;  %2610 = vmatprep.subr.bf16.mxu0 %v2894_v56  ;;  %v2925_v47 = vld [vmem:[%s3607_s1 + $0x2b0] sm:$0xff]   ;;  %v2926_v56 = vld [vmem:[%s3607_s1 + $0x268] sm:$0xff]  }
  0x34   : > { %2650 = vmatprep.subr.bf16.mxu1 %v2895_v57  ;;  %v2927_v57 = vld [vmem:[%s3607_s1 + $0x2e8] sm:$0xff]   ;;  %v186_v33 = vld [vmem:[%s3120_s27 + $0x70] sm:$0xff] }
  0x35   : > { %1628 = vmatmul.mubr.bf16.gmra.mxu0 %v2307_v53  ;;  %v2314_v53 = vcombine.high %v191_v50, %v199_v51 }
  0x36   : > { %1693 = vmatmul.mubr.bf16.gmra.mxu1 %v2309_v55  ;;  %2611 = vmatpush3.bf16.msra.mxu0 %v2896_v58  ;;  %v2313_v55 = vcombine.low %v191_v50, %v199_v51  ;;  %v2928_v58 = vld [vmem:[%s3607_s1 + $0x228] sm:$0xff]   ;;  %v2316_v51 = vcombine.high %v192_v48, %v200_v49 }
  0x37   : > { %2651 = vmatpush3.bf16.msra.mxu1 %v2897_v59  ;;  %2612 = vmatprep.subr.bf16.mxu0 %v2898_v60  ;;  %v2929_v59 = vld [vmem:[%s3607_s1 + $0x2a8] sm:$0xff]   ;;  %v2930_v60 = vld [vmem:[%s3607_s1 + $0x260] sm:$0xff]  }
  0x38   : > { %2652 = vmatprep.subr.bf16.mxu1 %v2899_v61  ;;  %1635 = vmatprep.mubr.bf16.mxu0 %v2324_v4  ;;  %v2931_v61 = vld [vmem:[%s3607_s1 + $0x2e0] sm:$0xff]   ;;  %v215_v4 = vld [vmem:[%s3120_s27 + $0x158] sm:$0xff]  ;;  %v193_v50 = vld [vmem:[%s3120_s27 + $0xa8] sm:$0xff] }
  0x39   : > { %1700 = vmatprep.mubr.bf16.mxu1 %v2326_v5  ;;  %v2327_v5 = vcombine.low %v206_v0, %v214_v1  ;;  %v208_v0 = vld [vmem:[%s3120_s27 + $0x120] sm:$0xff] }
  0x3a   : > { %2613 = vmatpush3.bf16.msra.mxu0 %v2900_v62  ;;  %v2932_v62 = vld [vmem:[%s3607_s1 + $0x220] sm:$0xff]  }
  0x3b   : > { %2653 = vmatpush3.bf16.msra.mxu1 %v2901_v63  ;;  %2614 = vmatprep.subr.bf16.mxu0 %v2902_v8  ;;  %v2933_v63 = vld [vmem:[%s3607_s1 + $0x2a0] sm:$0xff]   ;;  %v2934_v8 = vld [vmem:[%s3607_s1 + $0x258] sm:$0xff]  }
  0x3c   : > { %2654 = vmatprep.subr.bf16.mxu1 %v2903_v9  ;;  %v2935_v9 = vld [vmem:[%s3607_s1 + $0x2d8] sm:$0xff]   ;;  %v216_v1 = vld [vmem:[%s3120_s27 + $0x160] sm:$0xff] }
  0x3d   : > { %1636 = vmatmul.mubr.bf16.gmra.mxu0 %v2323_v6  ;;  %v2330_v6 = vcombine.high %v207_v2, %v215_v4 }
  0x3e   : > { %1701 = vmatmul.mubr.bf16.gmra.mxu1 %v2325_v7  ;;  %2615 = vmatpush3.bf16.msra.mxu0 %v2904_v10  ;;  %v2329_v7 = vcombine.low %v207_v2, %v215_v4  ;;  %v2936_v10 = vld [vmem:[%s3607_s1 + $0x218] sm:$0xff]   ;;  %v2332_v2 = vcombine.high %v208_v0, %v216_v1  ;;  %v217_v4 = vld [vmem:[%s3120_s27 + $0x168] sm:$0xff] }
  0x3f   : > { %2655 = vmatpush3.bf16.msra.mxu1 %v2905_v11  ;;  %2616 = vmatprep.subr.bf16.mxu0 %v2906_v12  ;;  %v2937_v11 = vld [vmem:[%s3607_s1 + $0x298] sm:$0xff]   ;;  %v2938_v12 = vld [vmem:[%s3607_s1 + $0x250] sm:$0xff]  }
  0x40   : > { %2656 = vmatprep.subr.bf16.mxu1 %v2907_v13  ;;  %1643 = vmatprep.mubr.bf16.mxu0 %v2340_v19  ;;  %v2939_v13 = vld [vmem:[%s3607_s1 + $0x2d0] sm:$0xff]   ;;  %v223_v19 = vld [vmem:[%s3120_s27 + $0x198] sm:$0xff] }
  0x41   : > { %1708 = vmatprep.mubr.bf16.mxu1 %v2342_v22  ;;  %v2346_v22 = vcombine.high %v223_v19, %v231_v20 }
  0x42   : > { %2617 = vmatpush3.bf16.msra.mxu0 %v2908_v14  ;;  %v2940_v14 = vld [vmem:[%s3607_s1 + $0x210] sm:$0xff]  }
  0x43   : > { %2657 = vmatpush3.bf16.msra.mxu1 %v2909_v15  ;;  %2618 = vmatprep.subr.bf16.mxu0 %v2910_v24  ;;  %v2941_v15 = vld [vmem:[%s3607_s1 + $0x290] sm:$0xff]   ;;  %v2942_v24 = vld [vmem:[%s3607_s1 + $0x248] sm:$0xff]  }
  0x44   : > { %2658 = vmatprep.subr.bf16.mxu1 %v2911_v25  ;;  %v2943_v25 = vld [vmem:[%s3607_s1 + $0x2c8] sm:$0xff]  }
  0x45   : > { %1644 = vmatmul.mubr.bf16.gmra.mxu0 %v2339_v21  ;;  %v2343_v21 = vcombine.low %v222_v16, %v230_v17  ;;  %v224_v16 = vld [vmem:[%s3120_s27 + $0x1a0] sm:$0xff] }
  0x46   : > { %1709 = vmatmul.mubr.bf16.gmra.mxu1 %v2341_v23  ;;  %2619 = vmatpush3.bf16.msra.mxu0 %v2912_v26  ;;  %v2345_v23 = vcombine.low %v223_v19, %v231_v20  ;;  %v2944_v26 = vld [vmem:[%s3607_s1 + $0x208] sm:$0xff]   ;;  %v232_v17 = vld [vmem:[%s3120_s27 + $0x1e0] sm:$0xff] }
  0x47   : > { %2659 = vmatpush3.bf16.msra.mxu1 %v2913_v27  ;;  %2620 = vmatprep.subr.bf16.mxu0 %v2914_v28  ;;  %v2945_v27 = vld [vmem:[%s3607_s1 + $0x288] sm:$0xff]   ;;  %v2946_v28 = vld [vmem:[%s3607_s1 + $0x240] sm:$0xff]   ;;  %v2348_v20 = vcombine.high %v224_v16, %v232_v17 }
  0x48   : > { %2660 = vmatprep.subr.bf16.mxu1 %v2915_v29  ;;  %1749 = vmatprep.mubr.bf16.mxu0 %v2296_v35  ;;  %v2947_v29 = vld [vmem:[%s3607_s1 + $0x2c0] sm:$0xff]   ;;  %v185_v35 = vld [vmem:[%s3120_s27 + $0x68] sm:$0xff] }
  0x49   : > { %1814 = vmatprep.mubr.bf16.mxu1 %v2298_v39  ;;  %v233_v19 = vld [vmem:[%s3120_s27 + $0x1e8] sm:$0xff] }
  0x4a   : > { %2621 = vmatpush3.bf16.msra.mxu0 %v2916_v30  ;;  %v2948_v30 = vld [vmem:[%s3607_s1 + $0x200] sm:$0xff]  }
  0x4b   : > { %2661 = vmatpush3.bf16.msra.mxu1 %v2917_v31  ;;  %2686 = vmatprep.subr.bf16.mxu0 %v2918_v40  ;;  %v2949_v31 = vld [vmem:[%s3607_s1 + $0x280] sm:$0xff]   ;;  %v2950_v40 = vld [vmem:[%s3607_s1 + $0x378] sm:$0xff]  }
  0x4c   : > { %2726 = vmatprep.subr.bf16.mxu1 %v2919_v41  ;;  %v2951_v41 = vld [vmem:[%s3607_s1 + $0x3f8] sm:$0xff]  }
  0x4d   : > { %1750 = vmatmul.mubr.bf16.vlgmr.msra.gmra.mxu0 %v2295_v34  ;;  %v177_v34 = vld [vmem:[%s3120_s27 + $0x28] sm:$0xff] }
  0x4e   : > { %1815 = vmatmul.mubr.bf16.vlgmr.msra.gmra.mxu1 %v2297_v38  ;;  %2687 = vmatpush3.bf16.msra.mxu0 %v2920_v42  ;;  %v2301_v38 = vcombine.low %v177_v34, %v185_v35  ;;  %v2302_v39 = vcombine.high %v177_v34, %v185_v35  ;;  %v2952_v42 = vld [vmem:[%s3607_s1 + $0x338] sm:$0xff]   ;;  %v2303_v35 = vcombine.low %v178_v32, %v186_v33 }
  0x4f   : > { %2727 = vmatpush3.bf16.msra.mxu1 %v2921_v43  ;;  %2688 = vmatprep.subr.bf16.mxu0 %v2922_v44  ;;  %v2953_v43 = vld [vmem:[%s3607_s1 + $0x3b8] sm:$0xff]   ;;  %v2954_v44 = vld [vmem:[%s3607_s1 + $0x370] sm:$0xff]  }
  0x50   : > { %2728 = vmatprep.subr.bf16.mxu1 %v2923_v45  ;;  %1757 = vmatprep.mubr.bf16.mxu0 %v2312_v52  ;;  %v2955_v45 = vld [vmem:[%s3607_s1 + $0x3f0] sm:$0xff]   ;;  %v201_v52 = vld [vmem:[%s3120_s27 + $0xe8] sm:$0xff]  ;;  %v179_v34 = vld [vmem:[%s3120_s27 + $0x38] sm:$0xff] }
  0x51   : > { %1822 = vmatprep.mubr.bf16.mxu1 %v2314_v53  ;;  %v2315_v53 = vcombine.low %v192_v48, %v200_v49  ;;  %v211_v48 = vld [vmem:[%s3120_s27 + $0x138] sm:$0xff] }
  0x52   : > { %2689 = vmatpush3.bf16.msra.mxu0 %v2924_v46  ;;  %v2956_v46 = vld [vmem:[%s3607_s1 + $0x330] sm:$0xff]   ;;  %v219_v49 = vld [vmem:[%s3120_s27 + $0x178] sm:$0xff] }
  0x53   : > { %2729 = vmatpush3.bf16.msra.mxu1 %v2925_v47  ;;  %2690 = vmatprep.subr.bf16.mxu0 %v2926_v56  ;;  %v2957_v47 = vld [vmem:[%s3607_s1 + $0x3b0] sm:$0xff]   ;;  %v2958_v56 = vld [vmem:[%s3607_s1 + $0x368] sm:$0xff]  }
  0x54   : > { %2730 = vmatprep.subr.bf16.mxu1 %v2927_v57  ;;  %v2959_v57 = vld [vmem:[%s3607_s1 + $0x3e8] sm:$0xff]  }
  0x55   : > { %1758 = vmatmul.mubr.bf16.gmra.mxu0 %v2311_v54  ;;  %v2318_v54 = vcombine.high %v193_v50, %v201_v52 }
  0x56   : > { %1823 = vmatmul.mubr.bf16.gmra.mxu1 %v2313_v55  ;;  %2691 = vmatpush3.bf16.msra.mxu0 %v2928_v58  ;;  %v2317_v55 = vcombine.low %v193_v50, %v201_v52  ;;  %v2960_v58 = vld [vmem:[%s3607_s1 + $0x328] sm:$0xff]  }
  0x57   : > { %2731 = vmatpush3.bf16.msra.mxu1 %v2929_v59  ;;  %2692 = vmatprep.subr.bf16.mxu0 %v2930_v60  ;;  %v2961_v59 = vld [vmem:[%s3607_s1 + $0x3a8] sm:$0xff]   ;;  %v2962_v60 = vld [vmem:[%s3607_s1 + $0x360] sm:$0xff]  }
  0x58   : > { %2732 = vmatprep.subr.bf16.mxu1 %v2931_v61  ;;  %1765 = vmatprep.mubr.bf16.mxu0 %v2328_v3  ;;  %v2963_v61 = vld [vmem:[%s3607_s1 + $0x3e0] sm:$0xff]   ;;  %v209_v3 = vld [vmem:[%s3120_s27 + $0x128] sm:$0xff] }
  0x59   : > { %1830 = vmatprep.mubr.bf16.mxu1 %v2330_v6  ;;  %v2334_v6 = vcombine.high %v209_v3, %v217_v4 }
  0x5a   : > { %2693 = vmatpush3.bf16.msra.mxu0 %v2932_v62  ;;  %v2964_v62 = vld [vmem:[%s3607_s1 + $0x320] sm:$0xff]  }
  0x5b   : > { %2733 = vmatpush3.bf16.msra.mxu1 %v2933_v63  ;;  %2694 = vmatprep.subr.bf16.mxu0 %v2934_v8  ;;  %v2965_v63 = vld [vmem:[%s3607_s1 + $0x3a0] sm:$0xff]   ;;  %v2966_v8 = vld [vmem:[%s3607_s1 + $0x358] sm:$0xff]  }
  0x5c   : > { %2734 = vmatprep.subr.bf16.mxu1 %v2935_v9  ;;  %v2967_v9 = vld [vmem:[%s3607_s1 + $0x3d8] sm:$0xff]  }
  0x5d   : > { %1766 = vmatmul.mubr.bf16.gmra.mxu0 %v2327_v5  ;;  %v2331_v5 = vcombine.low %v208_v0, %v216_v1 }
  0x5e   : > { %1831 = vmatmul.mubr.bf16.gmra.mxu1 %v2329_v7  ;;  %2695 = vmatpush3.bf16.msra.mxu0 %v2936_v10  ;;  %v2333_v7 = vcombine.low %v209_v3, %v217_v4  ;;  %v2968_v10 = vld [vmem:[%s3607_s1 + $0x318] sm:$0xff]  }
  0x5f   : > { %2735 = vmatpush3.bf16.msra.mxu1 %v2937_v11  ;;  %2696 = vmatprep.subr.bf16.mxu0 %v2938_v12  ;;  %v2969_v11 = vld [vmem:[%s3607_s1 + $0x398] sm:$0xff]   ;;  %v2970_v12 = vld [vmem:[%s3607_s1 + $0x350] sm:$0xff]  }
  0x60   : > { %2736 = vmatprep.subr.bf16.mxu1 %v2939_v13  ;;  %1773 = vmatprep.mubr.bf16.mxu0 %v2344_v18  ;;  %v2971_v13 = vld [vmem:[%s3607_s1 + $0x3d0] sm:$0xff]   ;;  %v225_v18 = vld [vmem:[%s3120_s27 + $0x1a8] sm:$0xff] }
  0x61   : > { %1838 = vmatprep.mubr.bf16.mxu1 %v2346_v22  ;;  %v2347_v22 = vcombine.low %v224_v16, %v232_v17 }
  0x62   : > { %2697 = vmatpush3.bf16.msra.mxu0 %v2940_v14  ;;  %v2972_v14 = vld [vmem:[%s3607_s1 + $0x310] sm:$0xff]  }
  0x63   : > { %2737 = vmatpush3.bf16.msra.mxu1 %v2941_v15  ;;  %2698 = vmatprep.subr.bf16.mxu0 %v2942_v24  ;;  %v2973_v15 = vld [vmem:[%s3607_s1 + $0x390] sm:$0xff]   ;;  %v2974_v24 = vld [vmem:[%s3607_s1 + $0x348] sm:$0xff]  }
  0x64   : > { %2738 = vmatprep.subr.bf16.mxu1 %v2943_v25  ;;  %v2975_v25 = vld [vmem:[%s3607_s1 + $0x3c8] sm:$0xff]  }
  0x65   : > { %1774 = vmatmul.mubr.bf16.gmra.mxu0 %v2343_v21  ;;  %v2350_v21 = vcombine.high %v225_v18, %v233_v19 }
  0x66   : > { %1839 = vmatmul.mubr.bf16.gmra.mxu1 %v2345_v23  ;;  %2699 = vmatpush3.bf16.msra.mxu0 %v2944_v26  ;;  %v2349_v23 = vcombine.low %v225_v18, %v233_v19  ;;  %v2976_v26 = vld [vmem:[%s3607_s1 + $0x308] sm:$0xff]  }
  0x67   : > { %2739 = vmatpush3.bf16.msra.mxu1 %v2945_v27  ;;  %2700 = vmatprep.subr.bf16.mxu0 %v2946_v28  ;;  %v2977_v27 = vld [vmem:[%s3607_s1 + $0x388] sm:$0xff]   ;;  %v2978_v28 = vld [vmem:[%s3607_s1 + $0x340] sm:$0xff]  }
  0x68   : > { %2740 = vmatprep.subr.bf16.mxu1 %v2947_v29  ;;  %1879 = vmatprep.mubr.bf16.mxu0 %v2300_v37  ;;  %v2979_v29 = vld [vmem:[%s3607_s1 + $0x3c0] sm:$0xff]   ;;  %v187_v37 = vld [vmem:[%s3120_s27 + $0x78] sm:$0xff] }
  0x69   : > { %1944 = vmatprep.mubr.bf16.mxu1 %v2302_v39  ;;  %v202_v39 = vld [vmem:[%s3120_s27 + $0xf0] sm:$0xff] }
  0x6a   : > { %2701 = vmatpush3.bf16.msra.mxu0 %v2948_v30  ;;  %v2980_v30 = vld [vmem:[%s3607_s1 + $0x300] sm:$0xff]  }
  0x6b   : > { %2741 = vmatpush3.bf16.msra.mxu1 %v2949_v31  ;;  %2766 = vmatprep.subr.bf16.mxu0 %v2950_v40  ;;  %v2981_v31 = vld [vmem:[%s3607_s1 + $0x380] sm:$0xff]   ;;  %v2305_v40 = vcombine.low %v179_v34, %v187_v37 }
  0x6c   : > { %2806 = vmatprep.subr.bf16.mxu1 %v2951_v41  ;;  %v2306_v41 = vcombine.high %v179_v34, %v187_v37 }
  0x6d   : > { %1880 = vmatmul.mubr.bf16.vlgmr.msra.gmra.mxu0 %v2299_v36  ;;  %v2304_v36 = vcombine.high %v178_v32, %v186_v33 }
  0x6e   : > { %1945 = vmatmul.mubr.bf16.vlgmr.msra.gmra.mxu1 %v2301_v38  ;;  %2767 = vmatpush3.bf16.msra.mxu0 %v2952_v42  ;;  %v194_v38 = vld [vmem:[%s3120_s27 + $0xb0] sm:$0xff] }
  0x6f   : > { %2807 = vmatpush3.bf16.msra.mxu1 %v2953_v43  ;;  %2768 = vmatprep.subr.bf16.mxu0 %v2954_v44  ;;  %v2320_v42 = vcombine.high %v194_v38, %v202_v39  ;;  %v195_v43 = vld [vmem:[%s3120_s27 + $0xb8] sm:$0xff]  ;;  %v2319_v50 = vcombine.low %v194_v38, %v202_v39 }
  0x70   : > { %2808 = vmatprep.subr.bf16.mxu1 %v2955_v45  ;;  %1887 = vmatprep.mubr.bf16.mxu0 %v2316_v51  ;;  %v203_v44 = vld [vmem:[%s3120_s27 + $0xf8] sm:$0xff] }
  0x71   : > { %1952 = vmatprep.mubr.bf16.mxu1 %v2318_v54  ;;  %v2322_v45 = vcombine.high %v195_v43, %v203_v44  ;;  %v2321_v51 = vcombine.low %v195_v43, %v203_v44  ;;  %v226_v54 = vld [vmem:[%s3120_s27 + $0x1b0] sm:$0xff] }
  0x72   : > { %2769 = vmatpush3.bf16.msra.mxu0 %v2956_v46  ;;  %v210_v46 = vld [vmem:[%s3120_s27 + $0x130] sm:$0xff] }
  0x73   : > { %2809 = vmatpush3.bf16.msra.mxu1 %v2957_v47  ;;  %2770 = vmatprep.subr.bf16.mxu0 %v2958_v56  ;;  %v218_v47 = vld [vmem:[%s3120_s27 + $0x170] sm:$0xff]  ;;  %v227_v56 = vld [vmem:[%s3120_s27 + $0x1b8] sm:$0xff] }
  0x74   : > { %2810 = vmatprep.subr.bf16.mxu1 %v2959_v57  ;;  %v2336_v52 = vcombine.high %v210_v46, %v218_v47  ;;  %v235_v57 = vld [vmem:[%s3120_s27 + $0x1f8] sm:$0xff] }
  0x75   : > { %1888 = vmatmul.mubr.bf16.gmra.mxu0 %v2315_v53  ;;  %v2338_v53 = vcombine.high %v211_v48, %v219_v49 }
  0x76   : > { %1953 = vmatmul.mubr.bf16.gmra.mxu1 %v2317_v55  ;;  %2771 = vmatpush3.bf16.msra.mxu0 %v2960_v58  ;;  %v234_v55 = vld [vmem:[%s3120_s27 + $0x1f0] sm:$0xff]  ;;  %v2335_v58 = vcombine.low %v210_v46, %v218_v47  ;;  %s2494_s27 = sshll.u32 %s3621_s13, 5 }
  0x77   : > { %2811 = vmatpush3.bf16.msra.mxu1 %v2961_v59  ;;  %2772 = vmatprep.subr.bf16.mxu0 %v2962_v60  ;;  %v2337_v59 = vcombine.low %v211_v48, %v219_v49  ;;  %v2352_v60 = vcombine.high %v226_v54, %v234_v55  ;;  %s170_s13 = scalar_lea.vmem %s3609_s3, %s2494_s27 }
  0x78   : > { %2812 = vmatprep.subr.bf16.mxu1 %v2963_v61  ;;  %1895 = vmatprep.mubr.bf16.mxu0 %v2332_v2  ;;  %v2354_v61 = vcombine.high %v227_v56, %v235_v57  ;;  %v2290_v2 = vld [vmem:[%s3608_s2] ss:$0 sm:$0xff] }
  0x79   : > { %1960 = vmatprep.mubr.bf16.mxu1 %v2334_v6 }
  0x7a   : > { %2773 = vmatpush3.bf16.msra.mxu0 %v2964_v62  ;;  %v2351_v62 = vcombine.low %v226_v54, %v234_v55 }
  0x7b   : > { %2813 = vmatpush3.bf16.msra.mxu1 %v2965_v63  ;;  %2774 = vmatprep.subr.bf16.mxu0 %v2966_v8  ;;  %v2353_v63 = vcombine.low %v227_v56, %v235_v57 }
  0x7c   : > { %2814 = vmatprep.subr.bf16.mxu1 %v2967_v9 }
  0x7d   : > { %1896 = vmatmul.mubr.bf16.gmra.mxu0 %v2331_v5 }
  0x7e   : > { %1961 = vmatmul.mubr.bf16.gmra.mxu1 %v2333_v7  ;;  %2775 = vmatpush3.bf16.msra.mxu0 %v2968_v10 }
  0x7f   : > { %2815 = vmatpush3.bf16.msra.mxu1 %v2969_v11  ;;  %2776 = vmatprep.subr.bf16.mxu0 %v2970_v12 }
  0x80   : > { %2816 = vmatprep.subr.bf16.mxu1 %v2971_v13  ;;  %1903 = vmatprep.mubr.bf16.mxu0 %v2348_v20 }
  0x81   : > { %1968 = vmatprep.mubr.bf16.mxu1 %v2350_v21 }
  0x82   : > { %2777 = vmatpush3.bf16.msra.mxu0 %v2972_v14 }
  0x83   : > { %2817 = vmatpush3.bf16.msra.mxu1 %v2973_v15  ;;  %2778 = vmatprep.subr.bf16.mxu0 %v2974_v24 }
  0x84   : > { %2818 = vmatprep.subr.bf16.mxu1 %v2975_v25 }
  0x85   : > { %1904 = vmatmul.mubr.bf16.gmra.mxu0 %v2347_v22 }
  0x86   : > { %1969 = vmatmul.mubr.bf16.gmra.mxu1 %v2349_v23  ;;  %2779 = vmatpush3.bf16.msra.mxu0 %v2976_v26 }
  0x87   : > { %2819 = vmatpush3.bf16.msra.mxu1 %v2977_v27  ;;  %2780 = vmatprep.subr.bf16.mxu0 %v2978_v28 }
  0x88   : > { %2820 = vmatprep.subr.bf16.mxu1 %v2979_v29  ;;  %2009 = vmatprep.mubr.bf16.mxu0 %v2304_v36 }
  0x89   : > { %2074 = vmatprep.mubr.bf16.mxu1 %v2306_v41 }
  0x8a   : > { %2781 = vmatpush3.bf16.msra.mxu0 %v2980_v30 }
  0x8b   : > { %2821 = vmatpush3.bf16.msra.mxu1 %v2981_v31 }
  0x8d   : > { %2010 = vmatmul.mubr.bf16.vlgmr.msra.gmra.mxu0 %v2303_v35 }
  0x8e   : > { %2075 = vmatmul.mubr.bf16.vlgmr.msra.gmra.mxu1 %v2305_v40  ;;  %2017 = vmatprep.mubr.bf16.mxu0 %v2320_v42 }
  0x8f   : > { %2082 = vmatprep.mubr.bf16.mxu1 %v2322_v45 }
  0x95   : > { %2018 = vmatmul.mubr.bf16.gmra.mxu0 %v2319_v50 }
  0x96   : > { %2083 = vmatmul.mubr.bf16.gmra.mxu1 %v2321_v51  ;;  %2025 = vmatprep.mubr.bf16.mxu0 %v2336_v52 }
  0x97   : > { %2090 = vmatprep.mubr.bf16.mxu1 %v2338_v53 }
  0x9d   : > { %2026 = vmatmul.mubr.bf16.gmra.mxu0 %v2335_v58 }
  0x9e   : > { %2091 = vmatmul.mubr.bf16.gmra.mxu1 %v2337_v59  ;;  %2033 = vmatprep.mubr.bf16.mxu0 %v2352_v60 }
  0x9f   : > { %2098 = vmatprep.mubr.bf16.mxu1 %v2354_v61 }
  0xa5   : > { %2034 = vmatmul.mubr.bf16.gmra.mxu0 %v2351_v62 }
  0xa6   : > { %2099 = vmatmul.mubr.bf16.gmra.mxu1 %v2353_v63 }
  0xed   : > { %v2542_v0 = vpop.f32.mrf.mxu0 }
  0xee   : > { %v2582_v1 = vpop.f32.mrf.mxu1 }
  0xef   : > { %v2543_v3 = vpop.f32.mrf.mxu0 }
  0xf0   : > { %v2544_v4 = vadd.f32 %v2543_v3, %v2542_v0  ;;  %v2583_v5 = vpop.f32.mrf.mxu1 }
  0xf1   : > { %v2584_v6 = vadd.f32 %v2583_v5, %v2582_v1  ;;  %v2545_v7 = vpop.f32.mrf.mxu0 }
  0xf2   : > { %v1622_v8 = vadd.f32 %v2544_v4, %v2290_v2  ;;  %v2585_v9 = vpop.f32.mrf.mxu1 }
  0xf3   : > { %v2546_v10 = vpop.f32.mrf.mxu0 }
  0xf4   : > { %v1687_v11 = vadd.f32 %v2584_v6, %v1622_v8  ;;  %v2547_v12 = vadd.f32 %v2546_v10, %v2545_v7  ;;  %v2586_v13 = vpop.f32.mrf.mxu1 }
  0xf5   : > { %v2587_v14 = vadd.f32 %v2586_v13, %v2585_v9  ;;  %v2548_v16 = vpop.f32.mrf.mxu0 }
  0xf6   : > { %v1625_v15 = vadd.f32 %v2547_v12, %v2290_v2  ;;  %v2588_v17 = vpop.f32.mrf.mxu1 }
  0xf7   : > { %v2549_v19 = vpop.f32.mrf.mxu0 }
  0xf8   : > { %v1690_v18 = vadd.f32 %v2587_v14, %v1625_v15  ;;  %v2550_v20 = vadd.f32 %v2549_v19, %v2548_v16  ;;  %v2589_v21 = vpop.f32.mrf.mxu1 }
  0xf9   : > { %v2590_v22 = vadd.f32 %v2589_v21, %v2588_v17  ;;  %v2551_v23 = vpop.f32.mrf.mxu0 }
  0xfa   : > { %v1630_v24 = vadd.f32 %v2550_v20, %v2290_v2  ;;  %v2591_v25 = vpop.f32.mrf.mxu1 }
  0xfb   : > { %v2552_v26 = vpop.f32.mrf.mxu0 }
  0xfc   : > { %v1695_v27 = vadd.f32 %v2590_v22, %v1630_v24  ;;  %v2553_v28 = vadd.f32 %v2552_v26, %v2551_v23  ;;  %v2592_v29 = vpop.f32.mrf.mxu1 }
  0xfd   : > { %v2593_v30 = vadd.f32 %v2592_v29, %v2591_v25  ;;  %v2554_v32 = vpop.f32.mrf.mxu0 }
  0xfe   : > { %v1633_v31 = vadd.f32 %v2553_v28, %v2290_v2  ;;  %v2594_v33 = vpop.f32.mrf.mxu1 }
  0xff   : > { %v2555_v35 = vpop.f32.mrf.mxu0 }
 0x100   : > { %v1698_v34 = vadd.f32 %v2593_v30, %v1633_v31  ;;  %v2595_v36 = vpop.f32.mrf.mxu1  ;;  %v2556_v37 = vadd.f32 %v2555_v35, %v2554_v32 }
 0x101   : > { %v2596_v38 = vadd.f32 %v2595_v36, %v2594_v33  ;;  %v2557_v39 = vpop.f32.mrf.mxu0 }
 0x102   : > { %v2597_v40 = vpop.f32.mrf.mxu1  ;;  %v1638_v41 = vadd.f32 %v2556_v37, %v2290_v2 }
 0x103   : > { %v2558_v42 = vpop.f32.mrf.mxu0 }
 0x104   : > { %v2598_v43 = vpop.f32.mrf.mxu1  ;;  %v1703_v44 = vadd.f32 %v2596_v38, %v1638_v41  ;;  %v2559_v45 = vadd.f32 %v2558_v42, %v2557_v39 }
 0x105   : > { %v2599_v46 = vadd.f32 %v2598_v43, %v2597_v40  ;;  %v2560_v48 = vpop.f32.mrf.mxu0 }
 0x106   : > { %v1641_v47 = vadd.f32 %v2559_v45, %v2290_v2  ;;  %v2600_v49 = vpop.f32.mrf.mxu1 }
 0x107   : > { %v2561_v51 = vpop.f32.mrf.mxu0 }
 0x108   : > { %v3483_v50 = vadd.f32 %v2599_v46, %v1641_v47  ;;  %v2562_v52 = vadd.f32 %v2561_v51, %v2560_v48  ;;  %v2601_v53 = vpop.f32.mrf.mxu1 }
 0x109   : > { %v2602_v54 = vadd.f32 %v2601_v53, %v2600_v49  ;;  %v2563_v55 = vpop.f32.mrf.mxu0 }
 0x10a   : > { %v1646_v56 = vadd.f32 %v2562_v52, %v2290_v2  ;;  %v2603_v57 = vpop.f32.mrf.mxu1 }
 0x10b   : > { %v2564_v58 = vpop.f32.mrf.mxu0 }
 0x10c   : > { %v3485_v59 = vadd.f32 %v2602_v54, %v1646_v56  ;;  %v2565_v60 = vadd.f32 %v2564_v58, %v2563_v55  ;;  %v2604_v61 = vpop.f32.mrf.mxu1 }
 0x10d   : > { %v2605_v62 = vadd.f32 %v2604_v61, %v2603_v57  ;;  %v2622_v0 = vpop.f32.mrf.mxu0 }
 0x10e   : > { %v1649_v63 = vadd.f32 %v2565_v60, %v2290_v2  ;;  %v2662_v1 = vpop.f32.mrf.mxu1 }
 0x10f   : > { %v2623_v4 = vpop.f32.mrf.mxu0 }
 0x110   : > { %v3487_v3 = vadd.f32 %v2605_v62, %v1649_v63  ;;  %v2624_v5 = vadd.f32 %v2623_v4, %v2622_v0  ;;  %v2663_v6 = vpop.f32.mrf.mxu1 }
 0x111   : > { %v2664_v7 = vadd.f32 %v2663_v6, %v2662_v1  ;;  %v2625_v8 = vpop.f32.mrf.mxu0 }
 0x112   : > { %v1752_v9 = vadd.f32 %v2624_v5, %v1687_v11  ;;  %v2665_v10 = vpop.f32.mrf.mxu1 }
 0x113   : > { %v2626_v12 = vpop.f32.mrf.mxu0 }
 0x114   : > { %v3489_v13 = vadd.f32 %v2664_v7, %v1752_v9  ;;  %v2627_v14 = vadd.f32 %v2626_v12, %v2625_v8  ;;  %v2666_v15 = vpop.f32.mrf.mxu1 }
 0x115   : > { %v2667_v16 = vadd.f32 %v2666_v15, %v2665_v10  ;;  %v2628_v19 = vpop.f32.mrf.mxu0 }
 0x116   : > { %v1755_v17 = vadd.f32 %v2627_v14, %v1690_v18  ;;  %v2668_v2 = vpop.f32.mrf.mxu1 }
 0x117   : > { %v2629_v21 = vpop.f32.mrf.mxu0 }
 0x118   : > { %v3491_v20 = vadd.f32 %v2667_v16, %v1755_v17  ;;  %v2669_v22 = vpop.f32.mrf.mxu1  ;;  %v2630_v23 = vadd.f32 %v2629_v21, %v2628_v19 }
 0x119   : > { %v2670_v24 = vadd.f32 %v2669_v22, %v2668_v2  ;;  %v2631_v25 = vpop.f32.mrf.mxu0 }
 0x11a   : > { %v2671_v26 = vpop.f32.mrf.mxu1  ;;  %v1760_v28 = vadd.f32 %v2630_v23, %v1695_v27 }
 0x11b   : > { %v2632_v11 = vpop.f32.mrf.mxu0 }
 0x11c   : > { %v2672_v29 = vpop.f32.mrf.mxu1  ;;  %v3493_v30 = vadd.f32 %v2670_v24, %v1760_v28  ;;  %v2633_v31 = vadd.f32 %v2632_v11, %v2631_v25 }
 0x11d   : > { %v2673_v32 = vadd.f32 %v2672_v29, %v2671_v26  ;;  %v2634_v35 = vpop.f32.mrf.mxu0 }
 0x11e   : > { %v1763_v33 = vadd.f32 %v2633_v31, %v1698_v34  ;;  %v2674_v18 = vpop.f32.mrf.mxu1 }
 0x11f   : > { %v2635_v37 = vpop.f32.mrf.mxu0 }
 0x120   : > { %v3495_v36 = vadd.f32 %v2673_v32, %v1763_v33  ;;  %v2636_v38 = vadd.f32 %v2635_v37, %v2634_v35  ;;  %v2675_v39 = vpop.f32.mrf.mxu1 }
 0x121   : > { %v3497_v40 = vpop.f32.mrf.mxu0  ;;  %v2676_v42 = vadd.f32 %v2675_v39, %v2674_v18 }
 0x122   : > { %v1768_v41 = vadd.f32 %v2636_v38, %v1703_v44  ;;  %v3499_v43 = vpop.f32.mrf.mxu1 }
 0x123   : > { %v3501_v27 = vpop.f32.mrf.mxu0 }
 0x124   : > { %v3503_v45 = vadd.f32 %v2676_v42, %v1768_v41  ;;  %v3505_v46 = vpop.f32.mrf.mxu1 }
 0x125   : > { %v3507_v34 = vpop.f32.mrf.mxu0 }
 0x126   : > { %v3509_v47 = vpop.f32.mrf.mxu1 }
 0x127   : > { %v3511_v48 = vpop.f32.mrf.mxu0 }
 0x128   : > { %v3513_v49 = vpop.f32.mrf.mxu1 }
 0x129   : > { %v3515_v51 = vpop.f32.mrf.mxu0 }
 0x12a   : > { %v3517_v44 = vpop.f32.mrf.mxu1 }
 0x12b   : > { %v3519_v52 = vpop.f32.mrf.mxu0 }
 0x12c   : > { %v3521_v53 = vpop.f32.mrf.mxu1 }
 0x12d   : > { %v2702_v54 = vpop.f32.mrf.mxu0 }
 0x12e   : > { %v2742_v55 = vpop.f32.mrf.mxu1 }
 0x12f   : > { %v2703_v56 = vpop.f32.mrf.mxu0 }
 0x130   : > { %v2743_v57 = vpop.f32.mrf.mxu1  ;;  %v2704_v26 = vadd.f32 %v2703_v56, %v2702_v54 }
 0x131   : > { %v2705_v58 = vpop.f32.mrf.mxu0  ;;  %v2744_v37 = vadd.f32 %v2743_v57, %v2742_v55 }
 0x132   : > { %v2745_v60 = vpop.f32.mrf.mxu1  ;;  %v1882_v32 = vadd.f32 %v2704_v26, %v3489_v13 }
 0x133   : > { %v2706_v61 = vpop.f32.mrf.mxu0 }
 0x134   : > { %v2746_v62 = vpop.f32.mrf.mxu1  ;;  %v2707_v29 = vadd.f32 %v2706_v61, %v2705_v58 }
 0x135   : > { %v2708_v63 = vpop.f32.mrf.mxu0 }
 0x136   : > { %v2748_v0 = vpop.f32.mrf.mxu1  ;;  %v1885_v38 = vadd.f32 %v2707_v29, %v3491_v20 }
 0x137   : > { %v2709_v1 = vpop.f32.mrf.mxu0 }
 0x138   : > { %v2749_v4 = vpop.f32.mrf.mxu1  ;;  %v2710_v35 = vadd.f32 %v2709_v1, %v2708_v63  ;;  %v2639_v63 = vadd.f32 %v3501_v27, %v3497_v40  ;;  %v2642_v40 = vadd.f32 %v3511_v48, %v3507_v34 }
 0x139   : > { %v2711_v5 = vpop.f32.mrf.mxu0  ;;  %v2750_v55 = vadd.f32 %v2749_v4, %v2748_v0 }
 0x13a   : > { %v2751_v6 = vpop.f32.mrf.mxu1  ;;  %v1890_v56 = vadd.f32 %v2710_v35, %v3493_v30 }
 0x13b   : > { %v2712_v7 = vpop.f32.mrf.mxu0 }
 0x13c   : > { %v2752_v8 = vpop.f32.mrf.mxu1 }
 0x13d   : > { %v2714_v9 = vpop.f32.mrf.mxu0  ;;  %v2753_v0 = vadd.f32 %v2752_v8, %v2751_v6  ;;  %v1776_v6 = vadd.f32 %v2642_v40, %v3485_v59  ;;  %v2645_v8 = vadd.f32 %v3519_v52, %v3515_v51 }
 0x13e   : > { %v3523_v10 = vpop.f32.mrf.mxu1 }
 0x13f   : > { %v2715_v12 = vpop.f32.mrf.mxu0 }
 0x140   : > { %v3525_v14 = vpop.f32.mrf.mxu1  ;;  %v2716_v30 = vadd.f32 %v2715_v12, %v2714_v9  ;;  %v2679_v9 = vadd.f32 %v3505_v46, %v3499_v43 }
 0x141   : > { %v2717_v15 = vpop.f32.mrf.mxu0 }
 0x142   : > { %v3527_v16 = vpop.f32.mrf.mxu1  ;;  %v1898_v35 = vadd.f32 %v2716_v30, %v3503_v45  ;;  %v2682_v45 = vadd.f32 %v3513_v49, %v3509_v47  ;;  %v2685_v49 = vadd.f32 %v3521_v53, %v3517_v44 }
 0x143   : > { %v2718_v17 = vpop.f32.mrf.mxu0 }
 0x144   : > { %v3529_v19 = vpop.f32.mrf.mxu1  ;;  %v2719_v12 = vadd.f32 %v2718_v17, %v2717_v15 }
 0x145   : > { %v3531_v2 = vpop.f32.mrf.mxu0 }
 0x146   : > { %v3533_v21 = vpop.f32.mrf.mxu1 }
 0x147   : > { %3610 = vst [vmem:[#allocation2_spill] sm:$0xff] %v3533_v21  ;;  %v3535_v22 = vpop.f32.mrf.mxu0  ;;  %v2713_v21 = vadd.f32 %v2712_v7, %v2711_v5 }
 0x148   : > { %v3537_v23 = vpop.f32.mrf.mxu1  ;;  %v2722_v59 = vadd.f32 %v3535_v22, %v3531_v2 }
 0x149   : > { %3611 = vst [vmem:[#allocation3_spill] sm:$0xff] %v3537_v23  ;;  %v3539_v24 = vpop.f32.mrf.mxu0  ;;  %v1947_v23 = vadd.f32 %v2744_v37, %v1882_v32 }
 0x14a   : > { %v3541_v25 = vpop.f32.mrf.mxu1 }
 0x14b   : > { %3612 = vst [vmem:[#allocation4_spill] sm:$0xff] %v3541_v25  ;;  %v3543_v28 = vpop.f32.mrf.mxu0  ;;  %v2747_v25 = vadd.f32 %v2746_v62, %v2745_v60  ;;  %v1893_v60 = vadd.f32 %v2713_v21, %v3495_v36 }
 0x14c   : > { %3613 = vst [vmem:[#allocation5_spill] sm:$0xff] %v3543_v28  ;;  %v3545_v11 = vpop.f32.mrf.mxu1 }
 0x14d   : > { %3614 = vst [vmem:[#allocation6_spill] sm:$0xff] %v3545_v11  ;;  %v2782_v31 = vpop.f32.mrf.mxu0  ;;  %v1950_v58 = vadd.f32 %v2747_v25, %v1885_v38  ;;  %v2756_v38 = vadd.f32 %v3525_v14, %v3523_v10  ;;  %v2759_v10 = vadd.f32 %v3529_v19, %v3527_v16 }
 0x14e   : > { %v2822_v33 = vpop.f32.mrf.mxu1  ;;  %v3616_v19 = vld [vmem:[#allocation2_spill] sm:$0xff] }
 0x14f   : > { %v2783_v18 = vpop.f32.mrf.mxu0 }
 0x150   : > { %v2784_v39 = vadd.f32 %v2783_v18, %v2782_v31  ;;  %v2823_v41 = vpop.f32.mrf.mxu1  ;;  %v1955_v31 = vadd.f32 %v2750_v55, %v1890_v56  ;;  %v1779_v56 = vadd.f32 %v2645_v8, %v3487_v3 }
 0x151   : > { %v2785_v42 = vpop.f32.mrf.mxu0  ;;  %v2824_v20 = vadd.f32 %v2823_v41, %v2822_v33  ;;  %v1958_v33 = vadd.f32 %v2753_v0, %v1893_v60 }
 0x152   : > { %v2825_v54 = vpop.f32.mrf.mxu1  ;;  %v2012_v61 = vadd.f32 %v2784_v39, %v1947_v23 }
 0x153   : > { %v2786_v11 = vpop.f32.mrf.mxu0  ;;  %v3615_v22 = vld [vmem:[#allocation5_spill] sm:$0xff] }
 0x154   : > { %v2787_v28 = vadd.f32 %v2786_v11, %v2785_v42  ;;  %v2826_v13 = vpop.f32.mrf.mxu1  ;;  %v3553_v5 = vadd.f32 %v2824_v20, %v2012_v61  ;;  %v1771_v11 = vadd.f32 %v2639_v63, %v3483_v50  ;;  %v1963_v42 = vadd.f32 %v2756_v38, %v1898_v35 }
 0x155   : > { %v2788_v57 = vpop.f32.mrf.mxu0  ;;  %v2827_v26 = vadd.f32 %v2826_v13, %v2825_v54  ;;  %v2725_v20 = vadd.f32 %v3615_v22, %v3539_v24  ;;  %v3618_v24 = vld [vmem:[#allocation4_spill] sm:$0xff] }
 0x156   : > { %v2015_v1 = vadd.f32 %v2787_v28, %v1950_v58  ;;  %v2828_v29 = vpop.f32.mrf.mxu1  ;;  %v1836_v48 = vadd.f32 %v2679_v9, %v1771_v11  ;;  %v1841_v58 = vadd.f32 %v2682_v45, %v1776_v6 }
 0x157   : > { %v2789_v62 = vpop.f32.mrf.mxu0 }
 0x158   : > { %v3555_v7 = vadd.f32 %v2827_v26, %v2015_v1  ;;  %v2790_v23 = vadd.f32 %v2789_v62, %v2788_v57  ;;  %v2829_v25 = vpop.f32.mrf.mxu1  ;;  %v1901_v39 = vadd.f32 %v2719_v12, %v1836_v48  ;;  %v1906_v2 = vadd.f32 %v2722_v59, %v1841_v58 }
 0x159   : > { %v2791_v27 = vpop.f32.mrf.mxu0  ;;  %v2830_v36 = vadd.f32 %v2829_v25, %v2828_v29  ;;  %v1844_v29 = vadd.f32 %v2685_v49, %v1779_v56 }
 0x15a   : > { %v2107_v4 = vadd.f32 %v3555_v7, %v3553_v5  ;;  %v2020_v28 = vadd.f32 %v2790_v23, %v1955_v31  ;;  %v2831_v21 = vpop.f32.mrf.mxu1  ;;  %v1966_v55 = vadd.f32 %v2759_v10, %v1901_v39  ;;  %v3617_v31 = vld [vmem:[#allocation3_spill] sm:$0xff] }
 0x15b   : > { %v2792_v32 = vpop.f32.mrf.mxu0  ;;  %v2762_v60 = vadd.f32 %v3617_v31, %v3616_v19  ;;  %v1909_v53 = vadd.f32 %v2725_v20, %v1844_v29 }
 0x15c   : > { %v3565_v50 = vadd.f32 %v2830_v36, %v2020_v28  ;;  %v2793_v18 = vadd.f32 %v2792_v32, %v2791_v27  ;;  %v2832_v34 = vpop.f32.mrf.mxu1  ;;  %v3619_v28 = vld [vmem:[#allocation6_spill] sm:$0xff] }
 0x15d   : > { %v2794_v37 = vpop.f32.mrf.mxu0  ;;  %v2833_v15 = vadd.f32 %v2832_v34, %v2831_v21  ;;  %v1971_v44 = vadd.f32 %v2762_v60, %v1906_v2  ;;  %v2765_v36 = vadd.f32 %v3619_v28, %v3618_v24 }
 0x15e   : > { %v2108_v43 = vadd.f32 %v2107_v4, %v3565_v50  ;;  %v2023_v46 = vadd.f32 %v2793_v18, %v1958_v33  ;;  %v2834_v17 = vpop.f32.mrf.mxu1 }
 0x15f   : > { %v2795_v41 = vpop.f32.mrf.mxu0  ;;  %v1974_v35 = vadd.f32 %v2765_v36, %v1909_v53 }
 0x160   : > { %v2088_v54 = vadd.f32 %v2833_v15, %v2023_v46  ;;  %v2796_v51 = vadd.f32 %v2795_v41, %v2794_v37  ;;  %v2835_v52 = vpop.f32.mrf.mxu1 }
 0x161   : > { %v2797_v14 = vpop.f32.mrf.mxu0  ;;  %v2836_v63 = vadd.f32 %v2835_v52, %v2834_v17 }
 0x162   : > { %v2109_v61 = vadd.f32 %v2108_v43, %v2088_v54  ;;  %v2028_v13 = vadd.f32 %v2796_v51, %v1963_v42  ;;  %v2837_v47 = vpop.f32.mrf.mxu1 }
 0x163   : > { %v2798_v57 = vpop.f32.mrf.mxu0 }
 0x164   : > { %v2093_v1 = vadd.f32 %v2836_v63, %v2028_v13  ;;  %v2799_v3 = vadd.f32 %v2798_v57, %v2797_v14  ;;  %v2838_v26 = vpop.f32.mrf.mxu1 }
 0x165   : > { %v2800_v16 = vpop.f32.mrf.mxu0  ;;  %v2839_v23 = vadd.f32 %v2838_v26, %v2837_v47 }
 0x166   : > { %v2110_v62 = vadd.f32 %v2109_v61, %v2093_v1  ;;  %v2031_v30 = vadd.f32 %v2799_v3, %v1966_v55  ;;  %v2840_v25 = vpop.f32.mrf.mxu1 }
 0x167   : > { %v2801_v11 = vpop.f32.mrf.mxu0 }
 0x168   : > { %v2096_v40 = vadd.f32 %v2839_v23, %v2031_v30  ;;  %v2802_v27 = vadd.f32 %v2801_v11, %v2800_v16  ;;  %v2841_v0 = vpop.f32.mrf.mxu1 }
 0x169   : > { %v2803_v4 = vpop.f32.mrf.mxu0  ;;  %v2842_v12 = vadd.f32 %v2841_v0, %v2840_v25 }
 0x16a   : > { %v2111_v21 = vadd.f32 %v2110_v62, %v2096_v40  ;;  %v2036_v9 = vadd.f32 %v2802_v27, %v1971_v44  ;;  %v2843_v32 = vpop.f32.mrf.mxu1 }
 0x16b   : > { %v2804_v33 = vpop.f32.mrf.mxu0 }
 0x16c   : > { %v2101_v18 = vadd.f32 %v2842_v12, %v2036_v9  ;;  %v2805_v34 = vadd.f32 %v2804_v33, %v2803_v4  ;;  %v2844_v48 = vpop.f32.mrf.mxu1 }
 0x16d   : > { %v2845_v37 = vadd.f32 %v2844_v48, %v2843_v32 }
 0x16e   : > { %v2112_v6 = vadd.f32 %v2111_v21, %v2101_v18  ;;  %v2039_v8 = vadd.f32 %v2805_v34, %v1974_v35 }
 0x170   : > { %v2104_v38 = vadd.f32 %v2845_v37, %v2039_v8 }
 0x172   : > { %v2113_v43 = vadd.f32 %v2112_v6, %v2104_v38 }
 0x174   : > { %v2114_v46 = vrot.slane %v2113_v43, 4 }
 0x176   : > { %v2115_v15 = vadd.f32 %v2114_v46, %v2113_v43 }
 0x178   : > { %v2116_v17 = vrot.slane %v2115_v15, 2 }
 0x17a   : > { %v2117_v45 = vadd.f32 %v2116_v17, %v2115_v15 }
 0x17c   : > { %v2118_v39 = vrot.slane %v2117_v45, 1 }
 0x17e   : > { %v2119_v41 = vadd.f32 %v2118_v39, %v2117_v45 }
 0x180   : > { %v2121_v42 = vmul.f32 0.015625, %v2119_v41 }
 0x182   : > { %v2122_v59 = vsub.f32 %v3553_v5, %v2121_v42  ;;  %v2123_v51 = vsub.f32 %v3555_v7, %v2121_v42  ;;  %v2124_v52 = vsub.f32 %v3565_v50, %v2121_v42  ;;  %v2125_v56 = vsub.f32 %v2088_v54, %v2121_v42 }
 0x183   : > { %v2126_v10 = vsub.f32 %v2093_v1, %v2121_v42  ;;  %v2127_v14 = vsub.f32 %v2096_v40, %v2121_v42  ;;  %v2128_v58 = vsub.f32 %v2101_v18, %v2121_v42  ;;  %v2129_v61 = vsub.f32 %v2104_v38, %v2121_v42 }
 0x184   : > { %v2130_v13 = vmul.f32 %v2122_v59, %v2122_v59  ;;  %v2131_v63 = vmul.f32 %v2123_v51, %v2123_v51  ;;  %v2132_v47 = vmul.f32 %v2124_v52, %v2124_v52  ;;  %v2133_v55 = vmul.f32 %v2125_v56, %v2125_v56 }
 0x185   : > { %v2134_v2 = vmul.f32 %v2126_v10, %v2126_v10  ;;  %v2135_v20 = vmul.f32 %v2127_v14, %v2127_v14  ;;  %v2136_v5 = vmul.f32 %v2128_v58, %v2128_v58  ;;  %v2137_v7 = vmul.f32 %v2129_v61, %v2129_v61 }
 0x186   : > { %v2138_v49 = vadd.f32 %v2131_v63, %v2130_v13 }
 0x188   : > { %v2139_v57 = vadd.f32 %v2138_v49, %v2132_v47 }
 0x18a   : > { %v2140_v22 = vadd.f32 %v2139_v57, %v2133_v55 }
 0x18c   : > { %v2141_v3 = vadd.f32 %v2140_v22, %v2134_v2 }
 0x18e   : > { %v2142_v26 = vadd.f32 %v2141_v3, %v2135_v20 }
 0x190   : > { %v2143_v29 = vadd.f32 %v2142_v26, %v2136_v5 }
 0x192   : > { %v2144_v50 = vadd.f32 %v2143_v29, %v2137_v7 }
 0x194   : > { %v2145_v54 = vrot.slane %v2144_v50, 4 }
 0x196   : > { %v2146_v1 = vadd.f32 %v2145_v54, %v2144_v50 }
 0x198   : > { %v2147_v16 = vrot.slane %v2146_v1, 2 }
 0x19a   : > { %v2148_v19 = vadd.f32 %v2147_v16, %v2146_v1 }
 0x19c   : > { %v2149_v31 = vrot.slane %v2148_v19, 1 }
 0x19e   : > { %v2150_v60 = vadd.f32 %v2149_v31, %v2148_v19 }
 0x1a0   : > { %v2151_v62 = vmul.f32 0.015625, %v2150_v60 }
 0x1a2   : > { %v2152_v30 = vadd.f32 1e-05, %v2151_v62 }
 0x1a4   : > { %2982 = vrsqrt.f32 %v2152_v30 }
 0x1b1   : > { %v2983_v23 = vpop.eup %2982 }
 0x1b2   : > { %v2154_v25 = vmul.f32 %v2983_v23, %v2122_v59  ;;  %v2155_v11 = vmul.f32 %v2983_v23, %v2123_v51  ;;  %v2156_v44 = vmul.f32 %v2983_v23, %v2124_v52  ;;  %v2157_v53 = vmul.f32 %v2983_v23, %v2125_v56 }
 0x1b3   : > { %v2158_v40 = vmul.f32 %v2983_v23, %v2126_v10  ;;  %v2159_v27 = vmul.f32 %v2983_v23, %v2127_v14  ;;  %v2160_v0 = vmul.f32 %v2983_v23, %v2128_v58  ;;  %v2161_v4 = vmul.f32 %v2983_v23, %v2129_v61 }
 0x1b4   : > { %vm2162_vm0 = vcmp.ge.f32.partialorder %v2154_v25, 0.0  ;;  %vm2163_vm1 = vcmp.ge.f32.partialorder %v2155_v11, 0.0  ;;  %vm2164_vm2 = vcmp.ge.f32.partialorder %v2156_v44, 0.0  ;;  %vm2165_vm3 = vcmp.ge.f32.partialorder %v2157_v53, 0.0 }
 0x1b5   : > { %vm2166_vm4 = vcmp.ge.f32.partialorder %v2158_v40, 0.0  ;;  %vm2167_vm5 = vcmp.ge.f32.partialorder %v2159_v27, 0.0  ;;  %vm2168_vm6 = vcmp.ge.f32.partialorder %v2160_v0, 0.0  ;;  %vm2169_vm7 = vcmp.ge.f32.partialorder %v2161_v4, 0.0 }
 0x1b6   : > { %v2170_v24 = vmul.f32 0.2, %v2154_v25  ;;  %v2171_v28 = vmul.f32 0.2, %v2155_v11  ;;  %v2172_v36 = vmul.f32 0.2, %v2156_v44 }
 0x1b7   : > { %v2173_v21 = vmul.f32 0.2, %v2157_v53  ;;  %v2174_v9 = vmul.f32 0.2, %v2158_v40  ;;  %v2175_v12 = vmul.f32 0.2, %v2159_v27 }
 0x1b8   : > { %v2176_v32 = vmul.f32 0.2, %v2160_v0  ;;  %v2177_v33 = vmul.f32 0.2, %v2161_v4  ;;  %v2178_v35 = vsel %vm2162_vm0, %v2154_v25, %v2170_v24  ;;  %v2179_v18 = vsel %vm2163_vm1, %v2155_v11, %v2171_v28 }
 0x1b9   : > { %v2180_v34 = vsel %vm2164_vm2, %v2156_v44, %v2172_v36  ;;  %v2181_v48 = vsel %vm2165_vm3, %v2157_v53, %v2173_v21  ;;  %v2182_v6 = vsel %vm2166_vm4, %v2158_v40, %v2174_v9  ;;  %v2183_v8 = vsel %vm2167_vm5, %v2159_v27, %v2175_v12 }
 0x1ba   : > { %v2184_v37 = vsel %vm2168_vm6, %v2160_v0, %v2176_v32  ;;  %v2185_v38 = vsel %vm2169_vm7, %v2161_v4, %v2177_v33  ;;  %v2506_v43 = vpack.c.bf16 %v2179_v18, %v2178_v35  ;;  %v2511_v46 = vpack.c.bf16 %v2181_v48, %v2180_v34 }
 0x1bb   : > { %v2516_v15 = vpack.c.bf16 %v2183_v8, %v2182_v6  ;;  %v2521_v17 = vpack.c.bf16 %v2185_v38, %v2184_v37 }
 0x1bc   : > { %2507 = vst [vmem:[%s170_s13] sm:$0xff] %v2506_v43   ;;  %2523 = vst [vmem:[%s170_s13 + $0x8] sm:$0xff] %v2511_v46  }
 0x1bd   : > { %2524 = vst [vmem:[%s170_s13 + $0x10] sm:$0xff] %v2516_v15   ;;  %2525 = vst [vmem:[%s170_s13 + $0x18] sm:$0xff] %v2521_v17  }
 0x1be PF: > { %s13_s12 = sadd.s32 1, %s2990_s12  }
 0x1bf   : > { %p10_p4 = scmp.ge.s32.totalorder %s13_s12, 4  }
 0x1c1   :  { %12 = sbr.rel (!%p10_p4) target bundleno = 1 (0x1), region = 62 }

// kernel: discriminator_forward.7
= control target key start
LH: loop header
LB: loop body
LE: loop exit
PB: predicated region body
PF: predicated region fallthrough
CT: control target
= control target key end

     0   :  { %s3002_s12 = smov 0   ;;  %s3864_s0 = inlined_call_operand.vmem [shape: bf16[2,16,2048], index: 0, kind: input, shape index: {}]   ;;  %s3865_s1 = inlined_call_operand.vmem [shape: bf16[2048,256], index: 1, kind: input, shape index: {}]   ;;  %s3866_s2 = inlined_call_operand.vmem [shape: f32[1,256], index: 2, kind: input, shape index: {}]   ;;  %s3867_s3 = inlined_call_operand.vmem [shape: bf16[2,16,256], index: 3, kind: output, shape index: {}]  }
   0x1 LB: > { %s2289_s13 = sadd.s32 4294967295, %s2980_s12   ;;  %p2293_p0 = scmp.ge.s32.totalorder %s2980_s12, 1  ;;  %s2980_s12 = sphi %s3002_s12, %s13_s12  }
   0x2   : > { %p137_p1 = scmp.lt.s32.totalorder %s2980_s12, 3 }
   0x4   : > { %p138_p2 = pnand %p2293_p0, %p137_p1 }
   0x5   : > { %p161_p3 = scmp.lt.s32.totalorder (!%p138_p2), %s2289_s13, 1 }
   0x6   : > { %141 = sbr.rel (%p138_p2) target bundleno = 531 (0x213), region = 32 }
   0xb   : > { %v2586_v0 = vld [vmem:[%s3865_s1 + $0x74] ss:$8 sps:$4 sm:$0xff]   ;;  %v2590_v2 = vld [vmem:[%s3865_s1 + $0x70] ss:$8 sps:$4 sm:$0xff]   ;;  %v2592_v4 = vld [vmem:[%s3865_s1 + $0x64] ss:$8 sps:$4 sm:$0xff]  }
   0xc   : > { %v2588_v1 = vld [vmem:[%s3865_s1 + $0x174] ss:$8 sps:$4 sm:$0xff]   ;;  %1815 = vmatprep.subr.bf16.mxu0 %v2586_v0  ;;  %v2591_v3 = vld [vmem:[%s3865_s1 + $0x170] ss:$8 sps:$4 sm:$0xff]   ;;  %v2594_v5 = vld [vmem:[%s3865_s1 + $0x164] ss:$8 sps:$4 sm:$0xff]  }
   0xd   : > { %1858 = vmatprep.subr.bf16.mxu1 %v2588_v1  ;;  %1816 = vmatpush1.bf16.msra.mxu0 %v2590_v2  ;;  %v2596_v6 = vld [vmem:[%s3865_s1 + $0x60] ss:$8 sps:$4 sm:$0xff]   ;;  %v2598_v8 = vld [vmem:[%s3865_s1 + $0x54] ss:$8 sps:$4 sm:$0xff]   ;;  %v2602_v10 = vld [vmem:[%s3865_s1 + $0x50] ss:$8 sps:$4 sm:$0xff]  }
   0xe   : > { %1859 = vmatpush1.bf16.msra.mxu1 %v2591_v3  ;;  %1817 = vmatprep.subr.bf16.mxu0 %v2592_v4  ;;  %v2597_v7 = vld [vmem:[%s3865_s1 + $0x160] ss:$8 sps:$4 sm:$0xff]   ;;  %v2600_v9 = vld [vmem:[%s3865_s1 + $0x154] ss:$8 sps:$4 sm:$0xff]   ;;  %v2603_v11 = vld [vmem:[%s3865_s1 + $0x150] ss:$8 sps:$4 sm:$0xff]  }
   0xf   : > { %1860 = vmatprep.subr.bf16.mxu1 %v2594_v5  ;;  %v2604_v12 = vld [vmem:[%s3865_s1 + $0x44] ss:$8 sps:$4 sm:$0xff]   ;;  %v2608_v14 = vld [vmem:[%s3865_s1 + $0x40] ss:$8 sps:$4 sm:$0xff]   ;;  %v2610_v16 = vld [vmem:[%s3865_s1 + $0x34] ss:$8 sps:$4 sm:$0xff]  }
  0x10   : > { %v2606_v13 = vld [vmem:[%s3865_s1 + $0x144] ss:$8 sps:$4 sm:$0xff]   ;;  %v2609_v15 = vld [vmem:[%s3865_s1 + $0x140] ss:$8 sps:$4 sm:$0xff]   ;;  %v2612_v17 = vld [vmem:[%s3865_s1 + $0x134] ss:$8 sps:$4 sm:$0xff]  }
  0x11   : > { %1818 = vmatpush1.bf16.msra.mxu0 %v2596_v6  ;;  %v2614_v18 = vld [vmem:[%s3865_s1 + $0x30] ss:$8 sps:$4 sm:$0xff]   ;;  %v2616_v20 = vld [vmem:[%s3865_s1 + $0x24] ss:$8 sps:$4 sm:$0xff]   ;;  %v2620_v22 = vld [vmem:[%s3865_s1 + $0x20] ss:$8 sps:$4 sm:$0xff]  }
  0x12   : > { %1861 = vmatpush1.bf16.msra.mxu1 %v2597_v7  ;;  %1819 = vmatprep.subr.bf16.mxu0 %v2598_v8  ;;  %v2615_v19 = vld [vmem:[%s3865_s1 + $0x130] ss:$8 sps:$4 sm:$0xff]   ;;  %v2618_v21 = vld [vmem:[%s3865_s1 + $0x124] ss:$8 sps:$4 sm:$0xff]   ;;  %v2621_v23 = vld [vmem:[%s3865_s1 + $0x120] ss:$8 sps:$4 sm:$0xff]  }
  0x13   : > { %1862 = vmatprep.subr.bf16.mxu1 %v2600_v9  ;;  %v2622_v24 = vld [vmem:[%s3865_s1 + $0x14] ss:$8 sps:$4 sm:$0xff]   ;;  %v2626_v26 = vld [vmem:[%s3865_s1 + $0x10] ss:$8 sps:$4 sm:$0xff]   ;;  %v2628_v28 = vld [vmem:[%s3865_s1 + $0x4] ss:$8 sps:$4 sm:$0xff]  }
  0x14   : > { %v2624_v25 = vld [vmem:[%s3865_s1 + $0x114] ss:$8 sps:$4 sm:$0xff]   ;;  %v2627_v27 = vld [vmem:[%s3865_s1 + $0x110] ss:$8 sps:$4 sm:$0xff]   ;;  %v2630_v29 = vld [vmem:[%s3865_s1 + $0x104] ss:$8 sps:$4 sm:$0xff]  }
  0x15   : > { %1820 = vmatpush1.bf16.msra.mxu0 %v2602_v10  ;;  %v2632_v30 = vld [vmem:[%s3865_s1] ss:$8 sps:$4 sm:$0xff]   ;;  %v2634_v32 = vld [vmem:[%s3865_s1 + $0xf4] ss:$8 sps:$4 sm:$0xff]   ;;  %v2638_v34 = vld [vmem:[%s3865_s1 + $0xf0] ss:$8 sps:$4 sm:$0xff]  }
  0x16   : > { %1863 = vmatpush1.bf16.msra.mxu1 %v2603_v11  ;;  %1821 = vmatprep.subr.bf16.mxu0 %v2604_v12  ;;  %v2633_v31 = vld [vmem:[%s3865_s1 + $0x100] ss:$8 sps:$4 sm:$0xff]   ;;  %v2636_v33 = vld [vmem:[%s3865_s1 + $0x1f4] ss:$8 sps:$4 sm:$0xff]   ;;  %v2639_v35 = vld [vmem:[%s3865_s1 + $0x1f0] ss:$8 sps:$4 sm:$0xff]  }
  0x17   : > { %1864 = vmatprep.subr.bf16.mxu1 %v2606_v13  ;;  %v2640_v36 = vld [vmem:[%s3865_s1 + $0xe4] ss:$8 sps:$4 sm:$0xff]   ;;  %s3869_s13 = smov (!%p161_p3, %s2289_s13), 1  ;;  %v2644_v38 = vld [vmem:[%s3865_s1 + $0xe0] ss:$8 sps:$4 sm:$0xff]  }
  0x18   : > { %v2642_v37 = vld [vmem:[%s3865_s1 + $0x1e4] ss:$8 sps:$4 sm:$0xff]   ;;  %v2645_v39 = vld [vmem:[%s3865_s1 + $0x1e0] ss:$8 sps:$4 sm:$0xff]   ;;  %v2646_v40 = vld [vmem:[%s3865_s1 + $0xd4] ss:$8 sps:$4 sm:$0xff]  }
  0x19   : > { %1822 = vmatpush1.bf16.msra.mxu0 %v2608_v14  ;;  %s2574_s21 = sshll.u32 %s3869_s13, 7  ;;  %v2648_v41 = vld [vmem:[%s3865_s1 + $0x1d4] ss:$8 sps:$4 sm:$0xff]   ;;  %v2650_v42 = vld [vmem:[%s3865_s1 + $0xd0] ss:$8 sps:$4 sm:$0xff]   ;;  %s2575_s19 = sshll.u32 %s3869_s13, 4 }
  0x1a   : > { %1865 = vmatpush1.bf16.msra.mxu1 %v2609_v15  ;;  %1823 = vmatprep.subr.bf16.mxu0 %v2610_v16  ;;  %v2651_v43 = vld [vmem:[%s3865_s1 + $0x1d0] ss:$8 sps:$4 sm:$0xff]   ;;  %s3152_s30 = scalar_lea.vmem %s3864_s0, %s2574_s21  ;;  %v2652_v44 = vld [vmem:[%s3865_s1 + $0xc4] ss:$8 sps:$4 sm:$0xff]   ;;  %v2656_v46 = vld [vmem:[%s3865_s1 + $0xc0] ss:$8 sps:$4 sm:$0xff]   ;;  %s170_s22 = scalar_lea.vmem %s3867_s3, %s2575_s19 }
  0x1b   : > { %1866 = vmatprep.subr.bf16.mxu1 %v2612_v17  ;;  %v2654_v45 = vld [vmem:[%s3865_s1 + $0x1c4] ss:$8 sps:$4 sm:$0xff]   ;;  %v2657_v47 = vld [vmem:[%s3865_s1 + $0x1c0] ss:$8 sps:$4 sm:$0xff]   ;;  %v2658_v52 = vld [vmem:[%s3865_s1 + $0xb4] ss:$8 sps:$4 sm:$0xff]  }
  0x1c   : > { %v171_v48 = vld [vmem:[%s3152_s30] sm:$0xff]  ;;  %v172_v50 = vld [vmem:[%s3152_s30 + $0x8] sm:$0xff]  ;;  %v2660_v54 = vld [vmem:[%s3865_s1 + $0x1b4] ss:$8 sps:$4 sm:$0xff]  }
  0x1d   : > { %1824 = vmatpush1.bf16.msra.mxu0 %v2614_v18  ;;  %v179_v49 = vld [vmem:[%s3152_s30 + $0x40] sm:$0xff]  ;;  %v180_v51 = vld [vmem:[%s3152_s30 + $0x48] sm:$0xff]  ;;  %v2662_v56 = vld [vmem:[%s3865_s1 + $0xb0] ss:$8 sps:$4 sm:$0xff]  }
  0x1e   : > { %1867 = vmatpush1.bf16.msra.mxu1 %v2615_v19  ;;  %1825 = vmatprep.subr.bf16.mxu0 %v2616_v20  ;;  %v2299_v53 = vcombine.high %v171_v48, %v179_v49  ;;  %v2301_v55 = vcombine.high %v172_v50, %v180_v51  ;;  %v2663_v57 = vld [vmem:[%s3865_s1 + $0x1b0] ss:$8 sps:$4 sm:$0xff]   ;;  %v2664_v58 = vld [vmem:[%s3865_s1 + $0xa4] ss:$8 sps:$4 sm:$0xff]   ;;  %v2668_v60 = vld [vmem:[%s3865_s1 + $0xa0] ss:$8 sps:$4 sm:$0xff]   ;;  %v2298_v8 = vcombine.low %v171_v48, %v179_v49 }
  0x1f   : > { %1868 = vmatprep.subr.bf16.mxu1 %v2618_v21  ;;  %v2666_v59 = vld [vmem:[%s3865_s1 + $0x1a4] ss:$8 sps:$4 sm:$0xff]   ;;  %v2669_v61 = vld [vmem:[%s3865_s1 + $0x1a0] ss:$8 sps:$4 sm:$0xff]   ;;  %v2670_v62 = vld [vmem:[%s3865_s1 + $0x94] ss:$8 sps:$4 sm:$0xff]   ;;  %v2300_v9 = vcombine.low %v172_v50, %v180_v51 }
  0x20   : > { %1847 = vmatprep.mubr.bf16.mxu0 %v2299_v53  ;;  %1890 = vmatprep.mubr.bf16.mxu1 %v2301_v55  ;;  %v2672_v63 = vld [vmem:[%s3865_s1 + $0x194] ss:$8 sps:$4 sm:$0xff]   ;;  %v2674_v0 = vld [vmem:[%s3865_s1 + $0x90] ss:$8 sps:$4 sm:$0xff]   ;;  %v2676_v2 = vld [vmem:[%s3865_s1 + $0x84] ss:$8 sps:$4 sm:$0xff]  }
  0x21   : > { %1826 = vmatpush1.bf16.msra.mxu0 %v2620_v22  ;;  %v2675_v1 = vld [vmem:[%s3865_s1 + $0x190] ss:$8 sps:$4 sm:$0xff]   ;;  %v2678_v3 = vld [vmem:[%s3865_s1 + $0x184] ss:$8 sps:$4 sm:$0xff]   ;;  %v2680_v4 = vld [vmem:[%s3865_s1 + $0x80] ss:$8 sps:$4 sm:$0xff]  }
  0x22   : > { %1869 = vmatpush1.bf16.msra.mxu1 %v2621_v23  ;;  %1827 = vmatprep.subr.bf16.mxu0 %v2622_v24  ;;  %v2681_v5 = vld [vmem:[%s3865_s1 + $0x180] ss:$8 sps:$4 sm:$0xff]   ;;  %v2684_v6 = vld [vmem:[%s3865_s1 + $0x274] ss:$8 sps:$4 sm:$0xff]   ;;  %v2682_v10 = vld [vmem:[%s3865_s1 + $0x270] ss:$8 sps:$4 sm:$0xff]  }
  0x23   : > { %1870 = vmatprep.subr.bf16.mxu1 %v2624_v25  ;;  %v2687_v7 = vld [vmem:[%s3865_s1 + $0x374] ss:$8 sps:$4 sm:$0xff]   ;;  %v2685_v11 = vld [vmem:[%s3865_s1 + $0x370] ss:$8 sps:$4 sm:$0xff]   ;;  %v2690_v12 = vld [vmem:[%s3865_s1 + $0x264] ss:$8 sps:$4 sm:$0xff]  }
  0x24   : > { %v2693_v13 = vld [vmem:[%s3865_s1 + $0x364] ss:$8 sps:$4 sm:$0xff]   ;;  %v2688_v14 = vld [vmem:[%s3865_s1 + $0x260] ss:$8 sps:$4 sm:$0xff]   ;;  %v2696_v16 = vld [vmem:[%s3865_s1 + $0x254] ss:$8 sps:$4 sm:$0xff]  }
  0x25   : > { %1828 = vmatpush1.bf16.msra.mxu0 %v2626_v26  ;;  %v2691_v15 = vld [vmem:[%s3865_s1 + $0x360] ss:$8 sps:$4 sm:$0xff]   ;;  %v2699_v17 = vld [vmem:[%s3865_s1 + $0x354] ss:$8 sps:$4 sm:$0xff]   ;;  %v2694_v18 = vld [vmem:[%s3865_s1 + $0x250] ss:$8 sps:$4 sm:$0xff]  }
  0x26   : > { %1871 = vmatpush1.bf16.msra.mxu1 %v2627_v27  ;;  %1829 = vmatprep.subr.bf16.mxu0 %v2628_v28  ;;  %v2697_v19 = vld [vmem:[%s3865_s1 + $0x350] ss:$8 sps:$4 sm:$0xff]   ;;  %v2702_v20 = vld [vmem:[%s3865_s1 + $0x244] ss:$8 sps:$4 sm:$0xff]   ;;  %v2700_v22 = vld [vmem:[%s3865_s1 + $0x240] ss:$8 sps:$4 sm:$0xff]  }
  0x27   : > { %1872 = vmatprep.subr.bf16.mxu1 %v2630_v29  ;;  %v2705_v21 = vld [vmem:[%s3865_s1 + $0x344] ss:$8 sps:$4 sm:$0xff]   ;;  %v2703_v23 = vld [vmem:[%s3865_s1 + $0x340] ss:$8 sps:$4 sm:$0xff]   ;;  %v2708_v24 = vld [vmem:[%s3865_s1 + $0x234] ss:$8 sps:$4 sm:$0xff]  }
  0x28   : > { %v2711_v25 = vld [vmem:[%s3865_s1 + $0x334] ss:$8 sps:$4 sm:$0xff]   ;;  %v2706_v26 = vld [vmem:[%s3865_s1 + $0x230] ss:$8 sps:$4 sm:$0xff]   ;;  %v2714_v28 = vld [vmem:[%s3865_s1 + $0x224] ss:$8 sps:$4 sm:$0xff]  }
  0x29   : > { %1830 = vmatpush1.bf16.msra.mxu0 %v2632_v30  ;;  %v2709_v27 = vld [vmem:[%s3865_s1 + $0x330] ss:$8 sps:$4 sm:$0xff]   ;;  %v2717_v29 = vld [vmem:[%s3865_s1 + $0x324] ss:$8 sps:$4 sm:$0xff]   ;;  %v2712_v30 = vld [vmem:[%s3865_s1 + $0x220] ss:$8 sps:$4 sm:$0xff]  }
  0x2a   : > { %1873 = vmatpush1.bf16.msra.mxu1 %v2633_v31  ;;  %1831 = vmatprep.subr.bf16.mxu0 %v2634_v32  ;;  %v2715_v31 = vld [vmem:[%s3865_s1 + $0x320] ss:$8 sps:$4 sm:$0xff]   ;;  %v2720_v32 = vld [vmem:[%s3865_s1 + $0x214] ss:$8 sps:$4 sm:$0xff]   ;;  %v2730_v48 = vld [vmem:[%s3865_s1 + $0x2f0] ss:$8 sps:$4 sm:$0xff]  }
  0x2b   : > { %1874 = vmatprep.subr.bf16.mxu1 %v2636_v33  ;;  %v2723_v33 = vld [vmem:[%s3865_s1 + $0x314] ss:$8 sps:$4 sm:$0xff]   ;;  %v2733_v49 = vld [vmem:[%s3865_s1 + $0x3f0] ss:$8 sps:$4 sm:$0xff]   ;;  %v2738_v50 = vld [vmem:[%s3865_s1 + $0x2e4] ss:$8 sps:$4 sm:$0xff]  }
  0x2c   : > { %v2741_v51 = vld [vmem:[%s3865_s1 + $0x3e4] ss:$8 sps:$4 sm:$0xff]   ;;  %v2739_v53 = vld [vmem:[%s3865_s1 + $0x3e0] ss:$8 sps:$4 sm:$0xff]   ;;  %v2747_v55 = vld [vmem:[%s3865_s1 + $0x3d4] ss:$8 sps:$4 sm:$0xff]  }
  0x2d   : > { %1832 = vmatpush2.bf16.msra.mxu0 %v2638_v34  ;;  %v2718_v34 = vld [vmem:[%s3865_s1 + $0x210] ss:$8 sps:$4 sm:$0xff]  }
  0x2e   : > { %1875 = vmatpush2.bf16.msra.mxu1 %v2639_v35  ;;  %1833 = vmatprep.subr.bf16.mxu0 %v2640_v36  ;;  %v2721_v35 = vld [vmem:[%s3865_s1 + $0x310] ss:$8 sps:$4 sm:$0xff]  }
  0x2f   : > { %1876 = vmatprep.subr.bf16.mxu1 %v2642_v37  ;;  %v3303_v36 = vld [vmem:[%s3152_s30 + $0x10] sm:$0xff] }
  0x30   : > { %v3306_v37 = vld [vmem:[%s3152_s30 + $0x50] sm:$0xff] }
  0x31   : > { %1834 = vmatpush2.bf16.msra.mxu0 %v2644_v38  ;;  %v3309_v38 = vld [vmem:[%s3152_s30 + $0x18] sm:$0xff] }
  0x32   : > { %1877 = vmatpush2.bf16.msra.mxu1 %v2645_v39  ;;  %1835 = vmatprep.subr.bf16.mxu0 %v2646_v40  ;;  %v3312_v39 = vld [vmem:[%s3152_s30 + $0x58] sm:$0xff]  ;;  %v2726_v40 = vld [vmem:[%s3865_s1 + $0x204] ss:$8 sps:$4 sm:$0xff]  }
  0x33   : > { %1878 = vmatprep.subr.bf16.mxu1 %v2648_v41  ;;  %v2303_v41 = vcombine.high %v3303_v36, %v3306_v37 }
  0x35   : > { %1836 = vmatpush2.bf16.msra.mxu0 %v2650_v42  ;;  %v2729_v42 = vld [vmem:[%s3865_s1 + $0x304] ss:$8 sps:$4 sm:$0xff]  }
  0x36   : > { %1879 = vmatpush2.bf16.msra.mxu1 %v2651_v43  ;;  %1837 = vmatprep.subr.bf16.mxu0 %v2652_v44  ;;  %v2305_v43 = vcombine.high %v3309_v38, %v3312_v39  ;;  %v2724_v44 = vld [vmem:[%s3865_s1 + $0x200] ss:$8 sps:$4 sm:$0xff]  }
  0x37   : > { %1880 = vmatprep.subr.bf16.mxu1 %v2654_v45  ;;  %v2727_v45 = vld [vmem:[%s3865_s1 + $0x300] ss:$8 sps:$4 sm:$0xff]  }
  0x39   : > { %1838 = vmatpush2.bf16.msra.mxu0 %v2656_v46  ;;  %v2732_v46 = vld [vmem:[%s3865_s1 + $0x2f4] ss:$8 sps:$4 sm:$0xff]  }
  0x3a   : > { %1881 = vmatpush2.bf16.msra.mxu1 %v2657_v47  ;;  %1839 = vmatprep.subr.bf16.mxu0 %v2658_v52  ;;  %v2735_v47 = vld [vmem:[%s3865_s1 + $0x3f4] ss:$8 sps:$4 sm:$0xff]   ;;  %v2736_v52 = vld [vmem:[%s3865_s1 + $0x2e0] ss:$8 sps:$4 sm:$0xff]  }
  0x3b   : > { %1882 = vmatprep.subr.bf16.mxu1 %v2660_v54  ;;  %v2744_v54 = vld [vmem:[%s3865_s1 + $0x2d4] ss:$8 sps:$4 sm:$0xff]  }
  0x3d   : > { %1840 = vmatpush2.bf16.msra.mxu0 %v2662_v56  ;;  %v2742_v56 = vld [vmem:[%s3865_s1 + $0x2d0] ss:$8 sps:$4 sm:$0xff]  }
  0x3e   : > { %1883 = vmatpush2.bf16.msra.mxu1 %v2663_v57  ;;  %1841 = vmatprep.subr.bf16.mxu0 %v2664_v58  ;;  %v2745_v57 = vld [vmem:[%s3865_s1 + $0x3d0] ss:$8 sps:$4 sm:$0xff]   ;;  %v2750_v58 = vld [vmem:[%s3865_s1 + $0x2c4] ss:$8 sps:$4 sm:$0xff]  }
  0x3f   : > { %1884 = vmatprep.subr.bf16.mxu1 %v2666_v59  ;;  %v2753_v59 = vld [vmem:[%s3865_s1 + $0x3c4] ss:$8 sps:$4 sm:$0xff]  }
  0x41   : > { %1842 = vmatpush2.bf16.msra.mxu0 %v2668_v60  ;;  %v2748_v60 = vld [vmem:[%s3865_s1 + $0x2c0] ss:$8 sps:$4 sm:$0xff]  }
  0x42   : > { %1885 = vmatpush2.bf16.msra.mxu1 %v2669_v61  ;;  %1843 = vmatprep.subr.bf16.mxu0 %v2670_v62  ;;  %v2751_v61 = vld [vmem:[%s3865_s1 + $0x3c0] ss:$8 sps:$4 sm:$0xff]   ;;  %v2756_v62 = vld [vmem:[%s3865_s1 + $0x2b4] ss:$8 sps:$4 sm:$0xff]  }
  0x43   : > { %1886 = vmatprep.subr.bf16.mxu1 %v2672_v63  ;;  %v2759_v63 = vld [vmem:[%s3865_s1 + $0x3b4] ss:$8 sps:$4 sm:$0xff]  }
  0x45   : > { %1844 = vmatpush2.bf16.msra.mxu0 %v2674_v0  ;;  %v2754_v0 = vld [vmem:[%s3865_s1 + $0x2b0] ss:$8 sps:$4 sm:$0xff]  }
  0x46   : > { %1887 = vmatpush2.bf16.msra.mxu1 %v2675_v1  ;;  %1845 = vmatprep.subr.bf16.mxu0 %v2676_v2  ;;  %v2757_v1 = vld [vmem:[%s3865_s1 + $0x3b0] ss:$8 sps:$4 sm:$0xff]   ;;  %v2762_v2 = vld [vmem:[%s3865_s1 + $0x2a4] ss:$8 sps:$4 sm:$0xff]  }
  0x47   : > { %1888 = vmatprep.subr.bf16.mxu1 %v2678_v3  ;;  %v2765_v3 = vld [vmem:[%s3865_s1 + $0x3a4] ss:$8 sps:$4 sm:$0xff]  }
  0x49   : > { %1846 = vmatpush2.bf16.msra.mxu0 %v2680_v4  ;;  %v2760_v4 = vld [vmem:[%s3865_s1 + $0x2a0] ss:$8 sps:$4 sm:$0xff]  }
  0x4a   : > { %1889 = vmatpush2.bf16.msra.mxu1 %v2681_v5  ;;  %1901 = vmatprep.subr.bf16.mxu0 %v2684_v6  ;;  %v2763_v5 = vld [vmem:[%s3865_s1 + $0x3a0] ss:$8 sps:$4 sm:$0xff]   ;;  %v2768_v6 = vld [vmem:[%s3865_s1 + $0x294] ss:$8 sps:$4 sm:$0xff]  }
  0x4b   : > { %1944 = vmatprep.subr.bf16.mxu1 %v2687_v7  ;;  %v2771_v7 = vld [vmem:[%s3865_s1 + $0x394] ss:$8 sps:$4 sm:$0xff]  }
  0x4c   : > { %1848 = vmatmul.mubr.bf16.vlgmr.msra.gmra.mxu0 %v2298_v8  ;;  %v2766_v8 = vld [vmem:[%s3865_s1 + $0x290] ss:$8 sps:$4 sm:$0xff]  }
  0x4d   : > { %1891 = vmatmul.mubr.bf16.vlgmr.msra.gmra.mxu1 %v2300_v9  ;;  %1902 = vmatpush1.bf16.msra.mxu0 %v2682_v10  ;;  %v2769_v9 = vld [vmem:[%s3865_s1 + $0x390] ss:$8 sps:$4 sm:$0xff]   ;;  %v2774_v10 = vld [vmem:[%s3865_s1 + $0x284] ss:$8 sps:$4 sm:$0xff]  }
  0x4e   : > { %1945 = vmatpush1.bf16.msra.mxu1 %v2685_v11  ;;  %1903 = vmatprep.subr.bf16.mxu0 %v2690_v12  ;;  %v2777_v11 = vld [vmem:[%s3865_s1 + $0x384] ss:$8 sps:$4 sm:$0xff]   ;;  %v2772_v12 = vld [vmem:[%s3865_s1 + $0x280] ss:$8 sps:$4 sm:$0xff]  }
  0x4f   : > { %1946 = vmatprep.subr.bf16.mxu1 %v2693_v13  ;;  %1933 = vmatprep.mubr.bf16.mxu0 %v2303_v41  ;;  %v2775_v13 = vld [vmem:[%s3865_s1 + $0x380] ss:$8 sps:$4 sm:$0xff]   ;;  %v2805_v41 = vld [vmem:[%s3865_s1 + $0x530] ss:$8 sps:$4 sm:$0xff]  }
  0x50   : > { %1976 = vmatprep.mubr.bf16.mxu1 %v2305_v43  ;;  %v2813_v43 = vld [vmem:[%s3865_s1 + $0x524] ss:$8 sps:$4 sm:$0xff]  }
  0x51   : > { %1904 = vmatpush1.bf16.msra.mxu0 %v2688_v14  ;;  %v2780_v14 = vld [vmem:[%s3865_s1 + $0x474] ss:$8 sps:$4 sm:$0xff]  }
  0x52   : > { %1947 = vmatpush1.bf16.msra.mxu1 %v2691_v15  ;;  %1905 = vmatprep.subr.bf16.mxu0 %v2696_v16  ;;  %v2783_v15 = vld [vmem:[%s3865_s1 + $0x574] ss:$8 sps:$4 sm:$0xff]   ;;  %v2302_v16 = vcombine.low %v3303_v36, %v3306_v37  ;;  %v2796_v36 = vld [vmem:[%s3865_s1 + $0x440] ss:$8 sps:$4 sm:$0xff]  }
  0x53   : > { %1948 = vmatprep.subr.bf16.mxu1 %v2699_v17  ;;  %v2304_v17 = vcombine.low %v3309_v38, %v3312_v39  ;;  %v2799_v37 = vld [vmem:[%s3865_s1 + $0x540] ss:$8 sps:$4 sm:$0xff]   ;;  %v2804_v38 = vld [vmem:[%s3865_s1 + $0x434] ss:$8 sps:$4 sm:$0xff]  }
  0x54   : > { %v2807_v39 = vld [vmem:[%s3865_s1 + $0x534] ss:$8 sps:$4 sm:$0xff]  }
  0x55   : > { %1906 = vmatpush1.bf16.msra.mxu0 %v2694_v18  ;;  %v2778_v18 = vld [vmem:[%s3865_s1 + $0x470] ss:$8 sps:$4 sm:$0xff]  }
  0x56   : > { %1949 = vmatpush1.bf16.msra.mxu1 %v2697_v19  ;;  %1907 = vmatprep.subr.bf16.mxu0 %v2702_v20  ;;  %v2781_v19 = vld [vmem:[%s3865_s1 + $0x570] ss:$8 sps:$4 sm:$0xff]   ;;  %v2786_v20 = vld [vmem:[%s3865_s1 + $0x464] ss:$8 sps:$4 sm:$0xff]  }
  0x57   : > { %1950 = vmatprep.subr.bf16.mxu1 %v2705_v21  ;;  %v2789_v21 = vld [vmem:[%s3865_s1 + $0x564] ss:$8 sps:$4 sm:$0xff]  }
  0x59   : > { %1908 = vmatpush1.bf16.msra.mxu0 %v2700_v22  ;;  %v2784_v22 = vld [vmem:[%s3865_s1 + $0x460] ss:$8 sps:$4 sm:$0xff]  }
  0x5a   : > { %1951 = vmatpush1.bf16.msra.mxu1 %v2703_v23  ;;  %1909 = vmatprep.subr.bf16.mxu0 %v2708_v24  ;;  %v2787_v23 = vld [vmem:[%s3865_s1 + $0x560] ss:$8 sps:$4 sm:$0xff]  }
  0x5b   : > { %1952 = vmatprep.subr.bf16.mxu1 %v2711_v25  ;;  %v3455_v24 = vld [vmem:[%s3152_s30 + $0x20] sm:$0xff] }
  0x5c   : > { %v3458_v25 = vld [vmem:[%s3152_s30 + $0x60] sm:$0xff] }
  0x5d   : > { %1910 = vmatpush1.bf16.msra.mxu0 %v2706_v26  ;;  %v3461_v26 = vld [vmem:[%s3152_s30 + $0x28] sm:$0xff] }
  0x5e   : > { %1953 = vmatpush1.bf16.msra.mxu1 %v2709_v27  ;;  %1911 = vmatprep.subr.bf16.mxu0 %v2714_v28  ;;  %v3464_v27 = vld [vmem:[%s3152_s30 + $0x68] sm:$0xff]  ;;  %v2792_v28 = vld [vmem:[%s3865_s1 + $0x454] ss:$8 sps:$4 sm:$0xff]  }
  0x5f   : > { %1954 = vmatprep.subr.bf16.mxu1 %v2717_v29  ;;  %v2307_v29 = vcombine.high %v3455_v24, %v3458_v25 }
  0x61   : > { %1912 = vmatpush1.bf16.msra.mxu0 %v2712_v30  ;;  %v2795_v30 = vld [vmem:[%s3865_s1 + $0x554] ss:$8 sps:$4 sm:$0xff]  }
  0x62   : > { %1955 = vmatpush1.bf16.msra.mxu1 %v2715_v31  ;;  %1913 = vmatprep.subr.bf16.mxu0 %v2720_v32  ;;  %v2309_v31 = vcombine.high %v3461_v26, %v3464_v27  ;;  %v2790_v32 = vld [vmem:[%s3865_s1 + $0x450] ss:$8 sps:$4 sm:$0xff]  }
  0x63   : > { %1956 = vmatprep.subr.bf16.mxu1 %v2723_v33  ;;  %v2793_v33 = vld [vmem:[%s3865_s1 + $0x550] ss:$8 sps:$4 sm:$0xff]  }
  0x65   : > { %1914 = vmatpush1.bf16.msra.mxu0 %v2718_v34  ;;  %v2798_v34 = vld [vmem:[%s3865_s1 + $0x444] ss:$8 sps:$4 sm:$0xff]  }
  0x66   : > { %1957 = vmatpush1.bf16.msra.mxu1 %v2721_v35  ;;  %1915 = vmatprep.subr.bf16.mxu0 %v2726_v40  ;;  %v2801_v35 = vld [vmem:[%s3865_s1 + $0x544] ss:$8 sps:$4 sm:$0xff]   ;;  %v2802_v40 = vld [vmem:[%s3865_s1 + $0x430] ss:$8 sps:$4 sm:$0xff]  }
  0x67   : > { %1958 = vmatprep.subr.bf16.mxu1 %v2729_v42  ;;  %v2810_v42 = vld [vmem:[%s3865_s1 + $0x424] ss:$8 sps:$4 sm:$0xff]  }
  0x69   : > { %1916 = vmatpush1.bf16.msra.mxu0 %v2724_v44  ;;  %v2808_v44 = vld [vmem:[%s3865_s1 + $0x420] ss:$8 sps:$4 sm:$0xff]  }
  0x6a   : > { %1959 = vmatpush1.bf16.msra.mxu1 %v2727_v45  ;;  %1917 = vmatprep.subr.bf16.mxu0 %v2732_v46  ;;  %v2811_v45 = vld [vmem:[%s3865_s1 + $0x520] ss:$8 sps:$4 sm:$0xff]   ;;  %v2816_v46 = vld [vmem:[%s3865_s1 + $0x414] ss:$8 sps:$4 sm:$0xff]  }
  0x6b   : > { %1960 = vmatprep.subr.bf16.mxu1 %v2735_v47  ;;  %v2819_v47 = vld [vmem:[%s3865_s1 + $0x514] ss:$8 sps:$4 sm:$0xff]  }
  0x6d   : > { %1918 = vmatpush2.bf16.msra.mxu0 %v2730_v48  ;;  %v2814_v48 = vld [vmem:[%s3865_s1 + $0x410] ss:$8 sps:$4 sm:$0xff]  }
  0x6e   : > { %1961 = vmatpush2.bf16.msra.mxu1 %v2733_v49  ;;  %1919 = vmatprep.subr.bf16.mxu0 %v2738_v50  ;;  %v2817_v49 = vld [vmem:[%s3865_s1 + $0x510] ss:$8 sps:$4 sm:$0xff]   ;;  %v2822_v50 = vld [vmem:[%s3865_s1 + $0x404] ss:$8 sps:$4 sm:$0xff]  }
  0x6f   : > { %1962 = vmatprep.subr.bf16.mxu1 %v2741_v51  ;;  %v2825_v51 = vld [vmem:[%s3865_s1 + $0x504] ss:$8 sps:$4 sm:$0xff]  }
  0x71   : > { %1920 = vmatpush2.bf16.msra.mxu0 %v2736_v52  ;;  %v2820_v52 = vld [vmem:[%s3865_s1 + $0x400] ss:$8 sps:$4 sm:$0xff]  }
  0x72   : > { %1963 = vmatpush2.bf16.msra.mxu1 %v2739_v53  ;;  %1921 = vmatprep.subr.bf16.mxu0 %v2744_v54  ;;  %v2823_v53 = vld [vmem:[%s3865_s1 + $0x500] ss:$8 sps:$4 sm:$0xff]   ;;  %v2828_v54 = vld [vmem:[%s3865_s1 + $0x4f4] ss:$8 sps:$4 sm:$0xff]  }
  0x73   : > { %1964 = vmatprep.subr.bf16.mxu1 %v2747_v55  ;;  %v2831_v55 = vld [vmem:[%s3865_s1 + $0x5f4] ss:$8 sps:$4 sm:$0xff]  }
  0x75   : > { %1922 = vmatpush2.bf16.msra.mxu0 %v2742_v56  ;;  %v2826_v56 = vld [vmem:[%s3865_s1 + $0x4f0] ss:$8 sps:$4 sm:$0xff]  }
  0x76   : > { %1965 = vmatpush2.bf16.msra.mxu1 %v2745_v57  ;;  %1923 = vmatprep.subr.bf16.mxu0 %v2750_v58  ;;  %v2829_v57 = vld [vmem:[%s3865_s1 + $0x5f0] ss:$8 sps:$4 sm:$0xff]   ;;  %v2834_v58 = vld [vmem:[%s3865_s1 + $0x4e4] ss:$8 sps:$4 sm:$0xff]  }
  0x77   : > { %1966 = vmatprep.subr.bf16.mxu1 %v2753_v59  ;;  %v2837_v59 = vld [vmem:[%s3865_s1 + $0x5e4] ss:$8 sps:$4 sm:$0xff]  }
  0x79   : > { %1924 = vmatpush2.bf16.msra.mxu0 %v2748_v60  ;;  %v2832_v60 = vld [vmem:[%s3865_s1 + $0x4e0] ss:$8 sps:$4 sm:$0xff]  }
  0x7a   : > { %1967 = vmatpush2.bf16.msra.mxu1 %v2751_v61  ;;  %1925 = vmatprep.subr.bf16.mxu0 %v2756_v62  ;;  %v2835_v61 = vld [vmem:[%s3865_s1 + $0x5e0] ss:$8 sps:$4 sm:$0xff]   ;;  %v2840_v62 = vld [vmem:[%s3865_s1 + $0x4d4] ss:$8 sps:$4 sm:$0xff]  }
  0x7b   : > { %1968 = vmatprep.subr.bf16.mxu1 %v2759_v63  ;;  %v2843_v63 = vld [vmem:[%s3865_s1 + $0x5d4] ss:$8 sps:$4 sm:$0xff]  }
  0x7d   : > { %1926 = vmatpush2.bf16.msra.mxu0 %v2754_v0  ;;  %v2838_v0 = vld [vmem:[%s3865_s1 + $0x4d0] ss:$8 sps:$4 sm:$0xff]  }
  0x7e   : > { %1969 = vmatpush2.bf16.msra.mxu1 %v2757_v1  ;;  %1927 = vmatprep.subr.bf16.mxu0 %v2762_v2  ;;  %v2841_v1 = vld [vmem:[%s3865_s1 + $0x5d0] ss:$8 sps:$4 sm:$0xff]   ;;  %v2846_v2 = vld [vmem:[%s3865_s1 + $0x4c4] ss:$8 sps:$4 sm:$0xff]  }
  0x7f   : > { %1970 = vmatprep.subr.bf16.mxu1 %v2765_v3  ;;  %v2849_v3 = vld [vmem:[%s3865_s1 + $0x5c4] ss:$8 sps:$4 sm:$0xff]  }
  0x81   : > { %1928 = vmatpush2.bf16.msra.mxu0 %v2760_v4  ;;  %v2844_v4 = vld [vmem:[%s3865_s1 + $0x4c0] ss:$8 sps:$4 sm:$0xff]  }
  0x82   : > { %1971 = vmatpush2.bf16.msra.mxu1 %v2763_v5  ;;  %1929 = vmatprep.subr.bf16.mxu0 %v2768_v6  ;;  %v2847_v5 = vld [vmem:[%s3865_s1 + $0x5c0] ss:$8 sps:$4 sm:$0xff]   ;;  %v2852_v6 = vld [vmem:[%s3865_s1 + $0x4b4] ss:$8 sps:$4 sm:$0xff]  }
  0x83   : > { %1972 = vmatprep.subr.bf16.mxu1 %v2771_v7  ;;  %v2855_v7 = vld [vmem:[%s3865_s1 + $0x5b4] ss:$8 sps:$4 sm:$0xff]  }
  0x85   : > { %1930 = vmatpush2.bf16.msra.mxu0 %v2766_v8  ;;  %v2850_v8 = vld [vmem:[%s3865_s1 + $0x4b0] ss:$8 sps:$4 sm:$0xff]  }
  0x86   : > { %1973 = vmatpush2.bf16.msra.mxu1 %v2769_v9  ;;  %1931 = vmatprep.subr.bf16.mxu0 %v2774_v10  ;;  %v2853_v9 = vld [vmem:[%s3865_s1 + $0x5b0] ss:$8 sps:$4 sm:$0xff]   ;;  %v2858_v10 = vld [vmem:[%s3865_s1 + $0x4a4] ss:$8 sps:$4 sm:$0xff]  }
  0x87   : > { %1974 = vmatprep.subr.bf16.mxu1 %v2777_v11  ;;  %v2861_v11 = vld [vmem:[%s3865_s1 + $0x5a4] ss:$8 sps:$4 sm:$0xff]  }
  0x89   : > { %1932 = vmatpush2.bf16.msra.mxu0 %v2772_v12  ;;  %v2856_v12 = vld [vmem:[%s3865_s1 + $0x4a0] ss:$8 sps:$4 sm:$0xff]  }
  0x8a   : > { %1975 = vmatpush2.bf16.msra.mxu1 %v2775_v13  ;;  %1987 = vmatprep.subr.bf16.mxu0 %v2780_v14  ;;  %v2859_v13 = vld [vmem:[%s3865_s1 + $0x5a0] ss:$8 sps:$4 sm:$0xff]   ;;  %v2864_v14 = vld [vmem:[%s3865_s1 + $0x494] ss:$8 sps:$4 sm:$0xff]  }
  0x8b   : > { %2030 = vmatprep.subr.bf16.mxu1 %v2783_v15  ;;  %v2867_v15 = vld [vmem:[%s3865_s1 + $0x594] ss:$8 sps:$4 sm:$0xff]  }
  0x8c   : > { %1934 = vmatmul.mubr.bf16.vlgmr.msra.gmra.mxu0 %v2302_v16  ;;  %v2862_v16 = vld [vmem:[%s3865_s1 + $0x490] ss:$8 sps:$4 sm:$0xff]  }
  0x8d   : > { %1977 = vmatmul.mubr.bf16.vlgmr.msra.gmra.mxu1 %v2304_v17  ;;  %1988 = vmatpush1.bf16.msra.mxu0 %v2778_v18  ;;  %v2865_v17 = vld [vmem:[%s3865_s1 + $0x590] ss:$8 sps:$4 sm:$0xff]   ;;  %v2870_v18 = vld [vmem:[%s3865_s1 + $0x484] ss:$8 sps:$4 sm:$0xff]  }
  0x8e   : > { %2031 = vmatpush1.bf16.msra.mxu1 %v2781_v19  ;;  %1989 = vmatprep.subr.bf16.mxu0 %v2786_v20  ;;  %v2873_v19 = vld [vmem:[%s3865_s1 + $0x584] ss:$8 sps:$4 sm:$0xff]   ;;  %v2868_v20 = vld [vmem:[%s3865_s1 + $0x480] ss:$8 sps:$4 sm:$0xff]  }
  0x8f   : > { %2032 = vmatprep.subr.bf16.mxu1 %v2789_v21  ;;  %2019 = vmatprep.mubr.bf16.mxu0 %v2307_v29  ;;  %v2871_v21 = vld [vmem:[%s3865_s1 + $0x580] ss:$8 sps:$4 sm:$0xff]   ;;  %v2306_v29 = vcombine.low %v3455_v24, %v3458_v25  ;;  %v2882_v24 = vld [vmem:[%s3865_s1 + $0x664] ss:$8 sps:$4 sm:$0xff]  }
  0x90   : > { %2062 = vmatprep.mubr.bf16.mxu1 %v2309_v31  ;;  %v3652_v31 = vld [vmem:[%s3152_s30 + $0x70] sm:$0xff]  ;;  %v2885_v25 = vld [vmem:[%s3865_s1 + $0x764] ss:$8 sps:$4 sm:$0xff]  }
  0x91   : > { %1990 = vmatpush1.bf16.msra.mxu0 %v2784_v22  ;;  %v2876_v22 = vld [vmem:[%s3865_s1 + $0x674] ss:$8 sps:$4 sm:$0xff]  }
  0x92   : > { %2033 = vmatpush1.bf16.msra.mxu1 %v2787_v23  ;;  %1991 = vmatprep.subr.bf16.mxu0 %v2792_v28  ;;  %v2879_v23 = vld [vmem:[%s3865_s1 + $0x774] ss:$8 sps:$4 sm:$0xff]  }
  0x93   : > { %2034 = vmatprep.subr.bf16.mxu1 %v2795_v30  ;;  %v3645_v28 = vld [vmem:[%s3152_s30 + $0x30] sm:$0xff]  ;;  %v2308_v30 = vcombine.low %v3461_v26, %v3464_v27 }
  0x94   : > { %v2311_v26 = vcombine.high %v3645_v28, %v3652_v31 }
  0x95   : > { %1992 = vmatpush1.bf16.msra.mxu0 %v2790_v32  ;;  %v3655_v32 = vld [vmem:[%s3152_s30 + $0x38] sm:$0xff] }
  0x96   : > { %2035 = vmatpush1.bf16.msra.mxu1 %v2793_v33  ;;  %1993 = vmatprep.subr.bf16.mxu0 %v2798_v34  ;;  %v3658_v33 = vld [vmem:[%s3152_s30 + $0x78] sm:$0xff] }
  0x97   : > { %2036 = vmatprep.subr.bf16.mxu1 %v2801_v35  ;;  %v2874_v34 = vld [vmem:[%s3865_s1 + $0x670] ss:$8 sps:$4 sm:$0xff]   ;;  %v2313_v27 = vcombine.high %v3655_v32, %v3658_v33 }
  0x98   : > { %v2877_v35 = vld [vmem:[%s3865_s1 + $0x770] ss:$8 sps:$4 sm:$0xff]  }
  0x99   : > { %1994 = vmatpush1.bf16.msra.mxu0 %v2796_v36  ;;  %v2880_v36 = vld [vmem:[%s3865_s1 + $0x660] ss:$8 sps:$4 sm:$0xff]  }
  0x9a   : > { %2037 = vmatpush1.bf16.msra.mxu1 %v2799_v37  ;;  %1995 = vmatprep.subr.bf16.mxu0 %v2804_v38  ;;  %v2883_v37 = vld [vmem:[%s3865_s1 + $0x760] ss:$8 sps:$4 sm:$0xff]   ;;  %v2888_v38 = vld [vmem:[%s3865_s1 + $0x654] ss:$8 sps:$4 sm:$0xff]  }
  0x9b   : > { %2038 = vmatprep.subr.bf16.mxu1 %v2807_v39  ;;  %v2891_v39 = vld [vmem:[%s3865_s1 + $0x754] ss:$8 sps:$4 sm:$0xff]  }
  0x9d   : > { %1996 = vmatpush1.bf16.msra.mxu0 %v2802_v40  ;;  %v2886_v40 = vld [vmem:[%s3865_s1 + $0x650] ss:$8 sps:$4 sm:$0xff]  }
  0x9e   : > { %2039 = vmatpush1.bf16.msra.mxu1 %v2805_v41  ;;  %1997 = vmatprep.subr.bf16.mxu0 %v2810_v42  ;;  %v2889_v41 = vld [vmem:[%s3865_s1 + $0x750] ss:$8 sps:$4 sm:$0xff]   ;;  %v2894_v42 = vld [vmem:[%s3865_s1 + $0x644] ss:$8 sps:$4 sm:$0xff]  }
  0x9f   : > { %2040 = vmatprep.subr.bf16.mxu1 %v2813_v43  ;;  %v2897_v43 = vld [vmem:[%s3865_s1 + $0x744] ss:$8 sps:$4 sm:$0xff]  }
  0xa1   : > { %1998 = vmatpush1.bf16.msra.mxu0 %v2808_v44  ;;  %v2892_v44 = vld [vmem:[%s3865_s1 + $0x640] ss:$8 sps:$4 sm:$0xff]  }
  0xa2   : > { %2041 = vmatpush1.bf16.msra.mxu1 %v2811_v45  ;;  %1999 = vmatprep.subr.bf16.mxu0 %v2816_v46  ;;  %v2895_v45 = vld [vmem:[%s3865_s1 + $0x740] ss:$8 sps:$4 sm:$0xff]   ;;  %v2900_v46 = vld [vmem:[%s3865_s1 + $0x634] ss:$8 sps:$4 sm:$0xff]  }
  0xa3   : > { %2042 = vmatprep.subr.bf16.mxu1 %v2819_v47  ;;  %v2903_v47 = vld [vmem:[%s3865_s1 + $0x734] ss:$8 sps:$4 sm:$0xff]  }
  0xa5   : > { %2000 = vmatpush1.bf16.msra.mxu0 %v2814_v48  ;;  %v2898_v48 = vld [vmem:[%s3865_s1 + $0x630] ss:$8 sps:$4 sm:$0xff]  }
  0xa6   : > { %2043 = vmatpush1.bf16.msra.mxu1 %v2817_v49  ;;  %2001 = vmatprep.subr.bf16.mxu0 %v2822_v50  ;;  %v2901_v49 = vld [vmem:[%s3865_s1 + $0x730] ss:$8 sps:$4 sm:$0xff]   ;;  %v2906_v50 = vld [vmem:[%s3865_s1 + $0x624] ss:$8 sps:$4 sm:$0xff]  }
  0xa7   : > { %2044 = vmatprep.subr.bf16.mxu1 %v2825_v51  ;;  %v2909_v51 = vld [vmem:[%s3865_s1 + $0x724] ss:$8 sps:$4 sm:$0xff]  }
  0xa9   : > { %2002 = vmatpush1.bf16.msra.mxu0 %v2820_v52  ;;  %v2904_v52 = vld [vmem:[%s3865_s1 + $0x620] ss:$8 sps:$4 sm:$0xff]  }
  0xaa   : > { %2045 = vmatpush1.bf16.msra.mxu1 %v2823_v53  ;;  %2003 = vmatprep.subr.bf16.mxu0 %v2828_v54  ;;  %v2907_v53 = vld [vmem:[%s3865_s1 + $0x720] ss:$8 sps:$4 sm:$0xff]   ;;  %v2912_v54 = vld [vmem:[%s3865_s1 + $0x614] ss:$8 sps:$4 sm:$0xff]  }
  0xab   : > { %2046 = vmatprep.subr.bf16.mxu1 %v2831_v55  ;;  %v2915_v55 = vld [vmem:[%s3865_s1 + $0x714] ss:$8 sps:$4 sm:$0xff]  }
  0xad   : > { %2004 = vmatpush2.bf16.msra.mxu0 %v2826_v56  ;;  %v2910_v56 = vld [vmem:[%s3865_s1 + $0x610] ss:$8 sps:$4 sm:$0xff]  }
  0xae   : > { %2047 = vmatpush2.bf16.msra.mxu1 %v2829_v57  ;;  %2005 = vmatprep.subr.bf16.mxu0 %v2834_v58  ;;  %v2913_v57 = vld [vmem:[%s3865_s1 + $0x710] ss:$8 sps:$4 sm:$0xff]   ;;  %v2918_v58 = vld [vmem:[%s3865_s1 + $0x604] ss:$8 sps:$4 sm:$0xff]  }
  0xaf   : > { %2048 = vmatprep.subr.bf16.mxu1 %v2837_v59  ;;  %v2921_v59 = vld [vmem:[%s3865_s1 + $0x704] ss:$8 sps:$4 sm:$0xff]  }
  0xb1   : > { %2006 = vmatpush2.bf16.msra.mxu0 %v2832_v60  ;;  %v2916_v60 = vld [vmem:[%s3865_s1 + $0x600] ss:$8 sps:$4 sm:$0xff]  }
  0xb2   : > { %2049 = vmatpush2.bf16.msra.mxu1 %v2835_v61  ;;  %2007 = vmatprep.subr.bf16.mxu0 %v2840_v62  ;;  %v2919_v61 = vld [vmem:[%s3865_s1 + $0x700] ss:$8 sps:$4 sm:$0xff]   ;;  %v2924_v62 = vld [vmem:[%s3865_s1 + $0x6f4] ss:$8 sps:$4 sm:$0xff]  }
  0xb3   : > { %2050 = vmatprep.subr.bf16.mxu1 %v2843_v63  ;;  %v2927_v63 = vld [vmem:[%s3865_s1 + $0x7f4] ss:$8 sps:$4 sm:$0xff]  }
  0xb5   : > { %2008 = vmatpush2.bf16.msra.mxu0 %v2838_v0  ;;  %v2922_v0 = vld [vmem:[%s3865_s1 + $0x6f0] ss:$8 sps:$4 sm:$0xff]  }
  0xb6   : > { %2051 = vmatpush2.bf16.msra.mxu1 %v2841_v1  ;;  %2009 = vmatprep.subr.bf16.mxu0 %v2846_v2  ;;  %v2925_v1 = vld [vmem:[%s3865_s1 + $0x7f0] ss:$8 sps:$4 sm:$0xff]   ;;  %v2930_v2 = vld [vmem:[%s3865_s1 + $0x6e4] ss:$8 sps:$4 sm:$0xff]  }
  0xb7   : > { %2052 = vmatprep.subr.bf16.mxu1 %v2849_v3  ;;  %v2933_v3 = vld [vmem:[%s3865_s1 + $0x7e4] ss:$8 sps:$4 sm:$0xff]  }
  0xb9   : > { %2010 = vmatpush2.bf16.msra.mxu0 %v2844_v4  ;;  %v2928_v4 = vld [vmem:[%s3865_s1 + $0x6e0] ss:$8 sps:$4 sm:$0xff]  }
  0xba   : > { %2053 = vmatpush2.bf16.msra.mxu1 %v2847_v5  ;;  %2011 = vmatprep.subr.bf16.mxu0 %v2852_v6  ;;  %v2931_v5 = vld [vmem:[%s3865_s1 + $0x7e0] ss:$8 sps:$4 sm:$0xff]   ;;  %v2936_v6 = vld [vmem:[%s3865_s1 + $0x6d4] ss:$8 sps:$4 sm:$0xff]  }
  0xbb   : > { %2054 = vmatprep.subr.bf16.mxu1 %v2855_v7  ;;  %v2939_v7 = vld [vmem:[%s3865_s1 + $0x7d4] ss:$8 sps:$4 sm:$0xff]  }
  0xbd   : > { %2012 = vmatpush2.bf16.msra.mxu0 %v2850_v8  ;;  %v2934_v8 = vld [vmem:[%s3865_s1 + $0x6d0] ss:$8 sps:$4 sm:$0xff]  }
  0xbe   : > { %2055 = vmatpush2.bf16.msra.mxu1 %v2853_v9  ;;  %2013 = vmatprep.subr.bf16.mxu0 %v2858_v10  ;;  %v2937_v9 = vld [vmem:[%s3865_s1 + $0x7d0] ss:$8 sps:$4 sm:$0xff]   ;;  %v2942_v10 = vld [vmem:[%s3865_s1 + $0x6c4] ss:$8 sps:$4 sm:$0xff]  }
  0xbf   : > { %2056 = vmatprep.subr.bf16.mxu1 %v2861_v11  ;;  %v2945_v11 = vld [vmem:[%s3865_s1 + $0x7c4] ss:$8 sps:$4 sm:$0xff]  }
  0xc1   : > { %2014 = vmatpush2.bf16.msra.mxu0 %v2856_v12  ;;  %v2940_v12 = vld [vmem:[%s3865_s1 + $0x6c0] ss:$8 sps:$4 sm:$0xff]  }
  0xc2   : > { %2057 = vmatpush2.bf16.msra.mxu1 %v2859_v13  ;;  %2015 = vmatprep.subr.bf16.mxu0 %v2864_v14  ;;  %v2943_v13 = vld [vmem:[%s3865_s1 + $0x7c0] ss:$8 sps:$4 sm:$0xff]   ;;  %v2948_v14 = vld [vmem:[%s3865_s1 + $0x6b4] ss:$8 sps:$4 sm:$0xff]  }
  0xc3   : > { %2058 = vmatprep.subr.bf16.mxu1 %v2867_v15  ;;  %v2951_v15 = vld [vmem:[%s3865_s1 + $0x7b4] ss:$8 sps:$4 sm:$0xff]  }
  0xc5   : > { %2016 = vmatpush2.bf16.msra.mxu0 %v2862_v16  ;;  %v2946_v16 = vld [vmem:[%s3865_s1 + $0x6b0] ss:$8 sps:$4 sm:$0xff]  }
  0xc6   : > { %2059 = vmatpush2.bf16.msra.mxu1 %v2865_v17  ;;  %2017 = vmatprep.subr.bf16.mxu0 %v2870_v18  ;;  %v2949_v17 = vld [vmem:[%s3865_s1 + $0x7b0] ss:$8 sps:$4 sm:$0xff]   ;;  %v2954_v18 = vld [vmem:[%s3865_s1 + $0x6a4] ss:$8 sps:$4 sm:$0xff]  }
  0xc7   : > { %2060 = vmatprep.subr.bf16.mxu1 %v2873_v19  ;;  %v2957_v19 = vld [vmem:[%s3865_s1 + $0x7a4] ss:$8 sps:$4 sm:$0xff]  }
  0xc9   : > { %2018 = vmatpush2.bf16.msra.mxu0 %v2868_v20  ;;  %v2952_v20 = vld [vmem:[%s3865_s1 + $0x6a0] ss:$8 sps:$4 sm:$0xff]  }
  0xca   : > { %2061 = vmatpush2.bf16.msra.mxu1 %v2871_v21  ;;  %2073 = vmatprep.subr.bf16.mxu0 %v2876_v22  ;;  %v2955_v21 = vld [vmem:[%s3865_s1 + $0x7a0] ss:$8 sps:$4 sm:$0xff]   ;;  %v2960_v22 = vld [vmem:[%s3865_s1 + $0x694] ss:$8 sps:$4 sm:$0xff]  }
  0xcb   : > { %2116 = vmatprep.subr.bf16.mxu1 %v2879_v23  ;;  %v2963_v23 = vld [vmem:[%s3865_s1 + $0x794] ss:$8 sps:$4 sm:$0xff]  }
  0xcc   : > { %2020 = vmatmul.mubr.bf16.vlgmr.msra.gmra.mxu0 %v2306_v29  ;;  %v2958_v29 = vld [vmem:[%s3865_s1 + $0x690] ss:$8 sps:$4 sm:$0xff]  }
  0xcd   : > { %2063 = vmatmul.mubr.bf16.vlgmr.msra.gmra.mxu1 %v2308_v30  ;;  %2074 = vmatpush1.bf16.msra.mxu0 %v2874_v34  ;;  %v2961_v30 = vld [vmem:[%s3865_s1 + $0x790] ss:$8 sps:$4 sm:$0xff]   ;;  %v2966_v34 = vld [vmem:[%s3865_s1 + $0x684] ss:$8 sps:$4 sm:$0xff]  }
  0xce   : > { %2117 = vmatpush1.bf16.msra.mxu1 %v2877_v35  ;;  %2075 = vmatprep.subr.bf16.mxu0 %v2882_v24  ;;  %v2969_v35 = vld [vmem:[%s3865_s1 + $0x784] ss:$8 sps:$4 sm:$0xff]   ;;  %v2964_v24 = vld [vmem:[%s3865_s1 + $0x680] ss:$8 sps:$4 sm:$0xff]  }
  0xcf   : > { %2118 = vmatprep.subr.bf16.mxu1 %v2885_v25  ;;  %2105 = vmatprep.mubr.bf16.mxu0 %v2311_v26  ;;  %v2967_v25 = vld [vmem:[%s3865_s1 + $0x780] ss:$8 sps:$4 sm:$0xff]   ;;  %v2310_v26 = vcombine.low %v3645_v28, %v3652_v31 }
  0xd0   : > { %2148 = vmatprep.mubr.bf16.mxu1 %v2313_v27  ;;  %v2312_v27 = vcombine.low %v3655_v32, %v3658_v33  ;;  %v443_v32 = vld [vmem:[%s3866_s2] sm:$0x3] }
  0xd1   : > { %2076 = vmatpush1.bf16.msra.mxu0 %v2880_v36 }
  0xd2   : > { %2119 = vmatpush1.bf16.msra.mxu1 %v2883_v37  ;;  %2077 = vmatprep.subr.bf16.mxu0 %v2888_v38 }
  0xd3   : > { %2120 = vmatprep.subr.bf16.mxu1 %v2891_v39 }
  0xd5   : > { %2078 = vmatpush1.bf16.msra.mxu0 %v2886_v40 }
  0xd6   : > { %2121 = vmatpush1.bf16.msra.mxu1 %v2889_v41  ;;  %2079 = vmatprep.subr.bf16.mxu0 %v2894_v42  ;;  %v445_v42 = vlaneseq }
  0xd7   : > { %2122 = vmatprep.subr.bf16.mxu1 %v2897_v43 }
  0xd9   : > { %2080 = vmatpush1.bf16.msra.mxu0 %v2892_v44 }
  0xda   : > { %2123 = vmatpush1.bf16.msra.mxu1 %v2895_v45  ;;  %2081 = vmatprep.subr.bf16.mxu0 %v2900_v46 }
  0xdb   : > { %2124 = vmatprep.subr.bf16.mxu1 %v2903_v47  ;;  %v446_v47 = vshrl.u32 %v445_v42, 7 }
  0xdd   : > { %2082 = vmatpush1.bf16.msra.mxu0 %v2898_v48  ;;  %v447_v48 = vsub.s32 0, %v446_v47  ;;  %v451_v33 = vsub.s32 1, %v446_v47 }
  0xde   : > { %2125 = vmatpush1.bf16.msra.mxu1 %v2901_v49  ;;  %2083 = vmatprep.subr.bf16.mxu0 %v2906_v50 }
  0xdf   : > { %2126 = vmatprep.subr.bf16.mxu1 %v2909_v51  ;;  %v448_v51 = vrot.slane %v443_v32, %v447_v48 }
  0xe1   : > { %2084 = vmatpush1.bf16.msra.mxu0 %v2904_v52  ;;  %v452_v52 = vrot.slane %v443_v32, %v451_v33 }
  0xe2   : > { %2127 = vmatpush1.bf16.msra.mxu1 %v2907_v53  ;;  %2085 = vmatprep.subr.bf16.mxu0 %v2912_v54 }
  0xe3   : > { %2128 = vmatprep.subr.bf16.mxu1 %v2915_v55 }
  0xe5   : > { %2086 = vmatpush1.bf16.msra.mxu0 %v2910_v56 }
  0xe6   : > { %2129 = vmatpush1.bf16.msra.mxu1 %v2913_v57  ;;  %2087 = vmatprep.subr.bf16.mxu0 %v2918_v58 }
  0xe7   : > { %2130 = vmatprep.subr.bf16.mxu1 %v2921_v59 }
  0xe9   : > { %2088 = vmatpush1.bf16.msra.mxu0 %v2916_v60 }
  0xea   : > { %2131 = vmatpush1.bf16.msra.mxu1 %v2919_v61  ;;  %2089 = vmatprep.subr.bf16.mxu0 %v2924_v62 }
  0xeb   : > { %2132 = vmatprep.subr.bf16.mxu1 %v2927_v63 }
  0xed   : > { %2090 = vmatpush2.bf16.msra.mxu0 %v2922_v0 }
  0xee   : > { %2133 = vmatpush2.bf16.msra.mxu1 %v2925_v1  ;;  %2091 = vmatprep.subr.bf16.mxu0 %v2930_v2 }
  0xef   : > { %2134 = vmatprep.subr.bf16.mxu1 %v2933_v3 }
  0xf1   : > { %2092 = vmatpush2.bf16.msra.mxu0 %v2928_v4 }
  0xf2   : > { %2135 = vmatpush2.bf16.msra.mxu1 %v2931_v5  ;;  %2093 = vmatprep.subr.bf16.mxu0 %v2936_v6 }
  0xf3   : > { %2136 = vmatprep.subr.bf16.mxu1 %v2939_v7 }
  0xf5   : > { %2094 = vmatpush2.bf16.msra.mxu0 %v2934_v8 }
  0xf6   : > { %2137 = vmatpush2.bf16.msra.mxu1 %v2937_v9  ;;  %2095 = vmatprep.subr.bf16.mxu0 %v2942_v10 }
  0xf7   : > { %2138 = vmatprep.subr.bf16.mxu1 %v2945_v11 }
  0xf9   : > { %2096 = vmatpush2.bf16.msra.mxu0 %v2940_v12 }
  0xfa   : > { %2139 = vmatpush2.bf16.msra.mxu1 %v2943_v13  ;;  %2097 = vmatprep.subr.bf16.mxu0 %v2948_v14 }
  0xfb   : > { %2140 = vmatprep.subr.bf16.mxu1 %v2951_v15 }
  0xfd   : > { %2098 = vmatpush2.bf16.msra.mxu0 %v2946_v16 }
  0xfe   : > { %2141 = vmatpush2.bf16.msra.mxu1 %v2949_v17  ;;  %2099 = vmatprep.subr.bf16.mxu0 %v2954_v18 }
  0xff   : > { %2142 = vmatprep.subr.bf16.mxu1 %v2957_v19 }
 0x101   : > { %2100 = vmatpush2.bf16.msra.mxu0 %v2952_v20 }
 0x102   : > { %2143 = vmatpush2.bf16.msra.mxu1 %v2955_v21  ;;  %2101 = vmatprep.subr.bf16.mxu0 %v2960_v22 }
 0x103   : > { %2144 = vmatprep.subr.bf16.mxu1 %v2963_v23 }
 0x105   : > { %2102 = vmatpush2.bf16.msra.mxu0 %v2958_v29 }
 0x106   : > { %2145 = vmatpush2.bf16.msra.mxu1 %v2961_v30  ;;  %2103 = vmatprep.subr.bf16.mxu0 %v2966_v34 }
 0x107   : > { %2146 = vmatprep.subr.bf16.mxu1 %v2969_v35 }
 0x109   : > { %2104 = vmatpush2.bf16.msra.mxu0 %v2964_v24 }
 0x10a   : > { %2147 = vmatpush2.bf16.msra.mxu1 %v2967_v25 }
 0x10c   : > { %2106 = vmatmul.mubr.bf16.vlgmr.msra.gmra.mxu0 %v2310_v26  ;;  %v1849_v36 = vpop.f32.mrf.mxu0 }
 0x10d   : > { %2149 = vmatmul.mubr.bf16.vlgmr.msra.gmra.mxu1 %v2312_v27  ;;  %v1892_v37 = vpop.f32.mrf.mxu1  ;;  %v1850_v55 = vadd.f32 %v1849_v36, %v448_v51 }
 0x10e   : > { %v1851_v38 = vpop.f32.mrf.mxu0 }
 0x10f   : > { %v1894_v39 = vpop.f32.mrf.mxu1  ;;  %v1852_v58 = vadd.f32 %v1851_v38, %v452_v52  ;;  %v1893_v60 = vadd.f32 %v1892_v37, %v1850_v55 }
 0x110   : > { %v1853_v40 = vpop.f32.mrf.mxu0 }
 0x111   : > { %v1896_v41 = vpop.f32.mrf.mxu1  ;;  %v1854_v59 = vadd.f32 %v1853_v40, %v448_v51  ;;  %v1895_v0 = vadd.f32 %v1894_v39, %v1852_v58 }
 0x112   : > { %v1855_v43 = vpop.f32.mrf.mxu0 }
 0x113   : > { %v1898_v44 = vpop.f32.mrf.mxu1  ;;  %v1856_v61 = vadd.f32 %v1855_v43, %v452_v52  ;;  %v1897_v1 = vadd.f32 %v1896_v41, %v1854_v59 }
 0x115   : > { %v1899_v3 = vadd.f32 %v1898_v44, %v1856_v61 }
 0x14c   : > { %v1935_v45 = vpop.f32.mrf.mxu0 }
 0x14d   : > { %v1978_v46 = vpop.f32.mrf.mxu1  ;;  %v1936_v2 = vadd.f32 %v1935_v45, %v1893_v60 }
 0x14e   : > { %v1937_v28 = vpop.f32.mrf.mxu0 }
 0x14f   : > { %v1980_v31 = vpop.f32.mrf.mxu1  ;;  %v1938_v4 = vadd.f32 %v1937_v28, %v1895_v0  ;;  %v1979_v8 = vadd.f32 %v1978_v46, %v1936_v2 }
 0x150   : > { %v1939_v49 = vpop.f32.mrf.mxu0 }
 0x151   : > { %v1982_v50 = vpop.f32.mrf.mxu1  ;;  %v1940_v5 = vadd.f32 %v1939_v49, %v1897_v1  ;;  %v1981_v10 = vadd.f32 %v1980_v31, %v1938_v4 }
 0x152   : > { %v1941_v53 = vpop.f32.mrf.mxu0 }
 0x153   : > { %v1984_v54 = vpop.f32.mrf.mxu1  ;;  %v1942_v9 = vadd.f32 %v1941_v53, %v1899_v3  ;;  %v1983_v11 = vadd.f32 %v1982_v50, %v1940_v5 }
 0x155   : > { %v1985_v15 = vadd.f32 %v1984_v54, %v1942_v9 }
 0x18c   : > { %v2021_v56 = vpop.f32.mrf.mxu0 }
 0x18d   : > { %v2064_v57 = vpop.f32.mrf.mxu1  ;;  %v2022_v12 = vadd.f32 %v2021_v56, %v1979_v8 }
 0x18e   : > { %v2023_v62 = vpop.f32.mrf.mxu0 }
 0x18f   : > { %v2066_v63 = vpop.f32.mrf.mxu1  ;;  %v2024_v16 = vadd.f32 %v2023_v62, %v1981_v10  ;;  %v2065_v20 = vadd.f32 %v2064_v57, %v2022_v12 }
 0x190   : > { %v2025_v6 = vpop.f32.mrf.mxu0 }
 0x191   : > { %v2068_v7 = vpop.f32.mrf.mxu1  ;;  %v2026_v17 = vadd.f32 %v2025_v6, %v1983_v11  ;;  %v2067_v29 = vadd.f32 %v2066_v63, %v2024_v16 }
 0x192   : > { %v2027_v13 = vpop.f32.mrf.mxu0 }
 0x193   : > { %v2070_v14 = vpop.f32.mrf.mxu1  ;;  %v2028_v21 = vadd.f32 %v2027_v13, %v1985_v15  ;;  %v2069_v30 = vadd.f32 %v2068_v7, %v2026_v17 }
 0x195   : > { %v2071_v25 = vadd.f32 %v2070_v14, %v2028_v21 }
 0x1cc   : > { %v2107_v18 = vpop.f32.mrf.mxu0 }
 0x1cd   : > { %v2150_v19 = vpop.f32.mrf.mxu1  ;;  %v2108_v34 = vadd.f32 %v2107_v18, %v2065_v20 }
 0x1ce   : > { %v2109_v22 = vpop.f32.mrf.mxu0 }
 0x1cf   : > { %v2152_v23 = vpop.f32.mrf.mxu1  ;;  %v2110_v26 = vadd.f32 %v2109_v22, %v2067_v29  ;;  %v2151_v37 = vadd.f32 %v2150_v19, %v2108_v34 }
 0x1d0   : > { %v2111_v35 = vpop.f32.mrf.mxu0 }
 0x1d1   : > { %v2154_v24 = vpop.f32.mrf.mxu1  ;;  %v2112_v27 = vadd.f32 %v2111_v35, %v2069_v30  ;;  %v2153_v41 = vadd.f32 %v2152_v23, %v2110_v26 }
 0x1d2   : > { %v2113_v36 = vpop.f32.mrf.mxu0 }
 0x1d3   : > { %v2155_v38 = vadd.f32 %v2154_v24, %v2112_v27  ;;  %v2114_v39 = vadd.f32 %v2113_v36, %v2071_v25  ;;  %v2156_v40 = vpop.f32.mrf.mxu1 }
 0x1d5   : > { %v2159_v42 = vadd.f32 %v2155_v38, %v2151_v37  ;;  %v2157_v43 = vadd.f32 %v2156_v40, %v2114_v39 }
 0x1d7   : > { %v2160_v44 = vrot.slane %v2159_v42, 4  ;;  %v2166_v45 = vadd.f32 %v2157_v43, %v2153_v41 }
 0x1d9   : > { %v2161_v46 = vadd.f32 %v2160_v44, %v2159_v42  ;;  %v2167_v47 = vrot.slane %v2166_v45, 4 }
 0x1db   : > { %v2162_v28 = vrot.slane %v2161_v46, 2  ;;  %v2168_v31 = vadd.f32 %v2167_v47, %v2166_v45 }
 0x1dd   : > { %v2163_v48 = vadd.f32 %v2162_v28, %v2161_v46  ;;  %v2169_v32 = vrot.slane %v2168_v31, 2 }
 0x1df   : > { %v2164_v33 = vrot.slane %v2163_v48, 1  ;;  %v2170_v49 = vadd.f32 %v2169_v32, %v2168_v31 }
 0x1e1   : > { %v2165_v50 = vadd.f32 %v2164_v33, %v2163_v48  ;;  %v2171_v51 = vrot.slane %v2170_v49, 1 }
 0x1e3   : > { %v2174_v52 = vmul.f32 0.0625, %v2165_v50  ;;  %v2172_v53 = vadd.f32 %v2171_v51, %v2170_v49 }
 0x1e5   : > { %v2176_v54 = vsub.f32 %v2151_v37, %v2174_v52  ;;  %v2178_v55 = vsub.f32 %v2155_v38, %v2174_v52  ;;  %v2175_v56 = vmul.f32 0.0625, %v2172_v53 }
 0x1e7   : > { %v2180_v57 = vmul.f32 %v2176_v54, %v2176_v54  ;;  %v2182_v58 = vmul.f32 %v2178_v55, %v2178_v55  ;;  %v2177_v59 = vsub.f32 %v2153_v41, %v2175_v56  ;;  %v2179_v60 = vsub.f32 %v2157_v43, %v2175_v56 }
 0x1e9   : > { %v2184_v61 = vadd.f32 %v2182_v58, %v2180_v57  ;;  %v2181_v62 = vmul.f32 %v2177_v59, %v2177_v59  ;;  %v2183_v63 = vmul.f32 %v2179_v60, %v2179_v60 }
 0x1eb   : > { %v2185_v0 = vrot.slane %v2184_v61, 4  ;;  %v2191_v1 = vadd.f32 %v2183_v63, %v2181_v62 }
 0x1ed   : > { %v2186_v2 = vadd.f32 %v2185_v0, %v2184_v61  ;;  %v2192_v3 = vrot.slane %v2191_v1, 4 }
 0x1ef   : > { %v2187_v4 = vrot.slane %v2186_v2, 2  ;;  %v2193_v5 = vadd.f32 %v2192_v3, %v2191_v1 }
 0x1f1   : > { %v2188_v6 = vadd.f32 %v2187_v4, %v2186_v2  ;;  %v2194_v7 = vrot.slane %v2193_v5, 2 }
 0x1f3   : > { %v2189_v8 = vrot.slane %v2188_v6, 1  ;;  %v2195_v9 = vadd.f32 %v2194_v7, %v2193_v5 }
 0x1f5   : > { %v2190_v10 = vadd.f32 %v2189_v8, %v2188_v6  ;;  %v2196_v11 = vrot.slane %v2195_v9, 1 }
 0x1f7   : > { %v2198_v12 = vmul.f32 0.0625, %v2190_v10  ;;  %v2197_v13 = vadd.f32 %v2196_v11, %v2195_v9 }
 0x1f9   : > { %v2200_v14 = vadd.f32 1e-05, %v2198_v12  ;;  %v2199_v15 = vmul.f32 0.0625, %v2197_v13 }
 0x1fb   : > { %2970 = vrsqrt.f32 %v2200_v14  ;;  %v2201_v16 = vadd.f32 1e-05, %v2199_v15 }
 0x1fd   : > { %2972 = vrsqrt.f32 %v2201_v16 }
 0x208   : > { %v2971_v17 = vpop.eup %2970 }
 0x209   : > { %v2204_v18 = vmul.f32 %v2971_v17, %v2176_v54  ;;  %v2206_v19 = vmul.f32 %v2971_v17, %v2178_v55 }
 0x20a   : > { %v2973_v20 = vpop.eup %2972 }
 0x20b   : > { %v2212_v21 = vmul.f32 0.2, %v2204_v18  ;;  %v2214_v22 = vmul.f32 0.2, %v2206_v19  ;;  %v2205_v23 = vmul.f32 %v2973_v20, %v2177_v59  ;;  %v2207_v29 = vmul.f32 %v2973_v20, %v2179_v60 }
 0x20c   : > { %vm2208_vm0 = vcmp.ge.f32.partialorder %v2204_v18, 0.0  ;;  %vm2210_vm1 = vcmp.ge.f32.partialorder %v2206_v19, 0.0 }
 0x20d   : > { %vm2209_vm2 = vcmp.ge.f32.partialorder %v2205_v23, 0.0  ;;  %vm2211_vm3 = vcmp.ge.f32.partialorder %v2207_v29, 0.0  ;;  %v2213_v30 = vmul.f32 0.2, %v2205_v23  ;;  %v2215_v34 = vmul.f32 0.2, %v2207_v29 }
 0x20e   : > { %v2216_v35 = vsel %vm2208_vm0, %v2204_v18, %v2212_v21  ;;  %v2218_v24 = vsel %vm2210_vm1, %v2206_v19, %v2214_v22 }
 0x20f   : > { %v2217_v25 = vsel %vm2209_vm2, %v2205_v23, %v2213_v30  ;;  %v2219_v26 = vsel %vm2211_vm3, %v2207_v29, %v2215_v34 }
 0x210   : > { %v2576_v27 = vpack.c.bf16 %v2217_v25, %v2216_v35  ;;  %v2577_v36 = vpack.c.bf16 %v2219_v26, %v2218_v24 }
 0x212   : > { %2232 = vst [vmem:[%s170_s22] sm:$0xff] %v2576_v27  ;;  %2233 = vst [vmem:[%s170_s22 + $0x8] sm:$0xff] %v2577_v36 }
 0x213 PF: > { %s13_s12 = sadd.s32 1, %s2980_s12  }
 0x214   : > { %p10_p4 = scmp.ge.s32.totalorder %s13_s12, 4  }
 0x216   :  { %12 = sbr.rel (!%p10_p4) target bundleno = 1 (0x1), region = 62 }

// kernel: discriminator_forward.9
= control target key start
LH: loop header
LB: loop body
LE: loop exit
PB: predicated region body
PF: predicated region fallthrough
CT: control target
= control target key end

     0   :  { %s1335_s14 = smov 0   ;;  %s2093_s0 = inlined_call_operand.vmem [shape: bf16[2,4,8192], index: 0, kind: input, shape index: {}]   ;;  %s2094_s1 = inlined_call_operand.vmem [shape: bf16[1,8192], index: 1, kind: input, shape index: {}]   ;;  %s2095_s2 = inlined_call_operand.<no memory space> [shape: f32[1,1], index: 2, kind: input, shape index: {}]   ;;  %s2096_s3 = inlined_call_operand.vmem [shape: f32[2,4,1], index: 3, kind: output, shape index: {}]  }
   0x1   :  { %v8_v0 = vstv %s2095_s2 }
   0x2   :  { %9 = vst [vmem:[#allocation2] sm:$0x1] %v8_v0 }
   0x3 LB: > { %s1284_s15 = sadd.s32 4294967295, %s1310_s14   ;;  %p1288_p0 = scmp.ge.s32.totalorder %s1310_s14, 1  ;;  %s1310_s14 = sphi %s1335_s14, %s15_s14  }
   0x4   : > { %p139_p1 = scmp.lt.s32.totalorder %s1310_s14, 3 }
   0x6   : > { %p140_p2 = pnand %p1288_p0, %p139_p1 }
   0x8   : > { %143 = sbr.rel (%p140_p2) target bundleno = 332 (0x14c), region = 32 }
   0xd   : > { %p162_p3 = scmp.lt.s32.totalorder %s1284_s15, 1  ;;  %v219_v1 = vld [vmem:[%s2094_s1] sm:$0xff]  ;;  %v220_v2 = vld [vmem:[%s2094_s1 + $0x8] sm:$0xff]  ;;  %v221_v3 = vld [vmem:[%s2094_s1 + $0x10] sm:$0xff]  ;;  %v259_v4 = vlaneseq  ;;  %vm1091_vm0 = vcmask 1043456   ;;  %vm1229_vm1 = vcmask 3072  }
   0xe   : > { %v223_v5 = vld [vmem:[%s2094_s1 + $0x20] sm:$0xff]  ;;  %v224_v6 = vld [vmem:[%s2094_s1 + $0x28] sm:$0xff]  ;;  %v225_v7 = vld [vmem:[%s2094_s1 + $0x30] sm:$0xff]  ;;  %v1372_v9 = vunpack.c.l.bf16 %v219_v1  ;;  %v1374_v10 = vunpack.c.h.bf16 %v219_v1  ;;  %v1382_v13 = vunpack.c.l.bf16 %v220_v2  ;;  %v1384_v14 = vunpack.c.h.bf16 %v220_v2 }
   0xf   : > { %s2149_s15 = smov (!%p162_p3, %s1284_s15), 1  ;;  %v226_v8 = vld [vmem:[%s2094_s1 + $0x38] sm:$0xff]  ;;  %v1386_v15 = vunpack.c.l.bf16 %v221_v3  ;;  %v1388_v16 = vunpack.c.h.bf16 %v221_v3  ;;  %v1396_v19 = vunpack.c.l.bf16 %v223_v5  ;;  %v1398_v20 = vunpack.c.h.bf16 %v223_v5 }
  0x10   : > { %s1295_s2 = sshll.u32 %s2149_s15, 7  ;;  %v1400_v21 = vunpack.c.l.bf16 %v224_v6  ;;  %v260_v22 = vshrl.u32 %v259_v4, 7  ;;  %v1402_v23 = vunpack.c.h.bf16 %v224_v6  ;;  %v1404_v24 = vunpack.c.l.bf16 %v225_v7  ;;  %s1291_s8 = sshll.u32 %s2149_s15, 2 }
  0x11   : > { %s1352_s20 = scalar_lea.vmem %s2093_s0, %s1295_s2  ;;  %2105 = vst [vmem:[#allocation5_spill] sm:$0xff] %v1386_v15  ;;  %2106 = vst [vmem:[#allocation6_spill] sm:$0xff] %v1388_v16  ;;  %v1406_v25 = vunpack.c.h.bf16 %v225_v7  ;;  %v1408_v26 = vunpack.c.l.bf16 %v226_v8  ;;  %v1419_v32 = vunpack.c.h.bf16 %v226_v8  ;;  %s170_s11 = scalar_lea.vmem %s2096_s3, %s1291_s8 }
  0x12   : > { %v1377_v11 = vld [vmem:[%s1352_s20] sm:$0xff]  ;;  %v1380_v12 = vld [vmem:[%s1352_s20 + $0x8] sm:$0xff]  ;;  %v1391_v17 = vld [vmem:[%s1352_s20 + $0x10] sm:$0xff]  ;;  %v1437_v41 = vsub.s32 0, %v260_v22  ;;  %v1439_v42 = vsub.s32 2, %v260_v22  ;;  %v1441_v43 = vsub.s32 4, %v260_v22 }
  0x13   : > { %2103 = vst [vmem:[#allocation3_spill] sm:$0xff] %v1377_v11  ;;  %2104 = vst [vmem:[#allocation4_spill] sm:$0xff] %v1380_v12  ;;  %v1394_v18 = vld [vmem:[%s1352_s20 + $0x40] sm:$0xff]  ;;  %v1411_v27 = vld [vmem:[%s1352_s20 + $0x48] sm:$0xff]  ;;  %v1443_v44 = vsub.s32 6, %v260_v22 }
  0x14   : > { %v1414_v28 = vld [vmem:[%s1352_s20 + $0x50] sm:$0xff]  ;;  %v1422_v33 = vld [vmem:[%s1352_s20 + $0x58] sm:$0xff]  ;;  %v1425_v34 = vld [vmem:[%s1352_s20 + $0x60] sm:$0xff]  ;;  %v262_v57 = vrot.slane %v1372_v9, %v1437_v41  ;;  %v266_v58 = vrot.slane %v1372_v9, %v1439_v42  ;;  %v390_v1 = vrot.slane %v1396_v19, %v1437_v41  ;;  %v394_v2 = vrot.slane %v1396_v19, %v1439_v42 }
  0x15   : > { %v1432_v39 = vld [vmem:[%s1352_s20 + $0x68] sm:$0xff]  ;;  %v1435_v40 = vld [vmem:[%s1352_s20 + $0x70] sm:$0xff]  ;;  %v398_v3 = vrot.slane %v1396_v19, %v1441_v43  ;;  %v402_v4 = vrot.slane %v1396_v19, %v1443_v44  ;;  %v406_v5 = vrot.slane %v1398_v20, %v1437_v41  ;;  %v410_v6 = vrot.slane %v1398_v20, %v1439_v42  ;;  %v186_v11 = vld [vmem:[%s1352_s20 + $0x78] sm:$0xff] }
  0x16   : > { %v414_v7 = vrot.slane %v1398_v20, %v1441_v43  ;;  %v418_v8 = vrot.slane %v1398_v20, %v1443_v44  ;;  %v422_v22 = vrot.slane %v1400_v21, %v1437_v41  ;;  %v426_v36 = vrot.slane %v1400_v21, %v1439_v42 }
  0x17   : > { %v430_v19 = vrot.slane %v1400_v21, %v1441_v43  ;;  %v434_v35 = vrot.slane %v1400_v21, %v1443_v44  ;;  %v438_v31 = vrot.slane %v1402_v23, %v1437_v41  ;;  %v442_v30 = vrot.slane %v1402_v23, %v1439_v42 }
  0x18   : > { %v446_v20 = vrot.slane %v1402_v23, %v1441_v43  ;;  %v450_v29 = vrot.slane %v1402_v23, %v1443_v44  ;;  %v458_v56 = vrot.slane %v1404_v24, %v1439_v42  ;;  %v462_v55 = vrot.slane %v1404_v24, %v1441_v43 }
  0x19   : > { %v466_v21 = vrot.slane %v1404_v24, %v1443_v44  ;;  %v474_v54 = vrot.slane %v1406_v25, %v1439_v42  ;;  %v478_v53 = vrot.slane %v1406_v25, %v1441_v43  ;;  %v482_v52 = vrot.slane %v1406_v25, %v1443_v44 }
  0x1a   : > { %v490_v23 = vrot.slane %v1408_v26, %v1439_v42  ;;  %v494_v51 = vrot.slane %v1408_v26, %v1441_v43  ;;  %v498_v50 = vrot.slane %v1408_v26, %v1443_v44  ;;  %v1524_v49 = vrot.slane %v394_v2, %v1437_v41 }
  0x1b   : > { %v1527_v48 = vrot.slane %v398_v3, %v1437_v41  ;;  %v1530_v47 = vrot.slane %v402_v4, %v1437_v41  ;;  %v506_v46 = vrot.slane %v1419_v32, %v1439_v42  ;;  %v1535_v45 = vrot.slane %v410_v6, %v1437_v41 }
  0x1c   : > { %v1538_v38 = vrot.slane %v414_v7, %v1437_v41  ;;  %v1541_v37 = vrot.slane %v418_v8, %v1437_v41  ;;  %v510_v2 = vrot.slane %v1419_v32, %v1441_v43  ;;  %v1546_v3 = vrot.slane %v426_v36, %v1437_v41 }
  0x1d   : > { %v1549_v4 = vrot.slane %v430_v19, %v1437_v41  ;;  %v1552_v0 = vrot.slane %v434_v35, %v1437_v41  ;;  %v514_v6 = vrot.slane %v1419_v32, %v1443_v44  ;;  %v1557_v7 = vrot.slane %v442_v30, %v1437_v41 }
  0x1e   : > { %v1560_v8 = vrot.slane %v446_v20, %v1437_v41  ;;  %v1563_v63 = vrot.slane %v450_v29, %v1437_v41  ;;  %v454_v36 = vrot.slane %v1404_v24, %v1437_v41  ;;  %v1568_v19 = vrot.slane %v458_v56, %v1437_v41 }
  0x1f   : > { %v1571_v35 = vrot.slane %v462_v55, %v1437_v41  ;;  %v1574_v62 = vrot.slane %v466_v21, %v1437_v41  ;;  %v470_v30 = vrot.slane %v1406_v25, %v1437_v41  ;;  %v1579_v20 = vrot.slane %v474_v54, %v1437_v41 }
  0x20   : > { %v1582_v29 = vrot.slane %v478_v53, %v1437_v41  ;;  %v1585_v24 = vrot.slane %v482_v52, %v1437_v41  ;;  %v486_v56 = vrot.slane %v1408_v26, %v1437_v41  ;;  %v1590_v55 = vrot.slane %v490_v23, %v1437_v41 }
  0x21   : > { %v1593_v21 = vrot.slane %v494_v51, %v1437_v41  ;;  %v1596_v25 = vrot.slane %v498_v50, %v1437_v41  ;;  %v502_v54 = vrot.slane %v1419_v32, %v1437_v41  ;;  %v1601_v53 = vrot.slane %v506_v46, %v1437_v41 }
  0x22   : > { %v1604_v52 = vrot.slane %v510_v2, %v1437_v41  ;;  %v1607_v26 = vrot.slane %v514_v6, %v1437_v41  ;;  %v294_v23 = vrot.slane %v1382_v13, %v1437_v41  ;;  %v298_v51 = vrot.slane %v1382_v13, %v1439_v42 }
  0x23   : > { %v710_v50 = vrot.slane %v390_v1, %v1437_v41  ;;  %v726_v61 = vrot.slane %v406_v5, %v1437_v41  ;;  %v302_v32 = vrot.slane %v1382_v13, %v1441_v43  ;;  %v306_v46 = vrot.slane %v1382_v13, %v1443_v44 }
  0x24   : > { %v742_v2 = vrot.slane %v422_v22, %v1437_v41  ;;  %v758_v6 = vrot.slane %v438_v31, %v1437_v41  ;;  %v1625_v60 = vrot.slane %v262_v57, %v1437_v41  ;;  %v586_v1 = vrot.slane %v266_v58, %v1437_v41 }
  0x25   : > { %v774_v5 = vrot.slane %v454_v36, %v1437_v41  ;;  %v790_v59 = vrot.slane %v470_v30, %v1437_v41  ;;  %v2107_v13 = vrot.slane %v1372_v9, %v1441_v43  ;;  %v2108_v57 = vrot.slane %v1372_v9, %v1443_v44 }
  0x26   : > { %v806_v16 = vrot.slane %v486_v56, %v1437_v41  ;;  %v822_v58 = vrot.slane %v502_v54, %v1437_v41  ;;  %v915_v36 = vcombine.low %v710_v50, %v1524_v49  ;;  %v916_v30 = vcombine.low %v1527_v48, %v1530_v47 }
  0x27   : > { %v1637_v31 = vrot.slane %v2107_v13, %v1437_v41  ;;  %v1643_v22 = vrot.slane %v2108_v57, %v1437_v41  ;;  %v917_v12 = vcombine.low %v726_v61, %v1535_v45  ;;  %v918_v13 = vcombine.low %v1538_v38, %v1541_v37 }
  0x28   : > { %v919_v15 = vcombine.low %v742_v2, %v1546_v3  ;;  %v920_v9 = vcombine.low %v1549_v4, %v1552_v0  ;;  %v921_v56 = vcombine.low %v758_v6, %v1557_v7  ;;  %v922_v54 = vcombine.low %v1560_v8, %v1563_v63 }
  0x29   : > { %v923_v49 = vcombine.low %v774_v5, %v1568_v19  ;;  %v924_v47 = vcombine.low %v1571_v35, %v1574_v62  ;;  %v925_v45 = vcombine.low %v790_v59, %v1579_v20  ;;  %v926_v37 = vcombine.low %v1582_v29, %v1585_v24 }
  0x2a   : > { %v927_v38 = vcombine.low %v806_v16, %v1590_v55  ;;  %v928_v48 = vcombine.low %v1593_v21, %v1596_v25  ;;  %v929_v61 = vcombine.low %v822_v58, %v1601_v53  ;;  %v930_v63 = vcombine.low %v1604_v52, %v1607_v26 }
  0x2b   : > { %v217_v0 = vunpack.c.l.bf16 %v186_v11  ;;  %v218_v3 = vunpack.c.h.bf16 %v186_v11  ;;  %v310_v62 = vrot.slane %v1384_v14, %v1437_v41  ;;  %v314_v59 = vrot.slane %v1384_v14, %v1439_v42 }
  0x2c   : > { %v318_v4 = vrot.slane %v1384_v14, %v1441_v43  ;;  %v322_v16 = vrot.slane %v1384_v14, %v1443_v44  ;;  %v2109_v7 = vrot.slane %v1374_v10, %v1437_v41  ;;  %v2110_v11 = vrot.slane %v1374_v10, %v1439_v42 }
  0x2d   : > { %v2111_v35 = vrot.slane %v1374_v10, %v1441_v43  ;;  %v2112_v29 = vrot.slane %v1374_v10, %v1443_v44  ;;  %v614_v24 = vrot.slane %v294_v23, %v1437_v41  ;;  %v618_v55 = vrot.slane %v298_v51, %v1437_v41 }
  0x2e   : > { %v598_v8 = vrot.slane %v2109_v7, %v1437_v41  ;;  %v602_v19 = vrot.slane %v2110_v11, %v1437_v41  ;;  %v622_v21 = vrot.slane %v302_v32, %v1437_v41  ;;  %v626_v25 = vrot.slane %v306_v46, %v1437_v41  ;;  %v2128_v11 = vld [vmem:[#allocation3_spill] sm:$0xff] }
  0x2f   : > { %v606_v20 = vrot.slane %v2111_v35, %v1437_v41  ;;  %v610_v14 = vrot.slane %v2112_v29, %v1437_v41  ;;  %v899_v53 = vcombine.low %v1625_v60, %v586_v1  ;;  %v900_v52 = vcombine.low %v1637_v31, %v1643_v22 }
  0x30   : > { %v2113_v26 = vunpack.c.l.bf16 %v1394_v18  ;;  %v2114_v10 = vunpack.c.h.bf16 %v1394_v18  ;;  %v2115_v23 = vunpack.c.l.bf16 %v1411_v27  ;;  %v2116_v32 = vunpack.c.h.bf16 %v1411_v27 }
  0x31   : > { %v2117_v60 = vunpack.c.l.bf16 %v1414_v28  ;;  %v2118_v1 = vunpack.c.h.bf16 %v1414_v28  ;;  %v2119_v18 = vunpack.c.l.bf16 %v1422_v33  ;;  %v2120_v57 = vunpack.c.h.bf16 %v1422_v33  ;;  %v1752_v33 = vld [vmem:[%s1352_s20 + $0x18] sm:$0xff] }
  0x32   : > { %v1705_v50 = vmul.f32 %v915_v36, %v2113_v26  ;;  %v1709_v2 = vmul.f32 %v916_v30, %v2114_v10  ;;  %v1713_v51 = vmul.f32 %v917_v12, %v2115_v23  ;;  %v1717_v46 = vmul.f32 %v918_v13, %v2116_v32 }
  0x33   : > { %v1721_v6 = vmul.f32 %v919_v15, %v2117_v60  ;;  %v1725_v5 = vmul.f32 %v920_v9, %v2118_v1  ;;  %v1729_v31 = vmul.f32 %v921_v56, %v2119_v18  ;;  %v1733_v12 = vmul.f32 %v922_v54, %v2120_v57 }
  0x34   : > { %v2121_v27 = vunpack.c.l.bf16 %v1425_v34  ;;  %v2122_v15 = vunpack.c.h.bf16 %v1425_v34  ;;  %v2123_v28 = vunpack.c.l.bf16 %v1432_v39  ;;  %v2124_v30 = vunpack.c.h.bf16 %v1432_v39  ;;  %v2127_v39 = vld [vmem:[#allocation5_spill] sm:$0xff] }
  0x35   : > { %v2125_v9 = vunpack.c.l.bf16 %v1435_v40  ;;  %v2126_v54 = vunpack.c.h.bf16 %v1435_v40  ;;  %v330_v7 = vrot.slane %v2127_v39, %v1439_v42  ;;  %v2129_v35 = vunpack.c.l.bf16 %v2128_v11 }
  0x36   : > { %v1737_v22 = vmul.f32 %v923_v49, %v2121_v27  ;;  %v1741_v58 = vmul.f32 %v924_v47, %v2122_v15  ;;  %v1745_v36 = vmul.f32 %v925_v45, %v2123_v28  ;;  %v1749_v13 = vmul.f32 %v926_v37, %v2124_v30 }
  0x37   : > { %v1756_v56 = vmul.f32 %v927_v38, %v2125_v9  ;;  %v1760_v34 = vmul.f32 %v928_v48, %v2126_v54  ;;  %v1762_v49 = vmul.f32 %v929_v61, %v217_v0  ;;  %v1764_v47 = vmul.f32 %v930_v63, %v218_v3  ;;  %v1776_v0 = vld [vmem:[%s1352_s20 + $0x20] sm:$0xff] }
  0x38   : > { %v192_v45 = vunpack.c.h.bf16 %v1391_v17  ;;  %v326_v37 = vrot.slane %v2127_v39, %v1437_v41  ;;  %v963_v38 = vmul.f32 %v899_v53, %v2129_v35  ;;  %v630_v29 = vrot.slane %v310_v62, %v1437_v41 }
  0x39   : > { %v634_v40 = vrot.slane %v314_v59, %v1437_v41  ;;  %v901_v48 = vcombine.low %v598_v8, %v602_v19  ;;  %v902_v61 = vcombine.low %v606_v20, %v610_v14  ;;  %v193_v63 = vunpack.c.l.bf16 %v1752_v33 }
  0x3a   : > { %v903_v3 = vcombine.low %v614_v24, %v618_v55  ;;  %v904_v26 = vcombine.low %v622_v21, %v626_v25  ;;  %v2130_v10 = vunpack.c.h.bf16 %v2128_v11  ;;  %v334_v32 = vrot.slane %v2127_v39, %v1441_v43  ;;  %v2131_v21 = vld [vmem:[#allocation4_spill] sm:$0xff] }
  0x3b   : > { %v338_v53 = vrot.slane %v2127_v39, %v1443_v44  ;;  %v1786_v62 = vrot.slane %v318_v4, %v1437_v41  ;;  %v1789_v59 = vrot.slane %v322_v16, %v1437_v41  ;;  %v194_v8 = vunpack.c.h.bf16 %v1752_v33  ;;  %v2134_v16 = vld [vmem:[#allocation6_spill] sm:$0xff] }
  0x3c   : > { %v964_v23 = vmul.f32 %v900_v52, %v2130_v10  ;;  %v1793_v19 = vrot.slane %v326_v37, %v1437_v41  ;;  %v1796_v20 = vrot.slane %v330_v7, %v1437_v41  ;;  %v1027_v14 = vcombine.high %v963_v38, %v963_v38 }
  0x3d   : > { %v905_v55 = vcombine.low %v630_v29, %v634_v40  ;;  %v2132_v25 = vunpack.c.l.bf16 %v2131_v21  ;;  %v2133_v4 = vunpack.c.h.bf16 %v2131_v21  ;;  %v2135_v18 = vunpack.c.l.bf16 %v1391_v17 }
  0x3e   : > { %v1807_v27 = vmul.f32 %v904_v26, %v192_v45  ;;  %v1028_v15 = vcombine.high %v964_v23, %v964_v23  ;;  %v1812_v30 = vrot.slane %v334_v32, %v1437_v41  ;;  %v1815_v9 = vrot.slane %v338_v53, %v1437_v41 }
  0x3f   : > { %v965_v52 = vmul.f32 %v901_v48, %v2132_v25  ;;  %v966_v60 = vmul.f32 %v902_v61, %v2133_v4  ;;  %v967_v57 = vmul.f32 %v903_v3, %v2135_v18  ;;  %v1092_v17 = vsel %vm1091_vm0, %v963_v38, 0.0 }
  0x40   : > { %v1093_v45 = vsel %vm1091_vm0, %v1027_v14, 0.0  ;;  %v1095_v37 = vsel %vm1091_vm0, %v964_v23, 0.0  ;;  %v1824_v7 = vmul.f32 %v905_v55, %v193_v63  ;;  %v1043_v61 = vcombine.high %v1705_v50, %v1705_v50 }
  0x41   : > { %v1029_v11 = vcombine.high %v965_v52, %v965_v52  ;;  %v1030_v35 = vcombine.high %v966_v60, %v966_v60  ;;  %v1094_v29 = vadd.f32 %v1093_v45, %v1092_v17  ;;  %v1031_v40 = vcombine.high %v967_v57, %v967_v57 }
  0x42   : > { %v1097_v3 = vsel %vm1091_vm0, %v1028_v15, 0.0  ;;  %v1044_v38 = vcombine.high %v1709_v2, %v1709_v2  ;;  %v1045_v26 = vcombine.high %v1713_v51, %v1713_v51  ;;  %v1046_v63 = vcombine.high %v1717_v46, %v1717_v46 }
  0x43   : > { %v1096_v10 = vadd.f32 %v1095_v37, %v1094_v29  ;;  %v1047_v23 = vcombine.high %v1721_v6, %v1721_v6  ;;  %v1048_v32 = vcombine.high %v1725_v5, %v1725_v5  ;;  %v1049_v53 = vcombine.high %v1729_v31, %v1729_v31 }
  0x44   : > { %v1099_v14 = vsel %vm1091_vm0, %v965_v52, 0.0  ;;  %v1050_v55 = vcombine.high %v1733_v12, %v1733_v12  ;;  %v1051_v21 = vcombine.high %v1737_v22, %v1737_v22  ;;  %v1052_v25 = vcombine.high %v1741_v58, %v1741_v58 }
  0x45   : > { %v1098_v4 = vadd.f32 %v1097_v3, %v1096_v10  ;;  %v1053_v18 = vcombine.high %v1745_v36, %v1745_v36  ;;  %v1054_v15 = vcombine.high %v1749_v13, %v1749_v13  ;;  %v1055_v17 = vcombine.high %v1756_v56, %v1756_v56 }
  0x46   : > { %v1101_v52 = vsel %vm1091_vm0, %v1029_v11, 0.0  ;;  %v1056_v45 = vcombine.high %v1760_v34, %v1760_v34  ;;  %v1057_v37 = vcombine.high %v1762_v49, %v1762_v49  ;;  %v1058_v29 = vcombine.high %v1764_v47, %v1764_v47 }
  0x47   : > { %v1100_v3 = vadd.f32 %v1099_v14, %v1098_v4  ;;  %v1103_v10 = vsel %vm1091_vm0, %v966_v60, 0.0  ;;  %v1105_v39 = vsel %vm1091_vm0, %v1030_v35, 0.0  ;;  %v1107_v24 = vsel %vm1091_vm0, %v967_v57, 0.0 }
  0x48   : > { %v1109_v28 = vsel %vm1091_vm0, %v1031_v40, 0.0  ;;  %v1111_v11 = vsel %vm1091_vm0, %v1807_v27, 0.0  ;;  %v1870_v48 = vsel %vm1091_vm0, %v1043_v61, 0.0  ;;  %v1874_v54 = vsel %vm1091_vm0, %v1709_v2, 0.0 }
  0x49   : > { %v1102_v1 = vadd.f32 %v1101_v52, %v1100_v3  ;;  %v1877_v14 = vsel %vm1091_vm0, %v1044_v38, 0.0  ;;  %v1881_v60 = vsel %vm1091_vm0, %v1713_v51, 0.0  ;;  %v1884_v57 = vsel %vm1091_vm0, %v1045_v26, 0.0 }
  0x4a   : > { %v1888_v35 = vsel %vm1091_vm0, %v1717_v46, 0.0  ;;  %v1891_v61 = vsel %vm1091_vm0, %v1046_v63, 0.0  ;;  %v1895_v2 = vsel %vm1091_vm0, %v1721_v6, 0.0  ;;  %v1898_v38 = vsel %vm1091_vm0, %v1047_v23, 0.0 }
  0x4b   : > { %v1104_v40 = vadd.f32 %v1103_v10, %v1102_v1  ;;  %v1902_v51 = vsel %vm1091_vm0, %v1725_v5, 0.0  ;;  %v1905_v26 = vsel %vm1091_vm0, %v1048_v32, 0.0  ;;  %v1909_v46 = vsel %vm1091_vm0, %v1729_v31, 0.0 }
  0x4c   : > { %v1912_v1 = vsel %vm1091_vm0, %v1049_v53, 0.0  ;;  %v1916_v6 = vsel %vm1091_vm0, %v1733_v12, 0.0  ;;  %v1919_v23 = vsel %vm1091_vm0, %v1050_v55, 0.0  ;;  %v1923_v5 = vsel %vm1091_vm0, %v1737_v22, 0.0 }
  0x4d   : > { %v1106_v63 = vadd.f32 %v1105_v39, %v1104_v40  ;;  %v1926_v32 = vsel %vm1091_vm0, %v1051_v21, 0.0  ;;  %v1930_v31 = vsel %vm1091_vm0, %v1741_v58, 0.0  ;;  %v1933_v39 = vsel %vm1091_vm0, %v1052_v25, 0.0 }
  0x4e   : > { %v1937_v12 = vsel %vm1091_vm0, %v1745_v36, 0.0  ;;  %v1940_v55 = vsel %vm1091_vm0, %v1053_v18, 0.0  ;;  %v1944_v22 = vsel %vm1091_vm0, %v1749_v13, 0.0  ;;  %v1947_v21 = vsel %vm1091_vm0, %v1054_v15, 0.0  ;;  %v222_v13 = vld [vmem:[%s2094_s1 + $0x18] sm:$0xff] }
  0x4f   : > { %v1108_v53 = vadd.f32 %v1107_v24, %v1106_v63  ;;  %v1951_v58 = vsel %vm1091_vm0, %v1756_v56, 0.0  ;;  %v1954_v25 = vsel %vm1091_vm0, %v1055_v17, 0.0  ;;  %v1958_v36 = vsel %vm1091_vm0, %v1760_v34, 0.0 }
  0x50   : > { %v1961_v24 = vsel %vm1091_vm0, %v1056_v45, 0.0  ;;  %v1968_v56 = vsel %vm1091_vm0, %v1762_v49, 0.0  ;;  %v1971_v18 = vsel %vm1091_vm0, %v1057_v37, 0.0  ;;  %v1975_v34 = vsel %vm1091_vm0, %v1764_v47, 0.0 }
  0x51   : > { %v1110_v4 = vadd.f32 %v1109_v28, %v1108_v53  ;;  %2136 = vst [vmem:[#allocation5_spill] sm:$0xff] %v1971_v18  ;;  %2137 = vst [vmem:[#allocation3_spill] sm:$0xff] %v1975_v34  ;;  %v2138_v15 = vcombine.low %v1786_v62, %v1789_v59  ;;  %v1033_v28 = vcombine.high %v1824_v7, %v1824_v7  ;;  %v1989_v45 = vsel %vm1091_vm0, %v1058_v29, 0.0  ;;  %v176_v59 = vld [vmem:[%s1352_s20 + $0x28] sm:$0xff] }
  0x52   : > { %v2139_v49 = vcombine.high %v1807_v27, %v1807_v27  ;;  %2140 = vst [vmem:[#allocation4_spill] sm:$0xff] %v1989_v45  ;;  %v196_v47 = vunpack.c.h.bf16 %v1776_v0  ;;  %v233_v3 = vunpack.c.l.bf16 %v222_v13  ;;  %v350_v33 = vrot.slane %v2134_v16, %v1441_v43 }
  0x53   : > { %v970_v17 = vmul.f32 %v2138_v15, %v194_v8  ;;  %v1112_v37 = vadd.f32 %v1111_v11, %v1110_v4  ;;  %v1115_v62 = vsel %vm1091_vm0, %v1824_v7, 0.0  ;;  %v354_v8 = vrot.slane %v2134_v16, %v1443_v44 }
  0x54   : > { %v1113_v52 = vsel %vm1091_vm0, %v2139_v49, 0.0  ;;  %v2141_v27 = vrot.slane %v2134_v16, %v1437_v41  ;;  %v2142_v10 = vrot.slane %v2134_v16, %v1439_v42  ;;  %v908_v63 = vcombine.low %v1812_v30, %v1815_v9 }
  0x55   : > { %v1114_v40 = vadd.f32 %v1113_v52, %v1112_v37  ;;  %v2143_v7 = vunpack.c.l.bf16 %v1776_v0  ;;  %v2144_v53 = vcombine.low %v1793_v19, %v1796_v20  ;;  %v1034_v15 = vcombine.high %v970_v17, %v970_v17 }
  0x56   : > { %v662_v29 = vrot.slane %v2141_v27, %v1437_v41  ;;  %v666_v11 = vrot.slane %v2142_v10, %v1437_v41  ;;  %v1117_v49 = vsel %vm1091_vm0, %v1033_v28, 0.0  ;;  %v197_v27 = vunpack.c.l.bf16 %v176_v59 }
  0x57   : > { %v971_v4 = vmul.f32 %v2144_v53, %v2143_v7  ;;  %v1116_v45 = vadd.f32 %v1115_v62, %v1114_v40  ;;  %v358_v34 = vrot.slane %v233_v3, %v1437_v41  ;;  %v1119_v16 = vsel %vm1091_vm0, %v970_v17, 0.0  ;;  %v177_v17 = vld [vmem:[%s1352_s20 + $0x30] sm:$0xff] }
  0x58   : > { %v362_v52 = vrot.slane %v233_v3, %v1439_v42  ;;  %v670_v30 = vrot.slane %v350_v33, %v1437_v41  ;;  %v674_v0 = vrot.slane %v354_v8, %v1437_v41  ;;  %v909_v37 = vcombine.low %v662_v29, %v666_v11 }
  0x59   : > { %v1118_v9 = vadd.f32 %v1117_v49, %v1116_v45  ;;  %v972_v19 = vmul.f32 %v908_v63, %v196_v47  ;;  %v1035_v20 = vcombine.high %v971_v4, %v971_v4  ;;  %v1121_v10 = vsel %vm1091_vm0, %v1034_v15, 0.0 }
  0x5a   : > { %v198_v62 = vunpack.c.h.bf16 %v176_v59  ;;  %v234_v40 = vunpack.c.h.bf16 %v222_v13  ;;  %v366_v7 = vrot.slane %v233_v3, %v1441_v43  ;;  %v1123_v53 = vsel %vm1091_vm0, %v971_v4, 0.0 }
  0x5b   : > { %v1120_v28 = vadd.f32 %v1119_v16, %v1118_v9  ;;  %v370_v18 = vrot.slane %v233_v3, %v1443_v44  ;;  %v678_v33 = vrot.slane %v358_v34, %v1437_v41  ;;  %v682_v8 = vrot.slane %v362_v52, %v1437_v41 }
  0x5c   : > { %v910_v29 = vcombine.low %v670_v30, %v674_v0  ;;  %v973_v47 = vmul.f32 %v909_v37, %v197_v27  ;;  %v1036_v11 = vcombine.high %v972_v19, %v972_v19  ;;  %v1125_v63 = vsel %vm1091_vm0, %v1035_v20, 0.0 }
  0x5d   : > { %v1122_v45 = vadd.f32 %v1121_v10, %v1120_v28  ;;  %v199_v59 = vunpack.c.l.bf16 %v177_v17  ;;  %v374_v13 = vrot.slane %v234_v40, %v1437_v41  ;;  %v1127_v49 = vsel %vm1091_vm0, %v972_v19, 0.0 }
  0x5e   : > { %v378_v4 = vrot.slane %v234_v40, %v1439_v42  ;;  %v686_v3 = vrot.slane %v366_v7, %v1437_v41  ;;  %v690_v34 = vrot.slane %v370_v18, %v1437_v41  ;;  %v911_v52 = vcombine.low %v678_v33, %v682_v8  ;;  %v178_v18 = vld [vmem:[%s1352_s20 + $0x38] sm:$0xff] }
  0x5f   : > { %v1124_v15 = vadd.f32 %v1123_v53, %v1122_v45  ;;  %v974_v30 = vmul.f32 %v910_v29, %v198_v62  ;;  %v1037_v27 = vcombine.high %v973_v47, %v973_v47  ;;  %v1129_v0 = vsel %vm1091_vm0, %v1036_v11, 0.0 }
  0x60   : > { %v200_v37 = vunpack.c.h.bf16 %v177_v17  ;;  %v382_v20 = vrot.slane %v234_v40, %v1441_v43  ;;  %v1131_v10 = vsel %vm1091_vm0, %v973_v47, 0.0  ;;  %v386_v19 = vrot.slane %v234_v40, %v1443_v44 }
  0x61   : > { %v1126_v16 = vadd.f32 %v1125_v63, %v1124_v15  ;;  %v694_v42 = vrot.slane %v374_v13, %v1437_v41  ;;  %v698_v28 = vrot.slane %v378_v4, %v1437_v41  ;;  %v912_v53 = vcombine.low %v686_v3, %v690_v34 }
  0x62   : > { %v975_v33 = vmul.f32 %v911_v52, %v199_v59  ;;  %v1038_v62 = vcombine.high %v974_v30, %v974_v30  ;;  %v1133_v8 = vsel %vm1091_vm0, %v1037_v27, 0.0  ;;  %v1135_v17 = vsel %vm1091_vm0, %v974_v30, 0.0 }
  0x63   : > { %v1128_v9 = vadd.f32 %v1127_v49, %v1126_v16  ;;  %v201_v29 = vunpack.c.l.bf16 %v178_v18  ;;  %v702_v43 = vrot.slane %v382_v20, %v1437_v41  ;;  %v706_v47 = vrot.slane %v386_v19, %v1437_v41 }
  0x64   : > { %v913_v40 = vcombine.low %v694_v42, %v698_v28  ;;  %v976_v11 = vmul.f32 %v912_v53, %v200_v37  ;;  %v1039_v63 = vcombine.high %v975_v33, %v975_v33  ;;  %v1137_v15 = vsel %vm1091_vm0, %v1038_v62, 0.0 }
  0x65   : > { %v1130_v7 = vadd.f32 %v1129_v0, %v1128_v9  ;;  %v1139_v59 = vsel %vm1091_vm0, %v975_v33, 0.0  ;;  %v202_v49 = vunpack.c.h.bf16 %v178_v18  ;;  %v914_v3 = vcombine.low %v702_v43, %v706_v47 }
  0x66   : > { %v977_v34 = vmul.f32 %v913_v40, %v201_v29  ;;  %v1040_v16 = vcombine.high %v976_v11, %v976_v11  ;;  %v1141_v52 = vsel %vm1091_vm0, %v1039_v63, 0.0  ;;  %v1143_v27 = vsel %vm1091_vm0, %v976_v11, 0.0 }
  0x67   : > { %v1132_v45 = vadd.f32 %v1131_v10, %v1130_v7  ;;  %v978_v0 = vmul.f32 %v914_v3, %v202_v49  ;;  %v2146_v49 = vld [vmem:[#allocation3_spill] sm:$0xff] }
  0x68   : > { %v1041_v9 = vcombine.high %v977_v34, %v977_v34  ;;  %v1145_v37 = vsel %vm1091_vm0, %v1040_v16, 0.0  ;;  %v1147_v10 = vsel %vm1091_vm0, %v977_v34, 0.0 }
  0x69   : > { %v1134_v44 = vadd.f32 %v1133_v8, %v1132_v45  ;;  %v1042_v42 = vcombine.high %v978_v0, %v978_v0  ;;  %v1151_v18 = vsel %vm1091_vm0, %v978_v0, 0.0  ;;  %v1155_v8 = vsel %vm1091_vm0, %v1705_v50, 0.0 }
  0x6a   : > { %v1149_v28 = vsel %vm1091_vm0, %v1041_v9, 0.0 }
  0x6b   : > { %v1136_v13 = vadd.f32 %v1135_v17, %v1134_v44  ;;  %v1153_v33 = vsel %vm1091_vm0, %v1042_v42, 0.0 }
  0x6d   : > { %v1138_v4 = vadd.f32 %v1137_v15, %v1136_v13 }
  0x6f   : > { %v1140_v30 = vadd.f32 %v1139_v59, %v1138_v4  ;;  %v2145_v59 = vld [vmem:[#allocation5_spill] sm:$0xff]  ;;  %v2147_v4 = vld [vmem:[#allocation4_spill] sm:$0xff] }
  0x71   : > { %v1142_v41 = vadd.f32 %v1141_v52, %v1140_v30 }
  0x73   : > { %v1144_v20 = vadd.f32 %v1143_v27, %v1142_v41 }
  0x75   : > { %v1146_v19 = vadd.f32 %v1145_v37, %v1144_v20 }
  0x77   : > { %v1148_v7 = vadd.f32 %v1147_v10, %v1146_v19 }
  0x79   : > { %v1150_v53 = vadd.f32 %v1149_v28, %v1148_v7 }
  0x7b   : > { %v1152_v62 = vadd.f32 %v1151_v18, %v1150_v53 }
  0x7d   : > { %v1154_v45 = vadd.f32 %v1153_v33, %v1152_v62 }
  0x7f   : > { %v1156_v17 = vadd.f32 %v1155_v8, %v1154_v45 }
  0x81   : > { %v1158_v29 = vadd.f32 %v1870_v48, %v1156_v17 }
  0x83   : > { %v1160_v43 = vadd.f32 %v1874_v54, %v1158_v29 }
  0x85   : > { %v1162_v47 = vadd.f32 %v1877_v14, %v1160_v43 }
  0x87   : > { %v1164_v44 = vadd.f32 %v1881_v60, %v1162_v47 }
  0x89   : > { %v1166_v40 = vadd.f32 %v1884_v57, %v1164_v44 }
  0x8b   : > { %v1168_v11 = vadd.f32 %v1888_v35, %v1166_v40 }
  0x8d   : > { %v1170_v63 = vadd.f32 %v1891_v61, %v1168_v11 }
  0x8f   : > { %v1172_v15 = vadd.f32 %v1895_v2, %v1170_v63 }
  0x91   : > { %v1174_v50 = vadd.f32 %v1898_v38, %v1172_v15 }
  0x93   : > { %v1176_v13 = vadd.f32 %v1902_v51, %v1174_v50 }
  0x95   : > { %v1178_v48 = vadd.f32 %v1905_v26, %v1176_v13 }
  0x97   : > { %v1180_v54 = vadd.f32 %v1909_v46, %v1178_v48 }
  0x99   : > { %v1182_v14 = vadd.f32 %v1912_v1, %v1180_v54 }
  0x9b   : > { %v1184_v60 = vadd.f32 %v1916_v6, %v1182_v14 }
  0x9d   : > { %v1186_v57 = vadd.f32 %v1919_v23, %v1184_v60 }
  0x9f   : > { %v1188_v35 = vadd.f32 %v1923_v5, %v1186_v57 }
  0xa1   : > { %v1190_v61 = vadd.f32 %v1926_v32, %v1188_v35 }
  0xa3   : > { %v1192_v2 = vadd.f32 %v1930_v31, %v1190_v61 }
  0xa5   : > { %v1194_v38 = vadd.f32 %v1933_v39, %v1192_v2 }
  0xa7   : > { %v1196_v51 = vadd.f32 %v1937_v12, %v1194_v38 }
  0xa9   : > { %v1198_v26 = vadd.f32 %v1940_v55, %v1196_v51 }
  0xab   : > { %v1200_v46 = vadd.f32 %v1944_v22, %v1198_v26  ;;  %v1292_v22 = vld [vmem:[#allocation2] ss:$0 sm:$0xff] }
  0xad   : > { %v1202_v1 = vadd.f32 %v1947_v21, %v1200_v46 }
  0xaf   : > { %v1204_v6 = vadd.f32 %v1951_v58, %v1202_v1 }
  0xb1   : > { %v1206_v23 = vadd.f32 %v1954_v25, %v1204_v6 }
  0xb3   : > { %v1208_v5 = vadd.f32 %v1958_v36, %v1206_v23 }
  0xb5   : > { %v1210_v32 = vadd.f32 %v1961_v24, %v1208_v5 }
  0xb7   : > { %v1212_v31 = vadd.f32 %v1968_v56, %v1210_v32 }
  0xb9   : > { %v1214_v39 = vadd.f32 %v2145_v59, %v1212_v31 }
  0xbb   : > { %v1216_v12 = vadd.f32 %v2146_v49, %v1214_v39 }
  0xbd   : > { %v1218_v55 = vadd.f32 %v2147_v4, %v1216_v12 }
  0xbf   : > { %1219 = vadd.xlane.f32.xlu0 %v1218_v55 }
 0x148   : > { %v1220_v21 = vpop.xlane.xlu0 %1219 }
 0x149   : > { %v1228_v58 = vadd.f32 %v1292_v22, %v1220_v21 }
 0x14b   : > { %1230 = vst.msk [vmem:[%s170_s11] sm:$0xf] %vm1229_vm1, %v1228_v58 }
 0x14c PF: > { %s15_s14 = sadd.s32 1, %s1310_s14  }
 0x14d   : > { %p12_p4 = scmp.ge.s32.totalorder %s15_s14, 4  }
 0x14f   :  { %14 = sbr.rel (!%p12_p4) target bundleno = 3 (0x3), region = 62 }

// kernel: discriminator_forward.8
= control target key start
LH: loop header
LB: loop body
LE: loop exit
PB: predicated region body
PF: predicated region fallthrough
CT: control target
= control target key end

     0   :  { %s10643_s12 = smov 0   ;;  %s14036_s0 = inlined_call_operand.vmem [shape: bf16[2,4,4096], index: 0, kind: input, shape index: {}]   ;;  %s14037_s1 = inlined_call_operand.vmem [shape: bf16[4096,512], index: 1, kind: input, shape index: {}]   ;;  %s14038_s2 = inlined_call_operand.vmem [shape: f32[1,512], index: 2, kind: input, shape index: {}]   ;;  %s14039_s3 = inlined_call_operand.vmem [shape: bf16[2,4,512], index: 3, kind: output, shape index: {}]  }
   0x1 LB: > { %s8013_s13 = sadd.s32 4294967295, %s10620_s12   ;;  %p8017_p0 = scmp.ge.s32.totalorder %s10620_s12, 1  ;;  %s10620_s12 = sphi %s10643_s12, %s13_s12  }
   0x2   : > { %p137_p1 = scmp.lt.s32.totalorder %s10620_s12, 3 }
   0x4   : > { %p138_p2 = pnand %p8017_p0, %p137_p1 }
   0x5   : > { %p161_p3 = scmp.lt.s32.totalorder (!%p138_p2), %s8013_s13, 1 }
   0x6   : > { %141 = sbr.rel (%p138_p2) target bundleno = 1297 (0x511), region = 32 }
   0xb   : > { %v9061_v0 = vld [vmem:[%s14037_s1 + $0xe4] ss:$16 sps:$4 sm:$0xff]   ;;  %v9065_v2 = vld [vmem:[%s14037_s1 + $0xe0] ss:$16 sps:$4 sm:$0xff]   ;;  %v1205_v36 = vlaneseq  ;;  %v10622_v37 = vmov 1983009808  }
   0xc   : > { %v9063_v1 = vld [vmem:[%s14037_s1 + $0x2e4] ss:$16 sps:$4 sm:$0xff]   ;;  %6521 = vmatprep.subr.bf16.mxu0 %v9061_v0  ;;  %v9066_v3 = vld [vmem:[%s14037_s1 + $0x2e0] ss:$16 sps:$4 sm:$0xff]   ;;  %v1235_v38 = vunpack.c.l.s4 %v10622_v37  ;;  %s14041_s13 = smov (!%p161_p3, %s8013_s13), 1  ;;  %vm7833_vm0 = vcmask 1043456  }
   0xd   : > { %6562 = vmatprep.subr.bf16.mxu1 %v9063_v1  ;;  %v9067_v4 = vld [vmem:[%s14037_s1 + $0xc4] ss:$16 sps:$4 sm:$0xff]   ;;  %6522 = vmatpush1.bf16.msra.mxu0 %v9065_v2  ;;  %v9071_v6 = vld [vmem:[%s14037_s1 + $0xc0] ss:$16 sps:$4 sm:$0xff]   ;;  %v10774_v42 = vshrl.u32 %v1205_v36, 7  ;;  %s9050_s21 = sshll.u32 %s14041_s13, 6 }
   0xe   : > { %6563 = vmatpush1.bf16.msra.mxu1 %v9066_v3  ;;  %v9069_v5 = vld [vmem:[%s14037_s1 + $0x2c4] ss:$16 sps:$4 sm:$0xff]   ;;  %6523 = vmatprep.subr.bf16.mxu0 %v9067_v4  ;;  %v9072_v7 = vld [vmem:[%s14037_s1 + $0x2c0] ss:$16 sps:$4 sm:$0xff]   ;;  %v1236_v43 = vunpack.c.0.s8 %v1235_v38  ;;  %s10795_s30 = scalar_lea.vmem %s14036_s0, %s9050_s21  ;;  %s9051_s27 = sshll.u32 %s14041_s13, 3 }
   0xf   : > { %6564 = vmatprep.subr.bf16.mxu1 %v9069_v5  ;;  %v9073_v8 = vld [vmem:[%s14037_s1 + $0xa4] ss:$16 sps:$4 sm:$0xff]   ;;  %v9077_v10 = vld [vmem:[%s14037_s1 + $0xa0] ss:$16 sps:$4 sm:$0xff]   ;;  %v172_v38 = vld [vmem:[%s10795_s30 + $0x8] sm:$0xff]  ;;  %s170_s4 = scalar_lea.vmem %s14039_s3, %s9051_s27 }
  0x10   : > { %v9075_v9 = vld [vmem:[%s14037_s1 + $0x2a4] ss:$16 sps:$4 sm:$0xff]   ;;  %v9078_v11 = vld [vmem:[%s14037_s1 + $0x2a0] ss:$16 sps:$4 sm:$0xff]   ;;  %v10798_v49 = vsub.s32 %v1236_v43, %v10774_v42 }
  0x11   : > { %6524 = vmatpush1.bf16.msra.mxu0 %v9071_v6  ;;  %v9079_v12 = vld [vmem:[%s14037_s1 + $0x84] ss:$16 sps:$4 sm:$0xff]   ;;  %v9083_v14 = vld [vmem:[%s14037_s1 + $0x80] ss:$16 sps:$4 sm:$0xff]  }
  0x12   : > { %6565 = vmatpush1.bf16.msra.mxu1 %v9072_v7  ;;  %6525 = vmatprep.subr.bf16.mxu0 %v9073_v8  ;;  %v9081_v13 = vld [vmem:[%s14037_s1 + $0x284] ss:$16 sps:$4 sm:$0xff]   ;;  %v9084_v15 = vld [vmem:[%s14037_s1 + $0x280] ss:$16 sps:$4 sm:$0xff]  }
  0x13   : > { %6566 = vmatprep.subr.bf16.mxu1 %v9075_v9  ;;  %v9085_v16 = vld [vmem:[%s14037_s1 + $0x64] ss:$16 sps:$4 sm:$0xff]   ;;  %v9089_v18 = vld [vmem:[%s14037_s1 + $0x60] ss:$16 sps:$4 sm:$0xff]  }
  0x14   : > { %v9087_v17 = vld [vmem:[%s14037_s1 + $0x264] ss:$16 sps:$4 sm:$0xff]   ;;  %v9090_v19 = vld [vmem:[%s14037_s1 + $0x260] ss:$16 sps:$4 sm:$0xff]  }
  0x15   : > { %6526 = vmatpush1.bf16.msra.mxu0 %v9077_v10  ;;  %v9091_v20 = vld [vmem:[%s14037_s1 + $0x44] ss:$16 sps:$4 sm:$0xff]   ;;  %v9095_v22 = vld [vmem:[%s14037_s1 + $0x40] ss:$16 sps:$4 sm:$0xff]  }
  0x16   : > { %6567 = vmatpush1.bf16.msra.mxu1 %v9078_v11  ;;  %6527 = vmatprep.subr.bf16.mxu0 %v9079_v12  ;;  %v9093_v21 = vld [vmem:[%s14037_s1 + $0x244] ss:$16 sps:$4 sm:$0xff]   ;;  %v9096_v23 = vld [vmem:[%s14037_s1 + $0x240] ss:$16 sps:$4 sm:$0xff]  }
  0x17   : > { %6568 = vmatprep.subr.bf16.mxu1 %v9081_v13  ;;  %v9097_v24 = vld [vmem:[%s14037_s1 + $0x24] ss:$16 sps:$4 sm:$0xff]   ;;  %v9101_v26 = vld [vmem:[%s14037_s1 + $0x20] ss:$16 sps:$4 sm:$0xff]  }
  0x18   : > { %v9099_v25 = vld [vmem:[%s14037_s1 + $0x224] ss:$16 sps:$4 sm:$0xff]   ;;  %v9102_v27 = vld [vmem:[%s14037_s1 + $0x220] ss:$16 sps:$4 sm:$0xff]  }
  0x19   : > { %6528 = vmatpush1.bf16.msra.mxu0 %v9083_v14  ;;  %v9103_v28 = vld [vmem:[%s14037_s1 + $0x4] ss:$16 sps:$4 sm:$0xff]   ;;  %v9107_v30 = vld [vmem:[%s14037_s1] ss:$16 sps:$4 sm:$0xff]  }
  0x1a   : > { %6569 = vmatpush1.bf16.msra.mxu1 %v9084_v15  ;;  %6529 = vmatprep.subr.bf16.mxu0 %v9085_v16  ;;  %v9105_v29 = vld [vmem:[%s14037_s1 + $0x204] ss:$16 sps:$4 sm:$0xff]   ;;  %v9108_v31 = vld [vmem:[%s14037_s1 + $0x200] ss:$16 sps:$4 sm:$0xff]  }
  0x1b   : > { %6570 = vmatprep.subr.bf16.mxu1 %v9087_v17  ;;  %v9109_v32 = vld [vmem:[%s14037_s1 + $0x1e4] ss:$16 sps:$4 sm:$0xff]   ;;  %v9113_v34 = vld [vmem:[%s14037_s1 + $0x1e0] ss:$16 sps:$4 sm:$0xff]  }
  0x1c   : > { %v9111_v33 = vld [vmem:[%s14037_s1 + $0x3e4] ss:$16 sps:$4 sm:$0xff]   ;;  %v9114_v35 = vld [vmem:[%s14037_s1 + $0x3e0] ss:$16 sps:$4 sm:$0xff]  }
  0x1d   : > { %6530 = vmatpush1.bf16.msra.mxu0 %v9089_v18  ;;  %v9115_v39 = vld [vmem:[%s14037_s1 + $0x1c4] ss:$16 sps:$4 sm:$0xff]   ;;  %v9119_v41 = vld [vmem:[%s14037_s1 + $0x1c0] ss:$16 sps:$4 sm:$0xff]  }
  0x1e   : > { %6571 = vmatpush1.bf16.msra.mxu1 %v9090_v19  ;;  %6531 = vmatprep.subr.bf16.mxu0 %v9091_v20  ;;  %v9117_v40 = vld [vmem:[%s14037_s1 + $0x3c4] ss:$16 sps:$4 sm:$0xff]   ;;  %v9120_v44 = vld [vmem:[%s14037_s1 + $0x3c0] ss:$16 sps:$4 sm:$0xff]  }
  0x1f   : > { %6572 = vmatprep.subr.bf16.mxu1 %v9093_v21  ;;  %v9121_v45 = vld [vmem:[%s14037_s1 + $0x1a4] ss:$16 sps:$4 sm:$0xff]   ;;  %v9125_v47 = vld [vmem:[%s14037_s1 + $0x1a0] ss:$16 sps:$4 sm:$0xff]  }
  0x20   : > { %v9123_v46 = vld [vmem:[%s14037_s1 + $0x3a4] ss:$16 sps:$4 sm:$0xff]   ;;  %v9126_v48 = vld [vmem:[%s14037_s1 + $0x3a0] ss:$16 sps:$4 sm:$0xff]  }
  0x21   : > { %6532 = vmatpush1.bf16.msra.mxu0 %v9095_v22  ;;  %v9127_v50 = vld [vmem:[%s14037_s1 + $0x184] ss:$16 sps:$4 sm:$0xff]   ;;  %v9131_v53 = vld [vmem:[%s14037_s1 + $0x180] ss:$16 sps:$4 sm:$0xff]  }
  0x22   : > { %6573 = vmatpush1.bf16.msra.mxu1 %v9096_v23  ;;  %6533 = vmatprep.subr.bf16.mxu0 %v9097_v24  ;;  %v9129_v51 = vld [vmem:[%s14037_s1 + $0x384] ss:$16 sps:$4 sm:$0xff]   ;;  %v9132_v56 = vld [vmem:[%s14037_s1 + $0x380] ss:$16 sps:$4 sm:$0xff]  }
  0x23   : > { %6574 = vmatprep.subr.bf16.mxu1 %v9099_v25  ;;  %v171_v52 = vld [vmem:[%s10795_s30] sm:$0xff] }
  0x24   : > { %v10811_v54 = vrot.slane %v171_v52, %v10798_v49  ;;  %v1233_v55 = vcombine.high %v171_v52, %v171_v52  ;;  %v9133_v57 = vld [vmem:[%s14037_s1 + $0x164] ss:$16 sps:$4 sm:$0xff]   ;;  %v9137_v61 = vld [vmem:[%s14037_s1 + $0x160] ss:$16 sps:$4 sm:$0xff]  }
  0x25   : > { %6534 = vmatpush1.bf16.msra.mxu0 %v9101_v26  ;;  %v9135_v58 = vld [vmem:[%s14037_s1 + $0x364] ss:$16 sps:$4 sm:$0xff]   ;;  %v9138_v63 = vld [vmem:[%s14037_s1 + $0x360] ss:$16 sps:$4 sm:$0xff]  }
  0x26   : > { %6575 = vmatpush1.bf16.msra.mxu1 %v9102_v27  ;;  %6535 = vmatprep.subr.bf16.mxu0 %v9103_v28  ;;  %v10824_v59 = vcombine.high %v10811_v54, %v10811_v54  ;;  %v10827_v60 = vrot.slane %v1233_v55, %v10798_v49  ;;  %v9139_v0 = vld [vmem:[%s14037_s1 + $0x144] ss:$16 sps:$4 sm:$0xff]   ;;  %v9143_v2 = vld [vmem:[%s14037_s1 + $0x140] ss:$16 sps:$4 sm:$0xff]  }
  0x27   : > { %6576 = vmatprep.subr.bf16.mxu1 %v9105_v29  ;;  %v9141_v1 = vld [vmem:[%s14037_s1 + $0x344] ss:$16 sps:$4 sm:$0xff]   ;;  %v9144_v3 = vld [vmem:[%s14037_s1 + $0x340] ss:$16 sps:$4 sm:$0xff]  }
  0x28   : > { %6553 = vmatprep.mubr.bf16.mxu0 %v10824_v59  ;;  %v10835_v62 = vcombine.high %v10827_v60, %v10827_v60  ;;  %v9145_v4 = vld [vmem:[%s14037_s1 + $0x124] ss:$16 sps:$4 sm:$0xff]   ;;  %v9149_v6 = vld [vmem:[%s14037_s1 + $0x120] ss:$16 sps:$4 sm:$0xff]  }
  0x29   : > { %6536 = vmatpush1.bf16.msra.mxu0 %v9107_v30  ;;  %v9147_v5 = vld [vmem:[%s14037_s1 + $0x324] ss:$16 sps:$4 sm:$0xff]   ;;  %v9150_v7 = vld [vmem:[%s14037_s1 + $0x320] ss:$16 sps:$4 sm:$0xff]  }
  0x2a   : > { %6577 = vmatpush1.bf16.msra.mxu1 %v9108_v31  ;;  %6537 = vmatprep.subr.bf16.mxu0 %v9109_v32  ;;  %v9151_v8 = vld [vmem:[%s14037_s1 + $0x104] ss:$16 sps:$4 sm:$0xff]   ;;  %v9155_v10 = vld [vmem:[%s14037_s1 + $0x100] ss:$16 sps:$4 sm:$0xff]  }
  0x2b   : > { %6578 = vmatprep.subr.bf16.mxu1 %v9111_v33  ;;  %6594 = vmatprep.mubr.bf16.mxu1 %v10835_v62  ;;  %v9153_v9 = vld [vmem:[%s14037_s1 + $0x304] ss:$16 sps:$4 sm:$0xff]   ;;  %v9156_v11 = vld [vmem:[%s14037_s1 + $0x300] ss:$16 sps:$4 sm:$0xff]  }
  0x2c   : > { %v9160_v12 = vld [vmem:[%s14037_s1 + $0x4e4] ss:$16 sps:$4 sm:$0xff]   ;;  %v9158_v14 = vld [vmem:[%s14037_s1 + $0x4e0] ss:$16 sps:$4 sm:$0xff]  }
  0x2d   : > { %6538 = vmatpush2.bf16.msra.mxu0 %v9113_v34  ;;  %v9163_v13 = vld [vmem:[%s14037_s1 + $0x6e4] ss:$16 sps:$4 sm:$0xff]   ;;  %v9161_v15 = vld [vmem:[%s14037_s1 + $0x6e0] ss:$16 sps:$4 sm:$0xff]  }
  0x2e   : > { %6579 = vmatpush2.bf16.msra.mxu1 %v9114_v35  ;;  %6539 = vmatprep.subr.bf16.mxu0 %v9115_v39  ;;  %v9166_v16 = vld [vmem:[%s14037_s1 + $0x4c4] ss:$16 sps:$4 sm:$0xff]   ;;  %v9164_v18 = vld [vmem:[%s14037_s1 + $0x4c0] ss:$16 sps:$4 sm:$0xff]   ;;  %v10959_v39 = vrot.slane %v172_v38, %v10798_v49 }
  0x2f   : > { %6580 = vmatprep.subr.bf16.mxu1 %v9117_v40  ;;  %v9169_v17 = vld [vmem:[%s14037_s1 + $0x6c4] ss:$16 sps:$4 sm:$0xff]   ;;  %v9167_v19 = vld [vmem:[%s14037_s1 + $0x6c0] ss:$16 sps:$4 sm:$0xff]   ;;  %v1250_v40 = vcombine.high %v172_v38, %v172_v38 }
  0x30   : > { %v9172_v20 = vld [vmem:[%s14037_s1 + $0x4a4] ss:$16 sps:$4 sm:$0xff]   ;;  %v9170_v22 = vld [vmem:[%s14037_s1 + $0x4a0] ss:$16 sps:$4 sm:$0xff]  }
  0x31   : > { %6540 = vmatpush2.bf16.msra.mxu0 %v9119_v41  ;;  %v9175_v21 = vld [vmem:[%s14037_s1 + $0x6a4] ss:$16 sps:$4 sm:$0xff]   ;;  %v9173_v23 = vld [vmem:[%s14037_s1 + $0x6a0] ss:$16 sps:$4 sm:$0xff]  }
  0x32   : > { %6581 = vmatpush2.bf16.msra.mxu1 %v9120_v44  ;;  %6541 = vmatprep.subr.bf16.mxu0 %v9121_v45  ;;  %v9178_v24 = vld [vmem:[%s14037_s1 + $0x484] ss:$16 sps:$4 sm:$0xff]   ;;  %v9176_v26 = vld [vmem:[%s14037_s1 + $0x480] ss:$16 sps:$4 sm:$0xff]   ;;  %v10969_v44 = vcombine.high %v10959_v39, %v10959_v39  ;;  %v10972_v45 = vrot.slane %v1250_v40, %v10798_v49 }
  0x33   : > { %6582 = vmatprep.subr.bf16.mxu1 %v9123_v46  ;;  %v9181_v25 = vld [vmem:[%s14037_s1 + $0x684] ss:$16 sps:$4 sm:$0xff]   ;;  %v9179_v27 = vld [vmem:[%s14037_s1 + $0x680] ss:$16 sps:$4 sm:$0xff]  }
  0x34   : > { %v9184_v28 = vld [vmem:[%s14037_s1 + $0x464] ss:$16 sps:$4 sm:$0xff]   ;;  %v9182_v30 = vld [vmem:[%s14037_s1 + $0x460] ss:$16 sps:$4 sm:$0xff]  }
  0x35   : > { %6542 = vmatpush2.bf16.msra.mxu0 %v9125_v47  ;;  %v9187_v29 = vld [vmem:[%s14037_s1 + $0x664] ss:$16 sps:$4 sm:$0xff]   ;;  %v9185_v31 = vld [vmem:[%s14037_s1 + $0x660] ss:$16 sps:$4 sm:$0xff]  }
  0x36   : > { %6583 = vmatpush2.bf16.msra.mxu1 %v9126_v48  ;;  %6543 = vmatprep.subr.bf16.mxu0 %v9127_v50  ;;  %v9190_v32 = vld [vmem:[%s14037_s1 + $0x444] ss:$16 sps:$4 sm:$0xff]   ;;  %v9188_v34 = vld [vmem:[%s14037_s1 + $0x440] ss:$16 sps:$4 sm:$0xff]   ;;  %v10983_v48 = vcombine.high %v10972_v45, %v10972_v45 }
  0x37   : > { %6584 = vmatprep.subr.bf16.mxu1 %v9129_v51  ;;  %v9193_v33 = vld [vmem:[%s14037_s1 + $0x644] ss:$16 sps:$4 sm:$0xff]   ;;  %v9191_v35 = vld [vmem:[%s14037_s1 + $0x640] ss:$16 sps:$4 sm:$0xff]  }
  0x38   : > { %v9196_v36 = vld [vmem:[%s14037_s1 + $0x424] ss:$16 sps:$4 sm:$0xff]   ;;  %v9194_v41 = vld [vmem:[%s14037_s1 + $0x420] ss:$16 sps:$4 sm:$0xff]  }
  0x39   : > { %6544 = vmatpush2.bf16.msra.mxu0 %v9131_v53  ;;  %v9199_v37 = vld [vmem:[%s14037_s1 + $0x624] ss:$16 sps:$4 sm:$0xff]   ;;  %v9197_v43 = vld [vmem:[%s14037_s1 + $0x620] ss:$16 sps:$4 sm:$0xff]  }
  0x3a   : > { %6585 = vmatpush2.bf16.msra.mxu1 %v9132_v56  ;;  %6545 = vmatprep.subr.bf16.mxu0 %v9133_v57  ;;  %v9202_v46 = vld [vmem:[%s14037_s1 + $0x404] ss:$16 sps:$4 sm:$0xff]   ;;  %v9200_v50 = vld [vmem:[%s14037_s1 + $0x400] ss:$16 sps:$4 sm:$0xff]  }
  0x3b   : > { %6586 = vmatprep.subr.bf16.mxu1 %v9135_v58  ;;  %v9205_v47 = vld [vmem:[%s14037_s1 + $0x604] ss:$16 sps:$4 sm:$0xff]   ;;  %v9203_v51 = vld [vmem:[%s14037_s1 + $0x600] ss:$16 sps:$4 sm:$0xff]  }
  0x3c   : > { %v9208_v52 = vld [vmem:[%s14037_s1 + $0x5e4] ss:$16 sps:$4 sm:$0xff]   ;;  %v9206_v55 = vld [vmem:[%s14037_s1 + $0x5e0] ss:$16 sps:$4 sm:$0xff]  }
  0x3d   : > { %6546 = vmatpush2.bf16.msra.mxu0 %v9137_v61  ;;  %v9211_v53 = vld [vmem:[%s14037_s1 + $0x7e4] ss:$16 sps:$4 sm:$0xff]   ;;  %v9209_v56 = vld [vmem:[%s14037_s1 + $0x7e0] ss:$16 sps:$4 sm:$0xff]  }
  0x3e   : > { %6587 = vmatpush2.bf16.msra.mxu1 %v9138_v63  ;;  %6547 = vmatprep.subr.bf16.mxu0 %v9139_v0  ;;  %v9214_v57 = vld [vmem:[%s14037_s1 + $0x5c4] ss:$16 sps:$4 sm:$0xff]   ;;  %v9212_v61 = vld [vmem:[%s14037_s1 + $0x5c0] ss:$16 sps:$4 sm:$0xff]  }
  0x3f   : > { %6588 = vmatprep.subr.bf16.mxu1 %v9141_v1  ;;  %v9217_v58 = vld [vmem:[%s14037_s1 + $0x7c4] ss:$16 sps:$4 sm:$0xff]   ;;  %v9215_v63 = vld [vmem:[%s14037_s1 + $0x7c0] ss:$16 sps:$4 sm:$0xff]  }
  0x40   : > { %v9220_v0 = vld [vmem:[%s14037_s1 + $0x5a4] ss:$16 sps:$4 sm:$0xff]  }
  0x41   : > { %6548 = vmatpush2.bf16.msra.mxu0 %v9143_v2  ;;  %v9223_v1 = vld [vmem:[%s14037_s1 + $0x7a4] ss:$16 sps:$4 sm:$0xff]   ;;  %v9218_v2 = vld [vmem:[%s14037_s1 + $0x5a0] ss:$16 sps:$4 sm:$0xff]  }
  0x42   : > { %6589 = vmatpush2.bf16.msra.mxu1 %v9144_v3  ;;  %6549 = vmatprep.subr.bf16.mxu0 %v9145_v4  ;;  %v9221_v3 = vld [vmem:[%s14037_s1 + $0x7a0] ss:$16 sps:$4 sm:$0xff]   ;;  %v9226_v4 = vld [vmem:[%s14037_s1 + $0x584] ss:$16 sps:$4 sm:$0xff]  }
  0x43   : > { %6590 = vmatprep.subr.bf16.mxu1 %v9147_v5  ;;  %v9229_v5 = vld [vmem:[%s14037_s1 + $0x784] ss:$16 sps:$4 sm:$0xff]  }
  0x44   : > { %v9272_v38 = vld [vmem:[%s14037_s1 + $0xaa4] ss:$16 sps:$4 sm:$0xff]  }
  0x45   : > { %6550 = vmatpush2.bf16.msra.mxu0 %v9149_v6  ;;  %v9224_v6 = vld [vmem:[%s14037_s1 + $0x580] ss:$16 sps:$4 sm:$0xff]  }
  0x46   : > { %6591 = vmatpush2.bf16.msra.mxu1 %v9150_v7  ;;  %6551 = vmatprep.subr.bf16.mxu0 %v9151_v8  ;;  %v9227_v7 = vld [vmem:[%s14037_s1 + $0x780] ss:$16 sps:$4 sm:$0xff]   ;;  %v9232_v8 = vld [vmem:[%s14037_s1 + $0x564] ss:$16 sps:$4 sm:$0xff]  }
  0x47   : > { %6592 = vmatprep.subr.bf16.mxu1 %v9153_v9  ;;  %v9235_v9 = vld [vmem:[%s14037_s1 + $0x764] ss:$16 sps:$4 sm:$0xff]  }
  0x49   : > { %6552 = vmatpush2.bf16.msra.mxu0 %v9155_v10  ;;  %v9230_v10 = vld [vmem:[%s14037_s1 + $0x560] ss:$16 sps:$4 sm:$0xff]  }
  0x4a   : > { %6593 = vmatpush2.bf16.msra.mxu1 %v9156_v11  ;;  %6603 = vmatprep.subr.bf16.mxu0 %v9160_v12  ;;  %v9233_v11 = vld [vmem:[%s14037_s1 + $0x760] ss:$16 sps:$4 sm:$0xff]   ;;  %v9238_v12 = vld [vmem:[%s14037_s1 + $0x544] ss:$16 sps:$4 sm:$0xff]  }
  0x4b   : > { %6644 = vmatprep.subr.bf16.mxu1 %v9163_v13  ;;  %v9241_v13 = vld [vmem:[%s14037_s1 + $0x744] ss:$16 sps:$4 sm:$0xff]  }
  0x4c   : > { %6554 = vmatmul.mubr.bf16.vlgmr.msra.gmra.mxu0 %v10811_v54 }
  0x4d   : > { %6595 = vmatmul.mubr.bf16.vlgmr.msra.gmra.mxu1 %v10827_v60  ;;  %6604 = vmatpush1.bf16.msra.mxu0 %v9158_v14  ;;  %v9236_v14 = vld [vmem:[%s14037_s1 + $0x540] ss:$16 sps:$4 sm:$0xff]  }
  0x4e   : > { %6645 = vmatpush1.bf16.msra.mxu1 %v9161_v15  ;;  %6605 = vmatprep.subr.bf16.mxu0 %v9166_v16  ;;  %v9239_v15 = vld [vmem:[%s14037_s1 + $0x740] ss:$16 sps:$4 sm:$0xff]   ;;  %v9244_v16 = vld [vmem:[%s14037_s1 + $0x524] ss:$16 sps:$4 sm:$0xff]  }
  0x4f   : > { %6646 = vmatprep.subr.bf16.mxu1 %v9169_v17  ;;  %6635 = vmatprep.mubr.bf16.mxu0 %v10969_v44  ;;  %v9247_v17 = vld [vmem:[%s14037_s1 + $0x724] ss:$16 sps:$4 sm:$0xff]  }
  0x50   : > { %6676 = vmatprep.mubr.bf16.mxu1 %v10983_v48 }
  0x51   : > { %6606 = vmatpush1.bf16.msra.mxu0 %v9164_v18  ;;  %v9242_v18 = vld [vmem:[%s14037_s1 + $0x520] ss:$16 sps:$4 sm:$0xff]  }
  0x52   : > { %6647 = vmatpush1.bf16.msra.mxu1 %v9167_v19  ;;  %6607 = vmatprep.subr.bf16.mxu0 %v9172_v20  ;;  %v9245_v19 = vld [vmem:[%s14037_s1 + $0x720] ss:$16 sps:$4 sm:$0xff]   ;;  %v9250_v20 = vld [vmem:[%s14037_s1 + $0x504] ss:$16 sps:$4 sm:$0xff]  }
  0x53   : > { %6648 = vmatprep.subr.bf16.mxu1 %v9175_v21  ;;  %v9253_v21 = vld [vmem:[%s14037_s1 + $0x704] ss:$16 sps:$4 sm:$0xff]  }
  0x55   : > { %6608 = vmatpush1.bf16.msra.mxu0 %v9170_v22  ;;  %v9248_v22 = vld [vmem:[%s14037_s1 + $0x500] ss:$16 sps:$4 sm:$0xff]  }
  0x56   : > { %6649 = vmatpush1.bf16.msra.mxu1 %v9173_v23  ;;  %6609 = vmatprep.subr.bf16.mxu0 %v9178_v24  ;;  %v9251_v23 = vld [vmem:[%s14037_s1 + $0x700] ss:$16 sps:$4 sm:$0xff]   ;;  %v9257_v24 = vld [vmem:[%s14037_s1 + $0x8e4] ss:$16 sps:$4 sm:$0xff]  }
  0x57   : > { %6650 = vmatprep.subr.bf16.mxu1 %v9181_v25  ;;  %v9260_v25 = vld [vmem:[%s14037_s1 + $0xae4] ss:$16 sps:$4 sm:$0xff]  }
  0x59   : > { %6610 = vmatpush1.bf16.msra.mxu0 %v9176_v26  ;;  %v9255_v26 = vld [vmem:[%s14037_s1 + $0x8e0] ss:$16 sps:$4 sm:$0xff]  }
  0x5a   : > { %6651 = vmatpush1.bf16.msra.mxu1 %v9179_v27  ;;  %6611 = vmatprep.subr.bf16.mxu0 %v9184_v28  ;;  %v9258_v27 = vld [vmem:[%s14037_s1 + $0xae0] ss:$16 sps:$4 sm:$0xff]   ;;  %v9263_v28 = vld [vmem:[%s14037_s1 + $0x8c4] ss:$16 sps:$4 sm:$0xff]  }
  0x5b   : > { %6652 = vmatprep.subr.bf16.mxu1 %v9187_v29  ;;  %v173_v29 = vld [vmem:[%s10795_s30 + $0x10] sm:$0xff] }
  0x5d   : > { %6612 = vmatpush1.bf16.msra.mxu0 %v9182_v30  ;;  %v9266_v30 = vld [vmem:[%s14037_s1 + $0xac4] ss:$16 sps:$4 sm:$0xff]  }
  0x5e   : > { %6653 = vmatpush1.bf16.msra.mxu1 %v9185_v31  ;;  %6613 = vmatprep.subr.bf16.mxu0 %v9190_v32  ;;  %v11108_v31 = vrot.slane %v173_v29, %v10798_v49  ;;  %v1267_v32 = vcombine.high %v173_v29, %v173_v29  ;;  %v9338_v29 = vld [vmem:[%s14037_s1 + $0xb44] ss:$16 sps:$4 sm:$0xff]  }
  0x5f   : > { %6654 = vmatprep.subr.bf16.mxu1 %v9193_v33  ;;  %v9261_v33 = vld [vmem:[%s14037_s1 + $0x8c0] ss:$16 sps:$4 sm:$0xff]  }
  0x61   : > { %6614 = vmatpush1.bf16.msra.mxu0 %v9188_v34  ;;  %v11117_v34 = vcombine.high %v11108_v31, %v11108_v31 }
  0x62   : > { %6655 = vmatpush1.bf16.msra.mxu1 %v9191_v35  ;;  %6615 = vmatprep.subr.bf16.mxu0 %v9196_v36  ;;  %v11120_v35 = vrot.slane %v1267_v32, %v10798_v49  ;;  %v9264_v36 = vld [vmem:[%s14037_s1 + $0xac0] ss:$16 sps:$4 sm:$0xff]  }
  0x63   : > { %6656 = vmatprep.subr.bf16.mxu1 %v9199_v37  ;;  %v9269_v37 = vld [vmem:[%s14037_s1 + $0x8a4] ss:$16 sps:$4 sm:$0xff]   ;;  %v9336_v32 = vld [vmem:[%s14037_s1 + $0xb40] ss:$16 sps:$4 sm:$0xff]  }
  0x64   : > { %v11133_v40 = vcombine.high %v11120_v35, %v11120_v35 }
  0x65   : > { %6616 = vmatpush1.bf16.msra.mxu0 %v9194_v41  ;;  %v9267_v41 = vld [vmem:[%s14037_s1 + $0x8a0] ss:$16 sps:$4 sm:$0xff]  }
  0x66   : > { %6657 = vmatpush1.bf16.msra.mxu1 %v9197_v43  ;;  %6617 = vmatprep.subr.bf16.mxu0 %v9202_v46  ;;  %v9270_v43 = vld [vmem:[%s14037_s1 + $0xaa0] ss:$16 sps:$4 sm:$0xff]   ;;  %v9275_v46 = vld [vmem:[%s14037_s1 + $0x884] ss:$16 sps:$4 sm:$0xff]  }
  0x67   : > { %6658 = vmatprep.subr.bf16.mxu1 %v9205_v47  ;;  %v9278_v47 = vld [vmem:[%s14037_s1 + $0xa84] ss:$16 sps:$4 sm:$0xff]  }
  0x69   : > { %6618 = vmatpush1.bf16.msra.mxu0 %v9200_v50  ;;  %v9273_v50 = vld [vmem:[%s14037_s1 + $0x880] ss:$16 sps:$4 sm:$0xff]  }
  0x6a   : > { %6659 = vmatpush1.bf16.msra.mxu1 %v9203_v51  ;;  %6619 = vmatprep.subr.bf16.mxu0 %v9208_v52  ;;  %v9276_v51 = vld [vmem:[%s14037_s1 + $0xa80] ss:$16 sps:$4 sm:$0xff]   ;;  %v9281_v52 = vld [vmem:[%s14037_s1 + $0x864] ss:$16 sps:$4 sm:$0xff]  }
  0x6b   : > { %6660 = vmatprep.subr.bf16.mxu1 %v9211_v53  ;;  %v9284_v53 = vld [vmem:[%s14037_s1 + $0xa64] ss:$16 sps:$4 sm:$0xff]  }
  0x6d   : > { %6620 = vmatpush2.bf16.msra.mxu0 %v9206_v55  ;;  %v9279_v55 = vld [vmem:[%s14037_s1 + $0x860] ss:$16 sps:$4 sm:$0xff]  }
  0x6e   : > { %6661 = vmatpush2.bf16.msra.mxu1 %v9209_v56  ;;  %6621 = vmatprep.subr.bf16.mxu0 %v9214_v57  ;;  %v9282_v56 = vld [vmem:[%s14037_s1 + $0xa60] ss:$16 sps:$4 sm:$0xff]   ;;  %v9287_v57 = vld [vmem:[%s14037_s1 + $0x844] ss:$16 sps:$4 sm:$0xff]  }
  0x6f   : > { %6662 = vmatprep.subr.bf16.mxu1 %v9217_v58  ;;  %v9290_v58 = vld [vmem:[%s14037_s1 + $0xa44] ss:$16 sps:$4 sm:$0xff]  }
  0x71   : > { %6622 = vmatpush2.bf16.msra.mxu0 %v9212_v61  ;;  %v9285_v61 = vld [vmem:[%s14037_s1 + $0x840] ss:$16 sps:$4 sm:$0xff]  }
  0x72   : > { %6663 = vmatpush2.bf16.msra.mxu1 %v9215_v63  ;;  %6623 = vmatprep.subr.bf16.mxu0 %v9220_v0  ;;  %v9288_v63 = vld [vmem:[%s14037_s1 + $0xa40] ss:$16 sps:$4 sm:$0xff]   ;;  %v9293_v0 = vld [vmem:[%s14037_s1 + $0x824] ss:$16 sps:$4 sm:$0xff]  }
  0x73   : > { %6664 = vmatprep.subr.bf16.mxu1 %v9223_v1  ;;  %v9296_v1 = vld [vmem:[%s14037_s1 + $0xa24] ss:$16 sps:$4 sm:$0xff]  }
  0x75   : > { %6624 = vmatpush2.bf16.msra.mxu0 %v9218_v2  ;;  %v9291_v2 = vld [vmem:[%s14037_s1 + $0x820] ss:$16 sps:$4 sm:$0xff]  }
  0x76   : > { %6665 = vmatpush2.bf16.msra.mxu1 %v9221_v3  ;;  %6625 = vmatprep.subr.bf16.mxu0 %v9226_v4  ;;  %v9294_v3 = vld [vmem:[%s14037_s1 + $0xa20] ss:$16 sps:$4 sm:$0xff]   ;;  %v9299_v4 = vld [vmem:[%s14037_s1 + $0x804] ss:$16 sps:$4 sm:$0xff]  }
  0x77   : > { %6666 = vmatprep.subr.bf16.mxu1 %v9229_v5  ;;  %v9302_v5 = vld [vmem:[%s14037_s1 + $0xa04] ss:$16 sps:$4 sm:$0xff]  }
  0x79   : > { %6626 = vmatpush2.bf16.msra.mxu0 %v9224_v6  ;;  %v9297_v6 = vld [vmem:[%s14037_s1 + $0x800] ss:$16 sps:$4 sm:$0xff]  }
  0x7a   : > { %6667 = vmatpush2.bf16.msra.mxu1 %v9227_v7  ;;  %6627 = vmatprep.subr.bf16.mxu0 %v9232_v8  ;;  %v9300_v7 = vld [vmem:[%s14037_s1 + $0xa00] ss:$16 sps:$4 sm:$0xff]   ;;  %v9305_v8 = vld [vmem:[%s14037_s1 + $0x9e4] ss:$16 sps:$4 sm:$0xff]  }
  0x7b   : > { %6668 = vmatprep.subr.bf16.mxu1 %v9235_v9  ;;  %v9308_v9 = vld [vmem:[%s14037_s1 + $0xbe4] ss:$16 sps:$4 sm:$0xff]  }
  0x7d   : > { %6628 = vmatpush2.bf16.msra.mxu0 %v9230_v10  ;;  %v9303_v10 = vld [vmem:[%s14037_s1 + $0x9e0] ss:$16 sps:$4 sm:$0xff]  }
  0x7e   : > { %6669 = vmatpush2.bf16.msra.mxu1 %v9233_v11  ;;  %6629 = vmatprep.subr.bf16.mxu0 %v9238_v12  ;;  %v9306_v11 = vld [vmem:[%s14037_s1 + $0xbe0] ss:$16 sps:$4 sm:$0xff]   ;;  %v9311_v12 = vld [vmem:[%s14037_s1 + $0x9c4] ss:$16 sps:$4 sm:$0xff]  }
  0x7f   : > { %6670 = vmatprep.subr.bf16.mxu1 %v9241_v13  ;;  %v9314_v13 = vld [vmem:[%s14037_s1 + $0xbc4] ss:$16 sps:$4 sm:$0xff]  }
  0x81   : > { %6630 = vmatpush2.bf16.msra.mxu0 %v9236_v14  ;;  %v9309_v14 = vld [vmem:[%s14037_s1 + $0x9c0] ss:$16 sps:$4 sm:$0xff]  }
  0x82   : > { %6671 = vmatpush2.bf16.msra.mxu1 %v9239_v15  ;;  %6631 = vmatprep.subr.bf16.mxu0 %v9244_v16  ;;  %v9312_v15 = vld [vmem:[%s14037_s1 + $0xbc0] ss:$16 sps:$4 sm:$0xff]   ;;  %v9317_v16 = vld [vmem:[%s14037_s1 + $0x9a4] ss:$16 sps:$4 sm:$0xff]  }
  0x83   : > { %6672 = vmatprep.subr.bf16.mxu1 %v9247_v17  ;;  %v9320_v17 = vld [vmem:[%s14037_s1 + $0xba4] ss:$16 sps:$4 sm:$0xff]  }
  0x85   : > { %6632 = vmatpush2.bf16.msra.mxu0 %v9242_v18  ;;  %v9315_v18 = vld [vmem:[%s14037_s1 + $0x9a0] ss:$16 sps:$4 sm:$0xff]  }
  0x86   : > { %6673 = vmatpush2.bf16.msra.mxu1 %v9245_v19  ;;  %6633 = vmatprep.subr.bf16.mxu0 %v9250_v20  ;;  %v9318_v19 = vld [vmem:[%s14037_s1 + $0xba0] ss:$16 sps:$4 sm:$0xff]   ;;  %v9323_v20 = vld [vmem:[%s14037_s1 + $0x984] ss:$16 sps:$4 sm:$0xff]  }
  0x87   : > { %6674 = vmatprep.subr.bf16.mxu1 %v9253_v21  ;;  %v9326_v21 = vld [vmem:[%s14037_s1 + $0xb84] ss:$16 sps:$4 sm:$0xff]  }
  0x89   : > { %6634 = vmatpush2.bf16.msra.mxu0 %v9248_v22  ;;  %v9321_v22 = vld [vmem:[%s14037_s1 + $0x980] ss:$16 sps:$4 sm:$0xff]  }
  0x8a   : > { %6675 = vmatpush2.bf16.msra.mxu1 %v9251_v23  ;;  %6685 = vmatprep.subr.bf16.mxu0 %v9257_v24  ;;  %v9324_v23 = vld [vmem:[%s14037_s1 + $0xb80] ss:$16 sps:$4 sm:$0xff]   ;;  %v9329_v24 = vld [vmem:[%s14037_s1 + $0x964] ss:$16 sps:$4 sm:$0xff]  }
  0x8b   : > { %6726 = vmatprep.subr.bf16.mxu1 %v9260_v25  ;;  %v9332_v25 = vld [vmem:[%s14037_s1 + $0xb64] ss:$16 sps:$4 sm:$0xff]  }
  0x8c   : > { %6636 = vmatmul.mubr.bf16.vlgmr.msra.gmra.mxu0 %v10959_v39 }
  0x8d   : > { %6677 = vmatmul.mubr.bf16.vlgmr.msra.gmra.mxu1 %v10972_v45  ;;  %6686 = vmatpush1.bf16.msra.mxu0 %v9255_v26  ;;  %v9327_v26 = vld [vmem:[%s14037_s1 + $0x960] ss:$16 sps:$4 sm:$0xff]  }
  0x8e   : > { %6727 = vmatpush1.bf16.msra.mxu1 %v9258_v27  ;;  %6687 = vmatprep.subr.bf16.mxu0 %v9263_v28  ;;  %v9330_v27 = vld [vmem:[%s14037_s1 + $0xb60] ss:$16 sps:$4 sm:$0xff]   ;;  %v9335_v28 = vld [vmem:[%s14037_s1 + $0x944] ss:$16 sps:$4 sm:$0xff]  }
  0x8f   : > { %6728 = vmatprep.subr.bf16.mxu1 %v9266_v30  ;;  %6717 = vmatprep.mubr.bf16.mxu0 %v11117_v34  ;;  %v9333_v30 = vld [vmem:[%s14037_s1 + $0x940] ss:$16 sps:$4 sm:$0xff]  }
  0x90   : > { %6758 = vmatprep.mubr.bf16.mxu1 %v11133_v40 }
  0x91   : > { %6688 = vmatpush1.bf16.msra.mxu0 %v9261_v33  ;;  %v9341_v33 = vld [vmem:[%s14037_s1 + $0x924] ss:$16 sps:$4 sm:$0xff]  }
  0x92   : > { %6729 = vmatpush1.bf16.msra.mxu1 %v9264_v36  ;;  %6689 = vmatprep.subr.bf16.mxu0 %v9269_v37  ;;  %v9344_v36 = vld [vmem:[%s14037_s1 + $0xb24] ss:$16 sps:$4 sm:$0xff]   ;;  %v9339_v37 = vld [vmem:[%s14037_s1 + $0x920] ss:$16 sps:$4 sm:$0xff]  }
  0x93   : > { %6730 = vmatprep.subr.bf16.mxu1 %v9272_v38  ;;  %v174_v38 = vld [vmem:[%s10795_s30 + $0x18] sm:$0xff] }
  0x95   : > { %6690 = vmatpush1.bf16.msra.mxu0 %v9267_v41  ;;  %v9342_v41 = vld [vmem:[%s14037_s1 + $0xb20] ss:$16 sps:$4 sm:$0xff]  }
  0x96   : > { %6731 = vmatpush1.bf16.msra.mxu1 %v9270_v43  ;;  %6691 = vmatprep.subr.bf16.mxu0 %v9275_v46  ;;  %v9347_v43 = vld [vmem:[%s14037_s1 + $0x904] ss:$16 sps:$4 sm:$0xff]  }
  0x97   : > { %6732 = vmatprep.subr.bf16.mxu1 %v9278_v47  ;;  %v9350_v46 = vld [vmem:[%s14037_s1 + $0xb04] ss:$16 sps:$4 sm:$0xff]   ;;  %v1284_v47 = vcombine.high %v174_v38, %v174_v38 }
  0x99   : > { %6692 = vmatpush1.bf16.msra.mxu0 %v9273_v50  ;;  %v9345_v50 = vld [vmem:[%s14037_s1 + $0x900] ss:$16 sps:$4 sm:$0xff]  }
  0x9a   : > { %6733 = vmatpush1.bf16.msra.mxu1 %v9276_v51  ;;  %6693 = vmatprep.subr.bf16.mxu0 %v9281_v52  ;;  %v9348_v51 = vld [vmem:[%s14037_s1 + $0xb00] ss:$16 sps:$4 sm:$0xff]   ;;  %v9354_v52 = vld [vmem:[%s14037_s1 + $0xce4] ss:$16 sps:$4 sm:$0xff]  }
  0x9b   : > { %6734 = vmatprep.subr.bf16.mxu1 %v9284_v53  ;;  %v9357_v53 = vld [vmem:[%s14037_s1 + $0xee4] ss:$16 sps:$4 sm:$0xff]  }
  0x9d   : > { %6694 = vmatpush1.bf16.msra.mxu0 %v9279_v55  ;;  %v11307_v55 = vrot.slane %v174_v38, %v10798_v49  ;;  %v9409_v38 = vld [vmem:[%s14037_s1 + $0xfc0] ss:$16 sps:$4 sm:$0xff]  }
  0x9e   : > { %6735 = vmatpush1.bf16.msra.mxu1 %v9282_v56  ;;  %6695 = vmatprep.subr.bf16.mxu0 %v9287_v57  ;;  %v11310_v56 = vrot.slane %v1284_v47, %v10798_v49  ;;  %v9352_v57 = vld [vmem:[%s14037_s1 + $0xce0] ss:$16 sps:$4 sm:$0xff]  }
  0x9f   : > { %6736 = vmatprep.subr.bf16.mxu1 %v9290_v58  ;;  %v9355_v58 = vld [vmem:[%s14037_s1 + $0xee0] ss:$16 sps:$4 sm:$0xff]  }
  0xa0   : > { %v9415_v47 = vld [vmem:[%s14037_s1 + $0xfa0] ss:$16 sps:$4 sm:$0xff]  }
  0xa1   : > { %6696 = vmatpush1.bf16.msra.mxu0 %v9285_v61  ;;  %v9360_v61 = vld [vmem:[%s14037_s1 + $0xcc4] ss:$16 sps:$4 sm:$0xff]  }
  0xa2   : > { %6737 = vmatpush1.bf16.msra.mxu1 %v9288_v63  ;;  %6697 = vmatprep.subr.bf16.mxu0 %v9293_v0  ;;  %v9363_v63 = vld [vmem:[%s14037_s1 + $0xec4] ss:$16 sps:$4 sm:$0xff]   ;;  %v11326_v0 = vcombine.high %v11307_v55, %v11307_v55 }
  0xa3   : > { %6738 = vmatprep.subr.bf16.mxu1 %v9296_v1  ;;  %v11330_v1 = vcombine.high %v11310_v56, %v11310_v56 }
  0xa5   : > { %6698 = vmatpush1.bf16.msra.mxu0 %v9291_v2  ;;  %v9358_v2 = vld [vmem:[%s14037_s1 + $0xcc0] ss:$16 sps:$4 sm:$0xff]  }
  0xa6   : > { %6739 = vmatpush1.bf16.msra.mxu1 %v9294_v3  ;;  %6699 = vmatprep.subr.bf16.mxu0 %v9299_v4  ;;  %v9361_v3 = vld [vmem:[%s14037_s1 + $0xec0] ss:$16 sps:$4 sm:$0xff]   ;;  %v9366_v4 = vld [vmem:[%s14037_s1 + $0xca4] ss:$16 sps:$4 sm:$0xff]  }
  0xa7   : > { %6740 = vmatprep.subr.bf16.mxu1 %v9302_v5  ;;  %v9369_v5 = vld [vmem:[%s14037_s1 + $0xea4] ss:$16 sps:$4 sm:$0xff]  }
  0xa9   : > { %6700 = vmatpush1.bf16.msra.mxu0 %v9297_v6  ;;  %v9364_v6 = vld [vmem:[%s14037_s1 + $0xca0] ss:$16 sps:$4 sm:$0xff]  }
  0xaa   : > { %6741 = vmatpush1.bf16.msra.mxu1 %v9300_v7  ;;  %6701 = vmatprep.subr.bf16.mxu0 %v9305_v8  ;;  %v9367_v7 = vld [vmem:[%s14037_s1 + $0xea0] ss:$16 sps:$4 sm:$0xff]   ;;  %v9372_v8 = vld [vmem:[%s14037_s1 + $0xc84] ss:$16 sps:$4 sm:$0xff]  }
  0xab   : > { %6742 = vmatprep.subr.bf16.mxu1 %v9308_v9  ;;  %v9375_v9 = vld [vmem:[%s14037_s1 + $0xe84] ss:$16 sps:$4 sm:$0xff]  }
  0xad   : > { %6702 = vmatpush2.bf16.msra.mxu0 %v9303_v10  ;;  %v9370_v10 = vld [vmem:[%s14037_s1 + $0xc80] ss:$16 sps:$4 sm:$0xff]  }
  0xae   : > { %6743 = vmatpush2.bf16.msra.mxu1 %v9306_v11  ;;  %6703 = vmatprep.subr.bf16.mxu0 %v9311_v12  ;;  %v9373_v11 = vld [vmem:[%s14037_s1 + $0xe80] ss:$16 sps:$4 sm:$0xff]   ;;  %v9378_v12 = vld [vmem:[%s14037_s1 + $0xc64] ss:$16 sps:$4 sm:$0xff]  }
  0xaf   : > { %6744 = vmatprep.subr.bf16.mxu1 %v9314_v13  ;;  %v9381_v13 = vld [vmem:[%s14037_s1 + $0xe64] ss:$16 sps:$4 sm:$0xff]  }
  0xb1   : > { %6704 = vmatpush2.bf16.msra.mxu0 %v9309_v14  ;;  %v9376_v14 = vld [vmem:[%s14037_s1 + $0xc60] ss:$16 sps:$4 sm:$0xff]  }
  0xb2   : > { %6745 = vmatpush2.bf16.msra.mxu1 %v9312_v15  ;;  %6705 = vmatprep.subr.bf16.mxu0 %v9317_v16  ;;  %v9379_v15 = vld [vmem:[%s14037_s1 + $0xe60] ss:$16 sps:$4 sm:$0xff]   ;;  %v9384_v16 = vld [vmem:[%s14037_s1 + $0xc44] ss:$16 sps:$4 sm:$0xff]  }
  0xb3   : > { %6746 = vmatprep.subr.bf16.mxu1 %v9320_v17  ;;  %v9387_v17 = vld [vmem:[%s14037_s1 + $0xe44] ss:$16 sps:$4 sm:$0xff]  }
  0xb5   : > { %6706 = vmatpush2.bf16.msra.mxu0 %v9315_v18  ;;  %v9382_v18 = vld [vmem:[%s14037_s1 + $0xc40] ss:$16 sps:$4 sm:$0xff]  }
  0xb6   : > { %6747 = vmatpush2.bf16.msra.mxu1 %v9318_v19  ;;  %6707 = vmatprep.subr.bf16.mxu0 %v9323_v20  ;;  %v9385_v19 = vld [vmem:[%s14037_s1 + $0xe40] ss:$16 sps:$4 sm:$0xff]   ;;  %v9390_v20 = vld [vmem:[%s14037_s1 + $0xc24] ss:$16 sps:$4 sm:$0xff]  }
  0xb7   : > { %6748 = vmatprep.subr.bf16.mxu1 %v9326_v21  ;;  %v9393_v21 = vld [vmem:[%s14037_s1 + $0xe24] ss:$16 sps:$4 sm:$0xff]  }
  0xb9   : > { %6708 = vmatpush2.bf16.msra.mxu0 %v9321_v22  ;;  %v9388_v22 = vld [vmem:[%s14037_s1 + $0xc20] ss:$16 sps:$4 sm:$0xff]  }
  0xba   : > { %6749 = vmatpush2.bf16.msra.mxu1 %v9324_v23  ;;  %6709 = vmatprep.subr.bf16.mxu0 %v9329_v24  ;;  %v9391_v23 = vld [vmem:[%s14037_s1 + $0xe20] ss:$16 sps:$4 sm:$0xff]   ;;  %v9396_v24 = vld [vmem:[%s14037_s1 + $0xc04] ss:$16 sps:$4 sm:$0xff]  }
  0xbb   : > { %6750 = vmatprep.subr.bf16.mxu1 %v9332_v25  ;;  %v9399_v25 = vld [vmem:[%s14037_s1 + $0xe04] ss:$16 sps:$4 sm:$0xff]  }
  0xbd   : > { %6710 = vmatpush2.bf16.msra.mxu0 %v9327_v26  ;;  %v9394_v26 = vld [vmem:[%s14037_s1 + $0xc00] ss:$16 sps:$4 sm:$0xff]  }
  0xbe   : > { %6751 = vmatpush2.bf16.msra.mxu1 %v9330_v27  ;;  %6711 = vmatprep.subr.bf16.mxu0 %v9335_v28  ;;  %v9397_v27 = vld [vmem:[%s14037_s1 + $0xe00] ss:$16 sps:$4 sm:$0xff]   ;;  %v9402_v28 = vld [vmem:[%s14037_s1 + $0xde4] ss:$16 sps:$4 sm:$0xff]  }
  0xbf   : > { %6752 = vmatprep.subr.bf16.mxu1 %v9338_v29  ;;  %v9405_v29 = vld [vmem:[%s14037_s1 + $0xfe4] ss:$16 sps:$4 sm:$0xff]  }
  0xc1   : > { %6712 = vmatpush2.bf16.msra.mxu0 %v9333_v30  ;;  %v9400_v30 = vld [vmem:[%s14037_s1 + $0xde0] ss:$16 sps:$4 sm:$0xff]  }
  0xc2   : > { %6753 = vmatpush2.bf16.msra.mxu1 %v9336_v32  ;;  %6713 = vmatprep.subr.bf16.mxu0 %v9341_v33  ;;  %v9403_v32 = vld [vmem:[%s14037_s1 + $0xfe0] ss:$16 sps:$4 sm:$0xff]   ;;  %v9408_v33 = vld [vmem:[%s14037_s1 + $0xdc4] ss:$16 sps:$4 sm:$0xff]  }
  0xc3   : > { %6754 = vmatprep.subr.bf16.mxu1 %v9344_v36  ;;  %v9411_v36 = vld [vmem:[%s14037_s1 + $0xfc4] ss:$16 sps:$4 sm:$0xff]  }
  0xc5   : > { %6714 = vmatpush2.bf16.msra.mxu0 %v9339_v37  ;;  %v9406_v37 = vld [vmem:[%s14037_s1 + $0xdc0] ss:$16 sps:$4 sm:$0xff]  }
  0xc6   : > { %6755 = vmatpush2.bf16.msra.mxu1 %v9342_v41  ;;  %6715 = vmatprep.subr.bf16.mxu0 %v9347_v43  ;;  %v9414_v41 = vld [vmem:[%s14037_s1 + $0xda4] ss:$16 sps:$4 sm:$0xff]  }
  0xc7   : > { %6756 = vmatprep.subr.bf16.mxu1 %v9350_v46  ;;  %v9417_v43 = vld [vmem:[%s14037_s1 + $0xfa4] ss:$16 sps:$4 sm:$0xff]   ;;  %v9412_v46 = vld [vmem:[%s14037_s1 + $0xda0] ss:$16 sps:$4 sm:$0xff]  }
  0xc9   : > { %6716 = vmatpush2.bf16.msra.mxu0 %v9345_v50  ;;  %v9420_v50 = vld [vmem:[%s14037_s1 + $0xd84] ss:$16 sps:$4 sm:$0xff]  }
  0xca   : > { %6757 = vmatpush2.bf16.msra.mxu1 %v9348_v51  ;;  %6767 = vmatprep.subr.bf16.mxu0 %v9354_v52  ;;  %v9423_v51 = vld [vmem:[%s14037_s1 + $0xf84] ss:$16 sps:$4 sm:$0xff]   ;;  %v9418_v52 = vld [vmem:[%s14037_s1 + $0xd80] ss:$16 sps:$4 sm:$0xff]  }
  0xcb   : > { %6808 = vmatprep.subr.bf16.mxu1 %v9357_v53  ;;  %v9421_v53 = vld [vmem:[%s14037_s1 + $0xf80] ss:$16 sps:$4 sm:$0xff]  }
  0xcc   : > { %6718 = vmatmul.mubr.bf16.vlgmr.msra.gmra.mxu0 %v11108_v31 }
  0xcd   : > { %6759 = vmatmul.mubr.bf16.vlgmr.msra.gmra.mxu1 %v11120_v35  ;;  %6768 = vmatpush1.bf16.msra.mxu0 %v9352_v57  ;;  %v9426_v57 = vld [vmem:[%s14037_s1 + $0xd64] ss:$16 sps:$4 sm:$0xff]  }
  0xce   : > { %6809 = vmatpush1.bf16.msra.mxu1 %v9355_v58  ;;  %6769 = vmatprep.subr.bf16.mxu0 %v9360_v61  ;;  %v9429_v58 = vld [vmem:[%s14037_s1 + $0xf64] ss:$16 sps:$4 sm:$0xff]   ;;  %v9424_v61 = vld [vmem:[%s14037_s1 + $0xd60] ss:$16 sps:$4 sm:$0xff]  }
  0xcf   : > { %6810 = vmatprep.subr.bf16.mxu1 %v9363_v63  ;;  %6799 = vmatprep.mubr.bf16.mxu0 %v11326_v0  ;;  %v9427_v63 = vld [vmem:[%s14037_s1 + $0xf60] ss:$16 sps:$4 sm:$0xff]  }
  0xd0   : > { %6840 = vmatprep.mubr.bf16.mxu1 %v11330_v1 }
  0xd1   : > { %6770 = vmatpush1.bf16.msra.mxu0 %v9358_v2  ;;  %v9432_v2 = vld [vmem:[%s14037_s1 + $0xd44] ss:$16 sps:$4 sm:$0xff]  }
  0xd2   : > { %6811 = vmatpush1.bf16.msra.mxu1 %v9361_v3  ;;  %6771 = vmatprep.subr.bf16.mxu0 %v9366_v4  ;;  %v9435_v3 = vld [vmem:[%s14037_s1 + $0xf44] ss:$16 sps:$4 sm:$0xff]   ;;  %v9430_v4 = vld [vmem:[%s14037_s1 + $0xd40] ss:$16 sps:$4 sm:$0xff]  }
  0xd3   : > { %6812 = vmatprep.subr.bf16.mxu1 %v9369_v5  ;;  %v9433_v5 = vld [vmem:[%s14037_s1 + $0xf40] ss:$16 sps:$4 sm:$0xff]  }
  0xd5   : > { %6772 = vmatpush1.bf16.msra.mxu0 %v9364_v6  ;;  %v9438_v6 = vld [vmem:[%s14037_s1 + $0xd24] ss:$16 sps:$4 sm:$0xff]  }
  0xd6   : > { %6813 = vmatpush1.bf16.msra.mxu1 %v9367_v7  ;;  %6773 = vmatprep.subr.bf16.mxu0 %v9372_v8  ;;  %v9441_v7 = vld [vmem:[%s14037_s1 + $0xf24] ss:$16 sps:$4 sm:$0xff]  }
  0xd7   : > { %6814 = vmatprep.subr.bf16.mxu1 %v9375_v9  ;;  %v175_v8 = vld [vmem:[%s10795_s30 + $0x20] sm:$0xff] }
  0xd8   : > { %v9436_v9 = vld [vmem:[%s14037_s1 + $0xd20] ss:$16 sps:$4 sm:$0xff]  }
  0xd9   : > { %6774 = vmatpush1.bf16.msra.mxu0 %v9370_v10  ;;  %v9439_v10 = vld [vmem:[%s14037_s1 + $0xf20] ss:$16 sps:$4 sm:$0xff]  }
  0xda   : > { %6815 = vmatpush1.bf16.msra.mxu1 %v9373_v11  ;;  %6775 = vmatprep.subr.bf16.mxu0 %v9378_v12  ;;  %v9444_v11 = vld [vmem:[%s14037_s1 + $0xd04] ss:$16 sps:$4 sm:$0xff]  }
  0xdb   : > { %6816 = vmatprep.subr.bf16.mxu1 %v9381_v13  ;;  %v9447_v12 = vld [vmem:[%s14037_s1 + $0xf04] ss:$16 sps:$4 sm:$0xff]   ;;  %v1301_v13 = vcombine.high %v175_v8, %v175_v8 }
  0xdd   : > { %6776 = vmatpush1.bf16.msra.mxu0 %v9376_v14  ;;  %v9442_v14 = vld [vmem:[%s14037_s1 + $0xd00] ss:$16 sps:$4 sm:$0xff]  }
  0xde   : > { %6817 = vmatpush1.bf16.msra.mxu1 %v9379_v15  ;;  %6777 = vmatprep.subr.bf16.mxu0 %v9384_v16  ;;  %v9445_v15 = vld [vmem:[%s14037_s1 + $0xf00] ss:$16 sps:$4 sm:$0xff]  }
  0xdf   : > { %6818 = vmatprep.subr.bf16.mxu1 %v9387_v17  ;;  %v1203_v16 = vld [vmem:[%s14038_s2] sm:$0xf]  ;;  %v1207_v17 = vsub.s32 0, %v10774_v42 }
  0xe1   : > { %6778 = vmatpush1.bf16.msra.mxu0 %v9382_v18  ;;  %v9451_v18 = vld [vmem:[%s14037_s1 + $0x10e4] ss:$16 sps:$4 sm:$0xff]  }
  0xe2   : > { %6819 = vmatpush1.bf16.msra.mxu1 %v9385_v19  ;;  %6779 = vmatprep.subr.bf16.mxu0 %v9390_v20  ;;  %v9454_v19 = vld [vmem:[%s14037_s1 + $0x12e4] ss:$16 sps:$4 sm:$0xff]   ;;  %v1211_v20 = vsub.s32 1, %v10774_v42 }
  0xe3   : > { %6820 = vmatprep.subr.bf16.mxu1 %v9393_v21  ;;  %v11523_v21 = vrot.slane %v175_v8, %v10798_v49  ;;  %v9478_v8 = vld [vmem:[%s14037_s1 + $0x1264] ss:$16 sps:$4 sm:$0xff]  }
  0xe5   : > { %6780 = vmatpush1.bf16.msra.mxu0 %v9388_v22  ;;  %v11526_v22 = vrot.slane %v1301_v13, %v10798_v49  ;;  %v9479_v13 = vld [vmem:[%s14037_s1 + $0x1040] ss:$16 sps:$4 sm:$0xff]  }
  0xe6   : > { %6821 = vmatpush1.bf16.msra.mxu1 %v9391_v23  ;;  %6781 = vmatprep.subr.bf16.mxu0 %v9396_v24  ;;  %v1208_v23 = vrot.slane %v1203_v16, %v1207_v17  ;;  %v9449_v24 = vld [vmem:[%s14037_s1 + $0x10e0] ss:$16 sps:$4 sm:$0xff]  }
  0xe7   : > { %6822 = vmatprep.subr.bf16.mxu1 %v9399_v25  ;;  %v9452_v25 = vld [vmem:[%s14037_s1 + $0x12e0] ss:$16 sps:$4 sm:$0xff]  }
  0xe8   : > { %v9485_v17 = vld [vmem:[%s14037_s1 + $0x1020] ss:$16 sps:$4 sm:$0xff]  }
  0xe9   : > { %6782 = vmatpush1.bf16.msra.mxu0 %v9394_v26  ;;  %v9457_v26 = vld [vmem:[%s14037_s1 + $0x10c4] ss:$16 sps:$4 sm:$0xff]  }
  0xea   : > { %6823 = vmatpush1.bf16.msra.mxu1 %v9397_v27  ;;  %6783 = vmatprep.subr.bf16.mxu0 %v9402_v28  ;;  %v9460_v27 = vld [vmem:[%s14037_s1 + $0x12c4] ss:$16 sps:$4 sm:$0xff]   ;;  %v1212_v28 = vrot.slane %v1203_v16, %v1211_v20 }
  0xeb   : > { %6824 = vmatprep.subr.bf16.mxu1 %v9405_v29  ;;  %v11542_v29 = vcombine.high %v11523_v21, %v11523_v21  ;;  %v9490_v16 = vld [vmem:[%s14037_s1 + $0x1224] ss:$16 sps:$4 sm:$0xff]  }
  0xec   : > { %v9496_v20 = vld [vmem:[%s14037_s1 + $0x1204] ss:$16 sps:$4 sm:$0xff]  }
  0xed   : > { %6784 = vmatpush2.bf16.msra.mxu0 %v9400_v30  ;;  %v11546_v30 = vcombine.high %v11526_v22, %v11526_v22 }
  0xee   : > { %6825 = vmatpush2.bf16.msra.mxu1 %v9403_v32  ;;  %6785 = vmatprep.subr.bf16.mxu0 %v9408_v33 }
  0xef   : > { %6826 = vmatprep.subr.bf16.mxu1 %v9411_v36  ;;  %v9455_v36 = vld [vmem:[%s14037_s1 + $0x10c0] ss:$16 sps:$4 sm:$0xff]  }
  0xf1   : > { %6786 = vmatpush2.bf16.msra.mxu0 %v9406_v37 }
  0xf2   : > { %6827 = vmatpush2.bf16.msra.mxu1 %v9409_v38  ;;  %6787 = vmatprep.subr.bf16.mxu0 %v9414_v41  ;;  %v9458_v38 = vld [vmem:[%s14037_s1 + $0x12c0] ss:$16 sps:$4 sm:$0xff]   ;;  %v9463_v41 = vld [vmem:[%s14037_s1 + $0x10a4] ss:$16 sps:$4 sm:$0xff]  }
  0xf3   : > { %6828 = vmatprep.subr.bf16.mxu1 %v9417_v43 }
  0xf5   : > { %6788 = vmatpush2.bf16.msra.mxu0 %v9412_v46 }
  0xf6   : > { %6829 = vmatpush2.bf16.msra.mxu1 %v9415_v47  ;;  %6789 = vmatprep.subr.bf16.mxu0 %v9420_v50  ;;  %v9466_v47 = vld [vmem:[%s14037_s1 + $0x12a4] ss:$16 sps:$4 sm:$0xff]  }
  0xf7   : > { %6830 = vmatprep.subr.bf16.mxu1 %v9423_v51 }
  0xf9   : > { %6790 = vmatpush2.bf16.msra.mxu0 %v9418_v52 }
  0xfa   : > { %6831 = vmatpush2.bf16.msra.mxu1 %v9421_v53  ;;  %6791 = vmatprep.subr.bf16.mxu0 %v9426_v57  ;;  %v9461_v57 = vld [vmem:[%s14037_s1 + $0x10a0] ss:$16 sps:$4 sm:$0xff]  }
  0xfb   : > { %6832 = vmatprep.subr.bf16.mxu1 %v9429_v58  ;;  %v9464_v58 = vld [vmem:[%s14037_s1 + $0x12a0] ss:$16 sps:$4 sm:$0xff]  }
  0xfd   : > { %6792 = vmatpush2.bf16.msra.mxu0 %v9424_v61 }
  0xfe   : > { %6833 = vmatpush2.bf16.msra.mxu1 %v9427_v63  ;;  %6793 = vmatprep.subr.bf16.mxu0 %v9432_v2 }
  0xff   : > { %6834 = vmatprep.subr.bf16.mxu1 %v9435_v3  ;;  %v9469_v3 = vld [vmem:[%s14037_s1 + $0x1084] ss:$16 sps:$4 sm:$0xff]  }
 0x101   : > { %6794 = vmatpush2.bf16.msra.mxu0 %v9430_v4  ;;  %v9472_v4 = vld [vmem:[%s14037_s1 + $0x1284] ss:$16 sps:$4 sm:$0xff]  }
 0x102   : > { %6835 = vmatpush2.bf16.msra.mxu1 %v9433_v5  ;;  %6795 = vmatprep.subr.bf16.mxu0 %v9438_v6  ;;  %v9467_v5 = vld [vmem:[%s14037_s1 + $0x1080] ss:$16 sps:$4 sm:$0xff]  }
 0x103   : > { %6836 = vmatprep.subr.bf16.mxu1 %v9441_v7  ;;  %v9470_v6 = vld [vmem:[%s14037_s1 + $0x1280] ss:$16 sps:$4 sm:$0xff]   ;;  %v9475_v7 = vld [vmem:[%s14037_s1 + $0x1064] ss:$16 sps:$4 sm:$0xff]  }
 0x105   : > { %6796 = vmatpush2.bf16.msra.mxu0 %v9436_v9  ;;  %v9473_v9 = vld [vmem:[%s14037_s1 + $0x1060] ss:$16 sps:$4 sm:$0xff]  }
 0x106   : > { %6837 = vmatpush2.bf16.msra.mxu1 %v9439_v10  ;;  %6797 = vmatprep.subr.bf16.mxu0 %v9444_v11  ;;  %v9476_v10 = vld [vmem:[%s14037_s1 + $0x1260] ss:$16 sps:$4 sm:$0xff]   ;;  %v9481_v11 = vld [vmem:[%s14037_s1 + $0x1044] ss:$16 sps:$4 sm:$0xff]  }
 0x107   : > { %6838 = vmatprep.subr.bf16.mxu1 %v9447_v12  ;;  %v9484_v12 = vld [vmem:[%s14037_s1 + $0x1244] ss:$16 sps:$4 sm:$0xff]  }
 0x109   : > { %6798 = vmatpush2.bf16.msra.mxu0 %v9442_v14  ;;  %v9482_v14 = vld [vmem:[%s14037_s1 + $0x1240] ss:$16 sps:$4 sm:$0xff]  }
 0x10a   : > { %6839 = vmatpush2.bf16.msra.mxu1 %v9445_v15  ;;  %6849 = vmatprep.subr.bf16.mxu0 %v9451_v18  ;;  %v9487_v15 = vld [vmem:[%s14037_s1 + $0x1024] ss:$16 sps:$4 sm:$0xff]   ;;  %v9488_v18 = vld [vmem:[%s14037_s1 + $0x1220] ss:$16 sps:$4 sm:$0xff]  }
 0x10b   : > { %6890 = vmatprep.subr.bf16.mxu1 %v9454_v19  ;;  %v9493_v19 = vld [vmem:[%s14037_s1 + $0x1004] ss:$16 sps:$4 sm:$0xff]  }
 0x10c   : > { %v6555_v32 = vpop.f32.mrf.mxu0  ;;  %6800 = vmatmul.mubr.bf16.vlgmr.msra.gmra.mxu0 %v11307_v55 }
 0x10d   : > { %v6596_v33 = vpop.f32.mrf.mxu1  ;;  %6841 = vmatmul.mubr.bf16.vlgmr.msra.gmra.mxu1 %v11310_v56  ;;  %v6556_v37 = vadd.f32 %v6555_v32, %v1208_v23  ;;  %6850 = vmatpush1.bf16.msra.mxu0 %v9449_v24  ;;  %v9491_v23 = vld [vmem:[%s14037_s1 + $0x1000] ss:$16 sps:$4 sm:$0xff]   ;;  %v9505_v32 = vld [vmem:[%s14037_s1 + $0x11c4] ss:$16 sps:$4 sm:$0xff]  }
 0x10e   : > { %6891 = vmatpush1.bf16.msra.mxu1 %v9452_v25  ;;  %v6557_v43 = vpop.f32.mrf.mxu0  ;;  %6851 = vmatprep.subr.bf16.mxu0 %v9457_v26  ;;  %v9494_v24 = vld [vmem:[%s14037_s1 + $0x1200] ss:$16 sps:$4 sm:$0xff]   ;;  %v9499_v25 = vld [vmem:[%s14037_s1 + $0x11e4] ss:$16 sps:$4 sm:$0xff]  }
 0x10f   : > { %v6598_v46 = vpop.f32.mrf.mxu1  ;;  %6892 = vmatprep.subr.bf16.mxu1 %v9460_v27  ;;  %v11562_v50 = vadd.f32 %v6596_v33, %v6556_v37  ;;  %v6558_v51 = vadd.f32 %v6557_v43, %v1212_v28  ;;  %6881 = vmatprep.mubr.bf16.mxu0 %v11542_v29  ;;  %v9502_v26 = vld [vmem:[%s14037_s1 + $0x13e4] ss:$16 sps:$4 sm:$0xff]   ;;  %v9497_v27 = vld [vmem:[%s14037_s1 + $0x11e0] ss:$16 sps:$4 sm:$0xff]  }
 0x110   : > { %6922 = vmatprep.mubr.bf16.mxu1 %v11546_v30  ;;  %v6559_v52 = vpop.f32.mrf.mxu0  ;;  %v9500_v28 = vld [vmem:[%s14037_s1 + $0x13e0] ss:$16 sps:$4 sm:$0xff]   ;;  %v9508_v33 = vld [vmem:[%s14037_s1 + $0x13c4] ss:$16 sps:$4 sm:$0xff]  }
 0x111   : > { %v6600_v53 = vpop.f32.mrf.mxu1  ;;  %v11572_v61 = vadd.f32 %v6598_v46, %v6558_v51  ;;  %6852 = vmatpush1.bf16.msra.mxu0 %v9455_v36  ;;  %v9503_v36 = vld [vmem:[%s14037_s1 + $0x11c0] ss:$16 sps:$4 sm:$0xff]   ;;  %v9520_v51 = vld [vmem:[%s14037_s1 + $0x1384] ss:$16 sps:$4 sm:$0xff]  }
 0x112   : > { %6893 = vmatpush1.bf16.msra.mxu1 %v9458_v38  ;;  %v6560_v63 = vpop.f32.mrf.mxu0  ;;  %6853 = vmatprep.subr.bf16.mxu0 %v9463_v41  ;;  %v9506_v37 = vld [vmem:[%s14037_s1 + $0x13c0] ss:$16 sps:$4 sm:$0xff]   ;;  %v9511_v38 = vld [vmem:[%s14037_s1 + $0x11a4] ss:$16 sps:$4 sm:$0xff]  }
 0x113   : > { %v6601_v2 = vpop.f32.mrf.mxu1  ;;  %6894 = vmatprep.subr.bf16.mxu1 %v9466_v47  ;;  %v9514_v41 = vld [vmem:[%s14037_s1 + $0x13a4] ss:$16 sps:$4 sm:$0xff]   ;;  %v9509_v43 = vld [vmem:[%s14037_s1 + $0x11a0] ss:$16 sps:$4 sm:$0xff]  }
 0x114   : > { %v9512_v46 = vld [vmem:[%s14037_s1 + $0x13a0] ss:$16 sps:$4 sm:$0xff]   ;;  %v9517_v47 = vld [vmem:[%s14037_s1 + $0x1184] ss:$16 sps:$4 sm:$0xff]  }
 0x115   : > { %6854 = vmatpush1.bf16.msra.mxu0 %v9461_v57  ;;  %v9515_v52 = vld [vmem:[%s14037_s1 + $0x1180] ss:$16 sps:$4 sm:$0xff]   ;;  %v9523_v57 = vld [vmem:[%s14037_s1 + $0x1164] ss:$16 sps:$4 sm:$0xff]  }
 0x116   : > { %6895 = vmatpush1.bf16.msra.mxu1 %v9464_v58  ;;  %6855 = vmatprep.subr.bf16.mxu0 %v9469_v3  ;;  %v9518_v53 = vld [vmem:[%s14037_s1 + $0x1380] ss:$16 sps:$4 sm:$0xff]   ;;  %v9526_v58 = vld [vmem:[%s14037_s1 + $0x1364] ss:$16 sps:$4 sm:$0xff]  }
 0x117   : > { %6896 = vmatprep.subr.bf16.mxu1 %v9472_v4  ;;  %v9521_v63 = vld [vmem:[%s14037_s1 + $0x1160] ss:$16 sps:$4 sm:$0xff]   ;;  %v9529_v3 = vld [vmem:[%s14037_s1 + $0x1144] ss:$16 sps:$4 sm:$0xff]  }
 0x118   : > { %v9524_v2 = vld [vmem:[%s14037_s1 + $0x1360] ss:$16 sps:$4 sm:$0xff]   ;;  %v9532_v4 = vld [vmem:[%s14037_s1 + $0x1344] ss:$16 sps:$4 sm:$0xff]  }
 0x119   : > { %6856 = vmatpush1.bf16.msra.mxu0 %v9467_v5  ;;  %v9527_v5 = vld [vmem:[%s14037_s1 + $0x1140] ss:$16 sps:$4 sm:$0xff]  }
 0x11a   : > { %6897 = vmatpush1.bf16.msra.mxu1 %v9470_v6  ;;  %6857 = vmatprep.subr.bf16.mxu0 %v9475_v7  ;;  %v9530_v6 = vld [vmem:[%s14037_s1 + $0x1340] ss:$16 sps:$4 sm:$0xff]   ;;  %v9535_v7 = vld [vmem:[%s14037_s1 + $0x1124] ss:$16 sps:$4 sm:$0xff]  }
 0x11b   : > { %6898 = vmatprep.subr.bf16.mxu1 %v9478_v8  ;;  %v9538_v8 = vld [vmem:[%s14037_s1 + $0x1324] ss:$16 sps:$4 sm:$0xff]  }
 0x11d   : > { %6858 = vmatpush1.bf16.msra.mxu0 %v9473_v9  ;;  %v176_v9 = vld [vmem:[%s10795_s30 + $0x28] sm:$0xff] }
 0x11e   : > { %6899 = vmatpush1.bf16.msra.mxu1 %v9476_v10  ;;  %6859 = vmatprep.subr.bf16.mxu0 %v9481_v11  ;;  %v9533_v10 = vld [vmem:[%s14037_s1 + $0x1120] ss:$16 sps:$4 sm:$0xff]  }
 0x11f   : > { %6900 = vmatprep.subr.bf16.mxu1 %v9484_v12  ;;  %v9536_v11 = vld [vmem:[%s14037_s1 + $0x1320] ss:$16 sps:$4 sm:$0xff]   ;;  %v9541_v12 = vld [vmem:[%s14037_s1 + $0x1104] ss:$16 sps:$4 sm:$0xff]  }
 0x121   : > { %6860 = vmatpush1.bf16.msra.mxu0 %v9479_v13  ;;  %v9544_v13 = vld [vmem:[%s14037_s1 + $0x1304] ss:$16 sps:$4 sm:$0xff]  }
 0x122   : > { %6901 = vmatpush1.bf16.msra.mxu1 %v9482_v14  ;;  %6861 = vmatprep.subr.bf16.mxu0 %v9487_v15  ;;  %v1318_v14 = vcombine.high %v176_v9, %v176_v9  ;;  %v9539_v15 = vld [vmem:[%s14037_s1 + $0x1100] ss:$16 sps:$4 sm:$0xff]  }
 0x123   : > { %6902 = vmatprep.subr.bf16.mxu1 %v9490_v16  ;;  %v9542_v16 = vld [vmem:[%s14037_s1 + $0x1300] ss:$16 sps:$4 sm:$0xff]  }
 0x125   : > { %6862 = vmatpush1.bf16.msra.mxu0 %v9485_v17  ;;  %v9548_v17 = vld [vmem:[%s14037_s1 + $0x14e4] ss:$16 sps:$4 sm:$0xff]  }
 0x126   : > { %6903 = vmatpush1.bf16.msra.mxu1 %v9488_v18  ;;  %6863 = vmatprep.subr.bf16.mxu0 %v9493_v19  ;;  %v9551_v18 = vld [vmem:[%s14037_s1 + $0x16e4] ss:$16 sps:$4 sm:$0xff]   ;;  %v9546_v19 = vld [vmem:[%s14037_s1 + $0x14e0] ss:$16 sps:$4 sm:$0xff]  }
 0x127   : > { %6904 = vmatprep.subr.bf16.mxu1 %v9496_v20  ;;  %v9549_v20 = vld [vmem:[%s14037_s1 + $0x16e0] ss:$16 sps:$4 sm:$0xff]  }
 0x129   : > { %6864 = vmatpush1.bf16.msra.mxu0 %v9491_v23  ;;  %v11744_v23 = vrot.slane %v176_v9, %v10798_v49  ;;  %v9570_v9 = vld [vmem:[%s14037_s1 + $0x1460] ss:$16 sps:$4 sm:$0xff]  }
 0x12a   : > { %6905 = vmatpush1.bf16.msra.mxu1 %v9494_v24  ;;  %6865 = vmatprep.subr.bf16.mxu0 %v9499_v25  ;;  %v11747_v24 = vrot.slane %v1318_v14, %v10798_v49  ;;  %v9554_v25 = vld [vmem:[%s14037_s1 + $0x14c4] ss:$16 sps:$4 sm:$0xff]   ;;  %v9579_v14 = vld [vmem:[%s14037_s1 + $0x1640] ss:$16 sps:$4 sm:$0xff]  }
 0x12b   : > { %6906 = vmatprep.subr.bf16.mxu1 %v9502_v26  ;;  %v9557_v26 = vld [vmem:[%s14037_s1 + $0x16c4] ss:$16 sps:$4 sm:$0xff]  }
 0x12d   : > { %6866 = vmatpush2.bf16.msra.mxu0 %v9497_v27  ;;  %v9552_v27 = vld [vmem:[%s14037_s1 + $0x14c0] ss:$16 sps:$4 sm:$0xff]  }
 0x12e   : > { %6907 = vmatpush2.bf16.msra.mxu1 %v9500_v28  ;;  %6867 = vmatprep.subr.bf16.mxu0 %v9505_v32  ;;  %v9555_v28 = vld [vmem:[%s14037_s1 + $0x16c0] ss:$16 sps:$4 sm:$0xff]   ;;  %v11763_v32 = vcombine.high %v11744_v23, %v11744_v23 }
 0x12f   : > { %6908 = vmatprep.subr.bf16.mxu1 %v9508_v33  ;;  %v11767_v33 = vcombine.high %v11747_v24, %v11747_v24 }
 0x131   : > { %6868 = vmatpush2.bf16.msra.mxu0 %v9503_v36 }
 0x132   : > { %6909 = vmatpush2.bf16.msra.mxu1 %v9506_v37  ;;  %6869 = vmatprep.subr.bf16.mxu0 %v9511_v38 }
 0x133   : > { %6910 = vmatprep.subr.bf16.mxu1 %v9514_v41 }
 0x135   : > { %6870 = vmatpush2.bf16.msra.mxu0 %v9509_v43 }
 0x136   : > { %6911 = vmatpush2.bf16.msra.mxu1 %v9512_v46  ;;  %6871 = vmatprep.subr.bf16.mxu0 %v9517_v47  ;;  %v9560_v46 = vld [vmem:[%s14037_s1 + $0x14a4] ss:$16 sps:$4 sm:$0xff]  }
 0x137   : > { %6912 = vmatprep.subr.bf16.mxu1 %v9520_v51  ;;  %v9563_v47 = vld [vmem:[%s14037_s1 + $0x16a4] ss:$16 sps:$4 sm:$0xff]  }
 0x139   : > { %6872 = vmatpush2.bf16.msra.mxu0 %v9515_v52 }
 0x13a   : > { %6913 = vmatpush2.bf16.msra.mxu1 %v9518_v53  ;;  %6873 = vmatprep.subr.bf16.mxu0 %v9523_v57  ;;  %v9561_v53 = vld [vmem:[%s14037_s1 + $0x16a0] ss:$16 sps:$4 sm:$0xff]  }
 0x13b   : > { %6914 = vmatprep.subr.bf16.mxu1 %v9526_v58 }
 0x13d   : > { %6874 = vmatpush2.bf16.msra.mxu0 %v9521_v63 }
 0x13e   : > { %6915 = vmatpush2.bf16.msra.mxu1 %v9524_v2  ;;  %6875 = vmatprep.subr.bf16.mxu0 %v9529_v3  ;;  %v9566_v3 = vld [vmem:[%s14037_s1 + $0x1484] ss:$16 sps:$4 sm:$0xff]  }
 0x13f   : > { %6916 = vmatprep.subr.bf16.mxu1 %v9532_v4  ;;  %v9569_v4 = vld [vmem:[%s14037_s1 + $0x1684] ss:$16 sps:$4 sm:$0xff]  }
 0x141   : > { %6876 = vmatpush2.bf16.msra.mxu0 %v9527_v5  ;;  %v9564_v5 = vld [vmem:[%s14037_s1 + $0x1480] ss:$16 sps:$4 sm:$0xff]  }
 0x142   : > { %6917 = vmatpush2.bf16.msra.mxu1 %v9530_v6  ;;  %6877 = vmatprep.subr.bf16.mxu0 %v9535_v7  ;;  %v9567_v6 = vld [vmem:[%s14037_s1 + $0x1680] ss:$16 sps:$4 sm:$0xff]   ;;  %v9572_v7 = vld [vmem:[%s14037_s1 + $0x1464] ss:$16 sps:$4 sm:$0xff]  }
 0x143   : > { %6918 = vmatprep.subr.bf16.mxu1 %v9538_v8  ;;  %v9575_v8 = vld [vmem:[%s14037_s1 + $0x1664] ss:$16 sps:$4 sm:$0xff]  }
 0x145   : > { %6878 = vmatpush2.bf16.msra.mxu0 %v9533_v10  ;;  %v9573_v10 = vld [vmem:[%s14037_s1 + $0x1660] ss:$16 sps:$4 sm:$0xff]  }
 0x146   : > { %6919 = vmatpush2.bf16.msra.mxu1 %v9536_v11  ;;  %6879 = vmatprep.subr.bf16.mxu0 %v9541_v12  ;;  %v9578_v11 = vld [vmem:[%s14037_s1 + $0x1444] ss:$16 sps:$4 sm:$0xff]  }
 0x147   : > { %6920 = vmatprep.subr.bf16.mxu1 %v9544_v13  ;;  %v9581_v12 = vld [vmem:[%s14037_s1 + $0x1644] ss:$16 sps:$4 sm:$0xff]   ;;  %v9576_v13 = vld [vmem:[%s14037_s1 + $0x1440] ss:$16 sps:$4 sm:$0xff]  }
 0x149   : > { %6880 = vmatpush2.bf16.msra.mxu0 %v9539_v15  ;;  %v9584_v15 = vld [vmem:[%s14037_s1 + $0x1424] ss:$16 sps:$4 sm:$0xff]  }
 0x14a   : > { %6921 = vmatpush2.bf16.msra.mxu1 %v9542_v16  ;;  %6931 = vmatprep.subr.bf16.mxu0 %v9548_v17  ;;  %v9587_v16 = vld [vmem:[%s14037_s1 + $0x1624] ss:$16 sps:$4 sm:$0xff]   ;;  %v9582_v17 = vld [vmem:[%s14037_s1 + $0x1420] ss:$16 sps:$4 sm:$0xff]  }
 0x14b   : > { %6972 = vmatprep.subr.bf16.mxu1 %v9551_v18  ;;  %v9585_v18 = vld [vmem:[%s14037_s1 + $0x1620] ss:$16 sps:$4 sm:$0xff]  }
 0x14c   : > { %v6637_v36 = vpop.f32.mrf.mxu0  ;;  %6882 = vmatmul.mubr.bf16.vlgmr.msra.gmra.mxu0 %v11523_v21 }
 0x14d   : > { %v6678_v37 = vpop.f32.mrf.mxu1  ;;  %6923 = vmatmul.mubr.bf16.vlgmr.msra.gmra.mxu1 %v11526_v22  ;;  %v6638_v38 = vadd.f32 %v6637_v36, %v11562_v50  ;;  %6932 = vmatpush1.bf16.msra.mxu0 %v9546_v19  ;;  %v9558_v50 = vld [vmem:[%s14037_s1 + $0x14a0] ss:$16 sps:$4 sm:$0xff]   ;;  %v9590_v19 = vld [vmem:[%s14037_s1 + $0x1404] ss:$16 sps:$4 sm:$0xff]  }
 0x14e   : > { %6973 = vmatpush1.bf16.msra.mxu1 %v9549_v20  ;;  %v6639_v41 = vpop.f32.mrf.mxu0  ;;  %6933 = vmatprep.subr.bf16.mxu0 %v9554_v25  ;;  %v9593_v20 = vld [vmem:[%s14037_s1 + $0x1604] ss:$16 sps:$4 sm:$0xff]   ;;  %v9588_v25 = vld [vmem:[%s14037_s1 + $0x1400] ss:$16 sps:$4 sm:$0xff]  }
 0x14f   : > { %v6680_v43 = vpop.f32.mrf.mxu1  ;;  %6974 = vmatprep.subr.bf16.mxu1 %v9557_v26  ;;  %v11778_v51 = vadd.f32 %v6678_v37, %v6638_v38  ;;  %v6640_v52 = vadd.f32 %v6639_v41, %v11572_v61  ;;  %6963 = vmatprep.mubr.bf16.mxu0 %v11763_v32  ;;  %v9591_v26 = vld [vmem:[%s14037_s1 + $0x1600] ss:$16 sps:$4 sm:$0xff]   ;;  %v9602_v38 = vld [vmem:[%s14037_s1 + $0x15c4] ss:$16 sps:$4 sm:$0xff]  }
 0x150   : > { %7004 = vmatprep.mubr.bf16.mxu1 %v11767_v33  ;;  %v6641_v57 = vpop.f32.mrf.mxu0  ;;  %v9594_v36 = vld [vmem:[%s14037_s1 + $0x15e0] ss:$16 sps:$4 sm:$0xff]   ;;  %v9605_v41 = vld [vmem:[%s14037_s1 + $0x17c4] ss:$16 sps:$4 sm:$0xff]  }
 0x151   : > { %v6682_v58 = vpop.f32.mrf.mxu1  ;;  %v11789_v63 = vadd.f32 %v6680_v43, %v6640_v52  ;;  %6934 = vmatpush1.bf16.msra.mxu0 %v9552_v27  ;;  %v9596_v27 = vld [vmem:[%s14037_s1 + $0x15e4] ss:$16 sps:$4 sm:$0xff]   ;;  %v9597_v37 = vld [vmem:[%s14037_s1 + $0x17e0] ss:$16 sps:$4 sm:$0xff]  }
 0x152   : > { %6975 = vmatpush1.bf16.msra.mxu1 %v9555_v28  ;;  %v6642_v2 = vpop.f32.mrf.mxu0  ;;  %6935 = vmatprep.subr.bf16.mxu0 %v9560_v46  ;;  %v9599_v28 = vld [vmem:[%s14037_s1 + $0x17e4] ss:$16 sps:$4 sm:$0xff]   ;;  %v9600_v43 = vld [vmem:[%s14037_s1 + $0x15c0] ss:$16 sps:$4 sm:$0xff]  }
 0x153   : > { %v6683_v61 = vpop.f32.mrf.mxu1  ;;  %6976 = vmatprep.subr.bf16.mxu1 %v9563_v47  ;;  %v9603_v46 = vld [vmem:[%s14037_s1 + $0x17c0] ss:$16 sps:$4 sm:$0xff]   ;;  %v9608_v47 = vld [vmem:[%s14037_s1 + $0x15a4] ss:$16 sps:$4 sm:$0xff]  }
 0x154   : > { %v9611_v52 = vld [vmem:[%s14037_s1 + $0x17a4] ss:$16 sps:$4 sm:$0xff]   ;;  %v9612_v2 = vld [vmem:[%s14037_s1 + $0x1580] ss:$16 sps:$4 sm:$0xff]  }
 0x155   : > { %6936 = vmatpush1.bf16.msra.mxu0 %v9558_v50  ;;  %v9606_v50 = vld [vmem:[%s14037_s1 + $0x15a0] ss:$16 sps:$4 sm:$0xff]   ;;  %v9614_v57 = vld [vmem:[%s14037_s1 + $0x1584] ss:$16 sps:$4 sm:$0xff]  }
 0x156   : > { %6977 = vmatpush1.bf16.msra.mxu1 %v9561_v53  ;;  %6937 = vmatprep.subr.bf16.mxu0 %v9566_v3  ;;  %v9609_v53 = vld [vmem:[%s14037_s1 + $0x17a0] ss:$16 sps:$4 sm:$0xff]   ;;  %v9617_v58 = vld [vmem:[%s14037_s1 + $0x1784] ss:$16 sps:$4 sm:$0xff]  }
 0x157   : > { %6978 = vmatprep.subr.bf16.mxu1 %v9569_v4  ;;  %v9615_v61 = vld [vmem:[%s14037_s1 + $0x1780] ss:$16 sps:$4 sm:$0xff]   ;;  %v9620_v3 = vld [vmem:[%s14037_s1 + $0x1564] ss:$16 sps:$4 sm:$0xff]  }
 0x158   : > { %v9623_v4 = vld [vmem:[%s14037_s1 + $0x1764] ss:$16 sps:$4 sm:$0xff]  }
 0x159   : > { %6938 = vmatpush1.bf16.msra.mxu0 %v9564_v5  ;;  %v9618_v5 = vld [vmem:[%s14037_s1 + $0x1560] ss:$16 sps:$4 sm:$0xff]  }
 0x15a   : > { %6979 = vmatpush1.bf16.msra.mxu1 %v9567_v6  ;;  %6939 = vmatprep.subr.bf16.mxu0 %v9572_v7  ;;  %v9621_v6 = vld [vmem:[%s14037_s1 + $0x1760] ss:$16 sps:$4 sm:$0xff]   ;;  %v9626_v7 = vld [vmem:[%s14037_s1 + $0x1544] ss:$16 sps:$4 sm:$0xff]  }
 0x15b   : > { %6980 = vmatprep.subr.bf16.mxu1 %v9575_v8  ;;  %v9629_v8 = vld [vmem:[%s14037_s1 + $0x1744] ss:$16 sps:$4 sm:$0xff]  }
 0x15d   : > { %6940 = vmatpush1.bf16.msra.mxu0 %v9570_v9  ;;  %v9624_v9 = vld [vmem:[%s14037_s1 + $0x1540] ss:$16 sps:$4 sm:$0xff]  }
 0x15e   : > { %6981 = vmatpush1.bf16.msra.mxu1 %v9573_v10  ;;  %6941 = vmatprep.subr.bf16.mxu0 %v9578_v11  ;;  %v9627_v10 = vld [vmem:[%s14037_s1 + $0x1740] ss:$16 sps:$4 sm:$0xff]   ;;  %v9632_v11 = vld [vmem:[%s14037_s1 + $0x1524] ss:$16 sps:$4 sm:$0xff]  }
 0x15f   : > { %6982 = vmatprep.subr.bf16.mxu1 %v9581_v12  ;;  %v9635_v12 = vld [vmem:[%s14037_s1 + $0x1724] ss:$16 sps:$4 sm:$0xff]  }
 0x161   : > { %6942 = vmatpush1.bf16.msra.mxu0 %v9576_v13  ;;  %v177_v13 = vld [vmem:[%s10795_s30 + $0x30] sm:$0xff] }
 0x162   : > { %6983 = vmatpush1.bf16.msra.mxu1 %v9579_v14  ;;  %6943 = vmatprep.subr.bf16.mxu0 %v9584_v15  ;;  %v9630_v14 = vld [vmem:[%s14037_s1 + $0x1520] ss:$16 sps:$4 sm:$0xff]  }
 0x163   : > { %6984 = vmatprep.subr.bf16.mxu1 %v9587_v16  ;;  %v9633_v15 = vld [vmem:[%s14037_s1 + $0x1720] ss:$16 sps:$4 sm:$0xff]   ;;  %v9638_v16 = vld [vmem:[%s14037_s1 + $0x1504] ss:$16 sps:$4 sm:$0xff]  }
 0x165   : > { %6944 = vmatpush1.bf16.msra.mxu0 %v9582_v17  ;;  %v9641_v17 = vld [vmem:[%s14037_s1 + $0x1704] ss:$16 sps:$4 sm:$0xff]  }
 0x166   : > { %6985 = vmatpush1.bf16.msra.mxu1 %v9585_v18  ;;  %6945 = vmatprep.subr.bf16.mxu0 %v9590_v19  ;;  %v1335_v18 = vcombine.high %v177_v13, %v177_v13  ;;  %v9636_v19 = vld [vmem:[%s14037_s1 + $0x1500] ss:$16 sps:$4 sm:$0xff]  }
 0x167   : > { %6986 = vmatprep.subr.bf16.mxu1 %v9593_v20  ;;  %v9639_v20 = vld [vmem:[%s14037_s1 + $0x1700] ss:$16 sps:$4 sm:$0xff]  }
 0x169   : > { %6946 = vmatpush1.bf16.msra.mxu0 %v9588_v25  ;;  %v9645_v25 = vld [vmem:[%s14037_s1 + $0x18e4] ss:$16 sps:$4 sm:$0xff]  }
 0x16a   : > { %6987 = vmatpush1.bf16.msra.mxu1 %v9591_v26  ;;  %6947 = vmatprep.subr.bf16.mxu0 %v9596_v27  ;;  %v9648_v26 = vld [vmem:[%s14037_s1 + $0x1ae4] ss:$16 sps:$4 sm:$0xff]   ;;  %v9643_v27 = vld [vmem:[%s14037_s1 + $0x18e0] ss:$16 sps:$4 sm:$0xff]  }
 0x16b   : > { %6988 = vmatprep.subr.bf16.mxu1 %v9599_v28  ;;  %v9646_v28 = vld [vmem:[%s14037_s1 + $0x1ae0] ss:$16 sps:$4 sm:$0xff]  }
 0x16d   : > { %6948 = vmatpush2.bf16.msra.mxu0 %v9594_v36  ;;  %v11961_v36 = vrot.slane %v177_v13, %v10798_v49  ;;  %v9661_v13 = vld [vmem:[%s14037_s1 + $0x1880] ss:$16 sps:$4 sm:$0xff]  }
 0x16e   : > { %6989 = vmatpush2.bf16.msra.mxu1 %v9597_v37  ;;  %6949 = vmatprep.subr.bf16.mxu0 %v9602_v38  ;;  %v11964_v37 = vrot.slane %v1335_v18, %v10798_v49  ;;  %v9651_v38 = vld [vmem:[%s14037_s1 + $0x18c4] ss:$16 sps:$4 sm:$0xff]   ;;  %v9670_v18 = vld [vmem:[%s14037_s1 + $0x1a60] ss:$16 sps:$4 sm:$0xff]  }
 0x16f   : > { %6990 = vmatprep.subr.bf16.mxu1 %v9605_v41  ;;  %v9654_v41 = vld [vmem:[%s14037_s1 + $0x1ac4] ss:$16 sps:$4 sm:$0xff]  }
 0x171   : > { %6950 = vmatpush2.bf16.msra.mxu0 %v9600_v43  ;;  %v9649_v43 = vld [vmem:[%s14037_s1 + $0x18c0] ss:$16 sps:$4 sm:$0xff]  }
 0x172   : > { %6991 = vmatpush2.bf16.msra.mxu1 %v9603_v46  ;;  %6951 = vmatprep.subr.bf16.mxu0 %v9608_v47  ;;  %v9652_v46 = vld [vmem:[%s14037_s1 + $0x1ac0] ss:$16 sps:$4 sm:$0xff]   ;;  %v11980_v47 = vcombine.high %v11961_v36, %v11961_v36 }
 0x173   : > { %6992 = vmatprep.subr.bf16.mxu1 %v9611_v52  ;;  %v11984_v52 = vcombine.high %v11964_v37, %v11964_v37 }
 0x175   : > { %6952 = vmatpush2.bf16.msra.mxu0 %v9606_v50 }
 0x176   : > { %6993 = vmatpush2.bf16.msra.mxu1 %v9609_v53  ;;  %6953 = vmatprep.subr.bf16.mxu0 %v9614_v57 }
 0x177   : > { %6994 = vmatprep.subr.bf16.mxu1 %v9617_v58 }
 0x179   : > { %6954 = vmatpush2.bf16.msra.mxu0 %v9612_v2 }
 0x17a   : > { %6995 = vmatpush2.bf16.msra.mxu1 %v9615_v61  ;;  %6955 = vmatprep.subr.bf16.mxu0 %v9620_v3  ;;  %v9657_v61 = vld [vmem:[%s14037_s1 + $0x18a4] ss:$16 sps:$4 sm:$0xff]  }
 0x17b   : > { %6996 = vmatprep.subr.bf16.mxu1 %v9623_v4  ;;  %v9660_v3 = vld [vmem:[%s14037_s1 + $0x1aa4] ss:$16 sps:$4 sm:$0xff]  }
 0x17d   : > { %6956 = vmatpush2.bf16.msra.mxu0 %v9618_v5 }
 0x17e   : > { %6997 = vmatpush2.bf16.msra.mxu1 %v9621_v6  ;;  %6957 = vmatprep.subr.bf16.mxu0 %v9626_v7  ;;  %v9658_v6 = vld [vmem:[%s14037_s1 + $0x1aa0] ss:$16 sps:$4 sm:$0xff]  }
 0x17f   : > { %6998 = vmatprep.subr.bf16.mxu1 %v9629_v8 }
 0x181   : > { %6958 = vmatpush2.bf16.msra.mxu0 %v9624_v9 }
 0x182   : > { %6999 = vmatpush2.bf16.msra.mxu1 %v9627_v10  ;;  %6959 = vmatprep.subr.bf16.mxu0 %v9632_v11  ;;  %v9663_v11 = vld [vmem:[%s14037_s1 + $0x1884] ss:$16 sps:$4 sm:$0xff]  }
 0x183   : > { %7000 = vmatprep.subr.bf16.mxu1 %v9635_v12  ;;  %v9666_v12 = vld [vmem:[%s14037_s1 + $0x1a84] ss:$16 sps:$4 sm:$0xff]  }
 0x185   : > { %6960 = vmatpush2.bf16.msra.mxu0 %v9630_v14  ;;  %v9664_v14 = vld [vmem:[%s14037_s1 + $0x1a80] ss:$16 sps:$4 sm:$0xff]  }
 0x186   : > { %7001 = vmatpush2.bf16.msra.mxu1 %v9633_v15  ;;  %6961 = vmatprep.subr.bf16.mxu0 %v9638_v16  ;;  %v9669_v15 = vld [vmem:[%s14037_s1 + $0x1864] ss:$16 sps:$4 sm:$0xff]  }
 0x187   : > { %7002 = vmatprep.subr.bf16.mxu1 %v9641_v17  ;;  %v9672_v16 = vld [vmem:[%s14037_s1 + $0x1a64] ss:$16 sps:$4 sm:$0xff]   ;;  %v9667_v17 = vld [vmem:[%s14037_s1 + $0x1860] ss:$16 sps:$4 sm:$0xff]  }
 0x189   : > { %6962 = vmatpush2.bf16.msra.mxu0 %v9636_v19  ;;  %v9675_v19 = vld [vmem:[%s14037_s1 + $0x1844] ss:$16 sps:$4 sm:$0xff]  }
 0x18a   : > { %7003 = vmatpush2.bf16.msra.mxu1 %v9639_v20  ;;  %7013 = vmatprep.subr.bf16.mxu0 %v9645_v25  ;;  %v9678_v20 = vld [vmem:[%s14037_s1 + $0x1a44] ss:$16 sps:$4 sm:$0xff]   ;;  %v9673_v25 = vld [vmem:[%s14037_s1 + $0x1840] ss:$16 sps:$4 sm:$0xff]  }
 0x18b   : > { %7054 = vmatprep.subr.bf16.mxu1 %v9648_v26  ;;  %v9676_v26 = vld [vmem:[%s14037_s1 + $0x1a40] ss:$16 sps:$4 sm:$0xff]  }
 0x18c   : > { %v6719_v50 = vpop.f32.mrf.mxu0  ;;  %6964 = vmatmul.mubr.bf16.vlgmr.msra.gmra.mxu0 %v11744_v23 }
 0x18d   : > { %v6760_v53 = vpop.f32.mrf.mxu1  ;;  %7005 = vmatmul.mubr.bf16.vlgmr.msra.gmra.mxu1 %v11747_v24  ;;  %v6720_v57 = vadd.f32 %v6719_v50, %v11778_v51  ;;  %7014 = vmatpush1.bf16.msra.mxu0 %v9643_v27  ;;  %v9655_v51 = vld [vmem:[%s14037_s1 + $0x18a0] ss:$16 sps:$4 sm:$0xff]   ;;  %v9681_v27 = vld [vmem:[%s14037_s1 + $0x1824] ss:$16 sps:$4 sm:$0xff]  }
 0x18e   : > { %7055 = vmatpush1.bf16.msra.mxu1 %v9646_v28  ;;  %v6721_v58 = vpop.f32.mrf.mxu0  ;;  %7015 = vmatprep.subr.bf16.mxu0 %v9651_v38  ;;  %v9684_v28 = vld [vmem:[%s14037_s1 + $0x1a24] ss:$16 sps:$4 sm:$0xff]   ;;  %v9679_v38 = vld [vmem:[%s14037_s1 + $0x1820] ss:$16 sps:$4 sm:$0xff]  }
 0x18f   : > { %v6762_v2 = vpop.f32.mrf.mxu1  ;;  %7056 = vmatprep.subr.bf16.mxu1 %v9654_v41  ;;  %v11995_v4 = vadd.f32 %v6760_v53, %v6720_v57  ;;  %v6722_v5 = vadd.f32 %v6721_v58, %v11789_v63  ;;  %7045 = vmatprep.mubr.bf16.mxu0 %v11980_v47  ;;  %v9682_v41 = vld [vmem:[%s14037_s1 + $0x1a20] ss:$16 sps:$4 sm:$0xff]   ;;  %v9693_v57 = vld [vmem:[%s14037_s1 + $0x19e4] ss:$16 sps:$4 sm:$0xff]  }
 0x190   : > { %7086 = vmatprep.mubr.bf16.mxu1 %v11984_v52  ;;  %v6723_v7 = vpop.f32.mrf.mxu0  ;;  %v9685_v50 = vld [vmem:[%s14037_s1 + $0x1800] ss:$16 sps:$4 sm:$0xff]   ;;  %v9696_v58 = vld [vmem:[%s14037_s1 + $0x1be4] ss:$16 sps:$4 sm:$0xff]  }
 0x191   : > { %v6764_v8 = vpop.f32.mrf.mxu1  ;;  %v12006_v9 = vadd.f32 %v6762_v2, %v6722_v5  ;;  %7016 = vmatpush1.bf16.msra.mxu0 %v9649_v43  ;;  %v9687_v43 = vld [vmem:[%s14037_s1 + $0x1804] ss:$16 sps:$4 sm:$0xff]   ;;  %v9688_v53 = vld [vmem:[%s14037_s1 + $0x1a00] ss:$16 sps:$4 sm:$0xff]  }
 0x192   : > { %7057 = vmatpush1.bf16.msra.mxu1 %v9652_v46  ;;  %v6724_v10 = vpop.f32.mrf.mxu0  ;;  %7017 = vmatprep.subr.bf16.mxu0 %v9657_v61  ;;  %v9690_v46 = vld [vmem:[%s14037_s1 + $0x1a04] ss:$16 sps:$4 sm:$0xff]   ;;  %v9691_v2 = vld [vmem:[%s14037_s1 + $0x19e0] ss:$16 sps:$4 sm:$0xff]  }
 0x193   : > { %v6765_v63 = vpop.f32.mrf.mxu1  ;;  %7058 = vmatprep.subr.bf16.mxu1 %v9660_v3  ;;  %v9694_v61 = vld [vmem:[%s14037_s1 + $0x1be0] ss:$16 sps:$4 sm:$0xff]   ;;  %v9699_v3 = vld [vmem:[%s14037_s1 + $0x19c4] ss:$16 sps:$4 sm:$0xff]  }
 0x194   : > { %v9702_v5 = vld [vmem:[%s14037_s1 + $0x1bc4] ss:$16 sps:$4 sm:$0xff]   ;;  %v9703_v10 = vld [vmem:[%s14037_s1 + $0x19a0] ss:$16 sps:$4 sm:$0xff]  }
 0x195   : > { %7018 = vmatpush1.bf16.msra.mxu0 %v9655_v51  ;;  %v9697_v51 = vld [vmem:[%s14037_s1 + $0x19c0] ss:$16 sps:$4 sm:$0xff]   ;;  %v9705_v7 = vld [vmem:[%s14037_s1 + $0x19a4] ss:$16 sps:$4 sm:$0xff]  }
 0x196   : > { %7059 = vmatpush1.bf16.msra.mxu1 %v9658_v6  ;;  %7019 = vmatprep.subr.bf16.mxu0 %v9663_v11  ;;  %v9700_v6 = vld [vmem:[%s14037_s1 + $0x1bc0] ss:$16 sps:$4 sm:$0xff]   ;;  %v9708_v8 = vld [vmem:[%s14037_s1 + $0x1ba4] ss:$16 sps:$4 sm:$0xff]  }
 0x197   : > { %7060 = vmatprep.subr.bf16.mxu1 %v9666_v12  ;;  %v9706_v63 = vld [vmem:[%s14037_s1 + $0x1ba0] ss:$16 sps:$4 sm:$0xff]   ;;  %v9711_v11 = vld [vmem:[%s14037_s1 + $0x1984] ss:$16 sps:$4 sm:$0xff]  }
 0x198   : > { %v9714_v12 = vld [vmem:[%s14037_s1 + $0x1b84] ss:$16 sps:$4 sm:$0xff]  }
 0x199   : > { %7020 = vmatpush1.bf16.msra.mxu0 %v9661_v13  ;;  %v9709_v13 = vld [vmem:[%s14037_s1 + $0x1980] ss:$16 sps:$4 sm:$0xff]  }
 0x19a   : > { %7061 = vmatpush1.bf16.msra.mxu1 %v9664_v14  ;;  %7021 = vmatprep.subr.bf16.mxu0 %v9669_v15  ;;  %v9712_v14 = vld [vmem:[%s14037_s1 + $0x1b80] ss:$16 sps:$4 sm:$0xff]   ;;  %v9717_v15 = vld [vmem:[%s14037_s1 + $0x1964] ss:$16 sps:$4 sm:$0xff]  }
 0x19b   : > { %7062 = vmatprep.subr.bf16.mxu1 %v9672_v16  ;;  %v9720_v16 = vld [vmem:[%s14037_s1 + $0x1b64] ss:$16 sps:$4 sm:$0xff]  }
 0x19d   : > { %7022 = vmatpush1.bf16.msra.mxu0 %v9667_v17  ;;  %v9715_v17 = vld [vmem:[%s14037_s1 + $0x1960] ss:$16 sps:$4 sm:$0xff]  }
 0x19e   : > { %7063 = vmatpush1.bf16.msra.mxu1 %v9670_v18  ;;  %7023 = vmatprep.subr.bf16.mxu0 %v9675_v19  ;;  %v9718_v18 = vld [vmem:[%s14037_s1 + $0x1b60] ss:$16 sps:$4 sm:$0xff]   ;;  %v9723_v19 = vld [vmem:[%s14037_s1 + $0x1944] ss:$16 sps:$4 sm:$0xff]  }
 0x19f   : > { %7064 = vmatprep.subr.bf16.mxu1 %v9678_v20  ;;  %v9726_v20 = vld [vmem:[%s14037_s1 + $0x1b44] ss:$16 sps:$4 sm:$0xff]  }
 0x1a1   : > { %7024 = vmatpush1.bf16.msra.mxu0 %v9673_v25  ;;  %v9721_v25 = vld [vmem:[%s14037_s1 + $0x1940] ss:$16 sps:$4 sm:$0xff]  }
 0x1a2   : > { %7065 = vmatpush1.bf16.msra.mxu1 %v9676_v26  ;;  %7025 = vmatprep.subr.bf16.mxu0 %v9681_v27  ;;  %v9724_v26 = vld [vmem:[%s14037_s1 + $0x1b40] ss:$16 sps:$4 sm:$0xff]   ;;  %v9729_v27 = vld [vmem:[%s14037_s1 + $0x1924] ss:$16 sps:$4 sm:$0xff]  }
 0x1a3   : > { %7066 = vmatprep.subr.bf16.mxu1 %v9684_v28  ;;  %v9732_v28 = vld [vmem:[%s14037_s1 + $0x1b24] ss:$16 sps:$4 sm:$0xff]  }
 0x1a5   : > { %7026 = vmatpush1.bf16.msra.mxu0 %v9679_v38  ;;  %v178_v38 = vld [vmem:[%s10795_s30 + $0x38] sm:$0xff] }
 0x1a6   : > { %7067 = vmatpush1.bf16.msra.mxu1 %v9682_v41  ;;  %7027 = vmatprep.subr.bf16.mxu0 %v9687_v43  ;;  %v9727_v41 = vld [vmem:[%s14037_s1 + $0x1920] ss:$16 sps:$4 sm:$0xff]  }
 0x1a7   : > { %7068 = vmatprep.subr.bf16.mxu1 %v9690_v46  ;;  %v9730_v43 = vld [vmem:[%s14037_s1 + $0x1b20] ss:$16 sps:$4 sm:$0xff]   ;;  %v9735_v46 = vld [vmem:[%s14037_s1 + $0x1904] ss:$16 sps:$4 sm:$0xff]  }
 0x1a9   : > { %7028 = vmatpush1.bf16.msra.mxu0 %v9685_v50  ;;  %v9738_v50 = vld [vmem:[%s14037_s1 + $0x1b04] ss:$16 sps:$4 sm:$0xff]  }
 0x1aa   : > { %7069 = vmatpush1.bf16.msra.mxu1 %v9688_v53  ;;  %7029 = vmatprep.subr.bf16.mxu0 %v9693_v57  ;;  %v1352_v53 = vcombine.high %v178_v38, %v178_v38  ;;  %v9733_v57 = vld [vmem:[%s14037_s1 + $0x1900] ss:$16 sps:$4 sm:$0xff]  }
 0x1ab   : > { %7070 = vmatprep.subr.bf16.mxu1 %v9696_v58  ;;  %v9736_v58 = vld [vmem:[%s14037_s1 + $0x1b00] ss:$16 sps:$4 sm:$0xff]  }
 0x1ad   : > { %7030 = vmatpush2.bf16.msra.mxu0 %v9691_v2  ;;  %v9742_v2 = vld [vmem:[%s14037_s1 + $0x1ce4] ss:$16 sps:$4 sm:$0xff]  }
 0x1ae   : > { %7071 = vmatpush2.bf16.msra.mxu1 %v9694_v61  ;;  %7031 = vmatprep.subr.bf16.mxu0 %v9699_v3  ;;  %v9745_v61 = vld [vmem:[%s14037_s1 + $0x1ee4] ss:$16 sps:$4 sm:$0xff]   ;;  %v9740_v3 = vld [vmem:[%s14037_s1 + $0x1ce0] ss:$16 sps:$4 sm:$0xff]  }
 0x1af   : > { %7072 = vmatprep.subr.bf16.mxu1 %v9702_v5  ;;  %v9743_v5 = vld [vmem:[%s14037_s1 + $0x1ee0] ss:$16 sps:$4 sm:$0xff]  }
 0x1b1   : > { %7032 = vmatpush2.bf16.msra.mxu0 %v9697_v51  ;;  %v12178_v51 = vrot.slane %v178_v38, %v10798_v49 }
 0x1b2   : > { %7073 = vmatpush2.bf16.msra.mxu1 %v9700_v6  ;;  %7033 = vmatprep.subr.bf16.mxu0 %v9705_v7  ;;  %v12181_v6 = vrot.slane %v1352_v53, %v10798_v49  ;;  %v9748_v7 = vld [vmem:[%s14037_s1 + $0x1cc4] ss:$16 sps:$4 sm:$0xff]   ;;  %v9761_v53 = vld [vmem:[%s14037_s1 + $0x1e80] ss:$16 sps:$4 sm:$0xff]  }
 0x1b3   : > { %7074 = vmatprep.subr.bf16.mxu1 %v9708_v8  ;;  %v9751_v8 = vld [vmem:[%s14037_s1 + $0x1ec4] ss:$16 sps:$4 sm:$0xff]  }
 0x1b5   : > { %7034 = vmatpush2.bf16.msra.mxu0 %v9703_v10  ;;  %v9746_v10 = vld [vmem:[%s14037_s1 + $0x1cc0] ss:$16 sps:$4 sm:$0xff]  }
 0x1b6   : > { %7075 = vmatpush2.bf16.msra.mxu1 %v9706_v63  ;;  %7035 = vmatprep.subr.bf16.mxu0 %v9711_v11  ;;  %v9749_v63 = vld [vmem:[%s14037_s1 + $0x1ec0] ss:$16 sps:$4 sm:$0xff]   ;;  %v12197_v11 = vcombine.high %v12178_v51, %v12178_v51 }
 0x1b7   : > { %7076 = vmatprep.subr.bf16.mxu1 %v9714_v12  ;;  %v12201_v12 = vcombine.high %v12181_v6, %v12181_v6 }
 0x1b9   : > { %7036 = vmatpush2.bf16.msra.mxu0 %v9709_v13 }
 0x1ba   : > { %7077 = vmatpush2.bf16.msra.mxu1 %v9712_v14  ;;  %7037 = vmatprep.subr.bf16.mxu0 %v9717_v15 }
 0x1bb   : > { %7078 = vmatprep.subr.bf16.mxu1 %v9720_v16 }
 0x1bd   : > { %7038 = vmatpush2.bf16.msra.mxu0 %v9715_v17 }
 0x1be   : > { %7079 = vmatpush2.bf16.msra.mxu1 %v9718_v18  ;;  %7039 = vmatprep.subr.bf16.mxu0 %v9723_v19  ;;  %v9754_v18 = vld [vmem:[%s14037_s1 + $0x1ca4] ss:$16 sps:$4 sm:$0xff]  }
 0x1bf   : > { %7080 = vmatprep.subr.bf16.mxu1 %v9726_v20  ;;  %v9757_v19 = vld [vmem:[%s14037_s1 + $0x1ea4] ss:$16 sps:$4 sm:$0xff]  }
 0x1c1   : > { %7040 = vmatpush2.bf16.msra.mxu0 %v9721_v25 }
 0x1c2   : > { %7081 = vmatpush2.bf16.msra.mxu1 %v9724_v26  ;;  %7041 = vmatprep.subr.bf16.mxu0 %v9729_v27  ;;  %v9755_v26 = vld [vmem:[%s14037_s1 + $0x1ea0] ss:$16 sps:$4 sm:$0xff]  }
 0x1c3   : > { %7082 = vmatprep.subr.bf16.mxu1 %v9732_v28 }
 0x1c5   : > { %7042 = vmatpush2.bf16.msra.mxu0 %v9727_v41 }
 0x1c6   : > { %7083 = vmatpush2.bf16.msra.mxu1 %v9730_v43  ;;  %7043 = vmatprep.subr.bf16.mxu0 %v9735_v46  ;;  %v9760_v43 = vld [vmem:[%s14037_s1 + $0x1c84] ss:$16 sps:$4 sm:$0xff]  }
 0x1c7   : > { %7084 = vmatprep.subr.bf16.mxu1 %v9738_v50  ;;  %v9763_v46 = vld [vmem:[%s14037_s1 + $0x1e84] ss:$16 sps:$4 sm:$0xff]   ;;  %v9758_v50 = vld [vmem:[%s14037_s1 + $0x1c80] ss:$16 sps:$4 sm:$0xff]  }
 0x1c9   : > { %7044 = vmatpush2.bf16.msra.mxu0 %v9733_v57  ;;  %v9766_v57 = vld [vmem:[%s14037_s1 + $0x1c64] ss:$16 sps:$4 sm:$0xff]  }
 0x1ca   : > { %7085 = vmatpush2.bf16.msra.mxu1 %v9736_v58  ;;  %7095 = vmatprep.subr.bf16.mxu0 %v9742_v2  ;;  %v9769_v58 = vld [vmem:[%s14037_s1 + $0x1e64] ss:$16 sps:$4 sm:$0xff]   ;;  %v9764_v2 = vld [vmem:[%s14037_s1 + $0x1c60] ss:$16 sps:$4 sm:$0xff]  }
 0x1cb   : > { %7136 = vmatprep.subr.bf16.mxu1 %v9745_v61  ;;  %v9767_v61 = vld [vmem:[%s14037_s1 + $0x1e60] ss:$16 sps:$4 sm:$0xff]  }
 0x1cc   : > { %v6801_v13 = vpop.f32.mrf.mxu0  ;;  %7046 = vmatmul.mubr.bf16.vlgmr.msra.gmra.mxu0 %v11961_v36 }
 0x1cd   : > { %v6842_v14 = vpop.f32.mrf.mxu1  ;;  %7087 = vmatmul.mubr.bf16.vlgmr.msra.gmra.mxu1 %v11964_v37  ;;  %v6802_v15 = vadd.f32 %v6801_v13, %v11995_v4  ;;  %7096 = vmatpush1.bf16.msra.mxu0 %v9740_v3  ;;  %v9752_v4 = vld [vmem:[%s14037_s1 + $0x1ca0] ss:$16 sps:$4 sm:$0xff]   ;;  %v9772_v3 = vld [vmem:[%s14037_s1 + $0x1c44] ss:$16 sps:$4 sm:$0xff]  }
 0x1ce   : > { %7137 = vmatpush1.bf16.msra.mxu1 %v9743_v5  ;;  %v6803_v16 = vpop.f32.mrf.mxu0  ;;  %7097 = vmatprep.subr.bf16.mxu0 %v9748_v7  ;;  %v9775_v5 = vld [vmem:[%s14037_s1 + $0x1e44] ss:$16 sps:$4 sm:$0xff]   ;;  %v9770_v7 = vld [vmem:[%s14037_s1 + $0x1c40] ss:$16 sps:$4 sm:$0xff]  }
 0x1cf   : > { %v6844_v17 = vpop.f32.mrf.mxu1  ;;  %7138 = vmatprep.subr.bf16.mxu1 %v9751_v8  ;;  %v12212_v20 = vadd.f32 %v6842_v14, %v6802_v15  ;;  %v6804_v25 = vadd.f32 %v6803_v16, %v12006_v9  ;;  %7127 = vmatprep.mubr.bf16.mxu0 %v12197_v11  ;;  %v9773_v8 = vld [vmem:[%s14037_s1 + $0x1e40] ss:$16 sps:$4 sm:$0xff]   ;;  %v9784_v15 = vld [vmem:[%s14037_s1 + $0x1c04] ss:$16 sps:$4 sm:$0xff]  }
 0x1d0   : > { %7168 = vmatprep.mubr.bf16.mxu1 %v12201_v12  ;;  %v6805_v27 = vpop.f32.mrf.mxu0  ;;  %v9776_v13 = vld [vmem:[%s14037_s1 + $0x1c20] ss:$16 sps:$4 sm:$0xff]   ;;  %v9787_v16 = vld [vmem:[%s14037_s1 + $0x1e04] ss:$16 sps:$4 sm:$0xff]  }
 0x1d1   : > { %v6846_v28 = vpop.f32.mrf.mxu1  ;;  %v12223_v38 = vadd.f32 %v6844_v17, %v6804_v25  ;;  %7098 = vmatpush1.bf16.msra.mxu0 %v9746_v10  ;;  %v9778_v10 = vld [vmem:[%s14037_s1 + $0x1c24] ss:$16 sps:$4 sm:$0xff]   ;;  %v9779_v14 = vld [vmem:[%s14037_s1 + $0x1e20] ss:$16 sps:$4 sm:$0xff]  }
 0x1d2   : > { %7139 = vmatpush1.bf16.msra.mxu1 %v9749_v63  ;;  %v6806_v41 = vpop.f32.mrf.mxu0  ;;  %7099 = vmatprep.subr.bf16.mxu0 %v9754_v18  ;;  %v9781_v63 = vld [vmem:[%s14037_s1 + $0x1e24] ss:$16 sps:$4 sm:$0xff]   ;;  %v9782_v17 = vld [vmem:[%s14037_s1 + $0x1c00] ss:$16 sps:$4 sm:$0xff]  }
 0x1d3   : > { %v6847_v9 = vpop.f32.mrf.mxu1  ;;  %7140 = vmatprep.subr.bf16.mxu1 %v9757_v19  ;;  %v9785_v18 = vld [vmem:[%s14037_s1 + $0x1e00] ss:$16 sps:$4 sm:$0xff]   ;;  %v9790_v19 = vld [vmem:[%s14037_s1 + $0x1de4] ss:$16 sps:$4 sm:$0xff]  }
 0x1d4   : > { %v9793_v25 = vld [vmem:[%s14037_s1 + $0x1fe4] ss:$16 sps:$4 sm:$0xff]   ;;  %v9794_v41 = vld [vmem:[%s14037_s1 + $0x1dc0] ss:$16 sps:$4 sm:$0xff]  }
 0x1d5   : > { %7100 = vmatpush1.bf16.msra.mxu0 %v9752_v4  ;;  %v9788_v4 = vld [vmem:[%s14037_s1 + $0x1de0] ss:$16 sps:$4 sm:$0xff]   ;;  %v9796_v27 = vld [vmem:[%s14037_s1 + $0x1dc4] ss:$16 sps:$4 sm:$0xff]  }
 0x1d6   : > { %7141 = vmatpush1.bf16.msra.mxu1 %v9755_v26  ;;  %7101 = vmatprep.subr.bf16.mxu0 %v9760_v43  ;;  %v9791_v26 = vld [vmem:[%s14037_s1 + $0x1fe0] ss:$16 sps:$4 sm:$0xff]   ;;  %v9799_v28 = vld [vmem:[%s14037_s1 + $0x1fc4] ss:$16 sps:$4 sm:$0xff]  }
 0x1d7   : > { %7142 = vmatprep.subr.bf16.mxu1 %v9763_v46  ;;  %v9797_v9 = vld [vmem:[%s14037_s1 + $0x1fc0] ss:$16 sps:$4 sm:$0xff]   ;;  %v9802_v43 = vld [vmem:[%s14037_s1 + $0x1da4] ss:$16 sps:$4 sm:$0xff]  }
 0x1d8   : > { %v9805_v46 = vld [vmem:[%s14037_s1 + $0x1fa4] ss:$16 sps:$4 sm:$0xff]  }
 0x1d9   : > { %7102 = vmatpush1.bf16.msra.mxu0 %v9758_v50  ;;  %v9800_v50 = vld [vmem:[%s14037_s1 + $0x1da0] ss:$16 sps:$4 sm:$0xff]  }
 0x1da   : > { %7143 = vmatpush1.bf16.msra.mxu1 %v9761_v53  ;;  %7103 = vmatprep.subr.bf16.mxu0 %v9766_v57  ;;  %v9803_v53 = vld [vmem:[%s14037_s1 + $0x1fa0] ss:$16 sps:$4 sm:$0xff]   ;;  %v9808_v57 = vld [vmem:[%s14037_s1 + $0x1d84] ss:$16 sps:$4 sm:$0xff]  }
 0x1db   : > { %7144 = vmatprep.subr.bf16.mxu1 %v9769_v58  ;;  %v9811_v58 = vld [vmem:[%s14037_s1 + $0x1f84] ss:$16 sps:$4 sm:$0xff]  }
 0x1dd   : > { %7104 = vmatpush1.bf16.msra.mxu0 %v9764_v2  ;;  %v9806_v2 = vld [vmem:[%s14037_s1 + $0x1d80] ss:$16 sps:$4 sm:$0xff]  }
 0x1de   : > { %7145 = vmatpush1.bf16.msra.mxu1 %v9767_v61  ;;  %7105 = vmatprep.subr.bf16.mxu0 %v9772_v3  ;;  %v9809_v61 = vld [vmem:[%s14037_s1 + $0x1f80] ss:$16 sps:$4 sm:$0xff]   ;;  %v9814_v3 = vld [vmem:[%s14037_s1 + $0x1d64] ss:$16 sps:$4 sm:$0xff]  }
 0x1df   : > { %7146 = vmatprep.subr.bf16.mxu1 %v9775_v5  ;;  %v9817_v5 = vld [vmem:[%s14037_s1 + $0x1f64] ss:$16 sps:$4 sm:$0xff]  }
 0x1e1   : > { %7106 = vmatpush1.bf16.msra.mxu0 %v9770_v7  ;;  %v9812_v7 = vld [vmem:[%s14037_s1 + $0x1d60] ss:$16 sps:$4 sm:$0xff]  }
 0x1e2   : > { %7147 = vmatpush1.bf16.msra.mxu1 %v9773_v8  ;;  %7107 = vmatprep.subr.bf16.mxu0 %v9778_v10  ;;  %v9815_v8 = vld [vmem:[%s14037_s1 + $0x1f60] ss:$16 sps:$4 sm:$0xff]   ;;  %v9820_v10 = vld [vmem:[%s14037_s1 + $0x1d44] ss:$16 sps:$4 sm:$0xff]  }
 0x1e3   : > { %7148 = vmatprep.subr.bf16.mxu1 %v9781_v63  ;;  %v9823_v63 = vld [vmem:[%s14037_s1 + $0x1f44] ss:$16 sps:$4 sm:$0xff]  }
 0x1e5   : > { %7108 = vmatpush1.bf16.msra.mxu0 %v9776_v13  ;;  %v9818_v13 = vld [vmem:[%s14037_s1 + $0x1d40] ss:$16 sps:$4 sm:$0xff]  }
 0x1e6   : > { %7149 = vmatpush1.bf16.msra.mxu1 %v9779_v14  ;;  %7109 = vmatprep.subr.bf16.mxu0 %v9784_v15  ;;  %v9821_v14 = vld [vmem:[%s14037_s1 + $0x1f40] ss:$16 sps:$4 sm:$0xff]   ;;  %v9826_v15 = vld [vmem:[%s14037_s1 + $0x1d24] ss:$16 sps:$4 sm:$0xff]  }
 0x1e7   : > { %7150 = vmatprep.subr.bf16.mxu1 %v9787_v16  ;;  %v9829_v16 = vld [vmem:[%s14037_s1 + $0x1f24] ss:$16 sps:$4 sm:$0xff]  }
 0x1e9   : > { %7110 = vmatpush1.bf16.msra.mxu0 %v9782_v17  ;;  %v9824_v17 = vld [vmem:[%s14037_s1 + $0x1d20] ss:$16 sps:$4 sm:$0xff]  }
 0x1ea   : > { %7151 = vmatpush1.bf16.msra.mxu1 %v9785_v18  ;;  %7111 = vmatprep.subr.bf16.mxu0 %v9790_v19  ;;  %v9827_v18 = vld [vmem:[%s14037_s1 + $0x1f20] ss:$16 sps:$4 sm:$0xff]   ;;  %v9832_v19 = vld [vmem:[%s14037_s1 + $0x1d04] ss:$16 sps:$4 sm:$0xff]  }
 0x1eb   : > { %7152 = vmatprep.subr.bf16.mxu1 %v9793_v25  ;;  %v9835_v25 = vld [vmem:[%s14037_s1 + $0x1f04] ss:$16 sps:$4 sm:$0xff]  }
 0x1ed   : > { %7112 = vmatpush2.bf16.msra.mxu0 %v9788_v4  ;;  %v9830_v4 = vld [vmem:[%s14037_s1 + $0x1d00] ss:$16 sps:$4 sm:$0xff]  }
 0x1ee   : > { %7153 = vmatpush2.bf16.msra.mxu1 %v9791_v26  ;;  %7113 = vmatprep.subr.bf16.mxu0 %v9796_v27  ;;  %v9833_v26 = vld [vmem:[%s14037_s1 + $0x1f00] ss:$16 sps:$4 sm:$0xff]   ;;  %v9839_v27 = vld [vmem:[%s14037_s1 + $0xec] ss:$16 sps:$4 sm:$0xff]  }
 0x1ef   : > { %7154 = vmatprep.subr.bf16.mxu1 %v9799_v28  ;;  %v9842_v28 = vld [vmem:[%s14037_s1 + $0x2ec] ss:$16 sps:$4 sm:$0xff]  }
 0x1f1   : > { %7114 = vmatpush2.bf16.msra.mxu0 %v9794_v41  ;;  %v9837_v41 = vld [vmem:[%s14037_s1 + $0xe8] ss:$16 sps:$4 sm:$0xff]  }
 0x1f2   : > { %7155 = vmatpush2.bf16.msra.mxu1 %v9797_v9  ;;  %7115 = vmatprep.subr.bf16.mxu0 %v9802_v43  ;;  %v9840_v9 = vld [vmem:[%s14037_s1 + $0x2e8] ss:$16 sps:$4 sm:$0xff]   ;;  %v9845_v43 = vld [vmem:[%s14037_s1 + $0xcc] ss:$16 sps:$4 sm:$0xff]  }
 0x1f3   : > { %7156 = vmatprep.subr.bf16.mxu1 %v9805_v46  ;;  %v9848_v46 = vld [vmem:[%s14037_s1 + $0x2cc] ss:$16 sps:$4 sm:$0xff]  }
 0x1f5   : > { %7116 = vmatpush2.bf16.msra.mxu0 %v9800_v50  ;;  %v9843_v50 = vld [vmem:[%s14037_s1 + $0xc8] ss:$16 sps:$4 sm:$0xff]  }
 0x1f6   : > { %7157 = vmatpush2.bf16.msra.mxu1 %v9803_v53  ;;  %7117 = vmatprep.subr.bf16.mxu0 %v9808_v57  ;;  %v9846_v53 = vld [vmem:[%s14037_s1 + $0x2c8] ss:$16 sps:$4 sm:$0xff]  }
 0x1f7   : > { %7158 = vmatprep.subr.bf16.mxu1 %v9811_v58 }
 0x1f9   : > { %7118 = vmatpush2.bf16.msra.mxu0 %v9806_v2 }
 0x1fa   : > { %7159 = vmatpush2.bf16.msra.mxu1 %v9809_v61  ;;  %7119 = vmatprep.subr.bf16.mxu0 %v9814_v3 }
 0x1fb   : > { %7160 = vmatprep.subr.bf16.mxu1 %v9817_v5  ;;  %v9851_v5 = vld [vmem:[%s14037_s1 + $0xac] ss:$16 sps:$4 sm:$0xff]  }
 0x1fd   : > { %7120 = vmatpush2.bf16.msra.mxu0 %v9812_v7  ;;  %v9854_v7 = vld [vmem:[%s14037_s1 + $0x2ac] ss:$16 sps:$4 sm:$0xff]  }
 0x1fe   : > { %7161 = vmatpush2.bf16.msra.mxu1 %v9815_v8  ;;  %7121 = vmatprep.subr.bf16.mxu0 %v9820_v10 }
 0x1ff   : > { %7162 = vmatprep.subr.bf16.mxu1 %v9823_v63  ;;  %v9852_v63 = vld [vmem:[%s14037_s1 + $0x2a8] ss:$16 sps:$4 sm:$0xff]  }
 0x201   : > { %7122 = vmatpush2.bf16.msra.mxu0 %v9818_v13 }
 0x202   : > { %7163 = vmatpush2.bf16.msra.mxu1 %v9821_v14  ;;  %7123 = vmatprep.subr.bf16.mxu0 %v9826_v15 }
 0x203   : > { %7164 = vmatprep.subr.bf16.mxu1 %v9829_v16 }
 0x205   : > { %7124 = vmatpush2.bf16.msra.mxu0 %v9824_v17  ;;  %v9857_v17 = vld [vmem:[%s14037_s1 + $0x8c] ss:$16 sps:$4 sm:$0xff]  }
 0x206   : > { %7165 = vmatpush2.bf16.msra.mxu1 %v9827_v18  ;;  %7125 = vmatprep.subr.bf16.mxu0 %v9832_v19  ;;  %v9858_v18 = vld [vmem:[%s14037_s1 + $0x288] ss:$16 sps:$4 sm:$0xff]   ;;  %v9863_v19 = vld [vmem:[%s14037_s1 + $0x6c] ss:$16 sps:$4 sm:$0xff]  }
 0x207   : > { %7166 = vmatprep.subr.bf16.mxu1 %v9835_v25  ;;  %v9866_v25 = vld [vmem:[%s14037_s1 + $0x26c] ss:$16 sps:$4 sm:$0xff]  }
 0x209   : > { %7126 = vmatpush2.bf16.msra.mxu0 %v9830_v4  ;;  %v9861_v4 = vld [vmem:[%s14037_s1 + $0x68] ss:$16 sps:$4 sm:$0xff]  }
 0x20a   : > { %7167 = vmatpush2.bf16.msra.mxu1 %v9833_v26  ;;  %7177 = vmatprep.subr.bf16.mxu0 %v9839_v27  ;;  %v9864_v26 = vld [vmem:[%s14037_s1 + $0x268] ss:$16 sps:$4 sm:$0xff]   ;;  %v9869_v27 = vld [vmem:[%s14037_s1 + $0x4c] ss:$16 sps:$4 sm:$0xff]  }
 0x20b   : > { %7218 = vmatprep.subr.bf16.mxu1 %v9842_v28  ;;  %v9872_v28 = vld [vmem:[%s14037_s1 + $0x24c] ss:$16 sps:$4 sm:$0xff]  }
 0x20c   : > { %v6883_v57 = vpop.f32.mrf.mxu0  ;;  %7128 = vmatmul.mubr.bf16.vlgmr.msra.gmra.mxu0 %v12178_v51 }
 0x20d   : > { %v6924_v58 = vpop.f32.mrf.mxu1  ;;  %7169 = vmatmul.mubr.bf16.vlgmr.msra.gmra.mxu1 %v12181_v6  ;;  %v6884_v2 = vadd.f32 %v6883_v57, %v12212_v20  ;;  %7178 = vmatpush1.bf16.msra.mxu0 %v9837_v41  ;;  %v9849_v20 = vld [vmem:[%s14037_s1 + $0xa8] ss:$16 sps:$4 sm:$0xff]   ;;  %v9881_v57 = vld [vmem:[%s14037_s1 + $0xc] ss:$16 sps:$4 sm:$0xff]  }
 0x20e   : > { %7219 = vmatpush1.bf16.msra.mxu1 %v9840_v9  ;;  %v6885_v61 = vpop.f32.mrf.mxu0  ;;  %7179 = vmatprep.subr.bf16.mxu0 %v9845_v43  ;;  %v9867_v41 = vld [vmem:[%s14037_s1 + $0x48] ss:$16 sps:$4 sm:$0xff]   ;;  %v9875_v43 = vld [vmem:[%s14037_s1 + $0x2c] ss:$16 sps:$4 sm:$0xff]  }
 0x20f   : > { %v6926_v3 = vpop.f32.mrf.mxu1  ;;  %7220 = vmatprep.subr.bf16.mxu1 %v9848_v46  ;;  %v12414_v8 = vadd.f32 %v6924_v58, %v6884_v2  ;;  %v6886_v10 = vadd.f32 %v6885_v61, %v12223_v38  ;;  %7209 = vmatprep.mubr.bf16.mxu0 %v10824_v59  ;;  %v9860_v59 = vld [vmem:[%s14037_s1 + $0x28c] ss:$16 sps:$4 sm:$0xff]   ;;  %v9870_v9 = vld [vmem:[%s14037_s1 + $0x248] ss:$16 sps:$4 sm:$0xff]  }
 0x210   : > { %7250 = vmatprep.mubr.bf16.mxu1 %v10835_v62  ;;  %v6887_v13 = vpop.f32.mrf.mxu0  ;;  %v9855_v62 = vld [vmem:[%s14037_s1 + $0x88] ss:$16 sps:$4 sm:$0xff]   ;;  %v9878_v46 = vld [vmem:[%s14037_s1 + $0x22c] ss:$16 sps:$4 sm:$0xff]  }
 0x211   : > { %v6928_v14 = vpop.f32.mrf.mxu1  ;;  %v12425_v15 = vadd.f32 %v6926_v3, %v6886_v10  ;;  %7180 = vmatpush1.bf16.msra.mxu0 %v9843_v50  ;;  %v9873_v50 = vld [vmem:[%s14037_s1 + $0x28] ss:$16 sps:$4 sm:$0xff]   ;;  %v9884_v58 = vld [vmem:[%s14037_s1 + $0x20c] ss:$16 sps:$4 sm:$0xff]  }
 0x212   : > { %7221 = vmatpush1.bf16.msra.mxu1 %v9846_v53  ;;  %v6888_v16 = vpop.f32.mrf.mxu0  ;;  %7181 = vmatprep.subr.bf16.mxu0 %v9851_v5  ;;  %v9876_v53 = vld [vmem:[%s14037_s1 + $0x228] ss:$16 sps:$4 sm:$0xff]   ;;  %v9887_v3 = vld [vmem:[%s14037_s1 + $0x1ec] ss:$16 sps:$4 sm:$0xff]  }
 0x213   : > { %v6929_v38 = vpop.f32.mrf.mxu1  ;;  %7222 = vmatprep.subr.bf16.mxu1 %v9854_v7  ;;  %v9879_v2 = vld [vmem:[%s14037_s1 + $0x8] ss:$16 sps:$4 sm:$0xff]   ;;  %v9890_v5 = vld [vmem:[%s14037_s1 + $0x3ec] ss:$16 sps:$4 sm:$0xff]  }
 0x214   : > { %v9882_v61 = vld [vmem:[%s14037_s1 + $0x208] ss:$16 sps:$4 sm:$0xff]   ;;  %v9899_v16 = vld [vmem:[%s14037_s1 + $0x1ac] ss:$16 sps:$4 sm:$0xff]  }
 0x215   : > { %7182 = vmatpush1.bf16.msra.mxu0 %v9849_v20  ;;  %v9885_v7 = vld [vmem:[%s14037_s1 + $0x1e8] ss:$16 sps:$4 sm:$0xff]   ;;  %v9893_v20 = vld [vmem:[%s14037_s1 + $0x1cc] ss:$16 sps:$4 sm:$0xff]  }
 0x216   : > { %7223 = vmatpush1.bf16.msra.mxu1 %v9852_v63  ;;  %7183 = vmatprep.subr.bf16.mxu0 %v9857_v17  ;;  %v9888_v10 = vld [vmem:[%s14037_s1 + $0x3e8] ss:$16 sps:$4 sm:$0xff]   ;;  %v9896_v63 = vld [vmem:[%s14037_s1 + $0x3cc] ss:$16 sps:$4 sm:$0xff]  }
 0x217   : > { %7224 = vmatprep.subr.bf16.mxu1 %v9860_v59  ;;  %v9891_v13 = vld [vmem:[%s14037_s1 + $0x1c8] ss:$16 sps:$4 sm:$0xff]   ;;  %v9902_v38 = vld [vmem:[%s14037_s1 + $0x3ac] ss:$16 sps:$4 sm:$0xff]  }
 0x218   : > { %v9894_v14 = vld [vmem:[%s14037_s1 + $0x3c8] ss:$16 sps:$4 sm:$0xff]  }
 0x219   : > { %7184 = vmatpush1.bf16.msra.mxu0 %v9855_v62  ;;  %v9897_v17 = vld [vmem:[%s14037_s1 + $0x1a8] ss:$16 sps:$4 sm:$0xff]   ;;  %v9905_v62 = vld [vmem:[%s14037_s1 + $0x18c] ss:$16 sps:$4 sm:$0xff]  }
 0x21a   : > { %7225 = vmatpush1.bf16.msra.mxu1 %v9858_v18  ;;  %7185 = vmatprep.subr.bf16.mxu0 %v9863_v19  ;;  %v9900_v59 = vld [vmem:[%s14037_s1 + $0x3a8] ss:$16 sps:$4 sm:$0xff]   ;;  %v9908_v18 = vld [vmem:[%s14037_s1 + $0x38c] ss:$16 sps:$4 sm:$0xff]  }
 0x21b   : > { %7226 = vmatprep.subr.bf16.mxu1 %v9866_v25  ;;  %v9903_v19 = vld [vmem:[%s14037_s1 + $0x188] ss:$16 sps:$4 sm:$0xff]  }
 0x21c   : > { %v9906_v25 = vld [vmem:[%s14037_s1 + $0x388] ss:$16 sps:$4 sm:$0xff]  }
 0x21d   : > { %7186 = vmatpush1.bf16.msra.mxu0 %v9861_v4  ;;  %v9911_v4 = vld [vmem:[%s14037_s1 + $0x16c] ss:$16 sps:$4 sm:$0xff]  }
 0x21e   : > { %7227 = vmatpush1.bf16.msra.mxu1 %v9864_v26  ;;  %7187 = vmatprep.subr.bf16.mxu0 %v9869_v27  ;;  %v9914_v26 = vld [vmem:[%s14037_s1 + $0x36c] ss:$16 sps:$4 sm:$0xff]   ;;  %v9909_v27 = vld [vmem:[%s14037_s1 + $0x168] ss:$16 sps:$4 sm:$0xff]  }
 0x21f   : > { %7228 = vmatprep.subr.bf16.mxu1 %v9872_v28  ;;  %v9912_v28 = vld [vmem:[%s14037_s1 + $0x368] ss:$16 sps:$4 sm:$0xff]  }
 0x221   : > { %7188 = vmatpush1.bf16.msra.mxu0 %v9867_v41  ;;  %v9917_v41 = vld [vmem:[%s14037_s1 + $0x14c] ss:$16 sps:$4 sm:$0xff]  }
 0x222   : > { %7229 = vmatpush1.bf16.msra.mxu1 %v9870_v9  ;;  %7189 = vmatprep.subr.bf16.mxu0 %v9875_v43  ;;  %v9920_v9 = vld [vmem:[%s14037_s1 + $0x34c] ss:$16 sps:$4 sm:$0xff]   ;;  %v9915_v43 = vld [vmem:[%s14037_s1 + $0x148] ss:$16 sps:$4 sm:$0xff]  }
 0x223   : > { %7230 = vmatprep.subr.bf16.mxu1 %v9878_v46  ;;  %v9918_v46 = vld [vmem:[%s14037_s1 + $0x348] ss:$16 sps:$4 sm:$0xff]  }
 0x225   : > { %7190 = vmatpush1.bf16.msra.mxu0 %v9873_v50  ;;  %v9923_v50 = vld [vmem:[%s14037_s1 + $0x12c] ss:$16 sps:$4 sm:$0xff]  }
 0x226   : > { %7231 = vmatpush1.bf16.msra.mxu1 %v9876_v53  ;;  %7191 = vmatprep.subr.bf16.mxu0 %v9881_v57  ;;  %v9926_v53 = vld [vmem:[%s14037_s1 + $0x32c] ss:$16 sps:$4 sm:$0xff]   ;;  %v9921_v57 = vld [vmem:[%s14037_s1 + $0x128] ss:$16 sps:$4 sm:$0xff]  }
 0x227   : > { %7232 = vmatprep.subr.bf16.mxu1 %v9884_v58  ;;  %v9924_v58 = vld [vmem:[%s14037_s1 + $0x328] ss:$16 sps:$4 sm:$0xff]  }
 0x229   : > { %7192 = vmatpush1.bf16.msra.mxu0 %v9879_v2  ;;  %v9929_v2 = vld [vmem:[%s14037_s1 + $0x10c] ss:$16 sps:$4 sm:$0xff]  }
 0x22a   : > { %7233 = vmatpush1.bf16.msra.mxu1 %v9882_v61  ;;  %7193 = vmatprep.subr.bf16.mxu0 %v9887_v3  ;;  %v9932_v61 = vld [vmem:[%s14037_s1 + $0x30c] ss:$16 sps:$4 sm:$0xff]   ;;  %v9927_v3 = vld [vmem:[%s14037_s1 + $0x108] ss:$16 sps:$4 sm:$0xff]  }
 0x22b   : > { %7234 = vmatprep.subr.bf16.mxu1 %v9890_v5  ;;  %v9930_v5 = vld [vmem:[%s14037_s1 + $0x308] ss:$16 sps:$4 sm:$0xff]  }
 0x22d   : > { %7194 = vmatpush2.bf16.msra.mxu0 %v9885_v7  ;;  %v9935_v7 = vld [vmem:[%s14037_s1 + $0x4ec] ss:$16 sps:$4 sm:$0xff]  }
 0x22e   : > { %7235 = vmatpush2.bf16.msra.mxu1 %v9888_v10  ;;  %7195 = vmatprep.subr.bf16.mxu0 %v9893_v20  ;;  %v9938_v10 = vld [vmem:[%s14037_s1 + $0x6ec] ss:$16 sps:$4 sm:$0xff]   ;;  %v9933_v20 = vld [vmem:[%s14037_s1 + $0x4e8] ss:$16 sps:$4 sm:$0xff]  }
 0x22f   : > { %7236 = vmatprep.subr.bf16.mxu1 %v9896_v63  ;;  %v9936_v63 = vld [vmem:[%s14037_s1 + $0x6e8] ss:$16 sps:$4 sm:$0xff]  }
 0x231   : > { %7196 = vmatpush2.bf16.msra.mxu0 %v9891_v13  ;;  %v9941_v13 = vld [vmem:[%s14037_s1 + $0x4cc] ss:$16 sps:$4 sm:$0xff]  }
 0x232   : > { %7237 = vmatpush2.bf16.msra.mxu1 %v9894_v14  ;;  %7197 = vmatprep.subr.bf16.mxu0 %v9899_v16  ;;  %v9944_v14 = vld [vmem:[%s14037_s1 + $0x6cc] ss:$16 sps:$4 sm:$0xff]  }
 0x233   : > { %7238 = vmatprep.subr.bf16.mxu1 %v9902_v38 }
 0x235   : > { %7198 = vmatpush2.bf16.msra.mxu0 %v9897_v17 }
 0x236   : > { %7239 = vmatpush2.bf16.msra.mxu1 %v9900_v59  ;;  %7199 = vmatprep.subr.bf16.mxu0 %v9905_v62  ;;  %v9939_v59 = vld [vmem:[%s14037_s1 + $0x4c8] ss:$16 sps:$4 sm:$0xff]  }
 0x237   : > { %7240 = vmatprep.subr.bf16.mxu1 %v9908_v18  ;;  %v9942_v62 = vld [vmem:[%s14037_s1 + $0x6c8] ss:$16 sps:$4 sm:$0xff]  }
 0x239   : > { %7200 = vmatpush2.bf16.msra.mxu0 %v9903_v19 }
 0x23a   : > { %7241 = vmatpush2.bf16.msra.mxu1 %v9906_v25  ;;  %7201 = vmatprep.subr.bf16.mxu0 %v9911_v4 }
 0x23b   : > { %7242 = vmatprep.subr.bf16.mxu1 %v9914_v26 }
 0x23d   : > { %7202 = vmatpush2.bf16.msra.mxu0 %v9909_v27 }
 0x23e   : > { %7243 = vmatpush2.bf16.msra.mxu1 %v9912_v28  ;;  %7203 = vmatprep.subr.bf16.mxu0 %v9917_v41  ;;  %v9945_v28 = vld [vmem:[%s14037_s1 + $0x4a8] ss:$16 sps:$4 sm:$0xff]  }
 0x23f   : > { %7244 = vmatprep.subr.bf16.mxu1 %v9920_v9  ;;  %v9948_v41 = vld [vmem:[%s14037_s1 + $0x6a8] ss:$16 sps:$4 sm:$0xff]  }
 0x241   : > { %7204 = vmatpush2.bf16.msra.mxu0 %v9915_v43  ;;  %v9951_v43 = vld [vmem:[%s14037_s1 + $0x488] ss:$16 sps:$4 sm:$0xff]  }
 0x242   : > { %7245 = vmatpush2.bf16.msra.mxu1 %v9918_v46  ;;  %7205 = vmatprep.subr.bf16.mxu0 %v9923_v50  ;;  %v9954_v46 = vld [vmem:[%s14037_s1 + $0x688] ss:$16 sps:$4 sm:$0xff]   ;;  %v9959_v50 = vld [vmem:[%s14037_s1 + $0x46c] ss:$16 sps:$4 sm:$0xff]  }
 0x243   : > { %7246 = vmatprep.subr.bf16.mxu1 %v9926_v53  ;;  %v9962_v53 = vld [vmem:[%s14037_s1 + $0x66c] ss:$16 sps:$4 sm:$0xff]  }
 0x245   : > { %7206 = vmatpush2.bf16.msra.mxu0 %v9921_v57  ;;  %v9957_v57 = vld [vmem:[%s14037_s1 + $0x468] ss:$16 sps:$4 sm:$0xff]  }
 0x246   : > { %7247 = vmatpush2.bf16.msra.mxu1 %v9924_v58  ;;  %7207 = vmatprep.subr.bf16.mxu0 %v9929_v2  ;;  %v9960_v58 = vld [vmem:[%s14037_s1 + $0x668] ss:$16 sps:$4 sm:$0xff]   ;;  %v9965_v2 = vld [vmem:[%s14037_s1 + $0x44c] ss:$16 sps:$4 sm:$0xff]  }
 0x247   : > { %7248 = vmatprep.subr.bf16.mxu1 %v9932_v61  ;;  %v9968_v61 = vld [vmem:[%s14037_s1 + $0x64c] ss:$16 sps:$4 sm:$0xff]  }
 0x249   : > { %7208 = vmatpush2.bf16.msra.mxu0 %v9927_v3  ;;  %v9963_v3 = vld [vmem:[%s14037_s1 + $0x448] ss:$16 sps:$4 sm:$0xff]  }
 0x24a   : > { %7249 = vmatpush2.bf16.msra.mxu1 %v9930_v5  ;;  %7259 = vmatprep.subr.bf16.mxu0 %v9935_v7  ;;  %v9966_v5 = vld [vmem:[%s14037_s1 + $0x648] ss:$16 sps:$4 sm:$0xff]   ;;  %v9971_v7 = vld [vmem:[%s14037_s1 + $0x42c] ss:$16 sps:$4 sm:$0xff]  }
 0x24b   : > { %7300 = vmatprep.subr.bf16.mxu1 %v9938_v10  ;;  %v9974_v10 = vld [vmem:[%s14037_s1 + $0x62c] ss:$16 sps:$4 sm:$0xff]  }
 0x24c   : > { %v6965_v16 = vpop.f32.mrf.mxu0  ;;  %7210 = vmatmul.mubr.bf16.vlgmr.msra.gmra.mxu0 %v10811_v54  ;;  %v9947_v54 = vld [vmem:[%s14037_s1 + $0x4ac] ss:$16 sps:$4 sm:$0xff]  }
 0x24d   : > { %v7006_v38 = vpop.f32.mrf.mxu1  ;;  %7251 = vmatmul.mubr.bf16.vlgmr.msra.gmra.mxu1 %v10827_v60  ;;  %v6966_v17 = vadd.f32 %v6965_v16, %v12414_v8  ;;  %7260 = vmatpush1.bf16.msra.mxu0 %v9933_v20  ;;  %v9950_v60 = vld [vmem:[%s14037_s1 + $0x6ac] ss:$16 sps:$4 sm:$0xff]   ;;  %v9969_v20 = vld [vmem:[%s14037_s1 + $0x428] ss:$16 sps:$4 sm:$0xff]  }
 0x24e   : > { %7301 = vmatpush1.bf16.msra.mxu1 %v9936_v63  ;;  %v6967_v18 = vpop.f32.mrf.mxu0  ;;  %7261 = vmatprep.subr.bf16.mxu0 %v9941_v13  ;;  %v9972_v63 = vld [vmem:[%s14037_s1 + $0x628] ss:$16 sps:$4 sm:$0xff]   ;;  %v9977_v13 = vld [vmem:[%s14037_s1 + $0x40c] ss:$16 sps:$4 sm:$0xff]  }
 0x24f   : > { %v7008_v19 = vpop.f32.mrf.mxu1  ;;  %7302 = vmatprep.subr.bf16.mxu1 %v9944_v14  ;;  %v12616_v8 = vadd.f32 %v7006_v38, %v6966_v17  ;;  %v6968_v25 = vadd.f32 %v6967_v18, %v12425_v15  ;;  %7291 = vmatprep.mubr.bf16.mxu0 %v10969_v44  ;;  %v9953_v44 = vld [vmem:[%s14037_s1 + $0x48c] ss:$16 sps:$4 sm:$0xff]   ;;  %v9975_v16 = vld [vmem:[%s14037_s1 + $0x408] ss:$16 sps:$4 sm:$0xff]  }
 0x250   : > { %7332 = vmatprep.mubr.bf16.mxu1 %v10983_v48  ;;  %v6969_v4 = vpop.f32.mrf.mxu0  ;;  %v9956_v48 = vld [vmem:[%s14037_s1 + $0x68c] ss:$16 sps:$4 sm:$0xff]   ;;  %v9978_v38 = vld [vmem:[%s14037_s1 + $0x608] ss:$16 sps:$4 sm:$0xff]  }
 0x251   : > { %v7010_v26 = vpop.f32.mrf.mxu1  ;;  %v12621_v27 = vadd.f32 %v7008_v19, %v6968_v25  ;;  %7262 = vmatpush1.bf16.msra.mxu0 %v9939_v59  ;;  %v9980_v14 = vld [vmem:[%s14037_s1 + $0x60c] ss:$16 sps:$4 sm:$0xff]   ;;  %v9984_v18 = vld [vmem:[%s14037_s1 + $0x7e8] ss:$16 sps:$4 sm:$0xff]  }
 0x252   : > { %7303 = vmatpush1.bf16.msra.mxu1 %v9942_v62  ;;  %v6970_v9 = vpop.f32.mrf.mxu0  ;;  %7263 = vmatprep.subr.bf16.mxu0 %v9947_v54  ;;  %v9983_v17 = vld [vmem:[%s14037_s1 + $0x5ec] ss:$16 sps:$4 sm:$0xff]   ;;  %v9981_v62 = vld [vmem:[%s14037_s1 + $0x5e8] ss:$16 sps:$4 sm:$0xff]  }
 0x253   : > { %v7011_v15 = vpop.f32.mrf.mxu1  ;;  %7304 = vmatprep.subr.bf16.mxu1 %v9950_v60  ;;  %v9986_v59 = vld [vmem:[%s14037_s1 + $0x7ec] ss:$16 sps:$4 sm:$0xff]   ;;  %v9987_v60 = vld [vmem:[%s14037_s1 + $0x5c8] ss:$16 sps:$4 sm:$0xff]  }
 0x254   : > { %v9989_v19 = vld [vmem:[%s14037_s1 + $0x5cc] ss:$16 sps:$4 sm:$0xff]   ;;  %v9990_v25 = vld [vmem:[%s14037_s1 + $0x7c8] ss:$16 sps:$4 sm:$0xff]  }
 0x255   : > { %7264 = vmatpush1.bf16.msra.mxu0 %v9945_v28  ;;  %v9992_v54 = vld [vmem:[%s14037_s1 + $0x7cc] ss:$16 sps:$4 sm:$0xff]   ;;  %v9993_v28 = vld [vmem:[%s14037_s1 + $0x5a8] ss:$16 sps:$4 sm:$0xff]  }
 0x256   : > { %7305 = vmatpush1.bf16.msra.mxu1 %v9948_v41  ;;  %7265 = vmatprep.subr.bf16.mxu0 %v9953_v44  ;;  %v9995_v4 = vld [vmem:[%s14037_s1 + $0x5ac] ss:$16 sps:$4 sm:$0xff]   ;;  %v9996_v41 = vld [vmem:[%s14037_s1 + $0x7a8] ss:$16 sps:$4 sm:$0xff]  }
 0x257   : > { %7306 = vmatprep.subr.bf16.mxu1 %v9956_v48  ;;  %v9998_v26 = vld [vmem:[%s14037_s1 + $0x7ac] ss:$16 sps:$4 sm:$0xff]   ;;  %v9999_v44 = vld [vmem:[%s14037_s1 + $0x588] ss:$16 sps:$4 sm:$0xff]  }
 0x258   : > { %v10001_v9 = vld [vmem:[%s14037_s1 + $0x58c] ss:$16 sps:$4 sm:$0xff]   ;;  %v10002_v48 = vld [vmem:[%s14037_s1 + $0x788] ss:$16 sps:$4 sm:$0xff]  }
 0x259   : > { %7266 = vmatpush1.bf16.msra.mxu0 %v9951_v43  ;;  %v10004_v15 = vld [vmem:[%s14037_s1 + $0x78c] ss:$16 sps:$4 sm:$0xff]  }
 0x25a   : > { %7307 = vmatpush1.bf16.msra.mxu1 %v9954_v46  ;;  %7267 = vmatprep.subr.bf16.mxu0 %v9959_v50  ;;  %v10007_v43 = vld [vmem:[%s14037_s1 + $0x56c] ss:$16 sps:$4 sm:$0xff]   ;;  %v10005_v50 = vld [vmem:[%s14037_s1 + $0x568] ss:$16 sps:$4 sm:$0xff]  }
 0x25b   : > { %7308 = vmatprep.subr.bf16.mxu1 %v9962_v53  ;;  %v10010_v46 = vld [vmem:[%s14037_s1 + $0x76c] ss:$16 sps:$4 sm:$0xff]   ;;  %v10008_v53 = vld [vmem:[%s14037_s1 + $0x768] ss:$16 sps:$4 sm:$0xff]  }
 0x25d   : > { %7268 = vmatpush1.bf16.msra.mxu0 %v9957_v57  ;;  %v10013_v57 = vld [vmem:[%s14037_s1 + $0x54c] ss:$16 sps:$4 sm:$0xff]  }
 0x25e   : > { %7309 = vmatpush1.bf16.msra.mxu1 %v9960_v58  ;;  %7269 = vmatprep.subr.bf16.mxu0 %v9965_v2  ;;  %v10016_v58 = vld [vmem:[%s14037_s1 + $0x74c] ss:$16 sps:$4 sm:$0xff]   ;;  %v10011_v2 = vld [vmem:[%s14037_s1 + $0x548] ss:$16 sps:$4 sm:$0xff]  }
 0x25f   : > { %7310 = vmatprep.subr.bf16.mxu1 %v9968_v61  ;;  %v10014_v61 = vld [vmem:[%s14037_s1 + $0x748] ss:$16 sps:$4 sm:$0xff]  }
 0x261   : > { %7270 = vmatpush1.bf16.msra.mxu0 %v9963_v3  ;;  %v10019_v3 = vld [vmem:[%s14037_s1 + $0x52c] ss:$16 sps:$4 sm:$0xff]  }
 0x262   : > { %7311 = vmatpush1.bf16.msra.mxu1 %v9966_v5  ;;  %7271 = vmatprep.subr.bf16.mxu0 %v9971_v7  ;;  %v10022_v5 = vld [vmem:[%s14037_s1 + $0x72c] ss:$16 sps:$4 sm:$0xff]   ;;  %v10017_v7 = vld [vmem:[%s14037_s1 + $0x528] ss:$16 sps:$4 sm:$0xff]  }
 0x263   : > { %7312 = vmatprep.subr.bf16.mxu1 %v9974_v10  ;;  %v10020_v10 = vld [vmem:[%s14037_s1 + $0x728] ss:$16 sps:$4 sm:$0xff]  }
 0x265   : > { %7272 = vmatpush1.bf16.msra.mxu0 %v9969_v20  ;;  %v10025_v20 = vld [vmem:[%s14037_s1 + $0x50c] ss:$16 sps:$4 sm:$0xff]  }
 0x266   : > { %7313 = vmatpush1.bf16.msra.mxu1 %v9972_v63  ;;  %7273 = vmatprep.subr.bf16.mxu0 %v9977_v13  ;;  %v10028_v63 = vld [vmem:[%s14037_s1 + $0x70c] ss:$16 sps:$4 sm:$0xff]   ;;  %v10023_v13 = vld [vmem:[%s14037_s1 + $0x508] ss:$16 sps:$4 sm:$0xff]  }
 0x267   : > { %7314 = vmatprep.subr.bf16.mxu1 %v9980_v14  ;;  %v10026_v14 = vld [vmem:[%s14037_s1 + $0x708] ss:$16 sps:$4 sm:$0xff]  }
 0x269   : > { %7274 = vmatpush1.bf16.msra.mxu0 %v9975_v16  ;;  %v10031_v16 = vld [vmem:[%s14037_s1 + $0x8ec] ss:$16 sps:$4 sm:$0xff]  }
 0x26a   : > { %7315 = vmatpush1.bf16.msra.mxu1 %v9978_v38  ;;  %7275 = vmatprep.subr.bf16.mxu0 %v9983_v17  ;;  %v10034_v38 = vld [vmem:[%s14037_s1 + $0xaec] ss:$16 sps:$4 sm:$0xff]   ;;  %v10029_v17 = vld [vmem:[%s14037_s1 + $0x8e8] ss:$16 sps:$4 sm:$0xff]  }
 0x26b   : > { %7316 = vmatprep.subr.bf16.mxu1 %v9986_v59  ;;  %v10032_v59 = vld [vmem:[%s14037_s1 + $0xae8] ss:$16 sps:$4 sm:$0xff]  }
 0x26d   : > { %7276 = vmatpush2.bf16.msra.mxu0 %v9981_v62  ;;  %v10037_v62 = vld [vmem:[%s14037_s1 + $0x8cc] ss:$16 sps:$4 sm:$0xff]  }
 0x26e   : > { %7317 = vmatpush2.bf16.msra.mxu1 %v9984_v18  ;;  %7277 = vmatprep.subr.bf16.mxu0 %v9989_v19  ;;  %v10040_v18 = vld [vmem:[%s14037_s1 + $0xacc] ss:$16 sps:$4 sm:$0xff]  }
 0x26f   : > { %7318 = vmatprep.subr.bf16.mxu1 %v9992_v54 }
 0x271   : > { %7278 = vmatpush2.bf16.msra.mxu0 %v9987_v60 }
 0x272   : > { %7319 = vmatpush2.bf16.msra.mxu1 %v9990_v25  ;;  %7279 = vmatprep.subr.bf16.mxu0 %v9995_v4  ;;  %v10035_v25 = vld [vmem:[%s14037_s1 + $0x8c8] ss:$16 sps:$4 sm:$0xff]  }
 0x273   : > { %7320 = vmatprep.subr.bf16.mxu1 %v9998_v26  ;;  %v10038_v4 = vld [vmem:[%s14037_s1 + $0xac8] ss:$16 sps:$4 sm:$0xff]  }
 0x275   : > { %7280 = vmatpush2.bf16.msra.mxu0 %v9993_v28 }
 0x276   : > { %7321 = vmatpush2.bf16.msra.mxu1 %v9996_v41  ;;  %7281 = vmatprep.subr.bf16.mxu0 %v10001_v9 }
 0x277   : > { %7322 = vmatprep.subr.bf16.mxu1 %v10004_v15 }
 0x279   : > { %7282 = vmatpush2.bf16.msra.mxu0 %v9999_v44 }
 0x27a   : > { %7323 = vmatpush2.bf16.msra.mxu1 %v10002_v48  ;;  %7283 = vmatprep.subr.bf16.mxu0 %v10007_v43  ;;  %v10041_v48 = vld [vmem:[%s14037_s1 + $0x8a8] ss:$16 sps:$4 sm:$0xff]  }
 0x27b   : > { %7324 = vmatprep.subr.bf16.mxu1 %v10010_v46  ;;  %v10044_v43 = vld [vmem:[%s14037_s1 + $0xaa8] ss:$16 sps:$4 sm:$0xff]  }
 0x27d   : > { %7284 = vmatpush2.bf16.msra.mxu0 %v10005_v50  ;;  %v10047_v50 = vld [vmem:[%s14037_s1 + $0x888] ss:$16 sps:$4 sm:$0xff]  }
 0x27e   : > { %7325 = vmatpush2.bf16.msra.mxu1 %v10008_v53  ;;  %7285 = vmatprep.subr.bf16.mxu0 %v10013_v57  ;;  %v10050_v53 = vld [vmem:[%s14037_s1 + $0xa88] ss:$16 sps:$4 sm:$0xff]   ;;  %v10055_v57 = vld [vmem:[%s14037_s1 + $0x86c] ss:$16 sps:$4 sm:$0xff]  }
 0x27f   : > { %7326 = vmatprep.subr.bf16.mxu1 %v10016_v58  ;;  %v10058_v58 = vld [vmem:[%s14037_s1 + $0xa6c] ss:$16 sps:$4 sm:$0xff]  }
 0x281   : > { %7286 = vmatpush2.bf16.msra.mxu0 %v10011_v2  ;;  %v10053_v2 = vld [vmem:[%s14037_s1 + $0x868] ss:$16 sps:$4 sm:$0xff]  }
 0x282   : > { %7327 = vmatpush2.bf16.msra.mxu1 %v10014_v61  ;;  %7287 = vmatprep.subr.bf16.mxu0 %v10019_v3  ;;  %v10056_v61 = vld [vmem:[%s14037_s1 + $0xa68] ss:$16 sps:$4 sm:$0xff]   ;;  %v10061_v3 = vld [vmem:[%s14037_s1 + $0x84c] ss:$16 sps:$4 sm:$0xff]  }
 0x283   : > { %7328 = vmatprep.subr.bf16.mxu1 %v10022_v5  ;;  %v10064_v5 = vld [vmem:[%s14037_s1 + $0xa4c] ss:$16 sps:$4 sm:$0xff]  }
 0x285   : > { %7288 = vmatpush2.bf16.msra.mxu0 %v10017_v7  ;;  %v10059_v7 = vld [vmem:[%s14037_s1 + $0x848] ss:$16 sps:$4 sm:$0xff]  }
 0x286   : > { %7329 = vmatpush2.bf16.msra.mxu1 %v10020_v10  ;;  %7289 = vmatprep.subr.bf16.mxu0 %v10025_v20  ;;  %v10062_v10 = vld [vmem:[%s14037_s1 + $0xa48] ss:$16 sps:$4 sm:$0xff]   ;;  %v10067_v20 = vld [vmem:[%s14037_s1 + $0x82c] ss:$16 sps:$4 sm:$0xff]  }
 0x287   : > { %7330 = vmatprep.subr.bf16.mxu1 %v10028_v63  ;;  %v10070_v63 = vld [vmem:[%s14037_s1 + $0xa2c] ss:$16 sps:$4 sm:$0xff]  }
 0x289   : > { %7290 = vmatpush2.bf16.msra.mxu0 %v10023_v13  ;;  %v10065_v13 = vld [vmem:[%s14037_s1 + $0x828] ss:$16 sps:$4 sm:$0xff]  }
 0x28a   : > { %7331 = vmatpush2.bf16.msra.mxu1 %v10026_v14  ;;  %7341 = vmatprep.subr.bf16.mxu0 %v10031_v16  ;;  %v10068_v14 = vld [vmem:[%s14037_s1 + $0xa28] ss:$16 sps:$4 sm:$0xff]   ;;  %v10073_v16 = vld [vmem:[%s14037_s1 + $0x80c] ss:$16 sps:$4 sm:$0xff]  }
 0x28b   : > { %7382 = vmatprep.subr.bf16.mxu1 %v10034_v38  ;;  %v10076_v38 = vld [vmem:[%s14037_s1 + $0xa0c] ss:$16 sps:$4 sm:$0xff]  }
 0x28c   : > { %v7047_v19 = vpop.f32.mrf.mxu0  ;;  %7292 = vmatmul.mubr.bf16.vlgmr.msra.gmra.mxu0 %v10959_v39  ;;  %v10043_v39 = vld [vmem:[%s14037_s1 + $0x8ac] ss:$16 sps:$4 sm:$0xff]  }
 0x28d   : > { %v7088_v54 = vpop.f32.mrf.mxu1  ;;  %7333 = vmatmul.mubr.bf16.vlgmr.msra.gmra.mxu1 %v10972_v45  ;;  %v7048_v60 = vadd.f32 %v7047_v19, %v12616_v8  ;;  %7342 = vmatpush1.bf16.msra.mxu0 %v10029_v17  ;;  %v10046_v45 = vld [vmem:[%s14037_s1 + $0xaac] ss:$16 sps:$4 sm:$0xff]   ;;  %v10071_v17 = vld [vmem:[%s14037_s1 + $0x808] ss:$16 sps:$4 sm:$0xff]  }
 0x28e   : > { %7383 = vmatpush1.bf16.msra.mxu1 %v10032_v59  ;;  %v7049_v26 = vpop.f32.mrf.mxu0  ;;  %7343 = vmatprep.subr.bf16.mxu0 %v10037_v62  ;;  %v10074_v59 = vld [vmem:[%s14037_s1 + $0xa08] ss:$16 sps:$4 sm:$0xff]   ;;  %v10079_v62 = vld [vmem:[%s14037_s1 + $0x9ec] ss:$16 sps:$4 sm:$0xff]  }
 0x28f   : > { %v7090_v28 = vpop.f32.mrf.mxu1  ;;  %7384 = vmatprep.subr.bf16.mxu1 %v10040_v18  ;;  %v12818_v8 = vadd.f32 %v7088_v54, %v7048_v60  ;;  %v7050_v41 = vadd.f32 %v7049_v26, %v12621_v27  ;;  %7373 = vmatprep.mubr.bf16.mxu0 %v11117_v34  ;;  %v10049_v34 = vld [vmem:[%s14037_s1 + $0x88c] ss:$16 sps:$4 sm:$0xff]   ;;  %v10077_v19 = vld [vmem:[%s14037_s1 + $0x9e8] ss:$16 sps:$4 sm:$0xff]  }
 0x290   : > { %7414 = vmatprep.mubr.bf16.mxu1 %v11133_v40  ;;  %v7051_v9 = vpop.f32.mrf.mxu0  ;;  %v10052_v40 = vld [vmem:[%s14037_s1 + $0xa8c] ss:$16 sps:$4 sm:$0xff]   ;;  %v10080_v54 = vld [vmem:[%s14037_s1 + $0xbe8] ss:$16 sps:$4 sm:$0xff]  }
 0x291   : > { %v7092_v15 = vpop.f32.mrf.mxu1  ;;  %v12823_v44 = vadd.f32 %v7090_v28, %v7050_v41  ;;  %7344 = vmatpush1.bf16.msra.mxu0 %v10035_v25  ;;  %v10082_v18 = vld [vmem:[%s14037_s1 + $0xbec] ss:$16 sps:$4 sm:$0xff]   ;;  %v10086_v26 = vld [vmem:[%s14037_s1 + $0xbc8] ss:$16 sps:$4 sm:$0xff]  }
 0x292   : > { %7385 = vmatpush1.bf16.msra.mxu1 %v10038_v4  ;;  %v7052_v46 = vpop.f32.mrf.mxu0  ;;  %7345 = vmatprep.subr.bf16.mxu0 %v10043_v39  ;;  %v10085_v60 = vld [vmem:[%s14037_s1 + $0x9cc] ss:$16 sps:$4 sm:$0xff]   ;;  %v10083_v4 = vld [vmem:[%s14037_s1 + $0x9c8] ss:$16 sps:$4 sm:$0xff]  }
 0x293   : > { %v7093_v27 = vpop.f32.mrf.mxu1  ;;  %7386 = vmatprep.subr.bf16.mxu1 %v10046_v45  ;;  %v10088_v25 = vld [vmem:[%s14037_s1 + $0xbcc] ss:$16 sps:$4 sm:$0xff]   ;;  %v10089_v45 = vld [vmem:[%s14037_s1 + $0x9a8] ss:$16 sps:$4 sm:$0xff]  }
 0x294   : > { %v10091_v28 = vld [vmem:[%s14037_s1 + $0x9ac] ss:$16 sps:$4 sm:$0xff]   ;;  %v10092_v41 = vld [vmem:[%s14037_s1 + $0xba8] ss:$16 sps:$4 sm:$0xff]  }
 0x295   : > { %7346 = vmatpush1.bf16.msra.mxu0 %v10041_v48  ;;  %v10094_v39 = vld [vmem:[%s14037_s1 + $0xbac] ss:$16 sps:$4 sm:$0xff]   ;;  %v10095_v48 = vld [vmem:[%s14037_s1 + $0x988] ss:$16 sps:$4 sm:$0xff]  }
 0x296   : > { %7387 = vmatpush1.bf16.msra.mxu1 %v10044_v43  ;;  %7347 = vmatprep.subr.bf16.mxu0 %v10049_v34  ;;  %v10097_v9 = vld [vmem:[%s14037_s1 + $0x98c] ss:$16 sps:$4 sm:$0xff]   ;;  %v10098_v43 = vld [vmem:[%s14037_s1 + $0xb88] ss:$16 sps:$4 sm:$0xff]  }
 0x297   : > { %7388 = vmatprep.subr.bf16.mxu1 %v10052_v40  ;;  %v10100_v15 = vld [vmem:[%s14037_s1 + $0xb8c] ss:$16 sps:$4 sm:$0xff]   ;;  %v10101_v34 = vld [vmem:[%s14037_s1 + $0x968] ss:$16 sps:$4 sm:$0xff]  }
 0x298   : > { %v10103_v46 = vld [vmem:[%s14037_s1 + $0x96c] ss:$16 sps:$4 sm:$0xff]   ;;  %v10104_v40 = vld [vmem:[%s14037_s1 + $0xb68] ss:$16 sps:$4 sm:$0xff]  }
 0x299   : > { %7348 = vmatpush1.bf16.msra.mxu0 %v10047_v50  ;;  %v10106_v27 = vld [vmem:[%s14037_s1 + $0xb6c] ss:$16 sps:$4 sm:$0xff]  }
 0x29a   : > { %7389 = vmatpush1.bf16.msra.mxu1 %v10050_v53  ;;  %7349 = vmatprep.subr.bf16.mxu0 %v10055_v57  ;;  %v10109_v50 = vld [vmem:[%s14037_s1 + $0x94c] ss:$16 sps:$4 sm:$0xff]   ;;  %v10107_v57 = vld [vmem:[%s14037_s1 + $0x948] ss:$16 sps:$4 sm:$0xff]  }
 0x29b   : > { %7390 = vmatprep.subr.bf16.mxu1 %v10058_v58  ;;  %v10112_v53 = vld [vmem:[%s14037_s1 + $0xb4c] ss:$16 sps:$4 sm:$0xff]   ;;  %v10110_v58 = vld [vmem:[%s14037_s1 + $0xb48] ss:$16 sps:$4 sm:$0xff]  }
 0x29d   : > { %7350 = vmatpush1.bf16.msra.mxu0 %v10053_v2  ;;  %v10115_v2 = vld [vmem:[%s14037_s1 + $0x92c] ss:$16 sps:$4 sm:$0xff]  }
 0x29e   : > { %7391 = vmatpush1.bf16.msra.mxu1 %v10056_v61  ;;  %7351 = vmatprep.subr.bf16.mxu0 %v10061_v3  ;;  %v10118_v61 = vld [vmem:[%s14037_s1 + $0xb2c] ss:$16 sps:$4 sm:$0xff]   ;;  %v10113_v3 = vld [vmem:[%s14037_s1 + $0x928] ss:$16 sps:$4 sm:$0xff]  }
 0x29f   : > { %7392 = vmatprep.subr.bf16.mxu1 %v10064_v5  ;;  %v10116_v5 = vld [vmem:[%s14037_s1 + $0xb28] ss:$16 sps:$4 sm:$0xff]  }
 0x2a1   : > { %7352 = vmatpush1.bf16.msra.mxu0 %v10059_v7  ;;  %v10121_v7 = vld [vmem:[%s14037_s1 + $0x90c] ss:$16 sps:$4 sm:$0xff]  }
 0x2a2   : > { %7393 = vmatpush1.bf16.msra.mxu1 %v10062_v10  ;;  %7353 = vmatprep.subr.bf16.mxu0 %v10067_v20  ;;  %v10124_v10 = vld [vmem:[%s14037_s1 + $0xb0c] ss:$16 sps:$4 sm:$0xff]   ;;  %v10119_v20 = vld [vmem:[%s14037_s1 + $0x908] ss:$16 sps:$4 sm:$0xff]  }
 0x2a3   : > { %7394 = vmatprep.subr.bf16.mxu1 %v10070_v63  ;;  %v10122_v63 = vld [vmem:[%s14037_s1 + $0xb08] ss:$16 sps:$4 sm:$0xff]  }
 0x2a5   : > { %7354 = vmatpush1.bf16.msra.mxu0 %v10065_v13  ;;  %v10127_v13 = vld [vmem:[%s14037_s1 + $0xcec] ss:$16 sps:$4 sm:$0xff]  }
 0x2a6   : > { %7395 = vmatpush1.bf16.msra.mxu1 %v10068_v14  ;;  %7355 = vmatprep.subr.bf16.mxu0 %v10073_v16  ;;  %v10130_v14 = vld [vmem:[%s14037_s1 + $0xeec] ss:$16 sps:$4 sm:$0xff]   ;;  %v10125_v16 = vld [vmem:[%s14037_s1 + $0xce8] ss:$16 sps:$4 sm:$0xff]  }
 0x2a7   : > { %7396 = vmatprep.subr.bf16.mxu1 %v10076_v38  ;;  %v10128_v38 = vld [vmem:[%s14037_s1 + $0xee8] ss:$16 sps:$4 sm:$0xff]  }
 0x2a9   : > { %7356 = vmatpush1.bf16.msra.mxu0 %v10071_v17  ;;  %v10133_v17 = vld [vmem:[%s14037_s1 + $0xccc] ss:$16 sps:$4 sm:$0xff]  }
 0x2aa   : > { %7397 = vmatpush1.bf16.msra.mxu1 %v10074_v59  ;;  %7357 = vmatprep.subr.bf16.mxu0 %v10079_v62  ;;  %v10136_v59 = vld [vmem:[%s14037_s1 + $0xecc] ss:$16 sps:$4 sm:$0xff]  }
 0x2ab   : > { %7398 = vmatprep.subr.bf16.mxu1 %v10082_v18 }
 0x2ad   : > { %7358 = vmatpush2.bf16.msra.mxu0 %v10077_v19 }
 0x2ae   : > { %7399 = vmatpush2.bf16.msra.mxu1 %v10080_v54  ;;  %7359 = vmatprep.subr.bf16.mxu0 %v10085_v60  ;;  %v10131_v54 = vld [vmem:[%s14037_s1 + $0xcc8] ss:$16 sps:$4 sm:$0xff]  }
 0x2af   : > { %7400 = vmatprep.subr.bf16.mxu1 %v10088_v25  ;;  %v10134_v60 = vld [vmem:[%s14037_s1 + $0xec8] ss:$16 sps:$4 sm:$0xff]  }
 0x2b1   : > { %7360 = vmatpush2.bf16.msra.mxu0 %v10083_v4 }
 0x2b2   : > { %7401 = vmatpush2.bf16.msra.mxu1 %v10086_v26  ;;  %7361 = vmatprep.subr.bf16.mxu0 %v10091_v28 }
 0x2b3   : > { %7402 = vmatprep.subr.bf16.mxu1 %v10094_v39 }
 0x2b5   : > { %7362 = vmatpush2.bf16.msra.mxu0 %v10089_v45 }
 0x2b6   : > { %7403 = vmatpush2.bf16.msra.mxu1 %v10092_v41  ;;  %7363 = vmatprep.subr.bf16.mxu0 %v10097_v9  ;;  %v10137_v9 = vld [vmem:[%s14037_s1 + $0xca8] ss:$16 sps:$4 sm:$0xff]  }
 0x2b7   : > { %7404 = vmatprep.subr.bf16.mxu1 %v10100_v15  ;;  %v10140_v15 = vld [vmem:[%s14037_s1 + $0xea8] ss:$16 sps:$4 sm:$0xff]  }
 0x2b9   : > { %7364 = vmatpush2.bf16.msra.mxu0 %v10095_v48 }
 0x2ba   : > { %7405 = vmatpush2.bf16.msra.mxu1 %v10098_v43  ;;  %7365 = vmatprep.subr.bf16.mxu0 %v10103_v46  ;;  %v10148_v43 = vld [vmem:[%s14037_s1 + $0xe8c] ss:$16 sps:$4 sm:$0xff]  }
 0x2bb   : > { %7406 = vmatprep.subr.bf16.mxu1 %v10106_v27 }
 0x2bd   : > { %7366 = vmatpush2.bf16.msra.mxu0 %v10101_v34 }
 0x2be   : > { %7407 = vmatpush2.bf16.msra.mxu1 %v10104_v40  ;;  %7367 = vmatprep.subr.bf16.mxu0 %v10109_v50  ;;  %v10143_v40 = vld [vmem:[%s14037_s1 + $0xc88] ss:$16 sps:$4 sm:$0xff]  }
 0x2bf   : > { %7408 = vmatprep.subr.bf16.mxu1 %v10112_v53  ;;  %v10146_v50 = vld [vmem:[%s14037_s1 + $0xe88] ss:$16 sps:$4 sm:$0xff]  }
 0x2c1   : > { %7368 = vmatpush2.bf16.msra.mxu0 %v10107_v57 }
 0x2c2   : > { %7409 = vmatpush2.bf16.msra.mxu1 %v10110_v58  ;;  %7369 = vmatprep.subr.bf16.mxu0 %v10115_v2  ;;  %v10151_v58 = vld [vmem:[%s14037_s1 + $0xc6c] ss:$16 sps:$4 sm:$0xff]  }
 0x2c3   : > { %7410 = vmatprep.subr.bf16.mxu1 %v10118_v61  ;;  %v10154_v2 = vld [vmem:[%s14037_s1 + $0xe6c] ss:$16 sps:$4 sm:$0xff]  }
 0x2c5   : > { %7370 = vmatpush2.bf16.msra.mxu0 %v10113_v3 }
 0x2c6   : > { %7411 = vmatpush2.bf16.msra.mxu1 %v10116_v5  ;;  %7371 = vmatprep.subr.bf16.mxu0 %v10121_v7  ;;  %v10149_v5 = vld [vmem:[%s14037_s1 + $0xc68] ss:$16 sps:$4 sm:$0xff]  }
 0x2c7   : > { %7412 = vmatprep.subr.bf16.mxu1 %v10124_v10  ;;  %v10152_v7 = vld [vmem:[%s14037_s1 + $0xe68] ss:$16 sps:$4 sm:$0xff]  }
 0x2c9   : > { %7372 = vmatpush2.bf16.msra.mxu0 %v10119_v20 }
 0x2ca   : > { %7413 = vmatpush2.bf16.msra.mxu1 %v10122_v63  ;;  %7423 = vmatprep.subr.bf16.mxu0 %v10127_v13  ;;  %v10157_v63 = vld [vmem:[%s14037_s1 + $0xc4c] ss:$16 sps:$4 sm:$0xff]  }
 0x2cb   : > { %7464 = vmatprep.subr.bf16.mxu1 %v10130_v14  ;;  %v10160_v13 = vld [vmem:[%s14037_s1 + $0xe4c] ss:$16 sps:$4 sm:$0xff]  }
 0x2cc   : > { %v7129_v62 = vpop.f32.mrf.mxu0  ;;  %7374 = vmatmul.mubr.bf16.vlgmr.msra.gmra.mxu0 %v11108_v31  ;;  %v10139_v31 = vld [vmem:[%s14037_s1 + $0xcac] ss:$16 sps:$4 sm:$0xff]  }
 0x2cd   : > { %v7170_v18 = vpop.f32.mrf.mxu1  ;;  %7415 = vmatmul.mubr.bf16.vlgmr.msra.gmra.mxu1 %v11120_v35  ;;  %v7130_v19 = vadd.f32 %v7129_v62, %v12818_v8  ;;  %7424 = vmatpush1.bf16.msra.mxu0 %v10125_v16  ;;  %v10142_v35 = vld [vmem:[%s14037_s1 + $0xeac] ss:$16 sps:$4 sm:$0xff]  }
 0x2ce   : > { %7465 = vmatpush1.bf16.msra.mxu1 %v10128_v38  ;;  %v7131_v25 = vpop.f32.mrf.mxu0  ;;  %7425 = vmatprep.subr.bf16.mxu0 %v10133_v17  ;;  %v10155_v38 = vld [vmem:[%s14037_s1 + $0xc48] ss:$16 sps:$4 sm:$0xff]  }
 0x2cf   : > { %v7172_v4 = vpop.f32.mrf.mxu1  ;;  %7466 = vmatprep.subr.bf16.mxu1 %v10136_v59  ;;  %v7171_v8 = vadd.f32 %v7170_v18, %v7130_v19  ;;  %v7132_v26 = vadd.f32 %v7131_v25, %v12823_v44  ;;  %7455 = vmatprep.mubr.bf16.mxu0 %v11326_v0  ;;  %v10158_v17 = vld [vmem:[%s14037_s1 + $0xe48] ss:$16 sps:$4 sm:$0xff]   ;;  %v10163_v18 = vld [vmem:[%s14037_s1 + $0xc2c] ss:$16 sps:$4 sm:$0xff]  }
 0x2d0   : > { %7496 = vmatprep.mubr.bf16.mxu1 %v11330_v1  ;;  %v7133_v28 = vpop.f32.mrf.mxu0  ;;  %v10145_v1 = vld [vmem:[%s14037_s1 + $0xc8c] ss:$16 sps:$4 sm:$0xff]   ;;  %v10161_v25 = vld [vmem:[%s14037_s1 + $0xc28] ss:$16 sps:$4 sm:$0xff]  }
 0x2d1   : > { %v7174_v39 = vpop.f32.mrf.mxu1  ;;  %v7834_v45 = vsel %vm7833_vm0, %v7171_v8, 0.0  ;;  %v7173_v41 = vadd.f32 %v7172_v4, %v7132_v26  ;;  %7426 = vmatpush1.bf16.msra.mxu0 %v10131_v54  ;;  %v10166_v19 = vld [vmem:[%s14037_s1 + $0xe2c] ss:$16 sps:$4 sm:$0xff]   ;;  %v10164_v4 = vld [vmem:[%s14037_s1 + $0xe28] ss:$16 sps:$4 sm:$0xff]  }
 0x2d2   : > { %7467 = vmatpush1.bf16.msra.mxu1 %v10134_v60  ;;  %v7835_v44 = vrot.slane %v7834_v45, 4  ;;  %v7134_v48 = vpop.f32.mrf.mxu0  ;;  %7427 = vmatprep.subr.bf16.mxu0 %v10139_v31  ;;  %v10172_v26 = vld [vmem:[%s14037_s1 + $0xe0c] ss:$16 sps:$4 sm:$0xff]  }
 0x2d3   : > { %v7175_v0 = vpop.f32.mrf.mxu1  ;;  %7468 = vmatprep.subr.bf16.mxu1 %v10142_v35  ;;  %v7841_v46 = vsel %vm7833_vm0, %v7173_v41, 0.0  ;;  %v10178_v48 = vld [vmem:[%s14037_s1 + $0xfec] ss:$16 sps:$4 sm:$0xff]  }
 0x2d4   : > { %v7836_v27 = vadd.f32 %v7835_v44, %v7834_v45  ;;  %v7842_v34 = vrot.slane %v7841_v46, 4  ;;  %v10175_v44 = vld [vmem:[%s14037_s1 + $0xdec] ss:$16 sps:$4 sm:$0xff]  }
 0x2d5   : > { %7428 = vmatpush1.bf16.msra.mxu0 %v10137_v9  ;;  %v10170_v9 = vld [vmem:[%s14037_s1 + $0xe08] ss:$16 sps:$4 sm:$0xff]  }
 0x2d6   : > { %7469 = vmatpush1.bf16.msra.mxu1 %v10140_v15  ;;  %v7837_v53 = vrot.slane %v7836_v27, 2  ;;  %v7843_v57 = vadd.f32 %v7842_v34, %v7841_v46  ;;  %7429 = vmatprep.subr.bf16.mxu0 %v10145_v1  ;;  %v10176_v34 = vld [vmem:[%s14037_s1 + $0xfe8] ss:$16 sps:$4 sm:$0xff]  }
 0x2d7   : > { %7470 = vmatprep.subr.bf16.mxu1 %v10148_v43 }
 0x2d8   : > { %v7838_v61 = vadd.f32 %v7837_v53, %v7836_v27  ;;  %v7844_v3 = vrot.slane %v7843_v57, 2  ;;  %v10173_v27 = vld [vmem:[%s14037_s1 + $0xde8] ss:$16 sps:$4 sm:$0xff]  }
 0x2d9   : > { %7430 = vmatpush1.bf16.msra.mxu0 %v10143_v40  ;;  %v10181_v40 = vld [vmem:[%s14037_s1 + $0xdcc] ss:$16 sps:$4 sm:$0xff]  }
 0x2da   : > { %7471 = vmatpush1.bf16.msra.mxu1 %v10146_v50  ;;  %v7839_v10 = vrot.slane %v7838_v61, 1  ;;  %v7845_v20 = vadd.f32 %v7844_v3, %v7843_v57  ;;  %7431 = vmatprep.subr.bf16.mxu0 %v10151_v58  ;;  %v10184_v50 = vld [vmem:[%s14037_s1 + $0xfcc] ss:$16 sps:$4 sm:$0xff]   ;;  %v10182_v3 = vld [vmem:[%s14037_s1 + $0xfc8] ss:$16 sps:$4 sm:$0xff]  }
 0x2db   : > { %7472 = vmatprep.subr.bf16.mxu1 %v10154_v2 }
 0x2dc   : > { %v7840_v14 = vadd.f32 %v7839_v10, %v7838_v61  ;;  %v7846_v16 = vrot.slane %v7845_v20, 1  ;;  %v10179_v61 = vld [vmem:[%s14037_s1 + $0xdc8] ss:$16 sps:$4 sm:$0xff]  }
 0x2dd   : > { %7432 = vmatpush1.bf16.msra.mxu0 %v10149_v5  ;;  %v10187_v5 = vld [vmem:[%s14037_s1 + $0xdac] ss:$16 sps:$4 sm:$0xff]  }
 0x2de   : > { %7473 = vmatpush1.bf16.msra.mxu1 %v10152_v7  ;;  %v7863_v59 = vmul.f32 0.25, %v7840_v14  ;;  %v7847_v62 = vadd.f32 %v7846_v16, %v7845_v20  ;;  %7433 = vmatprep.subr.bf16.mxu0 %v10157_v63  ;;  %v10190_v7 = vld [vmem:[%s14037_s1 + $0xfac] ss:$16 sps:$4 sm:$0xff]   ;;  %v10185_v14 = vld [vmem:[%s14037_s1 + $0xda8] ss:$16 sps:$4 sm:$0xff]  }
 0x2df   : > { %7474 = vmatprep.subr.bf16.mxu1 %v10160_v13  ;;  %v10188_v16 = vld [vmem:[%s14037_s1 + $0xfa8] ss:$16 sps:$4 sm:$0xff]  }
 0x2e0   : > { %v13073_v54 = vsub.f32 %v7171_v8, %v7863_v59  ;;  %v7864_v60 = vmul.f32 0.25, %v7847_v62  ;;  %v10169_v8 = vld [vmem:[%s14037_s1 + $0xc0c] ss:$16 sps:$4 sm:$0xff]  }
 0x2e1   : > { %7434 = vmatpush1.bf16.msra.mxu0 %v10155_v38  ;;  %v10193_v38 = vld [vmem:[%s14037_s1 + $0xd8c] ss:$16 sps:$4 sm:$0xff]  }
 0x2e2   : > { %7475 = vmatpush1.bf16.msra.mxu1 %v10158_v17  ;;  %v7871_v31 = vmul.f32 %v13073_v54, %v13073_v54  ;;  %v13083_v35 = vsub.f32 %v7173_v41, %v7864_v60  ;;  %7435 = vmatprep.subr.bf16.mxu0 %v10163_v18  ;;  %v10167_v41 = vld [vmem:[%s14037_s1 + $0xc08] ss:$16 sps:$4 sm:$0xff]   ;;  %v10196_v17 = vld [vmem:[%s14037_s1 + $0xf8c] ss:$16 sps:$4 sm:$0xff]  }
 0x2e3   : > { %7476 = vmatprep.subr.bf16.mxu1 %v10166_v19  ;;  %v10191_v19 = vld [vmem:[%s14037_s1 + $0xd88] ss:$16 sps:$4 sm:$0xff]  }
 0x2e4   : > { %v7875_v28 = vsel %vm7833_vm0, %v7871_v31, 0.0  ;;  %v7872_v39 = vmul.f32 %v13083_v35, %v13083_v35  ;;  %v10194_v60 = vld [vmem:[%s14037_s1 + $0xf88] ss:$16 sps:$4 sm:$0xff]  }
 0x2e5   : > { %v7876_v45 = vrot.slane %v7875_v28, 4  ;;  %7436 = vmatpush1.bf16.msra.mxu0 %v10161_v25  ;;  %v10199_v25 = vld [vmem:[%s14037_s1 + $0xd6c] ss:$16 sps:$4 sm:$0xff]   ;;  %v10197_v31 = vld [vmem:[%s14037_s1 + $0xd68] ss:$16 sps:$4 sm:$0xff]  }
 0x2e6   : > { %7477 = vmatpush1.bf16.msra.mxu1 %v10164_v4  ;;  %v7882_v15 = vsel %vm7833_vm0, %v7872_v39, 0.0  ;;  %7437 = vmatprep.subr.bf16.mxu0 %v10169_v8  ;;  %v10202_v4 = vld [vmem:[%s14037_s1 + $0xf6c] ss:$16 sps:$4 sm:$0xff]   ;;  %v10200_v8 = vld [vmem:[%s14037_s1 + $0xf68] ss:$16 sps:$4 sm:$0xff]  }
 0x2e7   : > { %7478 = vmatprep.subr.bf16.mxu1 %v10172_v26  ;;  %v7877_v0 = vadd.f32 %v7876_v45, %v7875_v28  ;;  %v7883_v1 = vrot.slane %v7882_v15, 4  ;;  %v10205_v26 = vld [vmem:[%s14037_s1 + $0xd4c] ss:$16 sps:$4 sm:$0xff]   ;;  %v10203_v39 = vld [vmem:[%s14037_s1 + $0xd48] ss:$16 sps:$4 sm:$0xff]  }
 0x2e8   : > { %v10208_v28 = vld [vmem:[%s14037_s1 + $0xf4c] ss:$16 sps:$4 sm:$0xff]   ;;  %v10206_v45 = vld [vmem:[%s14037_s1 + $0xf48] ss:$16 sps:$4 sm:$0xff]  }
 0x2e9   : > { %v7878_v43 = vrot.slane %v7877_v0, 2  ;;  %v7884_v46 = vadd.f32 %v7883_v1, %v7882_v15  ;;  %7438 = vmatpush1.bf16.msra.mxu0 %v10167_v41  ;;  %v10211_v41 = vld [vmem:[%s14037_s1 + $0xd2c] ss:$16 sps:$4 sm:$0xff]   ;;  %v10209_v15 = vld [vmem:[%s14037_s1 + $0xd28] ss:$16 sps:$4 sm:$0xff]  }
 0x2ea   : > { %7479 = vmatpush1.bf16.msra.mxu1 %v10170_v9  ;;  %7439 = vmatprep.subr.bf16.mxu0 %v10175_v44  ;;  %v10214_v9 = vld [vmem:[%s14037_s1 + $0xf2c] ss:$16 sps:$4 sm:$0xff]   ;;  %v10212_v44 = vld [vmem:[%s14037_s1 + $0xf28] ss:$16 sps:$4 sm:$0xff]  }
 0x2eb   : > { %7480 = vmatprep.subr.bf16.mxu1 %v10178_v48  ;;  %v7879_v53 = vadd.f32 %v7878_v43, %v7877_v0  ;;  %v7885_v57 = vrot.slane %v7884_v46, 2  ;;  %v10217_v0 = vld [vmem:[%s14037_s1 + $0xd0c] ss:$16 sps:$4 sm:$0xff]  }
 0x2ec   : > { %v10220_v1 = vld [vmem:[%s14037_s1 + $0xf0c] ss:$16 sps:$4 sm:$0xff]  }
 0x2ed   : > { %v7880_v58 = vrot.slane %v7879_v53, 1  ;;  %v7886_v2 = vadd.f32 %v7885_v57, %v7884_v46  ;;  %7440 = vmatpush2.bf16.msra.mxu0 %v10173_v27  ;;  %v10215_v27 = vld [vmem:[%s14037_s1 + $0xd08] ss:$16 sps:$4 sm:$0xff]   ;;  %v10226_v57 = vld [vmem:[%s14037_s1 + $0x12ec] ss:$16 sps:$4 sm:$0xff]  }
 0x2ee   : > { %7481 = vmatpush2.bf16.msra.mxu1 %v10176_v34  ;;  %7441 = vmatprep.subr.bf16.mxu0 %v10181_v40 }
 0x2ef   : > { %7482 = vmatprep.subr.bf16.mxu1 %v10184_v50  ;;  %v7881_v10 = vadd.f32 %v7880_v58, %v7879_v53  ;;  %v7887_v20 = vrot.slane %v7886_v2, 1  ;;  %v10218_v50 = vld [vmem:[%s14037_s1 + $0xf08] ss:$16 sps:$4 sm:$0xff]   ;;  %v1215_v53 = vsub.s32 2, %v10774_v42  ;;  %v1219_v58 = vsub.s32 3, %v10774_v42 }
 0x2f1   : > { %v7903_v63 = vmul.f32 0.25, %v7881_v10  ;;  %v7888_v13 = vadd.f32 %v7887_v20, %v7886_v2  ;;  %7442 = vmatpush2.bf16.msra.mxu0 %v10179_v61  ;;  %v10224_v10 = vld [vmem:[%s14037_s1 + $0x12e8] ss:$16 sps:$4 sm:$0xff]   ;;  %v10229_v20 = vld [vmem:[%s14037_s1 + $0x10cc] ss:$16 sps:$4 sm:$0xff]  }
 0x2f2   : > { %7483 = vmatpush2.bf16.msra.mxu1 %v10182_v3  ;;  %7443 = vmatprep.subr.bf16.mxu0 %v10187_v5  ;;  %v10613_v3 = vld [vmem:[%s14038_s2] sm:$0xf] }
 0x2f3   : > { %7484 = vmatprep.subr.bf16.mxu1 %v10190_v7  ;;  %v7907_v59 = vadd.f32 1e-05, %v7903_v63  ;;  %v7904_v62 = vmul.f32 0.25, %v7888_v13  ;;  %v1216_v5 = vrot.slane %v10613_v3, %v1215_v53  ;;  %v10221_v7 = vld [vmem:[%s14037_s1 + $0x10e8] ss:$16 sps:$4 sm:$0xff]   ;;  %v1220_v13 = vrot.slane %v10613_v3, %v1219_v58 }
 0x2f4   : > { %v10232_v63 = vld [vmem:[%s14037_s1 + $0x12cc] ss:$16 sps:$4 sm:$0xff]  }
 0x2f5   : > { %10605 = vrsqrt.f32 %v7907_v59  ;;  %v7908_v18 = vadd.f32 1e-05, %v7904_v62  ;;  %7444 = vmatpush2.bf16.msra.mxu0 %v10185_v14  ;;  %v10230_v59 = vld [vmem:[%s14037_s1 + $0x12c8] ss:$16 sps:$4 sm:$0xff]   ;;  %v10265_v53 = vld [vmem:[%s14037_s1 + $0x100c] ss:$16 sps:$4 sm:$0xff]  }
 0x2f6   : > { %7485 = vmatpush2.bf16.msra.mxu1 %v10188_v16  ;;  %7445 = vmatprep.subr.bf16.mxu0 %v10193_v38  ;;  %v10271_v58 = vld [vmem:[%s14037_s1 + $0x11ec] ss:$16 sps:$4 sm:$0xff]  }
 0x2f7   : > { %7486 = vmatprep.subr.bf16.mxu1 %v10196_v17  ;;  %10607 = vrsqrt.f32 %v7908_v18  ;;  %v10227_v17 = vld [vmem:[%s14037_s1 + $0x10c8] ss:$16 sps:$4 sm:$0xff]   ;;  %v10274_v3 = vld [vmem:[%s14037_s1 + $0x13ec] ss:$16 sps:$4 sm:$0xff]  }
 0x2f9   : > { %7446 = vmatpush2.bf16.msra.mxu0 %v10191_v19 }
 0x2fa   : > { %7487 = vmatpush2.bf16.msra.mxu1 %v10194_v60  ;;  %7447 = vmatprep.subr.bf16.mxu0 %v10199_v25 }
 0x2fb   : > { %7488 = vmatprep.subr.bf16.mxu1 %v10202_v4 }
 0x2fd   : > { %7448 = vmatpush2.bf16.msra.mxu0 %v10197_v31 }
 0x2fe   : > { %7489 = vmatpush2.bf16.msra.mxu1 %v10200_v8  ;;  %7449 = vmatprep.subr.bf16.mxu0 %v10205_v26  ;;  %v10233_v8 = vld [vmem:[%s14037_s1 + $0x10a8] ss:$16 sps:$4 sm:$0xff]  }
 0x2ff   : > { %7490 = vmatprep.subr.bf16.mxu1 %v10208_v28  ;;  %v10236_v26 = vld [vmem:[%s14037_s1 + $0x12a8] ss:$16 sps:$4 sm:$0xff]  }
 0x301   : > { %7450 = vmatpush2.bf16.msra.mxu0 %v10203_v39 }
 0x302   : > { %7491 = vmatpush2.bf16.msra.mxu1 %v10206_v45  ;;  %v10606_v48 = vpop.eup %10605  ;;  %7451 = vmatprep.subr.bf16.mxu0 %v10211_v41  ;;  %v10239_v45 = vld [vmem:[%s14037_s1 + $0x1088] ss:$16 sps:$4 sm:$0xff]  }
 0x303   : > { %7492 = vmatprep.subr.bf16.mxu1 %v10214_v9  ;;  %v7915_v43 = vmul.f32 %v10606_v48, %v13073_v54  ;;  %v10223_v54 = vld [vmem:[%s14037_s1 + $0x10ec] ss:$16 sps:$4 sm:$0xff]   ;;  %v10242_v41 = vld [vmem:[%s14037_s1 + $0x1288] ss:$16 sps:$4 sm:$0xff]  }
 0x304   : > { %v10608_v46 = vpop.eup %10607  ;;  %v10247_v9 = vld [vmem:[%s14037_s1 + $0x106c] ss:$16 sps:$4 sm:$0xff]   ;;  %v10248_v48 = vld [vmem:[%s14037_s1 + $0x1268] ss:$16 sps:$4 sm:$0xff]  }
 0x305   : > { %v7923_v34 = vmul.f32 0.2, %v7915_v43  ;;  %v7916_v40 = vmul.f32 %v10608_v46, %v13083_v35  ;;  %7452 = vmatpush2.bf16.msra.mxu0 %v10209_v15  ;;  %vm7919_vm1 = vcmp.ge.f32.partialorder %v7915_v43, 0.0  ;;  %v10250_v15 = vld [vmem:[%s14037_s1 + $0x126c] ss:$16 sps:$4 sm:$0xff]  }
 0x306   : > { %7493 = vmatpush2.bf16.msra.mxu1 %v10212_v44  ;;  %7453 = vmatprep.subr.bf16.mxu0 %v10217_v0  ;;  %v10245_v44 = vld [vmem:[%s14037_s1 + $0x1068] ss:$16 sps:$4 sm:$0xff]   ;;  %v10253_v0 = vld [vmem:[%s14037_s1 + $0x104c] ss:$16 sps:$4 sm:$0xff]  }
 0x307   : > { %7494 = vmatprep.subr.bf16.mxu1 %v10220_v1  ;;  %vm7920_vm2 = vcmp.ge.f32.partialorder %v7916_v40, 0.0  ;;  %v7924_v35 = vmul.f32 0.2, %v7916_v40  ;;  %v13207_v2 = vsel %vm7919_vm1, %v7915_v43, %v7923_v34  ;;  %v10256_v1 = vld [vmem:[%s14037_s1 + $0x124c] ss:$16 sps:$4 sm:$0xff]  }
 0x308   : > { %v10251_v43 = vld [vmem:[%s14037_s1 + $0x1048] ss:$16 sps:$4 sm:$0xff]   ;;  %v10262_v34 = vld [vmem:[%s14037_s1 + $0x122c] ss:$16 sps:$4 sm:$0xff]  }
 0x309   : > { %v13209_v61 = vsel %vm7920_vm2, %v7916_v40, %v7924_v35  ;;  %7454 = vmatpush2.bf16.msra.mxu0 %v10215_v27  ;;  %v10254_v46 = vld [vmem:[%s14037_s1 + $0x1248] ss:$16 sps:$4 sm:$0xff]   ;;  %v10259_v27 = vld [vmem:[%s14037_s1 + $0x102c] ss:$16 sps:$4 sm:$0xff]  }
 0x30a   : > { %7495 = vmatpush2.bf16.msra.mxu1 %v10218_v50  ;;  %v9046_v42 = vpack.c.bf16 %v13209_v61, %v13207_v2  ;;  %7505 = vmatprep.subr.bf16.mxu0 %v10223_v54  ;;  %v10257_v40 = vld [vmem:[%s14037_s1 + $0x1028] ss:$16 sps:$4 sm:$0xff]   ;;  %v10268_v54 = vld [vmem:[%s14037_s1 + $0x120c] ss:$16 sps:$4 sm:$0xff]  }
 0x30b   : > { %7546 = vmatprep.subr.bf16.mxu1 %v10226_v57  ;;  %v10260_v50 = vld [vmem:[%s14037_s1 + $0x1228] ss:$16 sps:$4 sm:$0xff]  }
 0x30c   : > { %v7211_v14 = vpop.f32.mrf.mxu0  ;;  %7456 = vmatmul.mubr.bf16.vlgmr.msra.gmra.mxu0 %v11307_v55  ;;  %v10235_v55 = vld [vmem:[%s14037_s1 + $0x10ac] ss:$16 sps:$4 sm:$0xff]   ;;  %v10263_v57 = vld [vmem:[%s14037_s1 + $0x1008] ss:$16 sps:$4 sm:$0xff]  }
 0x30d   : > { %v7252_v16 = vpop.f32.mrf.mxu1  ;;  %7497 = vmatmul.mubr.bf16.vlgmr.msra.gmra.mxu1 %v11310_v56  ;;  %v7212_v38 = vadd.f32 %v7211_v14, %v1216_v5  ;;  %7506 = vmatpush1.bf16.msra.mxu0 %v10221_v7  ;;  %v10238_v56 = vld [vmem:[%s14037_s1 + $0x12ac] ss:$16 sps:$4 sm:$0xff]   ;;  %v10266_v35 = vld [vmem:[%s14037_s1 + $0x1208] ss:$16 sps:$4 sm:$0xff]  }
 0x30e   : > { %7547 = vmatpush1.bf16.msra.mxu1 %v10224_v10  ;;  %v7213_v62 = vpop.f32.mrf.mxu0  ;;  %7507 = vmatprep.subr.bf16.mxu0 %v10229_v20  ;;  %v10269_v5 = vld [vmem:[%s14037_s1 + $0x11e8] ss:$16 sps:$4 sm:$0xff]   ;;  %v10277_v10 = vld [vmem:[%s14037_s1 + $0x11cc] ss:$16 sps:$4 sm:$0xff]  }
 0x30f   : > { %v7254_v18 = vpop.f32.mrf.mxu1  ;;  %7548 = vmatprep.subr.bf16.mxu1 %v10232_v63  ;;  %v13242_v19 = vadd.f32 %v7252_v16, %v7212_v38  ;;  %v7214_v60 = vadd.f32 %v7213_v62, %v1220_v13  ;;  %7537 = vmatprep.mubr.bf16.mxu0 %v11542_v29  ;;  %v10241_v29 = vld [vmem:[%s14037_s1 + $0x108c] ss:$16 sps:$4 sm:$0xff]   ;;  %v10272_v7 = vld [vmem:[%s14037_s1 + $0x13e8] ss:$16 sps:$4 sm:$0xff]  }
 0x310   : > { %7578 = vmatprep.mubr.bf16.mxu1 %v11546_v30  ;;  %v7215_v25 = vpop.f32.mrf.mxu0  ;;  %v10244_v30 = vld [vmem:[%s14037_s1 + $0x128c] ss:$16 sps:$4 sm:$0xff]   ;;  %v10275_v63 = vld [vmem:[%s14037_s1 + $0x11c8] ss:$16 sps:$4 sm:$0xff]  }
 0x311   : > { %v7256_v4 = vpop.f32.mrf.mxu1  ;;  %v13246_v31 = vadd.f32 %v7254_v18, %v7214_v60  ;;  %7508 = vmatpush1.bf16.msra.mxu0 %v10227_v17  ;;  %v10280_v20 = vld [vmem:[%s14037_s1 + $0x13cc] ss:$16 sps:$4 sm:$0xff]   ;;  %v10278_v13 = vld [vmem:[%s14037_s1 + $0x13c8] ss:$16 sps:$4 sm:$0xff]  }
 0x312   : > { %7549 = vmatpush1.bf16.msra.mxu1 %v10230_v59  ;;  %v7216_v28 = vpop.f32.mrf.mxu0  ;;  %7509 = vmatprep.subr.bf16.mxu0 %v10235_v55  ;;  %v10283_v14 = vld [vmem:[%s14037_s1 + $0x11ac] ss:$16 sps:$4 sm:$0xff]   ;;  %v10281_v38 = vld [vmem:[%s14037_s1 + $0x11a8] ss:$16 sps:$4 sm:$0xff]  }
 0x313   : > { %v7257_v39 = vpop.f32.mrf.mxu1  ;;  %7550 = vmatprep.subr.bf16.mxu1 %v10238_v56  ;;  %v10286_v16 = vld [vmem:[%s14037_s1 + $0x13ac] ss:$16 sps:$4 sm:$0xff]   ;;  %v10284_v17 = vld [vmem:[%s14037_s1 + $0x13a8] ss:$16 sps:$4 sm:$0xff]  }
 0x314   : > { %v10289_v59 = vld [vmem:[%s14037_s1 + $0x118c] ss:$16 sps:$4 sm:$0xff]   ;;  %v10287_v18 = vld [vmem:[%s14037_s1 + $0x1188] ss:$16 sps:$4 sm:$0xff]  }
 0x315   : > { %7510 = vmatpush1.bf16.msra.mxu0 %v10233_v8  ;;  %v10292_v62 = vld [vmem:[%s14037_s1 + $0x138c] ss:$16 sps:$4 sm:$0xff]   ;;  %v10290_v55 = vld [vmem:[%s14037_s1 + $0x1388] ss:$16 sps:$4 sm:$0xff]  }
 0x316   : > { %7551 = vmatpush1.bf16.msra.mxu1 %v10236_v26  ;;  %7511 = vmatprep.subr.bf16.mxu0 %v10241_v29  ;;  %v10295_v56 = vld [vmem:[%s14037_s1 + $0x116c] ss:$16 sps:$4 sm:$0xff]   ;;  %v10293_v25 = vld [vmem:[%s14037_s1 + $0x1168] ss:$16 sps:$4 sm:$0xff]  }
 0x317   : > { %7552 = vmatprep.subr.bf16.mxu1 %v10244_v30  ;;  %v10298_v60 = vld [vmem:[%s14037_s1 + $0x136c] ss:$16 sps:$4 sm:$0xff]   ;;  %v10296_v4 = vld [vmem:[%s14037_s1 + $0x1368] ss:$16 sps:$4 sm:$0xff]  }
 0x318   : > { %v10301_v8 = vld [vmem:[%s14037_s1 + $0x114c] ss:$16 sps:$4 sm:$0xff]   ;;  %v10299_v28 = vld [vmem:[%s14037_s1 + $0x1148] ss:$16 sps:$4 sm:$0xff]  }
 0x319   : > { %7512 = vmatpush1.bf16.msra.mxu0 %v10239_v45  ;;  %v10304_v26 = vld [vmem:[%s14037_s1 + $0x134c] ss:$16 sps:$4 sm:$0xff]   ;;  %v10302_v39 = vld [vmem:[%s14037_s1 + $0x1348] ss:$16 sps:$4 sm:$0xff]  }
 0x31a   : > { %7553 = vmatpush1.bf16.msra.mxu1 %v10242_v41  ;;  %7513 = vmatprep.subr.bf16.mxu0 %v10247_v9  ;;  %v10307_v29 = vld [vmem:[%s14037_s1 + $0x112c] ss:$16 sps:$4 sm:$0xff]   ;;  %v10305_v45 = vld [vmem:[%s14037_s1 + $0x1128] ss:$16 sps:$4 sm:$0xff]  }
 0x31b   : > { %7554 = vmatprep.subr.bf16.mxu1 %v10250_v15  ;;  %v10310_v30 = vld [vmem:[%s14037_s1 + $0x132c] ss:$16 sps:$4 sm:$0xff]   ;;  %v10308_v41 = vld [vmem:[%s14037_s1 + $0x1328] ss:$16 sps:$4 sm:$0xff]  }
 0x31c   : > { %v10313_v9 = vld [vmem:[%s14037_s1 + $0x110c] ss:$16 sps:$4 sm:$0xff]  }
 0x31d   : > { %7514 = vmatpush1.bf16.msra.mxu0 %v10245_v44  ;;  %v10316_v15 = vld [vmem:[%s14037_s1 + $0x130c] ss:$16 sps:$4 sm:$0xff]   ;;  %v10311_v44 = vld [vmem:[%s14037_s1 + $0x1108] ss:$16 sps:$4 sm:$0xff]  }
 0x31e   : > { %7555 = vmatpush1.bf16.msra.mxu1 %v10248_v48  ;;  %7515 = vmatprep.subr.bf16.mxu0 %v10253_v0  ;;  %v10314_v48 = vld [vmem:[%s14037_s1 + $0x1308] ss:$16 sps:$4 sm:$0xff]   ;;  %v10319_v0 = vld [vmem:[%s14037_s1 + $0x14ec] ss:$16 sps:$4 sm:$0xff]  }
 0x31f   : > { %7556 = vmatprep.subr.bf16.mxu1 %v10256_v1  ;;  %v10322_v1 = vld [vmem:[%s14037_s1 + $0x16ec] ss:$16 sps:$4 sm:$0xff]  }
 0x321   : > { %7516 = vmatpush1.bf16.msra.mxu0 %v10251_v43  ;;  %v10317_v43 = vld [vmem:[%s14037_s1 + $0x14e8] ss:$16 sps:$4 sm:$0xff]  }
 0x322   : > { %7557 = vmatpush1.bf16.msra.mxu1 %v10254_v46  ;;  %7517 = vmatprep.subr.bf16.mxu0 %v10259_v27  ;;  %v10320_v46 = vld [vmem:[%s14037_s1 + $0x16e8] ss:$16 sps:$4 sm:$0xff]   ;;  %v10325_v27 = vld [vmem:[%s14037_s1 + $0x14cc] ss:$16 sps:$4 sm:$0xff]  }
 0x323   : > { %7558 = vmatprep.subr.bf16.mxu1 %v10262_v34  ;;  %v10328_v34 = vld [vmem:[%s14037_s1 + $0x16cc] ss:$16 sps:$4 sm:$0xff]  }
 0x325   : > { %7518 = vmatpush1.bf16.msra.mxu0 %v10257_v40 }
 0x326   : > { %7559 = vmatpush1.bf16.msra.mxu1 %v10260_v50  ;;  %7519 = vmatprep.subr.bf16.mxu0 %v10265_v53 }
 0x327   : > { %7560 = vmatprep.subr.bf16.mxu1 %v10268_v54  ;;  %v10323_v54 = vld [vmem:[%s14037_s1 + $0x14c8] ss:$16 sps:$4 sm:$0xff]  }
 0x329   : > { %7520 = vmatpush1.bf16.msra.mxu0 %v10263_v57  ;;  %v10326_v57 = vld [vmem:[%s14037_s1 + $0x16c8] ss:$16 sps:$4 sm:$0xff]  }
 0x32a   : > { %7561 = vmatpush1.bf16.msra.mxu1 %v10266_v35  ;;  %7521 = vmatprep.subr.bf16.mxu0 %v10271_v58 }
 0x32b   : > { %7562 = vmatprep.subr.bf16.mxu1 %v10274_v3 }
 0x32d   : > { %7522 = vmatpush2.bf16.msra.mxu0 %v10269_v5 }
 0x32e   : > { %7563 = vmatpush2.bf16.msra.mxu1 %v10272_v7  ;;  %7523 = vmatprep.subr.bf16.mxu0 %v10277_v10 }
 0x32f   : > { %7564 = vmatprep.subr.bf16.mxu1 %v10280_v20  ;;  %v10329_v20 = vld [vmem:[%s14037_s1 + $0x14a8] ss:$16 sps:$4 sm:$0xff]  }
 0x331   : > { %7524 = vmatpush2.bf16.msra.mxu0 %v10275_v63  ;;  %v10332_v63 = vld [vmem:[%s14037_s1 + $0x16a8] ss:$16 sps:$4 sm:$0xff]  }
 0x332   : > { %7565 = vmatpush2.bf16.msra.mxu1 %v10278_v13  ;;  %7525 = vmatprep.subr.bf16.mxu0 %v10283_v14  ;;  %v10335_v14 = vld [vmem:[%s14037_s1 + $0x1488] ss:$16 sps:$4 sm:$0xff]  }
 0x333   : > { %7566 = vmatprep.subr.bf16.mxu1 %v10286_v16  ;;  %v10338_v16 = vld [vmem:[%s14037_s1 + $0x1688] ss:$16 sps:$4 sm:$0xff]  }
 0x335   : > { %7526 = vmatpush2.bf16.msra.mxu0 %v10281_v38  ;;  %v10343_v38 = vld [vmem:[%s14037_s1 + $0x146c] ss:$16 sps:$4 sm:$0xff]  }
 0x336   : > { %7567 = vmatpush2.bf16.msra.mxu1 %v10284_v17  ;;  %7527 = vmatprep.subr.bf16.mxu0 %v10289_v59  ;;  %v10346_v17 = vld [vmem:[%s14037_s1 + $0x166c] ss:$16 sps:$4 sm:$0xff]   ;;  %v10341_v59 = vld [vmem:[%s14037_s1 + $0x1468] ss:$16 sps:$4 sm:$0xff]  }
 0x337   : > { %7568 = vmatprep.subr.bf16.mxu1 %v10292_v62  ;;  %v10344_v62 = vld [vmem:[%s14037_s1 + $0x1668] ss:$16 sps:$4 sm:$0xff]  }
 0x339   : > { %7528 = vmatpush2.bf16.msra.mxu0 %v10287_v18  ;;  %v10349_v18 = vld [vmem:[%s14037_s1 + $0x144c] ss:$16 sps:$4 sm:$0xff]  }
 0x33a   : > { %7569 = vmatpush2.bf16.msra.mxu1 %v10290_v55  ;;  %7529 = vmatprep.subr.bf16.mxu0 %v10295_v56  ;;  %v10352_v55 = vld [vmem:[%s14037_s1 + $0x164c] ss:$16 sps:$4 sm:$0xff]   ;;  %v10347_v56 = vld [vmem:[%s14037_s1 + $0x1448] ss:$16 sps:$4 sm:$0xff]  }
 0x33b   : > { %7570 = vmatprep.subr.bf16.mxu1 %v10298_v60  ;;  %v10350_v60 = vld [vmem:[%s14037_s1 + $0x1648] ss:$16 sps:$4 sm:$0xff]  }
 0x33d   : > { %7530 = vmatpush2.bf16.msra.mxu0 %v10293_v25  ;;  %v10355_v25 = vld [vmem:[%s14037_s1 + $0x142c] ss:$16 sps:$4 sm:$0xff]  }
 0x33e   : > { %7571 = vmatpush2.bf16.msra.mxu1 %v10296_v4  ;;  %7531 = vmatprep.subr.bf16.mxu0 %v10301_v8  ;;  %v10358_v4 = vld [vmem:[%s14037_s1 + $0x162c] ss:$16 sps:$4 sm:$0xff]   ;;  %v10353_v8 = vld [vmem:[%s14037_s1 + $0x1428] ss:$16 sps:$4 sm:$0xff]  }
 0x33f   : > { %7572 = vmatprep.subr.bf16.mxu1 %v10304_v26  ;;  %v10356_v26 = vld [vmem:[%s14037_s1 + $0x1628] ss:$16 sps:$4 sm:$0xff]  }
 0x341   : > { %7532 = vmatpush2.bf16.msra.mxu0 %v10299_v28  ;;  %v10361_v28 = vld [vmem:[%s14037_s1 + $0x140c] ss:$16 sps:$4 sm:$0xff]  }
 0x342   : > { %7573 = vmatpush2.bf16.msra.mxu1 %v10302_v39  ;;  %7533 = vmatprep.subr.bf16.mxu0 %v10307_v29  ;;  %v10364_v39 = vld [vmem:[%s14037_s1 + $0x160c] ss:$16 sps:$4 sm:$0xff]   ;;  %v10359_v29 = vld [vmem:[%s14037_s1 + $0x1408] ss:$16 sps:$4 sm:$0xff]  }
 0x343   : > { %7574 = vmatprep.subr.bf16.mxu1 %v10310_v30  ;;  %v10362_v30 = vld [vmem:[%s14037_s1 + $0x1608] ss:$16 sps:$4 sm:$0xff]  }
 0x345   : > { %7534 = vmatpush2.bf16.msra.mxu0 %v10305_v45  ;;  %v10367_v45 = vld [vmem:[%s14037_s1 + $0x15ec] ss:$16 sps:$4 sm:$0xff]  }
 0x346   : > { %7575 = vmatpush2.bf16.msra.mxu1 %v10308_v41  ;;  %7535 = vmatprep.subr.bf16.mxu0 %v10313_v9  ;;  %v10370_v41 = vld [vmem:[%s14037_s1 + $0x17ec] ss:$16 sps:$4 sm:$0xff]   ;;  %v10365_v9 = vld [vmem:[%s14037_s1 + $0x15e8] ss:$16 sps:$4 sm:$0xff]  }
 0x347   : > { %7576 = vmatprep.subr.bf16.mxu1 %v10316_v15  ;;  %v10368_v15 = vld [vmem:[%s14037_s1 + $0x17e8] ss:$16 sps:$4 sm:$0xff]  }
 0x349   : > { %7536 = vmatpush2.bf16.msra.mxu0 %v10311_v44  ;;  %v10373_v44 = vld [vmem:[%s14037_s1 + $0x15cc] ss:$16 sps:$4 sm:$0xff]  }
 0x34a   : > { %7577 = vmatpush2.bf16.msra.mxu1 %v10314_v48  ;;  %7587 = vmatprep.subr.bf16.mxu0 %v10319_v0  ;;  %v10376_v48 = vld [vmem:[%s14037_s1 + $0x17cc] ss:$16 sps:$4 sm:$0xff]   ;;  %v10371_v0 = vld [vmem:[%s14037_s1 + $0x15c8] ss:$16 sps:$4 sm:$0xff]  }
 0x34b   : > { %7628 = vmatprep.subr.bf16.mxu1 %v10322_v1  ;;  %v10374_v1 = vld [vmem:[%s14037_s1 + $0x17c8] ss:$16 sps:$4 sm:$0xff]  }
 0x34c   : > { %v7293_v40 = vpop.f32.mrf.mxu0  ;;  %7538 = vmatmul.mubr.bf16.vlgmr.msra.gmra.mxu0 %v11523_v21  ;;  %v10331_v21 = vld [vmem:[%s14037_s1 + $0x14ac] ss:$16 sps:$4 sm:$0xff]  }
 0x34d   : > { %v7334_v50 = vpop.f32.mrf.mxu1  ;;  %7579 = vmatmul.mubr.bf16.vlgmr.msra.gmra.mxu1 %v11526_v22  ;;  %v7294_v53 = vadd.f32 %v7293_v40, %v13242_v19  ;;  %7588 = vmatpush1.bf16.msra.mxu0 %v10317_v43  ;;  %v10334_v22 = vld [vmem:[%s14037_s1 + $0x16ac] ss:$16 sps:$4 sm:$0xff]  }
 0x34e   : > { %7629 = vmatpush1.bf16.msra.mxu1 %v10320_v46  ;;  %v7295_v35 = vpop.f32.mrf.mxu0  ;;  %7589 = vmatprep.subr.bf16.mxu0 %v10325_v27  ;;  %v10379_v43 = vld [vmem:[%s14037_s1 + $0x15ac] ss:$16 sps:$4 sm:$0xff]   ;;  %v10377_v27 = vld [vmem:[%s14037_s1 + $0x15a8] ss:$16 sps:$4 sm:$0xff]  }
 0x34f   : > { %v7336_v58 = vpop.f32.mrf.mxu1  ;;  %7630 = vmatprep.subr.bf16.mxu1 %v10328_v34  ;;  %v13443_v19 = vadd.f32 %v7334_v50, %v7294_v53  ;;  %v7296_v3 = vadd.f32 %v7295_v35, %v13246_v31  ;;  %7619 = vmatprep.mubr.bf16.mxu0 %v11763_v32  ;;  %v10337_v32 = vld [vmem:[%s14037_s1 + $0x148c] ss:$16 sps:$4 sm:$0xff]   ;;  %v10380_v34 = vld [vmem:[%s14037_s1 + $0x17a8] ss:$16 sps:$4 sm:$0xff]  }
 0x350   : > { %7660 = vmatprep.mubr.bf16.mxu1 %v11767_v33  ;;  %v7297_v5 = vpop.f32.mrf.mxu0  ;;  %v10340_v33 = vld [vmem:[%s14037_s1 + $0x168c] ss:$16 sps:$4 sm:$0xff]   ;;  %v10383_v53 = vld [vmem:[%s14037_s1 + $0x1588] ss:$16 sps:$4 sm:$0xff]  }
 0x351   : > { %v7338_v7 = vpop.f32.mrf.mxu1  ;;  %v13448_v10 = vadd.f32 %v7336_v58, %v7296_v3  ;;  %7590 = vmatpush1.bf16.msra.mxu0 %v10323_v54  ;;  %v10382_v46 = vld [vmem:[%s14037_s1 + $0x17ac] ss:$16 sps:$4 sm:$0xff]   ;;  %v10386_v54 = vld [vmem:[%s14037_s1 + $0x1788] ss:$16 sps:$4 sm:$0xff]  }
 0x352   : > { %7631 = vmatpush1.bf16.msra.mxu1 %v10326_v57  ;;  %v7298_v13 = vpop.f32.mrf.mxu0  ;;  %7591 = vmatprep.subr.bf16.mxu0 %v10331_v21  ;;  %v10385_v40 = vld [vmem:[%s14037_s1 + $0x158c] ss:$16 sps:$4 sm:$0xff]   ;;  %v10389_v58 = vld [vmem:[%s14037_s1 + $0x1568] ss:$16 sps:$4 sm:$0xff]  }
 0x353   : > { %v7339_v31 = vpop.f32.mrf.mxu1  ;;  %7632 = vmatprep.subr.bf16.mxu1 %v10334_v22  ;;  %v10388_v50 = vld [vmem:[%s14037_s1 + $0x178c] ss:$16 sps:$4 sm:$0xff]   ;;  %v10392_v21 = vld [vmem:[%s14037_s1 + $0x1768] ss:$16 sps:$4 sm:$0xff]  }
 0x354   : > { %v10391_v57 = vld [vmem:[%s14037_s1 + $0x156c] ss:$16 sps:$4 sm:$0xff]   ;;  %v10395_v5 = vld [vmem:[%s14037_s1 + $0x1548] ss:$16 sps:$4 sm:$0xff]  }
 0x355   : > { %7592 = vmatpush1.bf16.msra.mxu0 %v10329_v20  ;;  %v10394_v35 = vld [vmem:[%s14037_s1 + $0x176c] ss:$16 sps:$4 sm:$0xff]   ;;  %v10398_v7 = vld [vmem:[%s14037_s1 + $0x1748] ss:$16 sps:$4 sm:$0xff]  }
 0x356   : > { %7633 = vmatpush1.bf16.msra.mxu1 %v10332_v63  ;;  %7593 = vmatprep.subr.bf16.mxu0 %v10337_v32  ;;  %v10397_v22 = vld [vmem:[%s14037_s1 + $0x154c] ss:$16 sps:$4 sm:$0xff]   ;;  %v10401_v13 = vld [vmem:[%s14037_s1 + $0x1528] ss:$16 sps:$4 sm:$0xff]  }
 0x357   : > { %7634 = vmatprep.subr.bf16.mxu1 %v10340_v33  ;;  %v10400_v3 = vld [vmem:[%s14037_s1 + $0x174c] ss:$16 sps:$4 sm:$0xff]   ;;  %v10404_v31 = vld [vmem:[%s14037_s1 + $0x1728] ss:$16 sps:$4 sm:$0xff]  }
 0x358   : > { %v10403_v20 = vld [vmem:[%s14037_s1 + $0x152c] ss:$16 sps:$4 sm:$0xff]  }
 0x359   : > { %7594 = vmatpush1.bf16.msra.mxu0 %v10335_v14  ;;  %v10406_v63 = vld [vmem:[%s14037_s1 + $0x172c] ss:$16 sps:$4 sm:$0xff]   ;;  %v10407_v14 = vld [vmem:[%s14037_s1 + $0x1508] ss:$16 sps:$4 sm:$0xff]  }
 0x35a   : > { %7635 = vmatpush1.bf16.msra.mxu1 %v10338_v16  ;;  %7595 = vmatprep.subr.bf16.mxu0 %v10343_v38  ;;  %v10409_v32 = vld [vmem:[%s14037_s1 + $0x150c] ss:$16 sps:$4 sm:$0xff]   ;;  %v10410_v16 = vld [vmem:[%s14037_s1 + $0x1708] ss:$16 sps:$4 sm:$0xff]  }
 0x35b   : > { %7636 = vmatprep.subr.bf16.mxu1 %v10346_v17  ;;  %v10412_v33 = vld [vmem:[%s14037_s1 + $0x170c] ss:$16 sps:$4 sm:$0xff]  }
 0x35c   : > { %v10415_v38 = vld [vmem:[%s14037_s1 + $0x18ec] ss:$16 sps:$4 sm:$0xff]  }
 0x35d   : > { %7596 = vmatpush1.bf16.msra.mxu0 %v10341_v59  ;;  %v10418_v17 = vld [vmem:[%s14037_s1 + $0x1aec] ss:$16 sps:$4 sm:$0xff]   ;;  %v10413_v59 = vld [vmem:[%s14037_s1 + $0x18e8] ss:$16 sps:$4 sm:$0xff]  }
 0x35e   : > { %7637 = vmatpush1.bf16.msra.mxu1 %v10344_v62  ;;  %7597 = vmatprep.subr.bf16.mxu0 %v10349_v18  ;;  %v10416_v62 = vld [vmem:[%s14037_s1 + $0x1ae8] ss:$16 sps:$4 sm:$0xff]   ;;  %v10421_v18 = vld [vmem:[%s14037_s1 + $0x18cc] ss:$16 sps:$4 sm:$0xff]  }
 0x35f   : > { %7638 = vmatprep.subr.bf16.mxu1 %v10352_v55  ;;  %v10424_v55 = vld [vmem:[%s14037_s1 + $0x1acc] ss:$16 sps:$4 sm:$0xff]  }
 0x361   : > { %7598 = vmatpush1.bf16.msra.mxu0 %v10347_v56 }
 0x362   : > { %7639 = vmatpush1.bf16.msra.mxu1 %v10350_v60  ;;  %7599 = vmatprep.subr.bf16.mxu0 %v10355_v25 }
 0x363   : > { %7640 = vmatprep.subr.bf16.mxu1 %v10358_v4  ;;  %v10419_v4 = vld [vmem:[%s14037_s1 + $0x18c8] ss:$16 sps:$4 sm:$0xff]  }
 0x365   : > { %7600 = vmatpush1.bf16.msra.mxu0 %v10353_v8  ;;  %v10422_v8 = vld [vmem:[%s14037_s1 + $0x1ac8] ss:$16 sps:$4 sm:$0xff]  }
 0x366   : > { %7641 = vmatpush1.bf16.msra.mxu1 %v10356_v26  ;;  %7601 = vmatprep.subr.bf16.mxu0 %v10361_v28 }
 0x367   : > { %7642 = vmatprep.subr.bf16.mxu1 %v10364_v39 }
 0x369   : > { %7602 = vmatpush1.bf16.msra.mxu0 %v10359_v29 }
 0x36a   : > { %7643 = vmatpush1.bf16.msra.mxu1 %v10362_v30  ;;  %7603 = vmatprep.subr.bf16.mxu0 %v10367_v45 }
 0x36b   : > { %7644 = vmatprep.subr.bf16.mxu1 %v10370_v41  ;;  %v10425_v41 = vld [vmem:[%s14037_s1 + $0x18a8] ss:$16 sps:$4 sm:$0xff]  }
 0x36d   : > { %7604 = vmatpush2.bf16.msra.mxu0 %v10365_v9  ;;  %v10428_v9 = vld [vmem:[%s14037_s1 + $0x1aa8] ss:$16 sps:$4 sm:$0xff]  }
 0x36e   : > { %7645 = vmatpush2.bf16.msra.mxu1 %v10368_v15  ;;  %7605 = vmatprep.subr.bf16.mxu0 %v10373_v44  ;;  %v10431_v44 = vld [vmem:[%s14037_s1 + $0x1888] ss:$16 sps:$4 sm:$0xff]  }
 0x36f   : > { %7646 = vmatprep.subr.bf16.mxu1 %v10376_v48  ;;  %v10434_v48 = vld [vmem:[%s14037_s1 + $0x1a88] ss:$16 sps:$4 sm:$0xff]  }
 0x371   : > { %7606 = vmatpush2.bf16.msra.mxu0 %v10371_v0  ;;  %v10439_v0 = vld [vmem:[%s14037_s1 + $0x186c] ss:$16 sps:$4 sm:$0xff]  }
 0x372   : > { %7647 = vmatpush2.bf16.msra.mxu1 %v10374_v1  ;;  %7607 = vmatprep.subr.bf16.mxu0 %v10379_v43  ;;  %v10442_v1 = vld [vmem:[%s14037_s1 + $0x1a6c] ss:$16 sps:$4 sm:$0xff]   ;;  %v10437_v43 = vld [vmem:[%s14037_s1 + $0x1868] ss:$16 sps:$4 sm:$0xff]  }
 0x373   : > { %7648 = vmatprep.subr.bf16.mxu1 %v10382_v46  ;;  %v10440_v46 = vld [vmem:[%s14037_s1 + $0x1a68] ss:$16 sps:$4 sm:$0xff]  }
 0x375   : > { %7608 = vmatpush2.bf16.msra.mxu0 %v10377_v27  ;;  %v10445_v27 = vld [vmem:[%s14037_s1 + $0x184c] ss:$16 sps:$4 sm:$0xff]  }
 0x376   : > { %7649 = vmatpush2.bf16.msra.mxu1 %v10380_v34  ;;  %7609 = vmatprep.subr.bf16.mxu0 %v10385_v40  ;;  %v10448_v34 = vld [vmem:[%s14037_s1 + $0x1a4c] ss:$16 sps:$4 sm:$0xff]   ;;  %v10443_v40 = vld [vmem:[%s14037_s1 + $0x1848] ss:$16 sps:$4 sm:$0xff]  }
 0x377   : > { %7650 = vmatprep.subr.bf16.mxu1 %v10388_v50  ;;  %v10446_v50 = vld [vmem:[%s14037_s1 + $0x1a48] ss:$16 sps:$4 sm:$0xff]  }
 0x379   : > { %7610 = vmatpush2.bf16.msra.mxu0 %v10383_v53  ;;  %v10451_v53 = vld [vmem:[%s14037_s1 + $0x182c] ss:$16 sps:$4 sm:$0xff]  }
 0x37a   : > { %7651 = vmatpush2.bf16.msra.mxu1 %v10386_v54  ;;  %7611 = vmatprep.subr.bf16.mxu0 %v10391_v57  ;;  %v10454_v54 = vld [vmem:[%s14037_s1 + $0x1a2c] ss:$16 sps:$4 sm:$0xff]   ;;  %v10449_v57 = vld [vmem:[%s14037_s1 + $0x1828] ss:$16 sps:$4 sm:$0xff]  }
 0x37b   : > { %7652 = vmatprep.subr.bf16.mxu1 %v10394_v35  ;;  %v10452_v35 = vld [vmem:[%s14037_s1 + $0x1a28] ss:$16 sps:$4 sm:$0xff]  }
 0x37d   : > { %7612 = vmatpush2.bf16.msra.mxu0 %v10389_v58  ;;  %v10457_v58 = vld [vmem:[%s14037_s1 + $0x180c] ss:$16 sps:$4 sm:$0xff]  }
 0x37e   : > { %7653 = vmatpush2.bf16.msra.mxu1 %v10392_v21  ;;  %7613 = vmatprep.subr.bf16.mxu0 %v10397_v22  ;;  %v10460_v21 = vld [vmem:[%s14037_s1 + $0x1a0c] ss:$16 sps:$4 sm:$0xff]   ;;  %v10455_v22 = vld [vmem:[%s14037_s1 + $0x1808] ss:$16 sps:$4 sm:$0xff]  }
 0x37f   : > { %7654 = vmatprep.subr.bf16.mxu1 %v10400_v3  ;;  %v10458_v3 = vld [vmem:[%s14037_s1 + $0x1a08] ss:$16 sps:$4 sm:$0xff]  }
 0x381   : > { %7614 = vmatpush2.bf16.msra.mxu0 %v10395_v5  ;;  %v10463_v5 = vld [vmem:[%s14037_s1 + $0x19ec] ss:$16 sps:$4 sm:$0xff]  }
 0x382   : > { %7655 = vmatpush2.bf16.msra.mxu1 %v10398_v7  ;;  %7615 = vmatprep.subr.bf16.mxu0 %v10403_v20  ;;  %v10466_v7 = vld [vmem:[%s14037_s1 + $0x1bec] ss:$16 sps:$4 sm:$0xff]   ;;  %v10461_v20 = vld [vmem:[%s14037_s1 + $0x19e8] ss:$16 sps:$4 sm:$0xff]  }
 0x383   : > { %7656 = vmatprep.subr.bf16.mxu1 %v10406_v63  ;;  %v10464_v63 = vld [vmem:[%s14037_s1 + $0x1be8] ss:$16 sps:$4 sm:$0xff]  }
 0x385   : > { %7616 = vmatpush2.bf16.msra.mxu0 %v10401_v13  ;;  %v10469_v13 = vld [vmem:[%s14037_s1 + $0x19cc] ss:$16 sps:$4 sm:$0xff]  }
 0x386   : > { %7657 = vmatpush2.bf16.msra.mxu1 %v10404_v31  ;;  %7617 = vmatprep.subr.bf16.mxu0 %v10409_v32  ;;  %v10472_v31 = vld [vmem:[%s14037_s1 + $0x1bcc] ss:$16 sps:$4 sm:$0xff]   ;;  %v10467_v32 = vld [vmem:[%s14037_s1 + $0x19c8] ss:$16 sps:$4 sm:$0xff]  }
 0x387   : > { %7658 = vmatprep.subr.bf16.mxu1 %v10412_v33  ;;  %v10470_v33 = vld [vmem:[%s14037_s1 + $0x1bc8] ss:$16 sps:$4 sm:$0xff]  }
 0x389   : > { %7618 = vmatpush2.bf16.msra.mxu0 %v10407_v14  ;;  %v10475_v14 = vld [vmem:[%s14037_s1 + $0x19ac] ss:$16 sps:$4 sm:$0xff]  }
 0x38a   : > { %7659 = vmatpush2.bf16.msra.mxu1 %v10410_v16  ;;  %7669 = vmatprep.subr.bf16.mxu0 %v10415_v38  ;;  %v10478_v16 = vld [vmem:[%s14037_s1 + $0x1bac] ss:$16 sps:$4 sm:$0xff]   ;;  %v10473_v38 = vld [vmem:[%s14037_s1 + $0x19a8] ss:$16 sps:$4 sm:$0xff]  }
 0x38b   : > { %7710 = vmatprep.subr.bf16.mxu1 %v10418_v17  ;;  %v10476_v17 = vld [vmem:[%s14037_s1 + $0x1ba8] ss:$16 sps:$4 sm:$0xff]  }
 0x38c   : > { %v7375_v56 = vpop.f32.mrf.mxu0  ;;  %7620 = vmatmul.mubr.bf16.vlgmr.msra.gmra.mxu0 %v11744_v23  ;;  %v10427_v23 = vld [vmem:[%s14037_s1 + $0x18ac] ss:$16 sps:$4 sm:$0xff]  }
 0x38d   : > { %v7416_v60 = vpop.f32.mrf.mxu1  ;;  %7661 = vmatmul.mubr.bf16.vlgmr.msra.gmra.mxu1 %v11747_v24  ;;  %v7376_v25 = vadd.f32 %v7375_v56, %v13443_v19  ;;  %7670 = vmatpush1.bf16.msra.mxu0 %v10413_v59  ;;  %v10430_v24 = vld [vmem:[%s14037_s1 + $0x1aac] ss:$16 sps:$4 sm:$0xff]  }
 0x38e   : > { %7711 = vmatpush1.bf16.msra.mxu1 %v10416_v62  ;;  %v7377_v26 = vpop.f32.mrf.mxu0  ;;  %7671 = vmatprep.subr.bf16.mxu0 %v10421_v18  ;;  %v10481_v59 = vld [vmem:[%s14037_s1 + $0x198c] ss:$16 sps:$4 sm:$0xff]   ;;  %v10479_v18 = vld [vmem:[%s14037_s1 + $0x1988] ss:$16 sps:$4 sm:$0xff]  }
 0x38f   : > { %v7418_v28 = vpop.f32.mrf.mxu1  ;;  %7712 = vmatprep.subr.bf16.mxu1 %v10424_v55  ;;  %v13645_v19 = vadd.f32 %v7416_v60, %v7376_v25  ;;  %v7378_v39 = vadd.f32 %v7377_v26, %v13448_v10  ;;  %7701 = vmatprep.mubr.bf16.mxu0 %v11980_v47  ;;  %v10433_v47 = vld [vmem:[%s14037_s1 + $0x188c] ss:$16 sps:$4 sm:$0xff]   ;;  %v10482_v55 = vld [vmem:[%s14037_s1 + $0x1b88] ss:$16 sps:$4 sm:$0xff]  }
 0x390   : > { %7742 = vmatprep.mubr.bf16.mxu1 %v11984_v52  ;;  %v7379_v29 = vpop.f32.mrf.mxu0  ;;  %v10436_v52 = vld [vmem:[%s14037_s1 + $0x1a8c] ss:$16 sps:$4 sm:$0xff]   ;;  %v10485_v25 = vld [vmem:[%s14037_s1 + $0x1968] ss:$16 sps:$4 sm:$0xff]  }
 0x391   : > { %v7420_v30 = vpop.f32.mrf.mxu1  ;;  %v13650_v45 = vadd.f32 %v7418_v28, %v7378_v39  ;;  %7672 = vmatpush1.bf16.msra.mxu0 %v10419_v4  ;;  %v10484_v62 = vld [vmem:[%s14037_s1 + $0x1b8c] ss:$16 sps:$4 sm:$0xff]   ;;  %v10488_v4 = vld [vmem:[%s14037_s1 + $0x1b68] ss:$16 sps:$4 sm:$0xff]  }
 0x392   : > { %7713 = vmatpush1.bf16.msra.mxu1 %v10422_v8  ;;  %v7380_v15 = vpop.f32.mrf.mxu0  ;;  %7673 = vmatprep.subr.bf16.mxu0 %v10427_v23  ;;  %v10487_v56 = vld [vmem:[%s14037_s1 + $0x196c] ss:$16 sps:$4 sm:$0xff]   ;;  %v10491_v28 = vld [vmem:[%s14037_s1 + $0x1948] ss:$16 sps:$4 sm:$0xff]  }
 0x393   : > { %v7421_v10 = vpop.f32.mrf.mxu1  ;;  %7714 = vmatprep.subr.bf16.mxu1 %v10430_v24  ;;  %v10490_v60 = vld [vmem:[%s14037_s1 + $0x1b6c] ss:$16 sps:$4 sm:$0xff]   ;;  %v10494_v23 = vld [vmem:[%s14037_s1 + $0x1b48] ss:$16 sps:$4 sm:$0xff]  }
 0x394   : > { %v10493_v8 = vld [vmem:[%s14037_s1 + $0x194c] ss:$16 sps:$4 sm:$0xff]   ;;  %v10497_v29 = vld [vmem:[%s14037_s1 + $0x1928] ss:$16 sps:$4 sm:$0xff]  }
 0x395   : > { %7674 = vmatpush1.bf16.msra.mxu0 %v10425_v41  ;;  %v10496_v26 = vld [vmem:[%s14037_s1 + $0x1b4c] ss:$16 sps:$4 sm:$0xff]   ;;  %v10500_v30 = vld [vmem:[%s14037_s1 + $0x1b28] ss:$16 sps:$4 sm:$0xff]  }
 0x396   : > { %7715 = vmatpush1.bf16.msra.mxu1 %v10428_v9  ;;  %7675 = vmatprep.subr.bf16.mxu0 %v10433_v47  ;;  %v10499_v24 = vld [vmem:[%s14037_s1 + $0x192c] ss:$16 sps:$4 sm:$0xff]   ;;  %v10503_v15 = vld [vmem:[%s14037_s1 + $0x1908] ss:$16 sps:$4 sm:$0xff]  }
 0x397   : > { %7716 = vmatprep.subr.bf16.mxu1 %v10436_v52  ;;  %v10502_v39 = vld [vmem:[%s14037_s1 + $0x1b2c] ss:$16 sps:$4 sm:$0xff]   ;;  %v10506_v10 = vld [vmem:[%s14037_s1 + $0x1b08] ss:$16 sps:$4 sm:$0xff]  }
 0x398   : > { %v10505_v41 = vld [vmem:[%s14037_s1 + $0x190c] ss:$16 sps:$4 sm:$0xff]  }
 0x399   : > { %7676 = vmatpush1.bf16.msra.mxu0 %v10431_v44  ;;  %v10508_v9 = vld [vmem:[%s14037_s1 + $0x1b0c] ss:$16 sps:$4 sm:$0xff]   ;;  %v10509_v44 = vld [vmem:[%s14037_s1 + $0x1ce8] ss:$16 sps:$4 sm:$0xff]  }
 0x39a   : > { %7717 = vmatpush1.bf16.msra.mxu1 %v10434_v48  ;;  %7677 = vmatprep.subr.bf16.mxu0 %v10439_v0  ;;  %v10511_v47 = vld [vmem:[%s14037_s1 + $0x1cec] ss:$16 sps:$4 sm:$0xff]   ;;  %v10512_v48 = vld [vmem:[%s14037_s1 + $0x1ee8] ss:$16 sps:$4 sm:$0xff]  }
 0x39b   : > { %7718 = vmatprep.subr.bf16.mxu1 %v10442_v1  ;;  %v10514_v52 = vld [vmem:[%s14037_s1 + $0x1eec] ss:$16 sps:$4 sm:$0xff]  }
 0x39c   : > { %v10517_v0 = vld [vmem:[%s14037_s1 + $0x1ccc] ss:$16 sps:$4 sm:$0xff]  }
 0x39d   : > { %7678 = vmatpush1.bf16.msra.mxu0 %v10437_v43  ;;  %v10520_v1 = vld [vmem:[%s14037_s1 + $0x1ecc] ss:$16 sps:$4 sm:$0xff]  }
 0x39e   : > { %7719 = vmatpush1.bf16.msra.mxu1 %v10440_v46  ;;  %7679 = vmatprep.subr.bf16.mxu0 %v10445_v27 }
 0x39f   : > { %7720 = vmatprep.subr.bf16.mxu1 %v10448_v34  ;;  %v10515_v34 = vld [vmem:[%s14037_s1 + $0x1cc8] ss:$16 sps:$4 sm:$0xff]  }
 0x3a1   : > { %7680 = vmatpush1.bf16.msra.mxu0 %v10443_v40  ;;  %v10518_v40 = vld [vmem:[%s14037_s1 + $0x1ec8] ss:$16 sps:$4 sm:$0xff]  }
 0x3a2   : > { %7721 = vmatpush1.bf16.msra.mxu1 %v10446_v50  ;;  %7681 = vmatprep.subr.bf16.mxu0 %v10451_v53 }
 0x3a3   : > { %7722 = vmatprep.subr.bf16.mxu1 %v10454_v54 }
 0x3a5   : > { %7682 = vmatpush1.bf16.msra.mxu0 %v10449_v57 }
 0x3a6   : > { %7723 = vmatpush1.bf16.msra.mxu1 %v10452_v35  ;;  %7683 = vmatprep.subr.bf16.mxu0 %v10457_v58 }
 0x3a7   : > { %7724 = vmatprep.subr.bf16.mxu1 %v10460_v21  ;;  %v10521_v21 = vld [vmem:[%s14037_s1 + $0x1ca8] ss:$16 sps:$4 sm:$0xff]  }
 0x3a9   : > { %7684 = vmatpush1.bf16.msra.mxu0 %v10455_v22  ;;  %v10524_v22 = vld [vmem:[%s14037_s1 + $0x1ea8] ss:$16 sps:$4 sm:$0xff]  }
 0x3aa   : > { %7725 = vmatpush1.bf16.msra.mxu1 %v10458_v3  ;;  %7685 = vmatprep.subr.bf16.mxu0 %v10463_v5  ;;  %v10527_v5 = vld [vmem:[%s14037_s1 + $0x1c88] ss:$16 sps:$4 sm:$0xff]  }
 0x3ab   : > { %7726 = vmatprep.subr.bf16.mxu1 %v10466_v7  ;;  %v10530_v7 = vld [vmem:[%s14037_s1 + $0x1e88] ss:$16 sps:$4 sm:$0xff]  }
 0x3ad   : > { %7686 = vmatpush2.bf16.msra.mxu0 %v10461_v20  ;;  %v10535_v20 = vld [vmem:[%s14037_s1 + $0x1c6c] ss:$16 sps:$4 sm:$0xff]  }
 0x3ae   : > { %7727 = vmatpush2.bf16.msra.mxu1 %v10464_v63  ;;  %7687 = vmatprep.subr.bf16.mxu0 %v10469_v13  ;;  %v10538_v63 = vld [vmem:[%s14037_s1 + $0x1e6c] ss:$16 sps:$4 sm:$0xff]   ;;  %v10533_v13 = vld [vmem:[%s14037_s1 + $0x1c68] ss:$16 sps:$4 sm:$0xff]  }
 0x3af   : > { %7728 = vmatprep.subr.bf16.mxu1 %v10472_v31  ;;  %v10536_v31 = vld [vmem:[%s14037_s1 + $0x1e68] ss:$16 sps:$4 sm:$0xff]  }
 0x3b1   : > { %7688 = vmatpush2.bf16.msra.mxu0 %v10467_v32  ;;  %v10541_v32 = vld [vmem:[%s14037_s1 + $0x1c4c] ss:$16 sps:$4 sm:$0xff]  }
 0x3b2   : > { %7729 = vmatpush2.bf16.msra.mxu1 %v10470_v33  ;;  %7689 = vmatprep.subr.bf16.mxu0 %v10475_v14  ;;  %v10544_v33 = vld [vmem:[%s14037_s1 + $0x1e4c] ss:$16 sps:$4 sm:$0xff]   ;;  %v10539_v14 = vld [vmem:[%s14037_s1 + $0x1c48] ss:$16 sps:$4 sm:$0xff]  }
 0x3b3   : > { %7730 = vmatprep.subr.bf16.mxu1 %v10478_v16  ;;  %v10542_v16 = vld [vmem:[%s14037_s1 + $0x1e48] ss:$16 sps:$4 sm:$0xff]  }
 0x3b5   : > { %7690 = vmatpush2.bf16.msra.mxu0 %v10473_v38  ;;  %v10547_v38 = vld [vmem:[%s14037_s1 + $0x1c2c] ss:$16 sps:$4 sm:$0xff]  }
 0x3b6   : > { %7731 = vmatpush2.bf16.msra.mxu1 %v10476_v17  ;;  %7691 = vmatprep.subr.bf16.mxu0 %v10481_v59  ;;  %v10550_v17 = vld [vmem:[%s14037_s1 + $0x1e2c] ss:$16 sps:$4 sm:$0xff]   ;;  %v10545_v59 = vld [vmem:[%s14037_s1 + $0x1c28] ss:$16 sps:$4 sm:$0xff]  }
 0x3b7   : > { %7732 = vmatprep.subr.bf16.mxu1 %v10484_v62  ;;  %v10548_v62 = vld [vmem:[%s14037_s1 + $0x1e28] ss:$16 sps:$4 sm:$0xff]  }
 0x3b9   : > { %7692 = vmatpush2.bf16.msra.mxu0 %v10479_v18  ;;  %v10553_v18 = vld [vmem:[%s14037_s1 + $0x1c0c] ss:$16 sps:$4 sm:$0xff]  }
 0x3ba   : > { %7733 = vmatpush2.bf16.msra.mxu1 %v10482_v55  ;;  %7693 = vmatprep.subr.bf16.mxu0 %v10487_v56  ;;  %v10556_v55 = vld [vmem:[%s14037_s1 + $0x1e0c] ss:$16 sps:$4 sm:$0xff]   ;;  %v10551_v56 = vld [vmem:[%s14037_s1 + $0x1c08] ss:$16 sps:$4 sm:$0xff]  }
 0x3bb   : > { %7734 = vmatprep.subr.bf16.mxu1 %v10490_v60  ;;  %v10554_v60 = vld [vmem:[%s14037_s1 + $0x1e08] ss:$16 sps:$4 sm:$0xff]  }
 0x3bd   : > { %7694 = vmatpush2.bf16.msra.mxu0 %v10485_v25  ;;  %v10559_v25 = vld [vmem:[%s14037_s1 + $0x1dec] ss:$16 sps:$4 sm:$0xff]  }
 0x3be   : > { %7735 = vmatpush2.bf16.msra.mxu1 %v10488_v4  ;;  %7695 = vmatprep.subr.bf16.mxu0 %v10493_v8  ;;  %v10562_v4 = vld [vmem:[%s14037_s1 + $0x1fec] ss:$16 sps:$4 sm:$0xff]   ;;  %v10557_v8 = vld [vmem:[%s14037_s1 + $0x1de8] ss:$16 sps:$4 sm:$0xff]  }
 0x3bf   : > { %7736 = vmatprep.subr.bf16.mxu1 %v10496_v26  ;;  %v10560_v26 = vld [vmem:[%s14037_s1 + $0x1fe8] ss:$16 sps:$4 sm:$0xff]  }
 0x3c1   : > { %7696 = vmatpush2.bf16.msra.mxu0 %v10491_v28  ;;  %v10565_v28 = vld [vmem:[%s14037_s1 + $0x1dcc] ss:$16 sps:$4 sm:$0xff]  }
 0x3c2   : > { %7737 = vmatpush2.bf16.msra.mxu1 %v10494_v23  ;;  %7697 = vmatprep.subr.bf16.mxu0 %v10499_v24  ;;  %v10568_v23 = vld [vmem:[%s14037_s1 + $0x1fcc] ss:$16 sps:$4 sm:$0xff]   ;;  %v10563_v24 = vld [vmem:[%s14037_s1 + $0x1dc8] ss:$16 sps:$4 sm:$0xff]  }
 0x3c3   : > { %7738 = vmatprep.subr.bf16.mxu1 %v10502_v39  ;;  %v10566_v39 = vld [vmem:[%s14037_s1 + $0x1fc8] ss:$16 sps:$4 sm:$0xff]  }
 0x3c5   : > { %7698 = vmatpush2.bf16.msra.mxu0 %v10497_v29  ;;  %v10571_v29 = vld [vmem:[%s14037_s1 + $0x1dac] ss:$16 sps:$4 sm:$0xff]  }
 0x3c6   : > { %7739 = vmatpush2.bf16.msra.mxu1 %v10500_v30  ;;  %7699 = vmatprep.subr.bf16.mxu0 %v10505_v41  ;;  %v10574_v30 = vld [vmem:[%s14037_s1 + $0x1fac] ss:$16 sps:$4 sm:$0xff]   ;;  %v10569_v41 = vld [vmem:[%s14037_s1 + $0x1da8] ss:$16 sps:$4 sm:$0xff]  }
 0x3c7   : > { %7740 = vmatprep.subr.bf16.mxu1 %v10508_v9  ;;  %v10572_v9 = vld [vmem:[%s14037_s1 + $0x1fa8] ss:$16 sps:$4 sm:$0xff]  }
 0x3c9   : > { %7700 = vmatpush2.bf16.msra.mxu0 %v10503_v15  ;;  %v10577_v15 = vld [vmem:[%s14037_s1 + $0x1d8c] ss:$16 sps:$4 sm:$0xff]  }
 0x3ca   : > { %7741 = vmatpush2.bf16.msra.mxu1 %v10506_v10  ;;  %7751 = vmatprep.subr.bf16.mxu0 %v10511_v47  ;;  %v10580_v10 = vld [vmem:[%s14037_s1 + $0x1f8c] ss:$16 sps:$4 sm:$0xff]   ;;  %v10575_v47 = vld [vmem:[%s14037_s1 + $0x1d88] ss:$16 sps:$4 sm:$0xff]  }
 0x3cb   : > { %7792 = vmatprep.subr.bf16.mxu1 %v10514_v52  ;;  %v10578_v52 = vld [vmem:[%s14037_s1 + $0x1f88] ss:$16 sps:$4 sm:$0xff]  }
 0x3cc   : > { %v7457_v43 = vpop.f32.mrf.mxu0  ;;  %7702 = vmatmul.mubr.bf16.vlgmr.msra.gmra.mxu0 %v11961_v36  ;;  %v10523_v36 = vld [vmem:[%s14037_s1 + $0x1cac] ss:$16 sps:$4 sm:$0xff]  }
 0x3cd   : > { %v7498_v46 = vpop.f32.mrf.mxu1  ;;  %7743 = vmatmul.mubr.bf16.vlgmr.msra.gmra.mxu1 %v11964_v37  ;;  %v7458_v27 = vadd.f32 %v7457_v43, %v13645_v19  ;;  %7752 = vmatpush1.bf16.msra.mxu0 %v10509_v44  ;;  %v10526_v37 = vld [vmem:[%s14037_s1 + $0x1eac] ss:$16 sps:$4 sm:$0xff]  }
 0x3ce   : > { %7793 = vmatpush1.bf16.msra.mxu1 %v10512_v48  ;;  %v7459_v50 = vpop.f32.mrf.mxu0  ;;  %7753 = vmatprep.subr.bf16.mxu0 %v10517_v0  ;;  %v10583_v44 = vld [vmem:[%s14037_s1 + $0x1d6c] ss:$16 sps:$4 sm:$0xff]   ;;  %v10581_v0 = vld [vmem:[%s14037_s1 + $0x1d68] ss:$16 sps:$4 sm:$0xff]  }
 0x3cf   : > { %v7500_v53 = vpop.f32.mrf.mxu1  ;;  %7794 = vmatprep.subr.bf16.mxu1 %v10520_v1  ;;  %v13847_v19 = vadd.f32 %v7498_v46, %v7458_v27  ;;  %v7460_v54 = vadd.f32 %v7459_v50, %v13650_v45  ;;  %7783 = vmatprep.mubr.bf16.mxu0 %v12197_v11  ;;  %v10529_v11 = vld [vmem:[%s14037_s1 + $0x1c8c] ss:$16 sps:$4 sm:$0xff]   ;;  %v10584_v1 = vld [vmem:[%s14037_s1 + $0x1f68] ss:$16 sps:$4 sm:$0xff]  }
 0x3d0   : > { %7824 = vmatprep.mubr.bf16.mxu1 %v12201_v12  ;;  %v7461_v57 = vpop.f32.mrf.mxu0  ;;  %v10532_v12 = vld [vmem:[%s14037_s1 + $0x1e8c] ss:$16 sps:$4 sm:$0xff]   ;;  %v10587_v27 = vld [vmem:[%s14037_s1 + $0x1d48] ss:$16 sps:$4 sm:$0xff]  }
 0x3d1   : > { %v7502_v35 = vpop.f32.mrf.mxu1  ;;  %v13852_v58 = vadd.f32 %v7500_v53, %v7460_v54  ;;  %7754 = vmatpush1.bf16.msra.mxu0 %v10515_v34  ;;  %v10586_v48 = vld [vmem:[%s14037_s1 + $0x1f6c] ss:$16 sps:$4 sm:$0xff]   ;;  %v10590_v34 = vld [vmem:[%s14037_s1 + $0x1f48] ss:$16 sps:$4 sm:$0xff]  }
 0x3d2   : > { %7795 = vmatpush1.bf16.msra.mxu1 %v10518_v40  ;;  %v7462_v3 = vpop.f32.mrf.mxu0  ;;  %7755 = vmatprep.subr.bf16.mxu0 %v10523_v36  ;;  %v10589_v43 = vld [vmem:[%s14037_s1 + $0x1d4c] ss:$16 sps:$4 sm:$0xff]   ;;  %v10593_v53 = vld [vmem:[%s14037_s1 + $0x1d28] ss:$16 sps:$4 sm:$0xff]  }
 0x3d3   : > { %v7503_v45 = vpop.f32.mrf.mxu1  ;;  %7796 = vmatprep.subr.bf16.mxu1 %v10526_v37  ;;  %v10592_v46 = vld [vmem:[%s14037_s1 + $0x1f4c] ss:$16 sps:$4 sm:$0xff]   ;;  %v10596_v36 = vld [vmem:[%s14037_s1 + $0x1f28] ss:$16 sps:$4 sm:$0xff]  }
 0x3d4   : > { %v10595_v40 = vld [vmem:[%s14037_s1 + $0x1d2c] ss:$16 sps:$4 sm:$0xff]   ;;  %v10599_v57 = vld [vmem:[%s14037_s1 + $0x1d08] ss:$16 sps:$4 sm:$0xff]  }
 0x3d5   : > { %7756 = vmatpush1.bf16.msra.mxu0 %v10521_v21  ;;  %v10598_v50 = vld [vmem:[%s14037_s1 + $0x1f2c] ss:$16 sps:$4 sm:$0xff]   ;;  %v10602_v35 = vld [vmem:[%s14037_s1 + $0x1f08] ss:$16 sps:$4 sm:$0xff]  }
 0x3d6   : > { %7797 = vmatpush1.bf16.msra.mxu1 %v10524_v22  ;;  %7757 = vmatprep.subr.bf16.mxu0 %v10529_v11  ;;  %v10601_v37 = vld [vmem:[%s14037_s1 + $0x1d0c] ss:$16 sps:$4 sm:$0xff]  }
 0x3d7   : > { %7798 = vmatprep.subr.bf16.mxu1 %v10532_v12  ;;  %v10604_v54 = vld [vmem:[%s14037_s1 + $0x1f0c] ss:$16 sps:$4 sm:$0xff]  }
 0x3d9   : > { %7758 = vmatpush1.bf16.msra.mxu0 %v10527_v5 }
 0x3da   : > { %7799 = vmatpush1.bf16.msra.mxu1 %v10530_v7  ;;  %7759 = vmatprep.subr.bf16.mxu0 %v10535_v20 }
 0x3db   : > { %7800 = vmatprep.subr.bf16.mxu1 %v10538_v63 }
 0x3dd   : > { %7760 = vmatpush1.bf16.msra.mxu0 %v10533_v13 }
 0x3de   : > { %7801 = vmatpush1.bf16.msra.mxu1 %v10536_v31  ;;  %7761 = vmatprep.subr.bf16.mxu0 %v10541_v32 }
 0x3df   : > { %7802 = vmatprep.subr.bf16.mxu1 %v10544_v33 }
 0x3e1   : > { %7762 = vmatpush1.bf16.msra.mxu0 %v10539_v14 }
 0x3e2   : > { %7803 = vmatpush1.bf16.msra.mxu1 %v10542_v16  ;;  %7763 = vmatprep.subr.bf16.mxu0 %v10547_v38 }
 0x3e3   : > { %7804 = vmatprep.subr.bf16.mxu1 %v10550_v17 }
 0x3e5   : > { %7764 = vmatpush1.bf16.msra.mxu0 %v10545_v59 }
 0x3e6   : > { %7805 = vmatpush1.bf16.msra.mxu1 %v10548_v62  ;;  %7765 = vmatprep.subr.bf16.mxu0 %v10553_v18 }
 0x3e7   : > { %7806 = vmatprep.subr.bf16.mxu1 %v10556_v55 }
 0x3e9   : > { %7766 = vmatpush1.bf16.msra.mxu0 %v10551_v56 }
 0x3ea   : > { %7807 = vmatpush1.bf16.msra.mxu1 %v10554_v60  ;;  %7767 = vmatprep.subr.bf16.mxu0 %v10559_v25 }
 0x3eb   : > { %7808 = vmatprep.subr.bf16.mxu1 %v10562_v4 }
 0x3ed   : > { %7768 = vmatpush2.bf16.msra.mxu0 %v10557_v8 }
 0x3ee   : > { %7809 = vmatpush2.bf16.msra.mxu1 %v10560_v26  ;;  %7769 = vmatprep.subr.bf16.mxu0 %v10565_v28 }
 0x3ef   : > { %7810 = vmatprep.subr.bf16.mxu1 %v10568_v23 }
 0x3f1   : > { %7770 = vmatpush2.bf16.msra.mxu0 %v10563_v24 }
 0x3f2   : > { %7811 = vmatpush2.bf16.msra.mxu1 %v10566_v39  ;;  %7771 = vmatprep.subr.bf16.mxu0 %v10571_v29 }
 0x3f3   : > { %7812 = vmatprep.subr.bf16.mxu1 %v10574_v30 }
 0x3f5   : > { %7772 = vmatpush2.bf16.msra.mxu0 %v10569_v41 }
 0x3f6   : > { %7813 = vmatpush2.bf16.msra.mxu1 %v10572_v9  ;;  %7773 = vmatprep.subr.bf16.mxu0 %v10577_v15 }
 0x3f7   : > { %7814 = vmatprep.subr.bf16.mxu1 %v10580_v10 }
 0x3f9   : > { %7774 = vmatpush2.bf16.msra.mxu0 %v10575_v47 }
 0x3fa   : > { %7815 = vmatpush2.bf16.msra.mxu1 %v10578_v52  ;;  %7775 = vmatprep.subr.bf16.mxu0 %v10583_v44 }
 0x3fb   : > { %7816 = vmatprep.subr.bf16.mxu1 %v10586_v48 }
 0x3fd   : > { %7776 = vmatpush2.bf16.msra.mxu0 %v10581_v0 }
 0x3fe   : > { %7817 = vmatpush2.bf16.msra.mxu1 %v10584_v1  ;;  %7777 = vmatprep.subr.bf16.mxu0 %v10589_v43 }
 0x3ff   : > { %7818 = vmatprep.subr.bf16.mxu1 %v10592_v46 }
 0x401   : > { %7778 = vmatpush2.bf16.msra.mxu0 %v10587_v27 }
 0x402   : > { %7819 = vmatpush2.bf16.msra.mxu1 %v10590_v34  ;;  %7779 = vmatprep.subr.bf16.mxu0 %v10595_v40 }
 0x403   : > { %7820 = vmatprep.subr.bf16.mxu1 %v10598_v50 }
 0x405   : > { %7780 = vmatpush2.bf16.msra.mxu0 %v10593_v53 }
 0x406   : > { %7821 = vmatpush2.bf16.msra.mxu1 %v10596_v36  ;;  %7781 = vmatprep.subr.bf16.mxu0 %v10601_v37 }
 0x407   : > { %7822 = vmatprep.subr.bf16.mxu1 %v10604_v54 }
 0x409   : > { %7782 = vmatpush2.bf16.msra.mxu0 %v10599_v57 }
 0x40a   : > { %7823 = vmatpush2.bf16.msra.mxu1 %v10602_v35 }
 0x40c   : > { %v7539_v21 = vpop.f32.mrf.mxu0  ;;  %7784 = vmatmul.mubr.bf16.vlgmr.msra.gmra.mxu0 %v12178_v51 }
 0x40d   : > { %v7580_v22 = vpop.f32.mrf.mxu1  ;;  %7825 = vmatmul.mubr.bf16.vlgmr.msra.gmra.mxu1 %v12181_v6  ;;  %v7540_v3 = vadd.f32 %v7539_v21, %v13847_v19 }
 0x40e   : > { %v7541_v45 = vpop.f32.mrf.mxu0 }
 0x40f   : > { %v7582_v11 = vpop.f32.mrf.mxu1  ;;  %v7581_v12 = vadd.f32 %v7580_v22, %v7540_v3  ;;  %v7542_v5 = vadd.f32 %v7541_v45, %v13852_v58 }
 0x410   : > { %v7543_v7 = vpop.f32.mrf.mxu0 }
 0x411   : > { %v7584_v20 = vpop.f32.mrf.mxu1  ;;  %v7583_v63 = vadd.f32 %v7582_v11, %v7542_v5 }
 0x412   : > { %v7544_v13 = vpop.f32.mrf.mxu0 }
 0x413   : > { %v7585_v31 = vpop.f32.mrf.mxu1 }
 0x44c   : > { %v7621_v32 = vpop.f32.mrf.mxu0 }
 0x44d   : > { %v7662_v33 = vpop.f32.mrf.mxu1  ;;  %v7622_v14 = vadd.f32 %v7621_v32, %v7581_v12 }
 0x44e   : > { %v7623_v16 = vpop.f32.mrf.mxu0 }
 0x44f   : > { %v7664_v38 = vpop.f32.mrf.mxu1  ;;  %v7663_v51 = vadd.f32 %v7662_v33, %v7622_v14  ;;  %v7624_v17 = vadd.f32 %v7623_v16, %v7583_v63 }
 0x450   : > { %v7625_v6 = vpop.f32.mrf.mxu0 }
 0x451   : > { %v7666_v59 = vpop.f32.mrf.mxu1  ;;  %v7665_v19 = vadd.f32 %v7664_v38, %v7624_v17 }
 0x452   : > { %v7626_v62 = vpop.f32.mrf.mxu0 }
 0x453   : > { %v7667_v18 = vpop.f32.mrf.mxu1 }
 0x48c   : > { %v7703_v55 = vpop.f32.mrf.mxu0 }
 0x48d   : > { %v7744_v56 = vpop.f32.mrf.mxu1  ;;  %v7704_v58 = vadd.f32 %v7703_v55, %v7663_v51 }
 0x48e   : > { %v7705_v60 = vpop.f32.mrf.mxu0 }
 0x48f   : > { %v7746_v25 = vpop.f32.mrf.mxu1  ;;  %v7745_v4 = vadd.f32 %v7744_v56, %v7704_v58  ;;  %v7706_v24 = vadd.f32 %v7705_v60, %v7665_v19 }
 0x490   : > { %v7707_v8 = vpop.f32.mrf.mxu0 }
 0x491   : > { %v7748_v26 = vpop.f32.mrf.mxu1  ;;  %v7747_v30 = vadd.f32 %v7746_v25, %v7706_v24 }
 0x492   : > { %v7708_v28 = vpop.f32.mrf.mxu0 }
 0x493   : > { %v7749_v23 = vpop.f32.mrf.mxu1 }
 0x4cc   : > { %v7785_v39 = vpop.f32.mrf.mxu0 }
 0x4cd   : > { %v7826_v29 = vpop.f32.mrf.mxu1  ;;  %v7786_v41 = vadd.f32 %v7785_v39, %v7745_v4  ;;  %v7947_v39 = vrot.slane %v9046_v42, %v10798_v49 }
 0x4ce   : > { %v7787_v9 = vpop.f32.mrf.mxu0 }
 0x4cf   : > { %v7828_v15 = vpop.f32.mrf.mxu1  ;;  %v7827_v10 = vadd.f32 %v7826_v29, %v7786_v41  ;;  %v7788_v47 = vadd.f32 %v7787_v9, %v7747_v30 }
 0x4d0   : > { %v7789_v52 = vpop.f32.mrf.mxu0 }
 0x4d1   : > { %v7830_v44 = vpop.f32.mrf.mxu1  ;;  %v7848_v48 = vsel %vm7833_vm0, %v7827_v10, 0.0  ;;  %v7829_v0 = vadd.f32 %v7828_v15, %v7788_v47 }
 0x4d2   : > { %v7849_v1 = vrot.slane %v7848_v48, 4  ;;  %v7790_v43 = vpop.f32.mrf.mxu0 }
 0x4d3   : > { %v7831_v46 = vpop.f32.mrf.mxu1  ;;  %v7855_v27 = vsel %vm7833_vm0, %v7829_v0, 0.0 }
 0x4d4   : > { %v7850_v34 = vadd.f32 %v7849_v1, %v7848_v48  ;;  %v7856_v40 = vrot.slane %v7855_v27, 4 }
 0x4d6   : > { %v7851_v50 = vrot.slane %v7850_v34, 2  ;;  %v7857_v53 = vadd.f32 %v7856_v40, %v7855_v27 }
 0x4d8   : > { %v7852_v36 = vadd.f32 %v7851_v50, %v7850_v34  ;;  %v7858_v37 = vrot.slane %v7857_v53, 2 }
 0x4da   : > { %v7853_v54 = vrot.slane %v7852_v36, 1  ;;  %v7859_v57 = vadd.f32 %v7858_v37, %v7857_v53 }
 0x4dc   : > { %v7854_v35 = vadd.f32 %v7853_v54, %v7852_v36  ;;  %v7860_v21 = vrot.slane %v7859_v57, 1 }
 0x4de   : > { %v7865_v22 = vmul.f32 0.25, %v7854_v35  ;;  %v7861_v3 = vadd.f32 %v7860_v21, %v7859_v57 }
 0x4e0   : > { %v7869_v45 = vsub.f32 %v7827_v10, %v7865_v22  ;;  %v7866_v11 = vmul.f32 0.25, %v7861_v3 }
 0x4e2   : > { %v7873_v12 = vmul.f32 %v7869_v45, %v7869_v45  ;;  %v7870_v5 = vsub.f32 %v7829_v0, %v7866_v11 }
 0x4e4   : > { %v7889_v7 = vsel %vm7833_vm0, %v7873_v12, 0.0  ;;  %v7874_v20 = vmul.f32 %v7870_v5, %v7870_v5 }
 0x4e5   : > { %v7890_v63 = vrot.slane %v7889_v7, 4 }
 0x4e6   : > { %v7896_v13 = vsel %vm7833_vm0, %v7874_v20, 0.0 }
 0x4e7   : > { %v7891_v31 = vadd.f32 %v7890_v63, %v7889_v7  ;;  %v7897_v32 = vrot.slane %v7896_v13, 4 }
 0x4e9   : > { %v7892_v33 = vrot.slane %v7891_v31, 2  ;;  %v7898_v14 = vadd.f32 %v7897_v32, %v7896_v13 }
 0x4eb   : > { %v7893_v16 = vadd.f32 %v7892_v33, %v7891_v31  ;;  %v7899_v38 = vrot.slane %v7898_v14, 2 }
 0x4ed   : > { %v7894_v51 = vrot.slane %v7893_v16, 1  ;;  %v7900_v17 = vadd.f32 %v7899_v38, %v7898_v14 }
 0x4ef   : > { %v7895_v6 = vadd.f32 %v7894_v51, %v7893_v16  ;;  %v7901_v59 = vrot.slane %v7900_v17, 1 }
 0x4f1   : > { %v7905_v19 = vmul.f32 0.25, %v7895_v6  ;;  %v7902_v62 = vadd.f32 %v7901_v59, %v7900_v17 }
 0x4f3   : > { %v7909_v18 = vadd.f32 1e-05, %v7905_v19  ;;  %v7906_v55 = vmul.f32 0.25, %v7902_v62 }
 0x4f5   : > { %10609 = vrsqrt.f32 %v7909_v18  ;;  %v7910_v56 = vadd.f32 1e-05, %v7906_v55 }
 0x4f7   : > { %10611 = vrsqrt.f32 %v7910_v56 }
 0x502   : > { %v10610_v58 = vpop.eup %10609 }
 0x503   : > { %v7917_v60 = vmul.f32 %v10610_v58, %v7869_v45 }
 0x504   : > { %v10612_v25 = vpop.eup %10611 }
 0x505   : > { %v7925_v4 = vmul.f32 0.2, %v7917_v60  ;;  %v7918_v8 = vmul.f32 %v10612_v25, %v7870_v5  ;;  %vm7921_vm3 = vcmp.ge.f32.partialorder %v7917_v60, 0.0 }
 0x507   : > { %vm7922_vm4 = vcmp.ge.f32.partialorder %v7918_v8, 0.0  ;;  %v7926_v26 = vmul.f32 0.2, %v7918_v8  ;;  %v7929_v28 = vsel %vm7921_vm3, %v7917_v60, %v7925_v4 }
 0x509   : > { %v7930_v23 = vsel %vm7922_vm4, %v7918_v8, %v7926_v26 }
 0x50a   : > { %v9047_v24 = vpack.c.bf16 %v7930_v23, %v7929_v28 }
 0x50c   : > { %v7954_v29 = vrot.slane %v9047_v24, %v10798_v49 }
 0x50e   : > { %v7955_v30 = vcombine.low %v7947_v39, %v7954_v29 }
 0x510   : > { %7957 = vst [vmem:[%s170_s4] sm:$0xff] %v7955_v30 }
 0x511 PF: > { %s13_s12 = sadd.s32 1, %s10620_s12  }
 0x512   : > { %p10_p4 = scmp.ge.s32.totalorder %s13_s12, 4  }
 0x514   :  { %12 = sbr.rel (!%p10_p4) target bundleno = 1 (0x1), region = 62 }

</bundles_post_ra>
